<compile_context>
chip_gen: v6e
topology: v6e:2x2x1
jax: 0.10.0
libtpu: 0.0.40
codegen_flags: <defaults>
</compile_context>

<pallas_src>
import math
from functools import partial

import numpy as np
import jax
import jax.numpy as jnp
from jax.experimental import pallas as pl
from jax.experimental.pallas import tpu as pltpu

_BN_EPS = 1e-5
_BN_SCALE = float(1.0 / math.sqrt(1.0 + _BN_EPS))  # eval-mode BatchNorm1d, default stats
_LN_EPS = 1e-5


def _gelu(x):
    # TODO(synk): PyTorch nn.GELU() default is erf-exact; tanh approximation is used
    # because erf lowering is not guaranteed on Pallas TPU (deviation ~1e-3).
    c = math.sqrt(2.0 / math.pi)
    return 0.5 * x * (1.0 + jnp.tanh(c * (x + 0.044715 * x * x * x)))


# ----------------------------- Pallas kernels ------------------------------

def _stem_pool_kernel(x_ref, w1_ref, w2_ref, m_ref, o_ref):
    """Stem (2x [conv1x1 pad1 no-bias -> GELU -> BN]) + MaxPool1d(3,2,1).

    BN1 is folded into w2, BN2 is folded into aggregate1's weights (maxpool
    commutes with a positive scale).  The stem's zero pad rows and the maxpool
    window selection (incl. its -inf padding semantics) are baked into the
    constant selection matrices m_ref (3, Tpool, T0)."""
    x = x_ref[0]                                                   # (T0, emb)
    g1 = _gelu(jnp.dot(x, w1_ref[...], preferred_element_type=jnp.float32))
    core = _gelu(jnp.dot(g1, w2_ref[...], preferred_element_type=jnp.float32))
    t0 = jnp.dot(m_ref[0], core, preferred_element_type=jnp.float32)
    t1 = jnp.dot(m_ref[1], core, preferred_element_type=jnp.float32)
    t2 = jnp.dot(m_ref[2], core, preferred_element_type=jnp.float32)
    o_ref[0] = jnp.maximum(jnp.maximum(t0, t1), t2)


def _stage_kernel(x_ref, a_ref, wa_ref, ba_ref, sh_ref, wl_ref, bl_ref,
                  dww_ref, dwb_ref, wf1_ref, bf1_ref, dwfw_ref, dwfb_ref,
                  wf2_ref, bf2_ref, o_ref):
    """Fused Aggregate (conv k3 s2 + LayerNorm(C,T)) + Block (LPU, 3x DWConv/GELU/BN,
    IRFFN) for one batch element. BN scales pre-folded except the one feeding the
    IRFFN residual (applied explicitly)."""
    x = x_ref[0]                                                   # (Tin, Cin)

    # Aggregate: stride-2 taps via constant selection matrices.
    y = jnp.dot(jnp.dot(a_ref[0], x, preferred_element_type=jnp.float32),
                wa_ref[0], preferred_element_type=jnp.float32)
    y = y + jnp.dot(jnp.dot(a_ref[1], x, preferred_element_type=jnp.float32),
                    wa_ref[1], preferred_element_type=jnp.float32)
    y = y + jnp.dot(jnp.dot(a_ref[2], x, preferred_element_type=jnp.float32),
                    wa_ref[2], preferred_element_type=jnp.float32)
    y = y + ba_ref[...]

    # LayerNorm over (C, T) jointly, no affine.
    n = float(y.shape[0] * y.shape[1])
    mu = jnp.sum(jnp.sum(y, axis=1, keepdims=True), axis=0, keepdims=True) / n
    msq = jnp.sum(jnp.sum(y * y, axis=1, keepdims=True), axis=0, keepdims=True) / n
    a = (y - mu) * jax.lax.rsqrt(msq - mu * mu + _LN_EPS)

    prev = sh_ref[0]                                               # (T, T) select x[t-1]
    nxt = sh_ref[1]                                                # (T, T) select x[t+1]

    # LPU: 1x1 conv + residual
    x = jnp.dot(a, wl_ref[...], preferred_element_type=jnp.float32) + bl_ref[...] + a

    # 3x (depthwise conv k3 p1 -> GELU -> BN); BN of dw1/dw2 folded into the next
    # conv's taps at prepare time, BN of dw3 applied explicitly (feeds residual).
    for j in range(3):
        w = dww_ref[j]                                             # (3, C)
        d = (jnp.dot(prev, x, preferred_element_type=jnp.float32) * w[0:1, :]
             + x * w[1:2, :]
             + jnp.dot(nxt, x, preferred_element_type=jnp.float32) * w[2:3, :]
             + dwb_ref[j])
        x = _gelu(d)
        if j == 2:
            x = x * _BN_SCALE

    # IRFFN: x + conv2(BN(gelu(BN(dw(gelu(BN(conv1(x)))))))) with BNs folded.
    h = _gelu(jnp.dot(x, wf1_ref[...], preferred_element_type=jnp.float32) + bf1_ref[...])
    wf = dwfw_ref[...]                                             # (3, E)
    h = _gelu(jnp.dot(prev, h, preferred_element_type=jnp.float32) * wf[0:1, :]
              + h * wf[1:2, :]
              + jnp.dot(nxt, h, preferred_element_type=jnp.float32) * wf[2:3, :]
              + dwfb_ref[...])
    h = jnp.dot(h, wf2_ref[...], preferred_element_type=jnp.float32) + bf2_ref[...]

    o_ref[0] = x + h


def _head_kernel(r1_ref, r2_ref, r3_ref, r4_ref,
                 wt1_ref, bt1_ref, wt2_ref, bt2_ref, wt3_ref, bt3_ref,
                 wt4_ref, bt4_ref, u21_ref, u32_ref, u43_ref, ws_ref, bs_ref,
                 o_ref):
    """Fused FPN top path (top1..4, nearest interp as constant matmuls, adds)
    plus smooth1 (conv k3, valid)."""
    r4 = jnp.dot(r4_ref[0], wt4_ref[...], preferred_element_type=jnp.float32) + bt4_ref[...]
    r3 = jnp.dot(r3_ref[0], wt3_ref[...], preferred_element_type=jnp.float32) + bt3_ref[...]
    r3 = jnp.dot(u43_ref[...], r4, preferred_element_type=jnp.float32) + r3
    r2 = jnp.dot(r2_ref[0], wt2_ref[...], preferred_element_type=jnp.float32) + bt2_ref[...]
    r2 = jnp.dot(u32_ref[...], r3, preferred_element_type=jnp.float32) + r2
    r1 = jnp.dot(r1_ref[0], wt1_ref[...], preferred_element_type=jnp.float32) + bt1_ref[...]
    r1 = jnp.dot(u21_ref[...], r2, preferred_element_type=jnp.float32) + r1

    t_out = r1.shape[0] - 2
    y = (jnp.dot(r1[0:t_out, :], ws_ref[0], preferred_element_type=jnp.float32)
         + jnp.dot(r1[1:t_out + 1, :], ws_ref[1], preferred_element_type=jnp.float32)
         + jnp.dot(r1[2:t_out + 2, :], ws_ref[2], preferred_element_type=jnp.float32)
         + bs_ref[...])
    o_ref[0] = y


# -------------------------- pallas_call plumbing ----------------------------

_PPARAMS = pltpu.CompilerParams(dimension_semantics=("parallel",))


def _spec_batched(shape):
    nd = len(shape)
    return pl.BlockSpec((1,) + tuple(shape[1:]),
                        lambda b, _nd=nd: (b,) + (0,) * (_nd - 1))


def _spec_full(shape):
    nd = len(shape)
    return pl.BlockSpec(tuple(shape), lambda b, _nd=nd: (0,) * _nd)


def _call(kernel, out_tc, batched, consts, batch):
    t, c = out_tc
    in_specs = ([_spec_batched(a.shape) for a in batched]
                + [_spec_full(a.shape) for a in consts])
    return pl.pallas_call(
        kernel,
        grid=(batch,),
        out_shape=jax.ShapeDtypeStruct((batch, t, c), jnp.float32),
        in_specs=in_specs,
        out_specs=_spec_batched((batch, t, c)),
        compiler_params=_PPARAMS,
    )(*(list(batched) + list(consts)))


# -------------------- constant selection matrices (numpy) -------------------

def _compute_times(t0):
    t_stem = t0 + 4                       # two k=1, pad=1 convs
    t_pool = (t_stem + 2 - 3) // 2 + 1    # MaxPool1d(3, 2, 1)
    ts, t = [], t_pool
    for _ in range(4):
        t = (t - 3) // 2 + 1              # Conv1d(k=3, s=2, p=0)
        ts.append(t)
    return t_pool, ts


def _pool_select_matrices(t0):
    # maxpool taps in terms of the stem "core" (length t0); stem output rows
    # {0, 1, t0+2, t0+3} are exact zeros and map to all-zero selector rows.
    t_stem = t0 + 4
    t_pool = (t_stem + 2 - 3) // 2 + 1
    m = np.zeros((3, t_pool, t0), np.float32)
    for j in range(t_pool):
        for k, s in enumerate((max(2 * j - 1, 0), 2 * j, 2 * j + 1)):
            if 2 <= s <= t0 + 1:
                m[k, j, s - 2] = 1.0
    return m


def _agg_select_matrices(t_in):
    t_out = (t_in - 3) // 2 + 1
    a = np.zeros((3, t_out, t_in), np.float32)
    for j in range(t_out):
        for k in range(3):
            a[k, j, 2 * j + k] = 1.0
    return a


def _shift_matrices(t):
    s = np.zeros((2, t, t), np.float32)
    for i in range(1, t):
        s[0, i, i - 1] = 1.0              # PREV (zero-pad at t=0)
    for i in range(t - 1):
        s[1, i, i + 1] = 1.0              # NEXT (zero-pad at t=T-1)
    return s


def _interp_matrix(t_in, t_out):
    u = np.zeros((t_out, t_in), np.float32)
    for j in range(t_out):
        u[j, (j * t_in) // t_out] = 1.0   # F.interpolate mode='nearest'
    return u


# ----------------------------- parameter prep -------------------------------

def init_params(key, emb_dim, stem_channel, channels, out_channel, R):
    keys = iter(jax.random.split(key, 128))

    def w(shape, scale=0.1):
        return scale * jax.random.normal(next(keys), shape, dtype=jnp.float32)

    p = {"embedding": w((26, emb_dim), 1.0),
         "stem_w1": w((emb_dim, stem_channel)),
         "stem_w2": w((stem_channel, stem_channel))}

    agg_in = [stem_channel, channels[0], channels[1], channels[2]]
    for i in range(4):
        cin, cout = agg_in[i], channels[i]
        p[f"agg{i}_w"] = w((3, cin, cout))
        p[f"agg{i}_b"] = w((1, cout))
        c = channels[i]
        exp = int(c * R)
        bp = {"lpu_w": w((c, c)), "lpu_b": w((1, c)),
              "ffn_w1": w((c, exp)), "ffn_b1": w((1, exp)),
              "ffn_dw_w": w((3, 1, exp)), "ffn_dw_b": w((1, 1, exp)),
              "ffn_w2": w((exp, c)), "ffn_b2": w((1, c))}
        for j in range(3):
            bp[f"dw{j}_w"] = w((3, 1, c))
            bp[f"dw{j}_b"] = w((1, 1, c))
        p[f"block{i}"] = bp

    for i, c in enumerate(channels, start=1):
        p[f"top{i}_w"] = w((c, out_channel))
        p[f"top{i}_b"] = w((1, out_channel))
    p["smooth1_w"] = w((3, out_channel, out_channel))
    p["smooth1_b"] = w((1, out_channel))
    return p


def prepare_params(params, t0):
    """Fold eval-mode BN scales into weights/biases and build constant matrices.

    # TODO(synk): BatchNorm1d is modeled in eval mode with default running stats
    # (gamma=1, beta=0, mean=0, var=1) -> constant scale 1/sqrt(1+eps).
    """
    s = _BN_SCALE
    t_pool, ts = _compute_times(t0)

    prep = {"embedding": params["embedding"],
            "stem_w1": params["stem_w1"],
            "stem_w2": s * params["stem_w2"],                      # fold stem BN1
            "pool_m": jnp.asarray(_pool_select_matrices(t0))}

    t_in = t_pool
    for i in range(4):
        bp = params[f"block{i}"]
        wa = params[f"agg{i}_w"]
        if i == 0:
            wa = s * wa                                            # fold stem BN2
        st = {"agg_a": jnp.asarray(_agg_select_matrices(t_in)),
              "agg_w": wa,
              "agg_b": params[f"agg{i}_b"],
              "shift": jnp.asarray(_shift_matrices(ts[i])),
              "lpu_w": bp["lpu_w"], "lpu_b": bp["lpu_b"]}
        dww, dwb = [], []
        for j in range(3):
            wdw = bp[f"dw{j}_w"][:, 0, :]                          # (3, C)
            if j > 0:
                wdw = s * wdw                                      # fold BN of previous dw
            dww.append(wdw)
            dwb.append(bp[f"dw{j}_b"][0])                          # (1, C)
        st["dw_w"] = jnp.stack(dww)                                # (3, 3, C)
        st["dw_b"] = jnp.stack(dwb)                                # (3, 1, C)
        st["ffn_w1"] = s * bp["ffn_w1"]
        st["ffn_b1"] = s * bp["ffn_b1"]
        st["ffn_dw_w"] = s * bp["ffn_dw_w"][:, 0, :]               # (3, E)
        st["ffn_dw_b"] = s * bp["ffn_dw_b"][0]                     # (1, E)
        st["ffn_w2"] = s * bp["ffn_w2"]
        st["ffn_b2"] = s * bp["ffn_b2"]
        prep[f"stage{i}"] = st
        t_in = ts[i]

    for i in range(1, 5):
        prep[f"top{i}_w"] = params[f"top{i}_w"]
        prep[f"top{i}_b"] = params[f"top{i}_b"]
    prep["u43"] = jnp.asarray(_interp_matrix(ts[3], ts[2]))
    prep["u32"] = jnp.asarray(_interp_matrix(ts[2], ts[1]))
    prep["u21"] = jnp.asarray(_interp_matrix(ts[1], ts[0]))
    prep["smooth_w"] = params["smooth1_w"]
    prep["smooth_b"] = params["smooth1_b"]
    return prep


# --------------------------------- forward ----------------------------------

def fea_cnn_forward(tokens, prep):
    batch = tokens.shape[0]
    x = prep["embedding"][tokens]                                  # (B, T0, emb) XLA gather

    pooled = _call(_stem_pool_kernel,
                   out_tc=(prep["pool_m"].shape[1], prep["stem_w2"].shape[1]),
                   batched=[x],
                   consts=[prep["stem_w1"], prep["stem_w2"], prep["pool_m"]],
                   batch=batch)

    results, h = [], pooled
    for i in range(4):
        st = prep[f"stage{i}"]
        h = _call(_stage_kernel,
                  out_tc=(st["shift"].shape[1], st["agg_w"].shape[2]),
                  batched=[h],
                  consts=[st["agg_a"], st["agg_w"], st["agg_b"], st["shift"],
                          st["lpu_w"], st["lpu_b"], st["dw_w"], st["dw_b"],
                          st["ffn_w1"], st["ffn_b1"], st["ffn_dw_w"],
                          st["ffn_dw_b"], st["ffn_w2"], st["ffn_b2"]],
                  batch=batch)
        results.append(h)
    r1, r2, r3, r4 = results

    out = _call(_head_kernel,
                out_tc=(r1.shape[1] - 2, prep["smooth_w"].shape[2]),
                batched=[r1, r2, r3, r4],
                consts=[prep["top1_w"], prep["top1_b"], prep["top2_w"], prep["top2_b"],
                        prep["top3_w"], prep["top3_b"], prep["top4_w"], prep["top4_b"],
                        prep["u21"], prep["u32"], prep["u43"],
                        prep["smooth_w"], prep["smooth_b"]],
                batch=batch)

    # PyTorch: result.view(B, T, -1) on a (B, C, T)-contiguous tensor.
    b, ts_, co = out.shape
    return jnp.transpose(out, (0, 2, 1)).reshape(b, ts_, -1)


if __name__ == "__main__":
    emb_dim, stem_channel = 8, 16
    channels = [16, 16, 32, 32]
    out_channel = 16
    R = 3.6
    B, T0 = 2, 100          # long enough to survive 4 stride-2 aggregates

    key = jax.random.PRNGKey(0)
    pkey, tkey = jax.random.split(key)
    params = init_params(pkey, emb_dim, stem_channel, channels, out_channel, R)
    prep = prepare_params(params, T0)
    tokens = jax.random.randint(tkey, (B, T0), 0, 26, dtype=jnp.int32)

    fwd = jax.jit(fea_cnn_forward)
    out = jax.block_until_ready(fwd(tokens, prep))
    assert out.ndim == 3 and out.shape[0] == B and out.shape[2] == out_channel
    assert bool(jnp.all(jnp.isfinite(out)))
    print("output shape:", out.shape, "dtype:", out.dtype)
    print("KERNEL_OK")
</pallas_src>

<mosaic_0001>
module attributes {stable_mosaic.version = 11 : i64} {
  func.func @_stem_pool_kernel(%arg0: i32, %arg1: memref<1x100x8xf32, #tpu.memory_space<vmem>>, %arg2: memref<8x16xf32, #tpu.memory_space<vmem>>, %arg3: memref<16x16xf32, #tpu.memory_space<vmem>>, %arg4: memref<3x52x100xf32, #tpu.memory_space<vmem>>, %arg5: memref<1x52x16xf32, #tpu.memory_space<vmem>>) attributes {dimension_semantics = [#tpu.dimension_semantics<parallel>], iteration_bounds = array<i64: 2>, scalar_prefetch = 0 : i64, scratch_operands = 0 : i64, tpu.core_type = #tpu.core_type<tc>, window_params = [{transform_indices = @transform_0, window_bounds = array<i64: 1, 100, 8>}, {pipeline_mode = #tpu.pipeline_mode<synchronous>, transform_indices = @transform_1, window_bounds = array<i64: 8, 16>}, {pipeline_mode = #tpu.pipeline_mode<synchronous>, transform_indices = @transform_2, window_bounds = array<i64: 16, 16>}, {pipeline_mode = #tpu.pipeline_mode<synchronous>, transform_indices = @transform_3, window_bounds = array<i64: 3, 52, 100>}, {transform_indices = @transform_4, window_bounds = array<i64: 1, 52, 16>}]} {
    %c0 = arith.constant 0 : index
    %c0_0 = arith.constant 0 : index
    %c0_1 = arith.constant 0 : index
    %0 = vector.load %arg1[%c0, %c0_0, %c0_1] : memref<1x100x8xf32, #tpu.memory_space<vmem>>, vector<1x100x8xf32>
    %1 = vector.shape_cast %0 : vector<1x100x8xf32> to vector<100x8xf32>
    %c0_2 = arith.constant 0 : index
    %c0_3 = arith.constant 0 : index
    %2 = vector.load %arg2[%c0_2, %c0_3] : memref<8x16xf32, #tpu.memory_space<vmem>>, vector<8x16xf32>
    %cst = arith.constant dense<0.000000e+00> : vector<100x16xf32>
    %3 = tpu.matmul %1, %2, %cst {dimension_numbers = #tpu.dot_dimension_numbers<[1], [0], [0], [1], [0, 0, 1, 1], [], []>} : vector<100x8xf32>, vector<8x16xf32>, vector<100x16xf32> -> vector<100x16xf32>
    %cst_4 = arith.constant 5.000000e-01 : f32
    %4 = vector.broadcast %cst_4 : f32 to vector<100x16xf32>
    %5 = arith.mulf %4, %3 : vector<100x16xf32>
    %cst_5 = arith.constant 4.471500e-02 : f32
    %6 = vector.broadcast %cst_5 : f32 to vector<100x16xf32>
    %7 = arith.mulf %6, %3 : vector<100x16xf32>
    %8 = arith.mulf %7, %3 : vector<100x16xf32>
    %9 = arith.mulf %8, %3 : vector<100x16xf32>
    %10 = arith.addf %3, %9 : vector<100x16xf32>
    %cst_6 = arith.constant 0.797884583 : f32
    %11 = vector.broadcast %cst_6 : f32 to vector<100x16xf32>
    %12 = arith.mulf %11, %10 : vector<100x16xf32>
    %13 = math.tanh %12 : vector<100x16xf32>
    %cst_7 = arith.constant 1.000000e+00 : f32
    %14 = vector.broadcast %cst_7 : f32 to vector<100x16xf32>
    %15 = arith.addf %14, %13 : vector<100x16xf32>
    %16 = arith.mulf %5, %15 : vector<100x16xf32>
    %c0_8 = arith.constant 0 : index
    %c0_9 = arith.constant 0 : index
    %17 = vector.load %arg3[%c0_8, %c0_9] : memref<16x16xf32, #tpu.memory_space<vmem>>, vector<16x16xf32>
    %cst_10 = arith.constant dense<0.000000e+00> : vector<100x16xf32>
    %18 = tpu.matmul %16, %17, %cst_10 {dimension_numbers = #tpu.dot_dimension_numbers<[1], [0], [0], [1], [0, 0, 1, 1], [], []>} : vector<100x16xf32>, vector<16x16xf32>, vector<100x16xf32> -> vector<100x16xf32>
    %cst_11 = arith.constant 5.000000e-01 : f32
    %19 = vector.broadcast %cst_11 : f32 to vector<100x16xf32>
    %20 = arith.mulf %19, %18 : vector<100x16xf32>
    %cst_12 = arith.constant 4.471500e-02 : f32
    %21 = vector.broadcast %cst_12 : f32 to vector<100x16xf32>
    %22 = arith.mulf %21, %18 : vector<100x16xf32>
    %23 = arith.mulf %22, %18 : vector<100x16xf32>
    %24 = arith.mulf %23, %18 : vector<100x16xf32>
    %25 = arith.addf %18, %24 : vector<100x16xf32>
    %cst_13 = arith.constant 0.797884583 : f32
    %26 = vector.broadcast %cst_13 : f32 to vector<100x16xf32>
    %27 = arith.mulf %26, %25 : vector<100x16xf32>
    %28 = math.tanh %27 : vector<100x16xf32>
    %cst_14 = arith.constant 1.000000e+00 : f32
    %29 = vector.broadcast %cst_14 : f32 to vector<100x16xf32>
    %30 = arith.addf %29, %28 : vector<100x16xf32>
    %31 = arith.mulf %20, %30 : vector<100x16xf32>
    %c0_15 = arith.constant 0 : index
    %c0_16 = arith.constant 0 : index
    %c0_17 = arith.constant 0 : index
    %32 = vector.load %arg4[%c0_15, %c0_16, %c0_17] : memref<3x52x100xf32, #tpu.memory_space<vmem>>, vector<1x52x100xf32>
    %33 = vector.shape_cast %32 : vector<1x52x100xf32> to vector<52x100xf32>
    %cst_18 = arith.constant dense<0.000000e+00> : vector<52x16xf32>
    %34 = tpu.matmul %33, %31, %cst_18 {dimension_numbers = #tpu.dot_dimension_numbers<[1], [0], [0], [1], [0, 0, 1, 1], [], []>} : vector<52x100xf32>, vector<100x16xf32>, vector<52x16xf32> -> vector<52x16xf32>
    %c1 = arith.constant 1 : index
    %c0_19 = arith.constant 0 : index
    %c0_20 = arith.constant 0 : index
    %35 = vector.load %arg4[%c1, %c0_19, %c0_20] : memref<3x52x100xf32, #tpu.memory_space<vmem>>, vector<1x52x100xf32>
    %36 = vector.shape_cast %35 : vector<1x52x100xf32> to vector<52x100xf32>
    %cst_21 = arith.constant dense<0.000000e+00> : vector<52x16xf32>
    %37 = tpu.matmul %36, %31, %cst_21 {dimension_numbers = #tpu.dot_dimension_numbers<[1], [0], [0], [1], [0, 0, 1, 1], [], []>} : vector<52x100xf32>, vector<100x16xf32>, vector<52x16xf32> -> vector<52x16xf32>
    %c2 = arith.constant 2 : index
    %c0_22 = arith.constant 0 : index
    %c0_23 = arith.constant 0 : index
    %38 = vector.load %arg4[%c2, %c0_22, %c0_23] : memref<3x52x100xf32, #tpu.memory_space<vmem>>, vector<1x52x100xf32>
    %39 = vector.shape_cast %38 : vector<1x52x100xf32> to vector<52x100xf32>
    %cst_24 = arith.constant dense<0.000000e+00> : vector<52x16xf32>
    %40 = tpu.matmul %39, %31, %cst_24 {dimension_numbers = #tpu.dot_dimension_numbers<[1], [0], [0], [1], [0, 0, 1, 1], [], []>} : vector<52x100xf32>, vector<100x16xf32>, vector<52x16xf32> -> vector<52x16xf32>
    %41 = arith.maximumf %34, %37 : vector<52x16xf32>
    %42 = arith.maximumf %41, %40 : vector<52x16xf32>
    %c0_25 = arith.constant 0 : index
    %c0_26 = arith.constant 0 : index
    %c0_27 = arith.constant 0 : index
    %43 = vector.load %arg5[%c0_25, %c0_26, %c0_27] : memref<1x52x16xf32, #tpu.memory_space<vmem>>, vector<1x52x16xf32>
    %44 = vector.shape_cast %43 : vector<1x52x16xf32> to vector<52x16xf32>
    %45 = vector.shape_cast %42 : vector<52x16xf32> to vector<1x52x16xf32>
    tpu.vector_store %arg5[%c0_25, %c0_26, %c0_27], %45 {strides = array<i32>} : memref<1x52x16xf32, #tpu.memory_space<vmem>>, vector<1x52x16xf32>,
    return
  }
  func.func @transform_0(%arg0: i32) -> (i32, i32, i32) {
    %c0_i32 = arith.constant 0 : i32
    %c0_i32_0 = arith.constant 0 : i32
    %c0_i32_1 = arith.constant 0 : i32
    return %arg0, %c0_i32, %c0_i32_0 : i32, i32, i32
  }
  func.func @transform_1(%arg0: i32) -> (i32, i32) {
    %c0_i32 = arith.constant 0 : i32
    %c0_i32_0 = arith.constant 0 : i32
    %c0_i32_1 = arith.constant 0 : i32
    return %c0_i32, %c0_i32_0 : i32, i32
  }
  func.func @transform_2(%arg0: i32) -> (i32, i32) {
    %c0_i32 = arith.constant 0 : i32
    %c0_i32_0 = arith.constant 0 : i32
    %c0_i32_1 = arith.constant 0 : i32
    return %c0_i32, %c0_i32_0 : i32, i32
  }
  func.func @transform_3(%arg0: i32) -> (i32, i32, i32) {
    %c0_i32 = arith.constant 0 : i32
    %c0_i32_0 = arith.constant 0 : i32
    %c0_i32_1 = arith.constant 0 : i32
    %c0_i32_2 = arith.constant 0 : i32
    return %c0_i32, %c0_i32_0, %c0_i32_1 : i32, i32, i32
  }
  func.func @transform_4(%arg0: i32) -> (i32, i32, i32) {
    %c0_i32 = arith.constant 0 : i32
    %c0_i32_0 = arith.constant 0 : i32
    %c0_i32_1 = arith.constant 0 : i32
    return %arg0, %c0_i32, %c0_i32_0 : i32, i32, i32
  }
}

module attributes {stable_mosaic.version = 11 : i64} {
  func.func @_stage_kernel(%arg0: i32, %arg1: memref<1x52x16xf32, #tpu.memory_space<vmem>>, %arg2: memref<3x25x52xf32, #tpu.memory_space<vmem>>, %arg3: memref<3x16x16xf32, #tpu.memory_space<vmem>>, %arg4: memref<1x16xf32, #tpu.memory_space<vmem>>, %arg5: memref<2x25x25xf32, #tpu.memory_space<vmem>>, %arg6: memref<16x16xf32, #tpu.memory_space<vmem>>, %arg7: memref<1x16xf32, #tpu.memory_space<vmem>>, %arg8: memref<3x3x16xf32, #tpu.memory_space<vmem>>, %arg9: memref<3x1x16xf32, #tpu.memory_space<vmem>>, %arg10: memref<16x57xf32, #tpu.memory_space<vmem>>, %arg11: memref<1x57xf32, #tpu.memory_space<vmem>>, %arg12: memref<3x57xf32, #tpu.memory_space<vmem>>, %arg13: memref<1x57xf32, #tpu.memory_space<vmem>>, %arg14: memref<57x16xf32, #tpu.memory_space<vmem>>, %arg15: memref<1x16xf32, #tpu.memory_space<vmem>>, %arg16: memref<1x25x16xf32, #tpu.memory_space<vmem>>) attributes {dimension_semantics = [#tpu.dimension_semantics<parallel>], iteration_bounds = array<i64: 2>, scalar_prefetch = 0 : i64, scratch_operands = 0 : i64, tpu.core_type = #tpu.core_type<tc>, window_params = [{transform_indices = @transform_0, window_bounds = array<i64: 1, 52, 16>}, {pipeline_mode = #tpu.pipeline_mode<synchronous>, transform_indices = @transform_1, window_bounds = array<i64: 3, 25, 52>}, {pipeline_mode = #tpu.pipeline_mode<synchronous>, transform_indices = @transform_2, window_bounds = array<i64: 3, 16, 16>}, {pipeline_mode = #tpu.pipeline_mode<synchronous>, transform_indices = @transform_3, window_bounds = array<i64: 1, 16>}, {pipeline_mode = #tpu.pipeline_mode<synchronous>, transform_indices = @transform_4, window_bounds = array<i64: 2, 25, 25>}, {pipeline_mode = #tpu.pipeline_mode<synchronous>, transform_indices = @transform_5, window_bounds = array<i64: 16, 16>}, {pipeline_mode = #tpu.pipeline_mode<synchronous>, transform_indices = @transform_6, window_bounds = array<i64: 1, 16>}, {pipeline_mode = #tpu.pipeline_mode<synchronous>, transform_indices = @transform_7, window_bounds = array<i64: 3, 3, 16>}, {pipeline_mode = #tpu.pipeline_mode<synchronous>, transform_indices = @transform_8, window_bounds = array<i64: 3, 1, 16>}, {pipeline_mode = #tpu.pipeline_mode<synchronous>, transform_indices = @transform_9, window_bounds = array<i64: 16, 57>}, {pipeline_mode = #tpu.pipeline_mode<synchronous>, transform_indices = @transform_10, window_bounds = array<i64: 1, 57>}, {pipeline_mode = #tpu.pipeline_mode<synchronous>, transform_indices = @transform_11, window_bounds = array<i64: 3, 57>}, {pipeline_mode = #tpu.pipeline_mode<synchronous>, transform_indices = @transform_12, window_bounds = array<i64: 1, 57>}, {pipeline_mode = #tpu.pipeline_mode<synchronous>, transform_indices = @transform_13, window_bounds = array<i64: 57, 16>}, {pipeline_mode = #tpu.pipeline_mode<synchronous>, transform_indices = @transform_14, window_bounds = array<i64: 1, 16>}, {transform_indices = @transform_15, window_bounds = array<i64: 1, 25, 16>}]} {
    %c0 = arith.constant 0 : index
    %c0_0 = arith.constant 0 : index
    %c0_1 = arith.constant 0 : index
    %0 = vector.load %arg1[%c0, %c0_0, %c0_1] : memref<1x52x16xf32, #tpu.memory_space<vmem>>, vector<1x52x16xf32>
    %1 = vector.shape_cast %0 : vector<1x52x16xf32> to vector<52x16xf32>
    %c0_2 = arith.constant 0 : index
    %c0_3 = arith.constant 0 : index
    %c0_4 = arith.constant 0 : index
    %2 = vector.load %arg2[%c0_2, %c0_3, %c0_4] : memref<3x25x52xf32, #tpu.memory_space<vmem>>, vector<1x25x52xf32>
    %3 = vector.shape_cast %2 : vector<1x25x52xf32> to vector<25x52xf32>
    %cst = arith.constant dense<0.000000e+00> : vector<25x16xf32>
    %4 = tpu.matmul %3, %1, %cst {dimension_numbers = #tpu.dot_dimension_numbers<[1], [0], [0], [1], [0, 0, 1, 1], [], []>} : vector<25x52xf32>, vector<52x16xf32>, vector<25x16xf32> -> vector<25x16xf32>
    %c0_5 = arith.constant 0 : index
    %c0_6 = arith.constant 0 : index
    %c0_7 = arith.constant 0 : index
    %5 = vector.load %arg3[%c0_5, %c0_6, %c0_7] : memref<3x16x16xf32, #tpu.memory_space<vmem>>, vector<1x16x16xf32>
    %6 = vector.shape_cast %5 : vector<1x16x16xf32> to vector<16x16xf32>
    %cst_8 = arith.constant dense<0.000000e+00> : vector<25x16xf32>
    %7 = tpu.matmul %4, %6, %cst_8 {dimension_numbers = #tpu.dot_dimension_numbers<[1], [0], [0], [1], [0, 0, 1, 1], [], []>} : vector<25x16xf32>, vector<16x16xf32>, vector<25x16xf32> -> vector<25x16xf32>
    %c1 = arith.constant 1 : index
    %c0_9 = arith.constant 0 : index
    %c0_10 = arith.constant 0 : index
    %8 = vector.load %arg2[%c1, %c0_9, %c0_10] : memref<3x25x52xf32, #tpu.memory_space<vmem>>, vector<1x25x52xf32>
    %9 = vector.shape_cast %8 : vector<1x25x52xf32> to vector<25x52xf32>
    %cst_11 = arith.constant dense<0.000000e+00> : vector<25x16xf32>
    %10 = tpu.matmul %9, %1, %cst_11 {dimension_numbers = #tpu.dot_dimension_numbers<[1], [0], [0], [1], [0, 0, 1, 1], [], []>} : vector<25x52xf32>, vector<52x16xf32>, vector<25x16xf32> -> vector<25x16xf32>
    %c1_12 = arith.constant 1 : index
    %c0_13 = arith.constant 0 : index
    %c0_14 = arith.constant 0 : index
    %11 = vector.load %arg3[%c1_12, %c0_13, %c0_14] : memref<3x16x16xf32, #tpu.memory_space<vmem>>, vector<1x16x16xf32>
    %12 = vector.shape_cast %11 : vector<1x16x16xf32> to vector<16x16xf32>
    %cst_15 = arith.constant dense<0.000000e+00> : vector<25x16xf32>
    %13 = tpu.matmul %10, %12, %cst_15 {dimension_numbers = #tpu.dot_dimension_numbers<[1], [0], [0], [1], [0, 0, 1, 1], [], []>} : vector<25x16xf32>, vector<16x16xf32>, vector<25x16xf32> -> vector<25x16xf32>
    %14 = arith.addf %7, %13 : vector<25x16xf32>
    %c2 = arith.constant 2 : index
    %c0_16 = arith.constant 0 : index
    %c0_17 = arith.constant 0 : index
    %15 = vector.load %arg2[%c2, %c0_16, %c0_17] : memref<3x25x52xf32, #tpu.memory_space<vmem>>, vector<1x25x52xf32>
    %16 = vector.shape_cast %15 : vector<1x25x52xf32> to vector<25x52xf32>
    %cst_18 = arith.constant dense<0.000000e+00> : vector<25x16xf32>
    %17 = tpu.matmul %16, %1, %cst_18 {dimension_numbers = #tpu.dot_dimension_numbers<[1], [0], [0], [1], [0, 0, 1, 1], [], []>} : vector<25x52xf32>, vector<52x16xf32>, vector<25x16xf32> -> vector<25x16xf32>
    %c2_19 = arith.constant 2 : index
    %c0_20 = arith.constant 0 : index
    %c0_21 = arith.constant 0 : index
    %18 = vector.load %arg3[%c2_19, %c0_20, %c0_21] : memref<3x16x16xf32, #tpu.memory_space<vmem>>, vector<1x16x16xf32>
    %19 = vector.shape_cast %18 : vector<1x16x16xf32> to vector<16x16xf32>
    %cst_22 = arith.constant dense<0.000000e+00> : vector<25x16xf32>
    %20 = tpu.matmul %17, %19, %cst_22 {dimension_numbers = #tpu.dot_dimension_numbers<[1], [0], [0], [1], [0, 0, 1, 1], [], []>} : vector<25x16xf32>, vector<16x16xf32>, vector<25x16xf32> -> vector<25x16xf32>
    %21 = arith.addf %14, %20 : vector<25x16xf32>
    %c0_23 = arith.constant 0 : index
    %c0_24 = arith.constant 0 : index
    %22 = vector.load %arg4[%c0_23, %c0_24] : memref<1x16xf32, #tpu.memory_space<vmem>>, vector<1x16xf32>
    %23 = vector.broadcast %22 : vector<1x16xf32> to vector<25x16xf32>
    %24 = arith.addf %21, %23 : vector<25x16xf32>
    %cst_25 = arith.constant dense<0.000000e+00> : vector<25xf32>
    %25 = vector.multi_reduction <add>, %24, %cst_25 [1] : vector<25x16xf32> to vector<25xf32>
    %26 = vector.shape_cast %25 : vector<25xf32> to vector<25x1xf32>
    %cst_26 = arith.constant dense<0.000000e+00> : vector<1xf32>
    %27 = vector.multi_reduction <add>, %26, %cst_26 [0] : vector<25x1xf32> to vector<1xf32>
    %28 = vector.shape_cast %27 : vector<1xf32> to vector<1x1xf32>
    %cst_27 = arith.constant 4.000000e+02 : f32
    %29 = vector.broadcast %cst_27 : f32 to vector<1x1xf32>
    %30 = arith.divf %28, %29 : vector<1x1xf32>
    %31 = arith.mulf %24, %24 : vector<25x16xf32>
    %cst_28 = arith.constant dense<0.000000e+00> : vector<25xf32>
    %32 = vector.multi_reduction <add>, %31, %cst_28 [1] : vector<25x16xf32> to vector<25xf32>
    %33 = vector.shape_cast %32 : vector<25xf32> to vector<25x1xf32>
    %cst_29 = arith.constant dense<0.000000e+00> : vector<1xf32>
    %34 = vector.multi_reduction <add>, %33, %cst_29 [0] : vector<25x1xf32> to vector<1xf32>
    %35 = vector.shape_cast %34 : vector<1xf32> to vector<1x1xf32>
    %cst_30 = arith.constant 4.000000e+02 : f32
    %36 = vector.broadcast %cst_30 : f32 to vector<1x1xf32>
    %37 = arith.divf %35, %36 : vector<1x1xf32>
    %38 = vector.broadcast %30 : vector<1x1xf32> to vector<25x16xf32>
    %39 = arith.subf %24, %38 : vector<25x16xf32>
    %40 = arith.mulf %30, %30 : vector<1x1xf32>
    %41 = arith.subf %37, %40 : vector<1x1xf32>
    %cst_31 = arith.constant 9.99999974E-6 : f32
    %42 = vector.broadcast %cst_31 : f32 to vector<1x1xf32>
    %43 = arith.addf %41, %42 : vector<1x1xf32>
    %44 = math.rsqrt %43 : vector<1x1xf32>
    %45 = vector.broadcast %44 : vector<1x1xf32> to vector<25x16xf32>
    %46 = arith.mulf %39, %45 : vector<25x16xf32>
    %c0_32 = arith.constant 0 : index
    %c0_33 = arith.constant 0 : index
    %c0_34 = arith.constant 0 : index
    %47 = vector.load %arg5[%c0_32, %c0_33, %c0_34] : memref<2x25x25xf32, #tpu.memory_space<vmem>>, vector<1x25x25xf32>
    %48 = vector.shape_cast %47 : vector<1x25x25xf32> to vector<25x25xf32>
    %c1_35 = arith.constant 1 : index
    %c0_36 = arith.constant 0 : index
    %c0_37 = arith.constant 0 : index
    %49 = vector.load %arg5[%c1_35, %c0_36, %c0_37] : memref<2x25x25xf32, #tpu.memory_space<vmem>>, vector<1x25x25xf32>
    %50 = vector.shape_cast %49 : vector<1x25x25xf32> to vector<25x25xf32>
    %c0_38 = arith.constant 0 : index
    %c0_39 = arith.constant 0 : index
    %51 = vector.load %arg6[%c0_38, %c0_39] : memref<16x16xf32, #tpu.memory_space<vmem>>, vector<16x16xf32>
    %cst_40 = arith.constant dense<0.000000e+00> : vector<25x16xf32>
    %52 = tpu.matmul %46, %51, %cst_40 {dimension_numbers = #tpu.dot_dimension_numbers<[1], [0], [0], [1], [0, 0, 1, 1], [], []>} : vector<25x16xf32>, vector<16x16xf32>, vector<25x16xf32> -> vector<25x16xf32>
    %c0_41 = arith.constant 0 : index
    %c0_42 = arith.constant 0 : index
    %53 = vector.load %arg7[%c0_41, %c0_42] : memref<1x16xf32, #tpu.memory_space<vmem>>, vector<1x16xf32>
    %54 = vector.broadcast %53 : vector<1x16xf32> to vector<25x16xf32>
    %55 = arith.addf %52, %54 : vector<25x16xf32>
    %56 = arith.addf %55, %46 : vector<25x16xf32>
    %c0_43 = arith.constant 0 : index
    %c0_44 = arith.constant 0 : index
    %c0_45 = arith.constant 0 : index
    %57 = vector.load %arg8[%c0_43, %c0_44, %c0_45] : memref<3x3x16xf32, #tpu.memory_space<vmem>>, vector<1x3x16xf32>
    %58 = vector.shape_cast %57 : vector<1x3x16xf32> to vector<3x16xf32>
    %cst_46 = arith.constant dense<0.000000e+00> : vector<25x16xf32>
    %59 = tpu.matmul %48, %56, %cst_46 {dimension_numbers = #tpu.dot_dimension_numbers<[1], [0], [0], [1], [0, 0, 1, 1], [], []>} : vector<25x25xf32>, vector<25x16xf32>, vector<25x16xf32> -> vector<25x16xf32>
    %60 = vector.extract_strided_slice %58 {offsets = [0, 0], sizes = [1, 16], strides = [1, 1]} : vector<3x16xf32> to vector<1x16xf32>
    %61 = vector.broadcast %60 : vector<1x16xf32> to vector<25x16xf32>
    %62 = arith.mulf %59, %61 : vector<25x16xf32>
    %63 = vector.extract_strided_slice %58 {offsets = [1, 0], sizes = [1, 16], strides = [1, 1]} : vector<3x16xf32> to vector<1x16xf32>
    %64 = vector.broadcast %63 : vector<1x16xf32> to vector<25x16xf32>
    %65 = arith.mulf %56, %64 : vector<25x16xf32>
    %66 = arith.addf %62, %65 : vector<25x16xf32>
    %cst_47 = arith.constant dense<0.000000e+00> : vector<25x16xf32>
    %67 = tpu.matmul %50, %56, %cst_47 {dimension_numbers = #tpu.dot_dimension_numbers<[1], [0], [0], [1], [0, 0, 1, 1], [], []>} : vector<25x25xf32>, vector<25x16xf32>, vector<25x16xf32> -> vector<25x16xf32>
    %68 = vector.extract_strided_slice %58 {offsets = [2, 0], sizes = [1, 16], strides = [1, 1]} : vector<3x16xf32> to vector<1x16xf32>
    %69 = vector.broadcast %68 : vector<1x16xf32> to vector<25x16xf32>
    %70 = arith.mulf %67, %69 : vector<25x16xf32>
    %71 = arith.addf %66, %70 : vector<25x16xf32>
    %c0_48 = arith.constant 0 : index
    %c0_49 = arith.constant 0 : index
    %c0_50 = arith.constant 0 : index
    %72 = vector.load %arg9[%c0_48, %c0_49, %c0_50] : memref<3x1x16xf32, #tpu.memory_space<vmem>>, vector<1x1x16xf32>
    %73 = vector.shape_cast %72 : vector<1x1x16xf32> to vector<1x16xf32>
    %74 = vector.broadcast %73 : vector<1x16xf32> to vector<25x16xf32>
    %75 = arith.addf %71, %74 : vector<25x16xf32>
    %cst_51 = arith.constant 5.000000e-01 : f32
    %76 = vector.broadcast %cst_51 : f32 to vector<25x16xf32>
    %77 = arith.mulf %76, %75 : vector<25x16xf32>
    %cst_52 = arith.constant 4.471500e-02 : f32
    %78 = vector.broadcast %cst_52 : f32 to vector<25x16xf32>
    %79 = arith.mulf %78, %75 : vector<25x16xf32>
    %80 = arith.mulf %79, %75 : vector<25x16xf32>
    %81 = arith.mulf %80, %75 : vector<25x16xf32>
    %82 = arith.addf %75, %81 : vector<25x16xf32>
    %cst_53 = arith.constant 0.797884583 : f32
    %83 = vector.broadcast %cst_53 : f32 to vector<25x16xf32>
    %84 = arith.mulf %83, %82 : vector<25x16xf32>
    %85 = math.tanh %84 : vector<25x16xf32>
    %cst_54 = arith.constant 1.000000e+00 : f32
    %86 = vector.broadcast %cst_54 : f32 to vector<25x16xf32>
    %87 = arith.addf %86, %85 : vector<25x16xf32>
    %88 = arith.mulf %77, %87 : vector<25x16xf32>
    %c1_55 = arith.constant 1 : index
    %c0_56 = arith.constant 0 : index
    %c0_57 = arith.constant 0 : index
    %89 = vector.load %arg8[%c1_55, %c0_56, %c0_57] : memref<3x3x16xf32, #tpu.memory_space<vmem>>, vector<1x3x16xf32>
    %90 = vector.shape_cast %89 : vector<1x3x16xf32> to vector<3x16xf32>
    %cst_58 = arith.constant dense<0.000000e+00> : vector<25x16xf32>
    %91 = tpu.matmul %48, %88, %cst_58 {dimension_numbers = #tpu.dot_dimension_numbers<[1], [0], [0], [1], [0, 0, 1, 1], [], []>} : vector<25x25xf32>, vector<25x16xf32>, vector<25x16xf32> -> vector<25x16xf32>
    %92 = vector.extract_strided_slice %90 {offsets = [0, 0], sizes = [1, 16], strides = [1, 1]} : vector<3x16xf32> to vector<1x16xf32>
    %93 = vector.broadcast %92 : vector<1x16xf32> to vector<25x16xf32>
    %94 = arith.mulf %91, %93 : vector<25x16xf32>
    %95 = vector.extract_strided_slice %90 {offsets = [1, 0], sizes = [1, 16], strides = [1, 1]} : vector<3x16xf32> to vector<1x16xf32>
    %96 = vector.broadcast %95 : vector<1x16xf32> to vector<25x16xf32>
    %97 = arith.mulf %88, %96 : vector<25x16xf32>
    %98 = arith.addf %94, %97 : vector<25x16xf32>
    %cst_59 = arith.constant dense<0.000000e+00> : vector<25x16xf32>
    %99 = tpu.matmul %50, %88, %cst_59 {dimension_numbers = #tpu.dot_dimension_numbers<[1], [0], [0], [1], [0, 0, 1, 1], [], []>} : vector<25x25xf32>, vector<25x16xf32>, vector<25x16xf32> -> vector<25x16xf32>
    %100 = vector.extract_strided_slice %90 {offsets = [2, 0], sizes = [1, 16], strides = [1, 1]} : vector<3x16xf32> to vector<1x16xf32>
    %101 = vector.broadcast %100 : vector<1x16xf32> to vector<25x16xf32>
    %102 = arith.mulf %99, %101 : vector<25x16xf32>
    %103 = arith.addf %98, %102 : vector<25x16xf32>
    %c1_60 = arith.constant 1 : index
    %c0_61 = arith.constant 0 : index
    %c0_62 = arith.constant 0 : index
    %104 = vector.load %arg9[%c1_60, %c0_61, %c0_62] : memref<3x1x16xf32, #tpu.memory_space<vmem>>, vector<1x1x16xf32>
    %105 = vector.shape_cast %104 : vector<1x1x16xf32> to vector<1x16xf32>
    %106 = vector.broadcast %105 : vector<1x16xf32> to vector<25x16xf32>
    %107 = arith.addf %103, %106 : vector<25x16xf32>
    %cst_63 = arith.constant 5.000000e-01 : f32
    %108 = vector.broadcast %cst_63 : f32 to vector<25x16xf32>
    %109 = arith.mulf %108, %107 : vector<25x16xf32>
    %cst_64 = arith.constant 4.471500e-02 : f32
    %110 = vector.broadcast %cst_64 : f32 to vector<25x16xf32>
    %111 = arith.mulf %110, %107 : vector<25x16xf32>
    %112 = arith.mulf %111, %107 : vector<25x16xf32>
    %113 = arith.mulf %112, %107 : vector<25x16xf32>
    %114 = arith.addf %107, %113 : vector<25x16xf32>
    %cst_65 = arith.constant 0.797884583 : f32
    %115 = vector.broadcast %cst_65 : f32 to vector<25x16xf32>
    %116 = arith.mulf %115, %114 : vector<25x16xf32>
    %117 = math.tanh %116 : vector<25x16xf32>
    %cst_66 = arith.constant 1.000000e+00 : f32
    %118 = vector.broadcast %cst_66 : f32 to vector<25x16xf32>
    %119 = arith.addf %118, %117 : vector<25x16xf32>
    %120 = arith.mulf %109, %119 : vector<25x16xf32>
    %c2_67 = arith.constant 2 : index
    %c0_68 = arith.constant 0 : index
    %c0_69 = arith.constant 0 : index
    %121 = vector.load %arg8[%c2_67, %c0_68, %c0_69] : memref<3x3x16xf32, #tpu.memory_space<vmem>>, vector<1x3x16xf32>
    %122 = vector.shape_cast %121 : vector<1x3x16xf32> to vector<3x16xf32>
    %cst_70 = arith.constant dense<0.000000e+00> : vector<25x16xf32>
    %123 = tpu.matmul %48, %120, %cst_70 {dimension_numbers = #tpu.dot_dimension_numbers<[1], [0], [0], [1], [0, 0, 1, 1], [], []>} : vector<25x25xf32>, vector<25x16xf32>, vector<25x16xf32> -> vector<25x16xf32>
    %124 = vector.extract_strided_slice %122 {offsets = [0, 0], sizes = [1, 16], strides = [1, 1]} : vector<3x16xf32> to vector<1x16xf32>
    %125 = vector.broadcast %124 : vector<1x16xf32> to vector<25x16xf32>
    %126 = arith.mulf %123, %125 : vector<25x16xf32>
    %127 = vector.extract_strided_slice %122 {offsets = [1, 0], sizes = [1, 16], strides = [1, 1]} : vector<3x16xf32> to vector<1x16xf32>
    %128 = vector.broadcast %127 : vector<1x16xf32> to vector<25x16xf32>
    %129 = arith.mulf %120, %128 : vector<25x16xf32>
    %130 = arith.addf %126, %129 : vector<25x16xf32>
    %cst_71 = arith.constant dense<0.000000e+00> : vector<25x16xf32>
    %131 = tpu.matmul %50, %120, %cst_71 {dimension_numbers = #tpu.dot_dimension_numbers<[1], [0], [0], [1], [0, 0, 1, 1], [], []>} : vector<25x25xf32>, vector<25x16xf32>, vector<25x16xf32> -> vector<25x16xf32>
    %132 = vector.extract_strided_slice %122 {offsets = [2, 0], sizes = [1, 16], strides = [1, 1]} : vector<3x16xf32> to vector<1x16xf32>
    %133 = vector.broadcast %132 : vector<1x16xf32> to vector<25x16xf32>
    %134 = arith.mulf %131, %133 : vector<25x16xf32>
    %135 = arith.addf %130, %134 : vector<25x16xf32>
    %c2_72 = arith.constant 2 : index
    %c0_73 = arith.constant 0 : index
    %c0_74 = arith.constant 0 : index
    %136 = vector.load %arg9[%c2_72, %c0_73, %c0_74] : memref<3x1x16xf32, #tpu.memory_space<vmem>>, vector<1x1x16xf32>
    %137 = vector.shape_cast %136 : vector<1x1x16xf32> to vector<1x16xf32>
    %138 = vector.broadcast %137 : vector<1x16xf32> to vector<25x16xf32>
    %139 = arith.addf %135, %138 : vector<25x16xf32>
    %cst_75 = arith.constant 5.000000e-01 : f32
    %140 = vector.broadcast %cst_75 : f32 to vector<25x16xf32>
    %141 = arith.mulf %140, %139 : vector<25x16xf32>
    %cst_76 = arith.constant 4.471500e-02 : f32
    %142 = vector.broadcast %cst_76 : f32 to vector<25x16xf32>
    %143 = arith.mulf %142, %139 : vector<25x16xf32>
    %144 = arith.mulf %143, %139 : vector<25x16xf32>
    %145 = arith.mulf %144, %139 : vector<25x16xf32>
    %146 = arith.addf %139, %145 : vector<25x16xf32>
    %cst_77 = arith.constant 0.797884583 : f32
    %147 = vector.broadcast %cst_77 : f32 to vector<25x16xf32>
    %148 = arith.mulf %147, %146 : vector<25x16xf32>
    %149 = math.tanh %148 : vector<25x16xf32>
    %cst_78 = arith.constant 1.000000e+00 : f32
    %150 = vector.broadcast %cst_78 : f32 to vector<25x16xf32>
    %151 = arith.addf %150, %149 : vector<25x16xf32>
    %152 = arith.mulf %141, %151 : vector<25x16xf32>
    %cst_79 = arith.constant 0.999994993 : f32
    %153 = vector.broadcast %cst_79 : f32 to vector<25x16xf32>
    %154 = arith.mulf %152, %153 : vector<25x16xf32>
    %c0_80 = arith.constant 0 : index
    %c0_81 = arith.constant 0 : index
    %155 = vector.load %arg10[%c0_80, %c0_81] : memref<16x57xf32, #tpu.memory_space<vmem>>, vector<16x57xf32>
    %cst_82 = arith.constant dense<0.000000e+00> : vector<25x57xf32>
    %156 = tpu.matmul %154, %155, %cst_82 {dimension_numbers = #tpu.dot_dimension_numbers<[1], [0], [0], [1], [0, 0, 1, 1], [], []>} : vector<25x16xf32>, vector<16x57xf32>, vector<25x57xf32> -> vector<25x57xf32>
    %c0_83 = arith.constant 0 : index
    %c0_84 = arith.constant 0 : index
    %157 = vector.load %arg11[%c0_83, %c0_84] : memref<1x57xf32, #tpu.memory_space<vmem>>, vector<1x57xf32>
    %158 = vector.broadcast %157 : vector<1x57xf32> to vector<25x57xf32>
    %159 = arith.addf %156, %158 : vector<25x57xf32>
    %cst_85 = arith.constant 5.000000e-01 : f32
    %160 = vector.broadcast %cst_85 : f32 to vector<25x57xf32>
    %161 = arith.mulf %160, %159 : vector<25x57xf32>
    %cst_86 = arith.constant 4.471500e-02 : f32
    %162 = vector.broadcast %cst_86 : f32 to vector<25x57xf32>
    %163 = arith.mulf %162, %159 : vector<25x57xf32>
    %164 = arith.mulf %163, %159 : vector<25x57xf32>
    %165 = arith.mulf %164, %159 : vector<25x57xf32>
    %166 = arith.addf %159, %165 : vector<25x57xf32>
    %cst_87 = arith.constant 0.797884583 : f32
    %167 = vector.broadcast %cst_87 : f32 to vector<25x57xf32>
    %168 = arith.mulf %167, %166 : vector<25x57xf32>
    %169 = math.tanh %168 : vector<25x57xf32>
    %cst_88 = arith.constant 1.000000e+00 : f32
    %170 = vector.broadcast %cst_88 : f32 to vector<25x57xf32>
    %171 = arith.addf %170, %169 : vector<25x57xf32>
    %172 = arith.mulf %161, %171 : vector<25x57xf32>
    %c0_89 = arith.constant 0 : index
    %c0_90 = arith.constant 0 : index
    %173 = vector.load %arg12[%c0_89, %c0_90] : memref<3x57xf32, #tpu.memory_space<vmem>>, vector<3x57xf32>
    %cst_91 = arith.constant dense<0.000000e+00> : vector<25x57xf32>
    %174 = tpu.matmul %48, %172, %cst_91 {dimension_numbers = #tpu.dot_dimension_numbers<[1], [0], [0], [1], [0, 0, 1, 1], [], []>} : vector<25x25xf32>, vector<25x57xf32>, vector<25x57xf32> -> vector<25x57xf32>
    %175 = vector.extract_strided_slice %173 {offsets = [0, 0], sizes = [1, 57], strides = [1, 1]} : vector<3x57xf32> to vector<1x57xf32>
    %176 = vector.broadcast %175 : vector<1x57xf32> to vector<25x57xf32>
    %177 = arith.mulf %174, %176 : vector<25x57xf32>
    %178 = vector.extract_strided_slice %173 {offsets = [1, 0], sizes = [1, 57], strides = [1, 1]} : vector<3x57xf32> to vector<1x57xf32>
    %179 = vector.broadcast %178 : vector<1x57xf32> to vector<25x57xf32>
    %180 = arith.mulf %172, %179 : vector<25x57xf32>
    %181 = arith.addf %177, %180 : vector<25x57xf32>
    %cst_92 = arith.constant dense<0.000000e+00> : vector<25x57xf32>
    %182 = tpu.matmul %50, %172, %cst_92 {dimension_numbers = #tpu.dot_dimension_numbers<[1], [0], [0], [1], [0, 0, 1, 1], [], []>} : vector<25x25xf32>, vector<25x57xf32>, vector<25x57xf32> -> vector<25x57xf32>
    %183 = vector.extract_strided_slice %173 {offsets = [2, 0], sizes = [1, 57], strides = [1, 1]} : vector<3x57xf32> to vector<1x57xf32>
    %184 = vector.broadcast %183 : vector<1x57xf32> to vector<25x57xf32>
    %185 = arith.mulf %182, %184 : vector<25x57xf32>
    %186 = arith.addf %181, %185 : vector<25x57xf32>
    %c0_93 = arith.constant 0 : index
    %c0_94 = arith.constant 0 : index
    %187 = vector.load %arg13[%c0_93, %c0_94] : memref<1x57xf32, #tpu.memory_space<vmem>>, vector<1x57xf32>
    %188 = vector.broadcast %187 : vector<1x57xf32> to vector<25x57xf32>
    %189 = arith.addf %186, %188 : vector<25x57xf32>
    %cst_95 = arith.constant 5.000000e-01 : f32
    %190 = vector.broadcast %cst_95 : f32 to vector<25x57xf32>
    %191 = arith.mulf %190, %189 : vector<25x57xf32>
    %cst_96 = arith.constant 4.471500e-02 : f32
    %192 = vector.broadcast %cst_96 : f32 to vector<25x57xf32>
    %193 = arith.mulf %192, %189 : vector<25x57xf32>
    %194 = arith.mulf %193, %189 : vector<25x57xf32>
    %195 = arith.mulf %194, %189 : vector<25x57xf32>
    %196 = arith.addf %189, %195 : vector<25x57xf32>
    %cst_97 = arith.constant 0.797884583 : f32
    %197 = vector.broadcast %cst_97 : f32 to vector<25x57xf32>
    %198 = arith.mulf %197, %196 : vector<25x57xf32>
    %199 = math.tanh %198 : vector<25x57xf32>
    %cst_98 = arith.constant 1.000000e+00 : f32
    %200 = vector.broadcast %cst_98 : f32 to vector<25x57xf32>
    %201 = arith.addf %200, %199 : vector<25x57xf32>
    %202 = arith.mulf %191, %201 : vector<25x57xf32>
    %c0_99 = arith.constant 0 : index
    %c0_100 = arith.constant 0 : index
    %203 = vector.load %arg14[%c0_99, %c0_100] : memref<57x16xf32, #tpu.memory_space<vmem>>, vector<57x16xf32>
    %cst_101 = arith.constant dense<0.000000e+00> : vector<25x16xf32>
    %204 = tpu.matmul %202, %203, %cst_101 {dimension_numbers = #tpu.dot_dimension_numbers<[1], [0], [0], [1], [0, 0, 1, 1], [], []>} : vector<25x57xf32>, vector<57x16xf32>, vector<25x16xf32> -> vector<25x16xf32>
    %c0_102 = arith.constant 0 : index
    %c0_103 = arith.constant 0 : index
    %205 = vector.load %arg15[%c0_102, %c0_103] : memref<1x16xf32, #tpu.memory_space<vmem>>, vector<1x16xf32>
    %206 = vector.broadcast %205 : vector<1x16xf32> to vector<25x16xf32>
    %207 = arith.addf %204, %206 : vector<25x16xf32>
    %208 = arith.addf %154, %207 : vector<25x16xf32>
    %c0_104 = arith.constant 0 : index
    %c0_105 = arith.constant 0 : index
    %c0_106 = arith.constant 0 : index
    %209 = vector.load %arg16[%c0_104, %c0_105, %c0_106] : memref<1x25x16xf32, #tpu.memory_space<vmem>>, vector<1x25x16xf32>
    %210 = vector.shape_cast %209 : vector<1x25x16xf32> to vector<25x16xf32>
    %211 = vector.shape_cast %208 : vector<25x16xf32> to vector<1x25x16xf32>
    tpu.vector_store %arg16[%c0_104, %c0_105, %c0_106], %211 {strides = array<i32>} : memref<1x25x16xf32, #tpu.memory_space<vmem>>, vector<1x25x16xf32>,
    return
  }
  func.func @transform_0(%arg0: i32) -> (i32, i32, i32) {
    %c0_i32 = arith.constant 0 : i32
    %c0_i32_0 = arith.constant 0 : i32
    %c0_i32_1 = arith.constant 0 : i32
    return %arg0, %c0_i32, %c0_i32_0 : i32, i32, i32
  }
  func.func @transform_1(%arg0: i32) -> (i32, i32, i32) {
    %c0_i32 = arith.constant 0 : i32
    %c0_i32_0 = arith.constant 0 : i32
    %c0_i32_1 = arith.constant 0 : i32
    %c0_i32_2 = arith.constant 0 : i32
    return %c0_i32, %c0_i32_0, %c0_i32_1 : i32, i32, i32
  }
  func.func @transform_2(%arg0: i32) -> (i32, i32, i32) {
    %c0_i32 = arith.constant 0 : i32
    %c0_i32_0 = arith.constant 0 : i32
    %c0_i32_1 = arith.constant 0 : i32
    %c0_i32_2 = arith.constant 0 : i32
    return %c0_i32, %c0_i32_0, %c0_i32_1 : i32, i32, i32
  }
  func.func @transform_3(%arg0: i32) -> (i32, i32) {
    %c0_i32 = arith.constant 0 : i32
    %c0_i32_0 = arith.constant 0 : i32
    %c0_i32_1 = arith.constant 0 : i32
    return %c0_i32, %c0_i32_0 : i32, i32
  }
  func.func @transform_4(%arg0: i32) -> (i32, i32, i32) {
    %c0_i32 = arith.constant 0 : i32
    %c0_i32_0 = arith.constant 0 : i32
    %c0_i32_1 = arith.constant 0 : i32
    %c0_i32_2 = arith.constant 0 : i32
    return %c0_i32, %c0_i32_0, %c0_i32_1 : i32, i32, i32
  }
  func.func @transform_5(%arg0: i32) -> (i32, i32) {
    %c0_i32 = arith.constant 0 : i32
    %c0_i32_0 = arith.constant 0 : i32
    %c0_i32_1 = arith.constant 0 : i32
    return %c0_i32, %c0_i32_0 : i32, i32
  }
  func.func @transform_6(%arg0: i32) -> (i32, i32) {
    %c0_i32 = arith.constant 0 : i32
    %c0_i32_0 = arith.constant 0 : i32
    %c0_i32_1 = arith.constant 0 : i32
    return %c0_i32, %c0_i32_0 : i32, i32
  }
  func.func @transform_7(%arg0: i32) -> (i32, i32, i32) {
    %c0_i32 = arith.constant 0 : i32
    %c0_i32_0 = arith.constant 0 : i32
    %c0_i32_1 = arith.constant 0 : i32
    %c0_i32_2 = arith.constant 0 : i32
    return %c0_i32, %c0_i32_0, %c0_i32_1 : i32, i32, i32
  }
  func.func @transform_8(%arg0: i32) -> (i32, i32, i32) {
    %c0_i32 = arith.constant 0 : i32
    %c0_i32_0 = arith.constant 0 : i32
    %c0_i32_1 = arith.constant 0 : i32
    %c0_i32_2 = arith.constant 0 : i32
    return %c0_i32, %c0_i32_0, %c0_i32_1 : i32, i32, i32
  }
  func.func @transform_9(%arg0: i32) -> (i32, i32) {
    %c0_i32 = arith.constant 0 : i32
    %c0_i32_0 = arith.constant 0 : i32
    %c0_i32_1 = arith.constant 0 : i32
    return %c0_i32, %c0_i32_0 : i32, i32
  }
  func.func @transform_10(%arg0: i32) -> (i32, i32) {
    %c0_i32 = arith.constant 0 : i32
    %c0_i32_0 = arith.constant 0 : i32
    %c0_i32_1 = arith.constant 0 : i32
    return %c0_i32, %c0_i32_0 : i32, i32
  }
  func.func @transform_11(%arg0: i32) -> (i32, i32) {
    %c0_i32 = arith.constant 0 : i32
    %c0_i32_0 = arith.constant 0 : i32
    %c0_i32_1 = arith.constant 0 : i32
    return %c0_i32, %c0_i32_0 : i32, i32
  }
  func.func @transform_12(%arg0: i32) -> (i32, i32) {
    %c0_i32 = arith.constant 0 : i32
    %c0_i32_0 = arith.constant 0 : i32
    %c0_i32_1 = arith.constant 0 : i32
    return %c0_i32, %c0_i32_0 : i32, i32
  }
  func.func @transform_13(%arg0: i32) -> (i32, i32) {
    %c0_i32 = arith.constant 0 : i32
    %c0_i32_0 = arith.constant 0 : i32
    %c0_i32_1 = arith.constant 0 : i32
    return %c0_i32, %c0_i32_0 : i32, i32
  }
  func.func @transform_14(%arg0: i32) -> (i32, i32) {
    %c0_i32 = arith.constant 0 : i32
    %c0_i32_0 = arith.constant 0 : i32
    %c0_i32_1 = arith.constant 0 : i32
    return %c0_i32, %c0_i32_0 : i32, i32
  }
  func.func @transform_15(%arg0: i32) -> (i32, i32, i32) {
    %c0_i32 = arith.constant 0 : i32
    %c0_i32_0 = arith.constant 0 : i32
    %c0_i32_1 = arith.constant 0 : i32
    return %arg0, %c0_i32, %c0_i32_0 : i32, i32, i32
  }
}

module attributes {stable_mosaic.version = 11 : i64} {
  func.func @_stage_kernel(%arg0: i32, %arg1: memref<1x25x16xf32, #tpu.memory_space<vmem>>, %arg2: memref<3x12x25xf32, #tpu.memory_space<vmem>>, %arg3: memref<3x16x16xf32, #tpu.memory_space<vmem>>, %arg4: memref<1x16xf32, #tpu.memory_space<vmem>>, %arg5: memref<2x12x12xf32, #tpu.memory_space<vmem>>, %arg6: memref<16x16xf32, #tpu.memory_space<vmem>>, %arg7: memref<1x16xf32, #tpu.memory_space<vmem>>, %arg8: memref<3x3x16xf32, #tpu.memory_space<vmem>>, %arg9: memref<3x1x16xf32, #tpu.memory_space<vmem>>, %arg10: memref<16x57xf32, #tpu.memory_space<vmem>>, %arg11: memref<1x57xf32, #tpu.memory_space<vmem>>, %arg12: memref<3x57xf32, #tpu.memory_space<vmem>>, %arg13: memref<1x57xf32, #tpu.memory_space<vmem>>, %arg14: memref<57x16xf32, #tpu.memory_space<vmem>>, %arg15: memref<1x16xf32, #tpu.memory_space<vmem>>, %arg16: memref<1x12x16xf32, #tpu.memory_space<vmem>>) attributes {dimension_semantics = [#tpu.dimension_semantics<parallel>], iteration_bounds = array<i64: 2>, scalar_prefetch = 0 : i64, scratch_operands = 0 : i64, tpu.core_type = #tpu.core_type<tc>, window_params = [{transform_indices = @transform_0, window_bounds = array<i64: 1, 25, 16>}, {pipeline_mode = #tpu.pipeline_mode<synchronous>, transform_indices = @transform_1, window_bounds = array<i64: 3, 12, 25>}, {pipeline_mode = #tpu.pipeline_mode<synchronous>, transform_indices = @transform_2, window_bounds = array<i64: 3, 16, 16>}, {pipeline_mode = #tpu.pipeline_mode<synchronous>, transform_indices = @transform_3, window_bounds = array<i64: 1, 16>}, {pipeline_mode = #tpu.pipeline_mode<synchronous>, transform_indices = @transform_4, window_bounds = array<i64: 2, 12, 12>}, {pipeline_mode = #tpu.pipeline_mode<synchronous>, transform_indices = @transform_5, window_bounds = array<i64: 16, 16>}, {pipeline_mode = #tpu.pipeline_mode<synchronous>, transform_indices = @transform_6, window_bounds = array<i64: 1, 16>}, {pipeline_mode = #tpu.pipeline_mode<synchronous>, transform_indices = @transform_7, window_bounds = array<i64: 3, 3, 16>}, {pipeline_mode = #tpu.pipeline_mode<synchronous>, transform_indices = @transform_8, window_bounds = array<i64: 3, 1, 16>}, {pipeline_mode = #tpu.pipeline_mode<synchronous>, transform_indices = @transform_9, window_bounds = array<i64: 16, 57>}, {pipeline_mode = #tpu.pipeline_mode<synchronous>, transform_indices = @transform_10, window_bounds = array<i64: 1, 57>}, {pipeline_mode = #tpu.pipeline_mode<synchronous>, transform_indices = @transform_11, window_bounds = array<i64: 3, 57>}, {pipeline_mode = #tpu.pipeline_mode<synchronous>, transform_indices = @transform_12, window_bounds = array<i64: 1, 57>}, {pipeline_mode = #tpu.pipeline_mode<synchronous>, transform_indices = @transform_13, window_bounds = array<i64: 57, 16>}, {pipeline_mode = #tpu.pipeline_mode<synchronous>, transform_indices = @transform_14, window_bounds = array<i64: 1, 16>}, {transform_indices = @transform_15, window_bounds = array<i64: 1, 12, 16>}]} {
    %c0 = arith.constant 0 : index
    %c0_0 = arith.constant 0 : index
    %c0_1 = arith.constant 0 : index
    %0 = vector.load %arg1[%c0, %c0_0, %c0_1] : memref<1x25x16xf32, #tpu.memory_space<vmem>>, vector<1x25x16xf32>
    %1 = vector.shape_cast %0 : vector<1x25x16xf32> to vector<25x16xf32>
    %c0_2 = arith.constant 0 : index
    %c0_3 = arith.constant 0 : index
    %c0_4 = arith.constant 0 : index
    %2 = vector.load %arg2[%c0_2, %c0_3, %c0_4] : memref<3x12x25xf32, #tpu.memory_space<vmem>>, vector<1x12x25xf32>
    %3 = vector.shape_cast %2 : vector<1x12x25xf32> to vector<12x25xf32>
    %cst = arith.constant dense<0.000000e+00> : vector<12x16xf32>
    %4 = tpu.matmul %3, %1, %cst {dimension_numbers = #tpu.dot_dimension_numbers<[1], [0], [0], [1], [0, 0, 1, 1], [], []>} : vector<12x25xf32>, vector<25x16xf32>, vector<12x16xf32> -> vector<12x16xf32>
    %c0_5 = arith.constant 0 : index
    %c0_6 = arith.constant 0 : index
    %c0_7 = arith.constant 0 : index
    %5 = vector.load %arg3[%c0_5, %c0_6, %c0_7] : memref<3x16x16xf32, #tpu.memory_space<vmem>>, vector<1x16x16xf32>
    %6 = vector.shape_cast %5 : vector<1x16x16xf32> to vector<16x16xf32>
    %cst_8 = arith.constant dense<0.000000e+00> : vector<12x16xf32>
    %7 = tpu.matmul %4, %6, %cst_8 {dimension_numbers = #tpu.dot_dimension_numbers<[1], [0], [0], [1], [0, 0, 1, 1], [], []>} : vector<12x16xf32>, vector<16x16xf32>, vector<12x16xf32> -> vector<12x16xf32>
    %c1 = arith.constant 1 : index
    %c0_9 = arith.constant 0 : index
    %c0_10 = arith.constant 0 : index
    %8 = vector.load %arg2[%c1, %c0_9, %c0_10] : memref<3x12x25xf32, #tpu.memory_space<vmem>>, vector<1x12x25xf32>
    %9 = vector.shape_cast %8 : vector<1x12x25xf32> to vector<12x25xf32>
    %cst_11 = arith.constant dense<0.000000e+00> : vector<12x16xf32>
    %10 = tpu.matmul %9, %1, %cst_11 {dimension_numbers = #tpu.dot_dimension_numbers<[1], [0], [0], [1], [0, 0, 1, 1], [], []>} : vector<12x25xf32>, vector<25x16xf32>, vector<12x16xf32> -> vector<12x16xf32>
    %c1_12 = arith.constant 1 : index
    %c0_13 = arith.constant 0 : index
    %c0_14 = arith.constant 0 : index
    %11 = vector.load %arg3[%c1_12, %c0_13, %c0_14] : memref<3x16x16xf32, #tpu.memory_space<vmem>>, vector<1x16x16xf32>
    %12 = vector.shape_cast %11 : vector<1x16x16xf32> to vector<16x16xf32>
    %cst_15 = arith.constant dense<0.000000e+00> : vector<12x16xf32>
    %13 = tpu.matmul %10, %12, %cst_15 {dimension_numbers = #tpu.dot_dimension_numbers<[1], [0], [0], [1], [0, 0, 1, 1], [], []>} : vector<12x16xf32>, vector<16x16xf32>, vector<12x16xf32> -> vector<12x16xf32>
    %14 = arith.addf %7, %13 : vector<12x16xf32>
    %c2 = arith.constant 2 : index
    %c0_16 = arith.constant 0 : index
    %c0_17 = arith.constant 0 : index
    %15 = vector.load %arg2[%c2, %c0_16, %c0_17] : memref<3x12x25xf32, #tpu.memory_space<vmem>>, vector<1x12x25xf32>
    %16 = vector.shape_cast %15 : vector<1x12x25xf32> to vector<12x25xf32>
    %cst_18 = arith.constant dense<0.000000e+00> : vector<12x16xf32>
    %17 = tpu.matmul %16, %1, %cst_18 {dimension_numbers = #tpu.dot_dimension_numbers<[1], [0], [0], [1], [0, 0, 1, 1], [], []>} : vector<12x25xf32>, vector<25x16xf32>, vector<12x16xf32> -> vector<12x16xf32>
    %c2_19 = arith.constant 2 : index
    %c0_20 = arith.constant 0 : index
    %c0_21 = arith.constant 0 : index
    %18 = vector.load %arg3[%c2_19, %c0_20, %c0_21] : memref<3x16x16xf32, #tpu.memory_space<vmem>>, vector<1x16x16xf32>
    %19 = vector.shape_cast %18 : vector<1x16x16xf32> to vector<16x16xf32>
    %cst_22 = arith.constant dense<0.000000e+00> : vector<12x16xf32>
    %20 = tpu.matmul %17, %19, %cst_22 {dimension_numbers = #tpu.dot_dimension_numbers<[1], [0], [0], [1], [0, 0, 1, 1], [], []>} : vector<12x16xf32>, vector<16x16xf32>, vector<12x16xf32> -> vector<12x16xf32>
    %21 = arith.addf %14, %20 : vector<12x16xf32>
    %c0_23 = arith.constant 0 : index
    %c0_24 = arith.constant 0 : index
    %22 = vector.load %arg4[%c0_23, %c0_24] : memref<1x16xf32, #tpu.memory_space<vmem>>, vector<1x16xf32>
    %23 = vector.broadcast %22 : vector<1x16xf32> to vector<12x16xf32>
    %24 = arith.addf %21, %23 : vector<12x16xf32>
    %cst_25 = arith.constant dense<0.000000e+00> : vector<12xf32>
    %25 = vector.multi_reduction <add>, %24, %cst_25 [1] : vector<12x16xf32> to vector<12xf32>
    %26 = vector.shape_cast %25 : vector<12xf32> to vector<12x1xf32>
    %cst_26 = arith.constant dense<0.000000e+00> : vector<1xf32>
    %27 = vector.multi_reduction <add>, %26, %cst_26 [0] : vector<12x1xf32> to vector<1xf32>
    %28 = vector.shape_cast %27 : vector<1xf32> to vector<1x1xf32>
    %cst_27 = arith.constant 1.920000e+02 : f32
    %29 = vector.broadcast %cst_27 : f32 to vector<1x1xf32>
    %30 = arith.divf %28, %29 : vector<1x1xf32>
    %31 = arith.mulf %24, %24 : vector<12x16xf32>
    %cst_28 = arith.constant dense<0.000000e+00> : vector<12xf32>
    %32 = vector.multi_reduction <add>, %31, %cst_28 [1] : vector<12x16xf32> to vector<12xf32>
    %33 = vector.shape_cast %32 : vector<12xf32> to vector<12x1xf32>
    %cst_29 = arith.constant dense<0.000000e+00> : vector<1xf32>
    %34 = vector.multi_reduction <add>, %33, %cst_29 [0] : vector<12x1xf32> to vector<1xf32>
    %35 = vector.shape_cast %34 : vector<1xf32> to vector<1x1xf32>
    %cst_30 = arith.constant 1.920000e+02 : f32
    %36 = vector.broadcast %cst_30 : f32 to vector<1x1xf32>
    %37 = arith.divf %35, %36 : vector<1x1xf32>
    %38 = vector.broadcast %30 : vector<1x1xf32> to vector<12x16xf32>
    %39 = arith.subf %24, %38 : vector<12x16xf32>
    %40 = arith.mulf %30, %30 : vector<1x1xf32>
    %41 = arith.subf %37, %40 : vector<1x1xf32>
    %cst_31 = arith.constant 9.99999974E-6 : f32
    %42 = vector.broadcast %cst_31 : f32 to vector<1x1xf32>
    %43 = arith.addf %41, %42 : vector<1x1xf32>
    %44 = math.rsqrt %43 : vector<1x1xf32>
    %45 = vector.broadcast %44 : vector<1x1xf32> to vector<12x16xf32>
    %46 = arith.mulf %39, %45 : vector<12x16xf32>
    %c0_32 = arith.constant 0 : index
    %c0_33 = arith.constant 0 : index
    %c0_34 = arith.constant 0 : index
    %47 = vector.load %arg5[%c0_32, %c0_33, %c0_34] : memref<2x12x12xf32, #tpu.memory_space<vmem>>, vector<1x12x12xf32>
    %48 = vector.shape_cast %47 : vector<1x12x12xf32> to vector<12x12xf32>
    %c1_35 = arith.constant 1 : index
    %c0_36 = arith.constant 0 : index
    %c0_37 = arith.constant 0 : index
    %49 = vector.load %arg5[%c1_35, %c0_36, %c0_37] : memref<2x12x12xf32, #tpu.memory_space<vmem>>, vector<1x12x12xf32>
    %50 = vector.shape_cast %49 : vector<1x12x12xf32> to vector<12x12xf32>
    %c0_38 = arith.constant 0 : index
    %c0_39 = arith.constant 0 : index
    %51 = vector.load %arg6[%c0_38, %c0_39] : memref<16x16xf32, #tpu.memory_space<vmem>>, vector<16x16xf32>
    %cst_40 = arith.constant dense<0.000000e+00> : vector<12x16xf32>
    %52 = tpu.matmul %46, %51, %cst_40 {dimension_numbers = #tpu.dot_dimension_numbers<[1], [0], [0], [1], [0, 0, 1, 1], [], []>} : vector<12x16xf32>, vector<16x16xf32>, vector<12x16xf32> -> vector<12x16xf32>
    %c0_41 = arith.constant 0 : index
    %c0_42 = arith.constant 0 : index
    %53 = vector.load %arg7[%c0_41, %c0_42] : memref<1x16xf32, #tpu.memory_space<vmem>>, vector<1x16xf32>
    %54 = vector.broadcast %53 : vector<1x16xf32> to vector<12x16xf32>
    %55 = arith.addf %52, %54 : vector<12x16xf32>
    %56 = arith.addf %55, %46 : vector<12x16xf32>
    %c0_43 = arith.constant 0 : index
    %c0_44 = arith.constant 0 : index
    %c0_45 = arith.constant 0 : index
    %57 = vector.load %arg8[%c0_43, %c0_44, %c0_45] : memref<3x3x16xf32, #tpu.memory_space<vmem>>, vector<1x3x16xf32>
    %58 = vector.shape_cast %57 : vector<1x3x16xf32> to vector<3x16xf32>
    %cst_46 = arith.constant dense<0.000000e+00> : vector<12x16xf32>
    %59 = tpu.matmul %48, %56, %cst_46 {dimension_numbers = #tpu.dot_dimension_numbers<[1], [0], [0], [1], [0, 0, 1, 1], [], []>} : vector<12x12xf32>, vector<12x16xf32>, vector<12x16xf32> -> vector<12x16xf32>
    %60 = vector.extract_strided_slice %58 {offsets = [0, 0], sizes = [1, 16], strides = [1, 1]} : vector<3x16xf32> to vector<1x16xf32>
    %61 = vector.broadcast %60 : vector<1x16xf32> to vector<12x16xf32>
    %62 = arith.mulf %59, %61 : vector<12x16xf32>
    %63 = vector.extract_strided_slice %58 {offsets = [1, 0], sizes = [1, 16], strides = [1, 1]} : vector<3x16xf32> to vector<1x16xf32>
    %64 = vector.broadcast %63 : vector<1x16xf32> to vector<12x16xf32>
    %65 = arith.mulf %56, %64 : vector<12x16xf32>
    %66 = arith.addf %62, %65 : vector<12x16xf32>
    %cst_47 = arith.constant dense<0.000000e+00> : vector<12x16xf32>
    %67 = tpu.matmul %50, %56, %cst_47 {dimension_numbers = #tpu.dot_dimension_numbers<[1], [0], [0], [1], [0, 0, 1, 1], [], []>} : vector<12x12xf32>, vector<12x16xf32>, vector<12x16xf32> -> vector<12x16xf32>
    %68 = vector.extract_strided_slice %58 {offsets = [2, 0], sizes = [1, 16], strides = [1, 1]} : vector<3x16xf32> to vector<1x16xf32>
    %69 = vector.broadcast %68 : vector<1x16xf32> to vector<12x16xf32>
    %70 = arith.mulf %67, %69 : vector<12x16xf32>
    %71 = arith.addf %66, %70 : vector<12x16xf32>
    %c0_48 = arith.constant 0 : index
    %c0_49 = arith.constant 0 : index
    %c0_50 = arith.constant 0 : index
    %72 = vector.load %arg9[%c0_48, %c0_49, %c0_50] : memref<3x1x16xf32, #tpu.memory_space<vmem>>, vector<1x1x16xf32>
    %73 = vector.shape_cast %72 : vector<1x1x16xf32> to vector<1x16xf32>
    %74 = vector.broadcast %73 : vector<1x16xf32> to vector<12x16xf32>
    %75 = arith.addf %71, %74 : vector<12x16xf32>
    %cst_51 = arith.constant 5.000000e-01 : f32
    %76 = vector.broadcast %cst_51 : f32 to vector<12x16xf32>
    %77 = arith.mulf %76, %75 : vector<12x16xf32>
    %cst_52 = arith.constant 4.471500e-02 : f32
    %78 = vector.broadcast %cst_52 : f32 to vector<12x16xf32>
    %79 = arith.mulf %78, %75 : vector<12x16xf32>
    %80 = arith.mulf %79, %75 : vector<12x16xf32>
    %81 = arith.mulf %80, %75 : vector<12x16xf32>
    %82 = arith.addf %75, %81 : vector<12x16xf32>
    %cst_53 = arith.constant 0.797884583 : f32
    %83 = vector.broadcast %cst_53 : f32 to vector<12x16xf32>
    %84 = arith.mulf %83, %82 : vector<12x16xf32>
    %85 = math.tanh %84 : vector<12x16xf32>
    %cst_54 = arith.constant 1.000000e+00 : f32
    %86 = vector.broadcast %cst_54 : f32 to vector<12x16xf32>
    %87 = arith.addf %86, %85 : vector<12x16xf32>
    %88 = arith.mulf %77, %87 : vector<12x16xf32>
    %c1_55 = arith.constant 1 : index
    %c0_56 = arith.constant 0 : index
    %c0_57 = arith.constant 0 : index
    %89 = vector.load %arg8[%c1_55, %c0_56, %c0_57] : memref<3x3x16xf32, #tpu.memory_space<vmem>>, vector<1x3x16xf32>
    %90 = vector.shape_cast %89 : vector<1x3x16xf32> to vector<3x16xf32>
    %cst_58 = arith.constant dense<0.000000e+00> : vector<12x16xf32>
    %91 = tpu.matmul %48, %88, %cst_58 {dimension_numbers = #tpu.dot_dimension_numbers<[1], [0], [0], [1], [0, 0, 1, 1], [], []>} : vector<12x12xf32>, vector<12x16xf32>, vector<12x16xf32> -> vector<12x16xf32>
    %92 = vector.extract_strided_slice %90 {offsets = [0, 0], sizes = [1, 16], strides = [1, 1]} : vector<3x16xf32> to vector<1x16xf32>
    %93 = vector.broadcast %92 : vector<1x16xf32> to vector<12x16xf32>
    %94 = arith.mulf %91, %93 : vector<12x16xf32>
    %95 = vector.extract_strided_slice %90 {offsets = [1, 0], sizes = [1, 16], strides = [1, 1]} : vector<3x16xf32> to vector<1x16xf32>
    %96 = vector.broadcast %95 : vector<1x16xf32> to vector<12x16xf32>
    %97 = arith.mulf %88, %96 : vector<12x16xf32>
    %98 = arith.addf %94, %97 : vector<12x16xf32>
    %cst_59 = arith.constant dense<0.000000e+00> : vector<12x16xf32>
    %99 = tpu.matmul %50, %88, %cst_59 {dimension_numbers = #tpu.dot_dimension_numbers<[1], [0], [0], [1], [0, 0, 1, 1], [], []>} : vector<12x12xf32>, vector<12x16xf32>, vector<12x16xf32> -> vector<12x16xf32>
    %100 = vector.extract_strided_slice %90 {offsets = [2, 0], sizes = [1, 16], strides = [1, 1]} : vector<3x16xf32> to vector<1x16xf32>
    %101 = vector.broadcast %100 : vector<1x16xf32> to vector<12x16xf32>
    %102 = arith.mulf %99, %101 : vector<12x16xf32>
    %103 = arith.addf %98, %102 : vector<12x16xf32>
    %c1_60 = arith.constant 1 : index
    %c0_61 = arith.constant 0 : index
    %c0_62 = arith.constant 0 : index
    %104 = vector.load %arg9[%c1_60, %c0_61, %c0_62] : memref<3x1x16xf32, #tpu.memory_space<vmem>>, vector<1x1x16xf32>
    %105 = vector.shape_cast %104 : vector<1x1x16xf32> to vector<1x16xf32>
    %106 = vector.broadcast %105 : vector<1x16xf32> to vector<12x16xf32>
    %107 = arith.addf %103, %106 : vector<12x16xf32>
    %cst_63 = arith.constant 5.000000e-01 : f32
    %108 = vector.broadcast %cst_63 : f32 to vector<12x16xf32>
    %109 = arith.mulf %108, %107 : vector<12x16xf32>
    %cst_64 = arith.constant 4.471500e-02 : f32
    %110 = vector.broadcast %cst_64 : f32 to vector<12x16xf32>
    %111 = arith.mulf %110, %107 : vector<12x16xf32>
    %112 = arith.mulf %111, %107 : vector<12x16xf32>
    %113 = arith.mulf %112, %107 : vector<12x16xf32>
    %114 = arith.addf %107, %113 : vector<12x16xf32>
    %cst_65 = arith.constant 0.797884583 : f32
    %115 = vector.broadcast %cst_65 : f32 to vector<12x16xf32>
    %116 = arith.mulf %115, %114 : vector<12x16xf32>
    %117 = math.tanh %116 : vector<12x16xf32>
    %cst_66 = arith.constant 1.000000e+00 : f32
    %118 = vector.broadcast %cst_66 : f32 to vector<12x16xf32>
    %119 = arith.addf %118, %117 : vector<12x16xf32>
    %120 = arith.mulf %109, %119 : vector<12x16xf32>
    %c2_67 = arith.constant 2 : index
    %c0_68 = arith.constant 0 : index
    %c0_69 = arith.constant 0 : index
    %121 = vector.load %arg8[%c2_67, %c0_68, %c0_69] : memref<3x3x16xf32, #tpu.memory_space<vmem>>, vector<1x3x16xf32>
    %122 = vector.shape_cast %121 : vector<1x3x16xf32> to vector<3x16xf32>
    %cst_70 = arith.constant dense<0.000000e+00> : vector<12x16xf32>
    %123 = tpu.matmul %48, %120, %cst_70 {dimension_numbers = #tpu.dot_dimension_numbers<[1], [0], [0], [1], [0, 0, 1, 1], [], []>} : vector<12x12xf32>, vector<12x16xf32>, vector<12x16xf32> -> vector<12x16xf32>
    %124 = vector.extract_strided_slice %122 {offsets = [0, 0], sizes = [1, 16], strides = [1, 1]} : vector<3x16xf32> to vector<1x16xf32>
    %125 = vector.broadcast %124 : vector<1x16xf32> to vector<12x16xf32>
    %126 = arith.mulf %123, %125 : vector<12x16xf32>
    %127 = vector.extract_strided_slice %122 {offsets = [1, 0], sizes = [1, 16], strides = [1, 1]} : vector<3x16xf32> to vector<1x16xf32>
    %128 = vector.broadcast %127 : vector<1x16xf32> to vector<12x16xf32>
    %129 = arith.mulf %120, %128 : vector<12x16xf32>
    %130 = arith.addf %126, %129 : vector<12x16xf32>
    %cst_71 = arith.constant dense<0.000000e+00> : vector<12x16xf32>
    %131 = tpu.matmul %50, %120, %cst_71 {dimension_numbers = #tpu.dot_dimension_numbers<[1], [0], [0], [1], [0, 0, 1, 1], [], []>} : vector<12x12xf32>, vector<12x16xf32>, vector<12x16xf32> -> vector<12x16xf32>
    %132 = vector.extract_strided_slice %122 {offsets = [2, 0], sizes = [1, 16], strides = [1, 1]} : vector<3x16xf32> to vector<1x16xf32>
    %133 = vector.broadcast %132 : vector<1x16xf32> to vector<12x16xf32>
    %134 = arith.mulf %131, %133 : vector<12x16xf32>
    %135 = arith.addf %130, %134 : vector<12x16xf32>
    %c2_72 = arith.constant 2 : index
    %c0_73 = arith.constant 0 : index
    %c0_74 = arith.constant 0 : index
    %136 = vector.load %arg9[%c2_72, %c0_73, %c0_74] : memref<3x1x16xf32, #tpu.memory_space<vmem>>, vector<1x1x16xf32>
    %137 = vector.shape_cast %136 : vector<1x1x16xf32> to vector<1x16xf32>
    %138 = vector.broadcast %137 : vector<1x16xf32> to vector<12x16xf32>
    %139 = arith.addf %135, %138 : vector<12x16xf32>
    %cst_75 = arith.constant 5.000000e-01 : f32
    %140 = vector.broadcast %cst_75 : f32 to vector<12x16xf32>
    %141 = arith.mulf %140, %139 : vector<12x16xf32>
    %cst_76 = arith.constant 4.471500e-02 : f32
    %142 = vector.broadcast %cst_76 : f32 to vector<12x16xf32>
    %143 = arith.mulf %142, %139 : vector<12x16xf32>
    %144 = arith.mulf %143, %139 : vector<12x16xf32>
    %145 = arith.mulf %144, %139 : vector<12x16xf32>
    %146 = arith.addf %139, %145 : vector<12x16xf32>
    %cst_77 = arith.constant 0.797884583 : f32
    %147 = vector.broadcast %cst_77 : f32 to vector<12x16xf32>
    %148 = arith.mulf %147, %146 : vector<12x16xf32>
    %149 = math.tanh %148 : vector<12x16xf32>
    %cst_78 = arith.constant 1.000000e+00 : f32
    %150 = vector.broadcast %cst_78 : f32 to vector<12x16xf32>
    %151 = arith.addf %150, %149 : vector<12x16xf32>
    %152 = arith.mulf %141, %151 : vector<12x16xf32>
    %cst_79 = arith.constant 0.999994993 : f32
    %153 = vector.broadcast %cst_79 : f32 to vector<12x16xf32>
    %154 = arith.mulf %152, %153 : vector<12x16xf32>
    %c0_80 = arith.constant 0 : index
    %c0_81 = arith.constant 0 : index
    %155 = vector.load %arg10[%c0_80, %c0_81] : memref<16x57xf32, #tpu.memory_space<vmem>>, vector<16x57xf32>
    %cst_82 = arith.constant dense<0.000000e+00> : vector<12x57xf32>
    %156 = tpu.matmul %154, %155, %cst_82 {dimension_numbers = #tpu.dot_dimension_numbers<[1], [0], [0], [1], [0, 0, 1, 1], [], []>} : vector<12x16xf32>, vector<16x57xf32>, vector<12x57xf32> -> vector<12x57xf32>
    %c0_83 = arith.constant 0 : index
    %c0_84 = arith.constant 0 : index
    %157 = vector.load %arg11[%c0_83, %c0_84] : memref<1x57xf32, #tpu.memory_space<vmem>>, vector<1x57xf32>
    %158 = vector.broadcast %157 : vector<1x57xf32> to vector<12x57xf32>
    %159 = arith.addf %156, %158 : vector<12x57xf32>
    %cst_85 = arith.constant 5.000000e-01 : f32
    %160 = vector.broadcast %cst_85 : f32 to vector<12x57xf32>
    %161 = arith.mulf %160, %159 : vector<12x57xf32>
    %cst_86 = arith.constant 4.471500e-02 : f32
    %162 = vector.broadcast %cst_86 : f32 to vector<12x57xf32>
    %163 = arith.mulf %162, %159 : vector<12x57xf32>
    %164 = arith.mulf %163, %159 : vector<12x57xf32>
    %165 = arith.mulf %164, %159 : vector<12x57xf32>
    %166 = arith.addf %159, %165 : vector<12x57xf32>
    %cst_87 = arith.constant 0.797884583 : f32
    %167 = vector.broadcast %cst_87 : f32 to vector<12x57xf32>
    %168 = arith.mulf %167, %166 : vector<12x57xf32>
    %169 = math.tanh %168 : vector<12x57xf32>
    %cst_88 = arith.constant 1.000000e+00 : f32
    %170 = vector.broadcast %cst_88 : f32 to vector<12x57xf32>
    %171 = arith.addf %170, %169 : vector<12x57xf32>
    %172 = arith.mulf %161, %171 : vector<12x57xf32>
    %c0_89 = arith.constant 0 : index
    %c0_90 = arith.constant 0 : index
    %173 = vector.load %arg12[%c0_89, %c0_90] : memref<3x57xf32, #tpu.memory_space<vmem>>, vector<3x57xf32>
    %cst_91 = arith.constant dense<0.000000e+00> : vector<12x57xf32>
    %174 = tpu.matmul %48, %172, %cst_91 {dimension_numbers = #tpu.dot_dimension_numbers<[1], [0], [0], [1], [0, 0, 1, 1], [], []>} : vector<12x12xf32>, vector<12x57xf32>, vector<12x57xf32> -> vector<12x57xf32>
    %175 = vector.extract_strided_slice %173 {offsets = [0, 0], sizes = [1, 57], strides = [1, 1]} : vector<3x57xf32> to vector<1x57xf32>
    %176 = vector.broadcast %175 : vector<1x57xf32> to vector<12x57xf32>
    %177 = arith.mulf %174, %176 : vector<12x57xf32>
    %178 = vector.extract_strided_slice %173 {offsets = [1, 0], sizes = [1, 57], strides = [1, 1]} : vector<3x57xf32> to vector<1x57xf32>
    %179 = vector.broadcast %178 : vector<1x57xf32> to vector<12x57xf32>
    %180 = arith.mulf %172, %179 : vector<12x57xf32>
    %181 = arith.addf %177, %180 : vector<12x57xf32>
    %cst_92 = arith.constant dense<0.000000e+00> : vector<12x57xf32>
    %182 = tpu.matmul %50, %172, %cst_92 {dimension_numbers = #tpu.dot_dimension_numbers<[1], [0], [0], [1], [0, 0, 1, 1], [], []>} : vector<12x12xf32>, vector<12x57xf32>, vector<12x57xf32> -> vector<12x57xf32>
    %183 = vector.extract_strided_slice %173 {offsets = [2, 0], sizes = [1, 57], strides = [1, 1]} : vector<3x57xf32> to vector<1x57xf32>
    %184 = vector.broadcast %183 : vector<1x57xf32> to vector<12x57xf32>
    %185 = arith.mulf %182, %184 : vector<12x57xf32>
    %186 = arith.addf %181, %185 : vector<12x57xf32>
    %c0_93 = arith.constant 0 : index
    %c0_94 = arith.constant 0 : index
    %187 = vector.load %arg13[%c0_93, %c0_94] : memref<1x57xf32, #tpu.memory_space<vmem>>, vector<1x57xf32>
    %188 = vector.broadcast %187 : vector<1x57xf32> to vector<12x57xf32>
    %189 = arith.addf %186, %188 : vector<12x57xf32>
    %cst_95 = arith.constant 5.000000e-01 : f32
    %190 = vector.broadcast %cst_95 : f32 to vector<12x57xf32>
    %191 = arith.mulf %190, %189 : vector<12x57xf32>
    %cst_96 = arith.constant 4.471500e-02 : f32
    %192 = vector.broadcast %cst_96 : f32 to vector<12x57xf32>
    %193 = arith.mulf %192, %189 : vector<12x57xf32>
    %194 = arith.mulf %193, %189 : vector<12x57xf32>
    %195 = arith.mulf %194, %189 : vector<12x57xf32>
    %196 = arith.addf %189, %195 : vector<12x57xf32>
    %cst_97 = arith.constant 0.797884583 : f32
    %197 = vector.broadcast %cst_97 : f32 to vector<12x57xf32>
    %198 = arith.mulf %197, %196 : vector<12x57xf32>
    %199 = math.tanh %198 : vector<12x57xf32>
    %cst_98 = arith.constant 1.000000e+00 : f32
    %200 = vector.broadcast %cst_98 : f32 to vector<12x57xf32>
    %201 = arith.addf %200, %199 : vector<12x57xf32>
    %202 = arith.mulf %191, %201 : vector<12x57xf32>
    %c0_99 = arith.constant 0 : index
    %c0_100 = arith.constant 0 : index
    %203 = vector.load %arg14[%c0_99, %c0_100] : memref<57x16xf32, #tpu.memory_space<vmem>>, vector<57x16xf32>
    %cst_101 = arith.constant dense<0.000000e+00> : vector<12x16xf32>
    %204 = tpu.matmul %202, %203, %cst_101 {dimension_numbers = #tpu.dot_dimension_numbers<[1], [0], [0], [1], [0, 0, 1, 1], [], []>} : vector<12x57xf32>, vector<57x16xf32>, vector<12x16xf32> -> vector<12x16xf32>
    %c0_102 = arith.constant 0 : index
    %c0_103 = arith.constant 0 : index
    %205 = vector.load %arg15[%c0_102, %c0_103] : memref<1x16xf32, #tpu.memory_space<vmem>>, vector<1x16xf32>
    %206 = vector.broadcast %205 : vector<1x16xf32> to vector<12x16xf32>
    %207 = arith.addf %204, %206 : vector<12x16xf32>
    %208 = arith.addf %154, %207 : vector<12x16xf32>
    %c0_104 = arith.constant 0 : index
    %c0_105 = arith.constant 0 : index
    %c0_106 = arith.constant 0 : index
    %209 = vector.load %arg16[%c0_104, %c0_105, %c0_106] : memref<1x12x16xf32, #tpu.memory_space<vmem>>, vector<1x12x16xf32>
    %210 = vector.shape_cast %209 : vector<1x12x16xf32> to vector<12x16xf32>
    %211 = vector.shape_cast %208 : vector<12x16xf32> to vector<1x12x16xf32>
    tpu.vector_store %arg16[%c0_104, %c0_105, %c0_106], %211 {strides = array<i32>} : memref<1x12x16xf32, #tpu.memory_space<vmem>>, vector<1x12x16xf32>,
    return
  }
  func.func @transform_0(%arg0: i32) -> (i32, i32, i32) {
    %c0_i32 = arith.constant 0 : i32
    %c0_i32_0 = arith.constant 0 : i32
    %c0_i32_1 = arith.constant 0 : i32
    return %arg0, %c0_i32, %c0_i32_0 : i32, i32, i32
  }
  func.func @transform_1(%arg0: i32) -> (i32, i32, i32) {
    %c0_i32 = arith.constant 0 : i32
    %c0_i32_0 = arith.constant 0 : i32
    %c0_i32_1 = arith.constant 0 : i32
    %c0_i32_2 = arith.constant 0 : i32
    return %c0_i32, %c0_i32_0, %c0_i32_1 : i32, i32, i32
  }
  func.func @transform_2(%arg0: i32) -> (i32, i32, i32) {
    %c0_i32 = arith.constant 0 : i32
    %c0_i32_0 = arith.constant 0 : i32
    %c0_i32_1 = arith.constant 0 : i32
    %c0_i32_2 = arith.constant 0 : i32
    return %c0_i32, %c0_i32_0, %c0_i32_1 : i32, i32, i32
  }
  func.func @transform_3(%arg0: i32) -> (i32, i32) {
    %c0_i32 = arith.constant 0 : i32
    %c0_i32_0 = arith.constant 0 : i32
    %c0_i32_1 = arith.constant 0 : i32
    return %c0_i32, %c0_i32_0 : i32, i32
  }
  func.func @transform_4(%arg0: i32) -> (i32, i32, i32) {
    %c0_i32 = arith.constant 0 : i32
    %c0_i32_0 = arith.constant 0 : i32
    %c0_i32_1 = arith.constant 0 : i32
    %c0_i32_2 = arith.constant 0 : i32
    return %c0_i32, %c0_i32_0, %c0_i32_1 : i32, i32, i32
  }
  func.func @transform_5(%arg0: i32) -> (i32, i32) {
    %c0_i32 = arith.constant 0 : i32
    %c0_i32_0 = arith.constant 0 : i32
    %c0_i32_1 = arith.constant 0 : i32
    return %c0_i32, %c0_i32_0 : i32, i32
  }
  func.func @transform_6(%arg0: i32) -> (i32, i32) {
    %c0_i32 = arith.constant 0 : i32
    %c0_i32_0 = arith.constant 0 : i32
    %c0_i32_1 = arith.constant 0 : i32
    return %c0_i32, %c0_i32_0 : i32, i32
  }
  func.func @transform_7(%arg0: i32) -> (i32, i32, i32) {
    %c0_i32 = arith.constant 0 : i32
    %c0_i32_0 = arith.constant 0 : i32
    %c0_i32_1 = arith.constant 0 : i32
    %c0_i32_2 = arith.constant 0 : i32
    return %c0_i32, %c0_i32_0, %c0_i32_1 : i32, i32, i32
  }
  func.func @transform_8(%arg0: i32) -> (i32, i32, i32) {
    %c0_i32 = arith.constant 0 : i32
    %c0_i32_0 = arith.constant 0 : i32
    %c0_i32_1 = arith.constant 0 : i32
    %c0_i32_2 = arith.constant 0 : i32
    return %c0_i32, %c0_i32_0, %c0_i32_1 : i32, i32, i32
  }
  func.func @transform_9(%arg0: i32) -> (i32, i32) {
    %c0_i32 = arith.constant 0 : i32
    %c0_i32_0 = arith.constant 0 : i32
    %c0_i32_1 = arith.constant 0 : i32
    return %c0_i32, %c0_i32_0 : i32, i32
  }
  func.func @transform_10(%arg0: i32) -> (i32, i32) {
    %c0_i32 = arith.constant 0 : i32
    %c0_i32_0 = arith.constant 0 : i32
    %c0_i32_1 = arith.constant 0 : i32
    return %c0_i32, %c0_i32_0 : i32, i32
  }
  func.func @transform_11(%arg0: i32) -> (i32, i32) {
    %c0_i32 = arith.constant 0 : i32
    %c0_i32_0 = arith.constant 0 : i32
    %c0_i32_1 = arith.constant 0 : i32
    return %c0_i32, %c0_i32_0 : i32, i32
  }
  func.func @transform_12(%arg0: i32) -> (i32, i32) {
    %c0_i32 = arith.constant 0 : i32
    %c0_i32_0 = arith.constant 0 : i32
    %c0_i32_1 = arith.constant 0 : i32
    return %c0_i32, %c0_i32_0 : i32, i32
  }
  func.func @transform_13(%arg0: i32) -> (i32, i32) {
    %c0_i32 = arith.constant 0 : i32
    %c0_i32_0 = arith.constant 0 : i32
    %c0_i32_1 = arith.constant 0 : i32
    return %c0_i32, %c0_i32_0 : i32, i32
  }
  func.func @transform_14(%arg0: i32) -> (i32, i32) {
    %c0_i32 = arith.constant 0 : i32
    %c0_i32_0 = arith.constant 0 : i32
    %c0_i32_1 = arith.constant 0 : i32
    return %c0_i32, %c0_i32_0 : i32, i32
  }
  func.func @transform_15(%arg0: i32) -> (i32, i32, i32) {
    %c0_i32 = arith.constant 0 : i32
    %c0_i32_0 = arith.constant 0 : i32
    %c0_i32_1 = arith.constant 0 : i32
    return %arg0, %c0_i32, %c0_i32_0 : i32, i32, i32
  }
}

module attributes {stable_mosaic.version = 11 : i64} {
  func.func @_stage_kernel(%arg0: i32, %arg1: memref<1x12x16xf32, #tpu.memory_space<vmem>>, %arg2: memref<3x5x12xf32, #tpu.memory_space<vmem>>, %arg3: memref<3x16x32xf32, #tpu.memory_space<vmem>>, %arg4: memref<1x32xf32, #tpu.memory_space<vmem>>, %arg5: memref<2x5x5xf32, #tpu.memory_space<vmem>>, %arg6: memref<32x32xf32, #tpu.memory_space<vmem>>, %arg7: memref<1x32xf32, #tpu.memory_space<vmem>>, %arg8: memref<3x3x32xf32, #tpu.memory_space<vmem>>, %arg9: memref<3x1x32xf32, #tpu.memory_space<vmem>>, %arg10: memref<32x115xf32, #tpu.memory_space<vmem>>, %arg11: memref<1x115xf32, #tpu.memory_space<vmem>>, %arg12: memref<3x115xf32, #tpu.memory_space<vmem>>, %arg13: memref<1x115xf32, #tpu.memory_space<vmem>>, %arg14: memref<115x32xf32, #tpu.memory_space<vmem>>, %arg15: memref<1x32xf32, #tpu.memory_space<vmem>>, %arg16: memref<1x5x32xf32, #tpu.memory_space<vmem>>) attributes {dimension_semantics = [#tpu.dimension_semantics<parallel>], iteration_bounds = array<i64: 2>, scalar_prefetch = 0 : i64, scratch_operands = 0 : i64, tpu.core_type = #tpu.core_type<tc>, window_params = [{transform_indices = @transform_0, window_bounds = array<i64: 1, 12, 16>}, {pipeline_mode = #tpu.pipeline_mode<synchronous>, transform_indices = @transform_1, window_bounds = array<i64: 3, 5, 12>}, {pipeline_mode = #tpu.pipeline_mode<synchronous>, transform_indices = @transform_2, window_bounds = array<i64: 3, 16, 32>}, {pipeline_mode = #tpu.pipeline_mode<synchronous>, transform_indices = @transform_3, window_bounds = array<i64: 1, 32>}, {pipeline_mode = #tpu.pipeline_mode<synchronous>, transform_indices = @transform_4, window_bounds = array<i64: 2, 5, 5>}, {pipeline_mode = #tpu.pipeline_mode<synchronous>, transform_indices = @transform_5, window_bounds = array<i64: 32, 32>}, {pipeline_mode = #tpu.pipeline_mode<synchronous>, transform_indices = @transform_6, window_bounds = array<i64: 1, 32>}, {pipeline_mode = #tpu.pipeline_mode<synchronous>, transform_indices = @transform_7, window_bounds = array<i64: 3, 3, 32>}, {pipeline_mode = #tpu.pipeline_mode<synchronous>, transform_indices = @transform_8, window_bounds = array<i64: 3, 1, 32>}, {pipeline_mode = #tpu.pipeline_mode<synchronous>, transform_indices = @transform_9, window_bounds = array<i64: 32, 115>}, {pipeline_mode = #tpu.pipeline_mode<synchronous>, transform_indices = @transform_10, window_bounds = array<i64: 1, 115>}, {pipeline_mode = #tpu.pipeline_mode<synchronous>, transform_indices = @transform_11, window_bounds = array<i64: 3, 115>}, {pipeline_mode = #tpu.pipeline_mode<synchronous>, transform_indices = @transform_12, window_bounds = array<i64: 1, 115>}, {pipeline_mode = #tpu.pipeline_mode<synchronous>, transform_indices = @transform_13, window_bounds = array<i64: 115, 32>}, {pipeline_mode = #tpu.pipeline_mode<synchronous>, transform_indices = @transform_14, window_bounds = array<i64: 1, 32>}, {transform_indices = @transform_15, window_bounds = array<i64: 1, 5, 32>}]} {
    %c0 = arith.constant 0 : index
    %c0_0 = arith.constant 0 : index
    %c0_1 = arith.constant 0 : index
    %0 = vector.load %arg1[%c0, %c0_0, %c0_1] : memref<1x12x16xf32, #tpu.memory_space<vmem>>, vector<1x12x16xf32>
    %1 = vector.shape_cast %0 : vector<1x12x16xf32> to vector<12x16xf32>
    %c0_2 = arith.constant 0 : index
    %c0_3 = arith.constant 0 : index
    %c0_4 = arith.constant 0 : index
    %2 = vector.load %arg2[%c0_2, %c0_3, %c0_4] : memref<3x5x12xf32, #tpu.memory_space<vmem>>, vector<1x5x12xf32>
    %3 = vector.shape_cast %2 : vector<1x5x12xf32> to vector<5x12xf32>
    %cst = arith.constant dense<0.000000e+00> : vector<5x16xf32>
    %4 = tpu.matmul %3, %1, %cst {dimension_numbers = #tpu.dot_dimension_numbers<[1], [0], [0], [1], [0, 0, 1, 1], [], []>} : vector<5x12xf32>, vector<12x16xf32>, vector<5x16xf32> -> vector<5x16xf32>
    %c0_5 = arith.constant 0 : index
    %c0_6 = arith.constant 0 : index
    %c0_7 = arith.constant 0 : index
    %5 = vector.load %arg3[%c0_5, %c0_6, %c0_7] : memref<3x16x32xf32, #tpu.memory_space<vmem>>, vector<1x16x32xf32>
    %6 = vector.shape_cast %5 : vector<1x16x32xf32> to vector<16x32xf32>
    %cst_8 = arith.constant dense<0.000000e+00> : vector<5x32xf32>
    %7 = tpu.matmul %4, %6, %cst_8 {dimension_numbers = #tpu.dot_dimension_numbers<[1], [0], [0], [1], [0, 0, 1, 1], [], []>} : vector<5x16xf32>, vector<16x32xf32>, vector<5x32xf32> -> vector<5x32xf32>
    %c1 = arith.constant 1 : index
    %c0_9 = arith.constant 0 : index
    %c0_10 = arith.constant 0 : index
    %8 = vector.load %arg2[%c1, %c0_9, %c0_10] : memref<3x5x12xf32, #tpu.memory_space<vmem>>, vector<1x5x12xf32>
    %9 = vector.shape_cast %8 : vector<1x5x12xf32> to vector<5x12xf32>
    %cst_11 = arith.constant dense<0.000000e+00> : vector<5x16xf32>
    %10 = tpu.matmul %9, %1, %cst_11 {dimension_numbers = #tpu.dot_dimension_numbers<[1], [0], [0], [1], [0, 0, 1, 1], [], []>} : vector<5x12xf32>, vector<12x16xf32>, vector<5x16xf32> -> vector<5x16xf32>
    %c1_12 = arith.constant 1 : index
    %c0_13 = arith.constant 0 : index
    %c0_14 = arith.constant 0 : index
    %11 = vector.load %arg3[%c1_12, %c0_13, %c0_14] : memref<3x16x32xf32, #tpu.memory_space<vmem>>, vector<1x16x32xf32>
    %12 = vector.shape_cast %11 : vector<1x16x32xf32> to vector<16x32xf32>
    %cst_15 = arith.constant dense<0.000000e+00> : vector<5x32xf32>
    %13 = tpu.matmul %10, %12, %cst_15 {dimension_numbers = #tpu.dot_dimension_numbers<[1], [0], [0], [1], [0, 0, 1, 1], [], []>} : vector<5x16xf32>, vector<16x32xf32>, vector<5x32xf32> -> vector<5x32xf32>
    %14 = arith.addf %7, %13 : vector<5x32xf32>
    %c2 = arith.constant 2 : index
    %c0_16 = arith.constant 0 : index
    %c0_17 = arith.constant 0 : index
    %15 = vector.load %arg2[%c2, %c0_16, %c0_17] : memref<3x5x12xf32, #tpu.memory_space<vmem>>, vector<1x5x12xf32>
    %16 = vector.shape_cast %15 : vector<1x5x12xf32> to vector<5x12xf32>
    %cst_18 = arith.constant dense<0.000000e+00> : vector<5x16xf32>
    %17 = tpu.matmul %16, %1, %cst_18 {dimension_numbers = #tpu.dot_dimension_numbers<[1], [0], [0], [1], [0, 0, 1, 1], [], []>} : vector<5x12xf32>, vector<12x16xf32>, vector<5x16xf32> -> vector<5x16xf32>
    %c2_19 = arith.constant 2 : index
    %c0_20 = arith.constant 0 : index
    %c0_21 = arith.constant 0 : index
    %18 = vector.load %arg3[%c2_19, %c0_20, %c0_21] : memref<3x16x32xf32, #tpu.memory_space<vmem>>, vector<1x16x32xf32>
    %19 = vector.shape_cast %18 : vector<1x16x32xf32> to vector<16x32xf32>
    %cst_22 = arith.constant dense<0.000000e+00> : vector<5x32xf32>
    %20 = tpu.matmul %17, %19, %cst_22 {dimension_numbers = #tpu.dot_dimension_numbers<[1], [0], [0], [1], [0, 0, 1, 1], [], []>} : vector<5x16xf32>, vector<16x32xf32>, vector<5x32xf32> -> vector<5x32xf32>
    %21 = arith.addf %14, %20 : vector<5x32xf32>
    %c0_23 = arith.constant 0 : index
    %c0_24 = arith.constant 0 : index
    %22 = vector.load %arg4[%c0_23, %c0_24] : memref<1x32xf32, #tpu.memory_space<vmem>>, vector<1x32xf32>
    %23 = vector.broadcast %22 : vector<1x32xf32> to vector<5x32xf32>
    %24 = arith.addf %21, %23 : vector<5x32xf32>
    %cst_25 = arith.constant dense<0.000000e+00> : vector<5xf32>
    %25 = vector.multi_reduction <add>, %24, %cst_25 [1] : vector<5x32xf32> to vector<5xf32>
    %26 = vector.shape_cast %25 : vector<5xf32> to vector<5x1xf32>
    %cst_26 = arith.constant dense<0.000000e+00> : vector<1xf32>
    %27 = vector.multi_reduction <add>, %26, %cst_26 [0] : vector<5x1xf32> to vector<1xf32>
    %28 = vector.shape_cast %27 : vector<1xf32> to vector<1x1xf32>
    %cst_27 = arith.constant 1.600000e+02 : f32
    %29 = vector.broadcast %cst_27 : f32 to vector<1x1xf32>
    %30 = arith.divf %28, %29 : vector<1x1xf32>
    %31 = arith.mulf %24, %24 : vector<5x32xf32>
    %cst_28 = arith.constant dense<0.000000e+00> : vector<5xf32>
    %32 = vector.multi_reduction <add>, %31, %cst_28 [1] : vector<5x32xf32> to vector<5xf32>
    %33 = vector.shape_cast %32 : vector<5xf32> to vector<5x1xf32>
    %cst_29 = arith.constant dense<0.000000e+00> : vector<1xf32>
    %34 = vector.multi_reduction <add>, %33, %cst_29 [0] : vector<5x1xf32> to vector<1xf32>
    %35 = vector.shape_cast %34 : vector<1xf32> to vector<1x1xf32>
    %cst_30 = arith.constant 1.600000e+02 : f32
    %36 = vector.broadcast %cst_30 : f32 to vector<1x1xf32>
    %37 = arith.divf %35, %36 : vector<1x1xf32>
    %38 = vector.broadcast %30 : vector<1x1xf32> to vector<5x32xf32>
    %39 = arith.subf %24, %38 : vector<5x32xf32>
    %40 = arith.mulf %30, %30 : vector<1x1xf32>
    %41 = arith.subf %37, %40 : vector<1x1xf32>
    %cst_31 = arith.constant 9.99999974E-6 : f32
    %42 = vector.broadcast %cst_31 : f32 to vector<1x1xf32>
    %43 = arith.addf %41, %42 : vector<1x1xf32>
    %44 = math.rsqrt %43 : vector<1x1xf32>
    %45 = vector.broadcast %44 : vector<1x1xf32> to vector<5x32xf32>
    %46 = arith.mulf %39, %45 : vector<5x32xf32>
    %c0_32 = arith.constant 0 : index
    %c0_33 = arith.constant 0 : index
    %c0_34 = arith.constant 0 : index
    %47 = vector.load %arg5[%c0_32, %c0_33, %c0_34] : memref<2x5x5xf32, #tpu.memory_space<vmem>>, vector<1x5x5xf32>
    %48 = vector.shape_cast %47 : vector<1x5x5xf32> to vector<5x5xf32>
    %c1_35 = arith.constant 1 : index
    %c0_36 = arith.constant 0 : index
    %c0_37 = arith.constant 0 : index
    %49 = vector.load %arg5[%c1_35, %c0_36, %c0_37] : memref<2x5x5xf32, #tpu.memory_space<vmem>>, vector<1x5x5xf32>
    %50 = vector.shape_cast %49 : vector<1x5x5xf32> to vector<5x5xf32>
    %c0_38 = arith.constant 0 : index
    %c0_39 = arith.constant 0 : index
    %51 = vector.load %arg6[%c0_38, %c0_39] : memref<32x32xf32, #tpu.memory_space<vmem>>, vector<32x32xf32>
    %cst_40 = arith.constant dense<0.000000e+00> : vector<5x32xf32>
    %52 = tpu.matmul %46, %51, %cst_40 {dimension_numbers = #tpu.dot_dimension_numbers<[1], [0], [0], [1], [0, 0, 1, 1], [], []>} : vector<5x32xf32>, vector<32x32xf32>, vector<5x32xf32> -> vector<5x32xf32>
    %c0_41 = arith.constant 0 : index
    %c0_42 = arith.constant 0 : index
    %53 = vector.load %arg7[%c0_41, %c0_42] : memref<1x32xf32, #tpu.memory_space<vmem>>, vector<1x32xf32>
    %54 = vector.broadcast %53 : vector<1x32xf32> to vector<5x32xf32>
    %55 = arith.addf %52, %54 : vector<5x32xf32>
    %56 = arith.addf %55, %46 : vector<5x32xf32>
    %c0_43 = arith.constant 0 : index
    %c0_44 = arith.constant 0 : index
    %c0_45 = arith.constant 0 : index
    %57 = vector.load %arg8[%c0_43, %c0_44, %c0_45] : memref<3x3x32xf32, #tpu.memory_space<vmem>>, vector<1x3x32xf32>
    %58 = vector.shape_cast %57 : vector<1x3x32xf32> to vector<3x32xf32>
    %cst_46 = arith.constant dense<0.000000e+00> : vector<5x32xf32>
    %59 = tpu.matmul %48, %56, %cst_46 {dimension_numbers = #tpu.dot_dimension_numbers<[1], [0], [0], [1], [0, 0, 1, 1], [], []>} : vector<5x5xf32>, vector<5x32xf32>, vector<5x32xf32> -> vector<5x32xf32>
    %60 = vector.extract_strided_slice %58 {offsets = [0, 0], sizes = [1, 32], strides = [1, 1]} : vector<3x32xf32> to vector<1x32xf32>
    %61 = vector.broadcast %60 : vector<1x32xf32> to vector<5x32xf32>
    %62 = arith.mulf %59, %61 : vector<5x32xf32>
    %63 = vector.extract_strided_slice %58 {offsets = [1, 0], sizes = [1, 32], strides = [1, 1]} : vector<3x32xf32> to vector<1x32xf32>
    %64 = vector.broadcast %63 : vector<1x32xf32> to vector<5x32xf32>
    %65 = arith.mulf %56, %64 : vector<5x32xf32>
    %66 = arith.addf %62, %65 : vector<5x32xf32>
    %cst_47 = arith.constant dense<0.000000e+00> : vector<5x32xf32>
    %67 = tpu.matmul %50, %56, %cst_47 {dimension_numbers = #tpu.dot_dimension_numbers<[1], [0], [0], [1], [0, 0, 1, 1], [], []>} : vector<5x5xf32>, vector<5x32xf32>, vector<5x32xf32> -> vector<5x32xf32>
    %68 = vector.extract_strided_slice %58 {offsets = [2, 0], sizes = [1, 32], strides = [1, 1]} : vector<3x32xf32> to vector<1x32xf32>
    %69 = vector.broadcast %68 : vector<1x32xf32> to vector<5x32xf32>
    %70 = arith.mulf %67, %69 : vector<5x32xf32>
    %71 = arith.addf %66, %70 : vector<5x32xf32>
    %c0_48 = arith.constant 0 : index
    %c0_49 = arith.constant 0 : index
    %c0_50 = arith.constant 0 : index
    %72 = vector.load %arg9[%c0_48, %c0_49, %c0_50] : memref<3x1x32xf32, #tpu.memory_space<vmem>>, vector<1x1x32xf32>
    %73 = vector.shape_cast %72 : vector<1x1x32xf32> to vector<1x32xf32>
    %74 = vector.broadcast %73 : vector<1x32xf32> to vector<5x32xf32>
    %75 = arith.addf %71, %74 : vector<5x32xf32>
    %cst_51 = arith.constant 5.000000e-01 : f32
    %76 = vector.broadcast %cst_51 : f32 to vector<5x32xf32>
    %77 = arith.mulf %76, %75 : vector<5x32xf32>
    %cst_52 = arith.constant 4.471500e-02 : f32
    %78 = vector.broadcast %cst_52 : f32 to vector<5x32xf32>
    %79 = arith.mulf %78, %75 : vector<5x32xf32>
    %80 = arith.mulf %79, %75 : vector<5x32xf32>
    %81 = arith.mulf %80, %75 : vector<5x32xf32>
    %82 = arith.addf %75, %81 : vector<5x32xf32>
    %cst_53 = arith.constant 0.797884583 : f32
    %83 = vector.broadcast %cst_53 : f32 to vector<5x32xf32>
    %84 = arith.mulf %83, %82 : vector<5x32xf32>
    %85 = math.tanh %84 : vector<5x32xf32>
    %cst_54 = arith.constant 1.000000e+00 : f32
    %86 = vector.broadcast %cst_54 : f32 to vector<5x32xf32>
    %87 = arith.addf %86, %85 : vector<5x32xf32>
    %88 = arith.mulf %77, %87 : vector<5x32xf32>
    %c1_55 = arith.constant 1 : index
    %c0_56 = arith.constant 0 : index
    %c0_57 = arith.constant 0 : index
    %89 = vector.load %arg8[%c1_55, %c0_56, %c0_57] : memref<3x3x32xf32, #tpu.memory_space<vmem>>, vector<1x3x32xf32>
    %90 = vector.shape_cast %89 : vector<1x3x32xf32> to vector<3x32xf32>
    %cst_58 = arith.constant dense<0.000000e+00> : vector<5x32xf32>
    %91 = tpu.matmul %48, %88, %cst_58 {dimension_numbers = #tpu.dot_dimension_numbers<[1], [0], [0], [1], [0, 0, 1, 1], [], []>} : vector<5x5xf32>, vector<5x32xf32>, vector<5x32xf32> -> vector<5x32xf32>
    %92 = vector.extract_strided_slice %90 {offsets = [0, 0], sizes = [1, 32], strides = [1, 1]} : vector<3x32xf32> to vector<1x32xf32>
    %93 = vector.broadcast %92 : vector<1x32xf32> to vector<5x32xf32>
    %94 = arith.mulf %91, %93 : vector<5x32xf32>
    %95 = vector.extract_strided_slice %90 {offsets = [1, 0], sizes = [1, 32], strides = [1, 1]} : vector<3x32xf32> to vector<1x32xf32>
    %96 = vector.broadcast %95 : vector<1x32xf32> to vector<5x32xf32>
    %97 = arith.mulf %88, %96 : vector<5x32xf32>
    %98 = arith.addf %94, %97 : vector<5x32xf32>
    %cst_59 = arith.constant dense<0.000000e+00> : vector<5x32xf32>
    %99 = tpu.matmul %50, %88, %cst_59 {dimension_numbers = #tpu.dot_dimension_numbers<[1], [0], [0], [1], [0, 0, 1, 1], [], []>} : vector<5x5xf32>, vector<5x32xf32>, vector<5x32xf32> -> vector<5x32xf32>
    %100 = vector.extract_strided_slice %90 {offsets = [2, 0], sizes = [1, 32], strides = [1, 1]} : vector<3x32xf32> to vector<1x32xf32>
    %101 = vector.broadcast %100 : vector<1x32xf32> to vector<5x32xf32>
    %102 = arith.mulf %99, %101 : vector<5x32xf32>
    %103 = arith.addf %98, %102 : vector<5x32xf32>
    %c1_60 = arith.constant 1 : index
    %c0_61 = arith.constant 0 : index
    %c0_62 = arith.constant 0 : index
    %104 = vector.load %arg9[%c1_60, %c0_61, %c0_62] : memref<3x1x32xf32, #tpu.memory_space<vmem>>, vector<1x1x32xf32>
    %105 = vector.shape_cast %104 : vector<1x1x32xf32> to vector<1x32xf32>
    %106 = vector.broadcast %105 : vector<1x32xf32> to vector<5x32xf32>
    %107 = arith.addf %103, %106 : vector<5x32xf32>
    %cst_63 = arith.constant 5.000000e-01 : f32
    %108 = vector.broadcast %cst_63 : f32 to vector<5x32xf32>
    %109 = arith.mulf %108, %107 : vector<5x32xf32>
    %cst_64 = arith.constant 4.471500e-02 : f32
    %110 = vector.broadcast %cst_64 : f32 to vector<5x32xf32>
    %111 = arith.mulf %110, %107 : vector<5x32xf32>
    %112 = arith.mulf %111, %107 : vector<5x32xf32>
    %113 = arith.mulf %112, %107 : vector<5x32xf32>
    %114 = arith.addf %107, %113 : vector<5x32xf32>
    %cst_65 = arith.constant 0.797884583 : f32
    %115 = vector.broadcast %cst_65 : f32 to vector<5x32xf32>
    %116 = arith.mulf %115, %114 : vector<5x32xf32>
    %117 = math.tanh %116 : vector<5x32xf32>
    %cst_66 = arith.constant 1.000000e+00 : f32
    %118 = vector.broadcast %cst_66 : f32 to vector<5x32xf32>
    %119 = arith.addf %118, %117 : vector<5x32xf32>
    %120 = arith.mulf %109, %119 : vector<5x32xf32>
    %c2_67 = arith.constant 2 : index
    %c0_68 = arith.constant 0 : index
    %c0_69 = arith.constant 0 : index
    %121 = vector.load %arg8[%c2_67, %c0_68, %c0_69] : memref<3x3x32xf32, #tpu.memory_space<vmem>>, vector<1x3x32xf32>
    %122 = vector.shape_cast %121 : vector<1x3x32xf32> to vector<3x32xf32>
    %cst_70 = arith.constant dense<0.000000e+00> : vector<5x32xf32>
    %123 = tpu.matmul %48, %120, %cst_70 {dimension_numbers = #tpu.dot_dimension_numbers<[1], [0], [0], [1], [0, 0, 1, 1], [], []>} : vector<5x5xf32>, vector<5x32xf32>, vector<5x32xf32> -> vector<5x32xf32>
    %124 = vector.extract_strided_slice %122 {offsets = [0, 0], sizes = [1, 32], strides = [1, 1]} : vector<3x32xf32> to vector<1x32xf32>
    %125 = vector.broadcast %124 : vector<1x32xf32> to vector<5x32xf32>
    %126 = arith.mulf %123, %125 : vector<5x32xf32>
    %127 = vector.extract_strided_slice %122 {offsets = [1, 0], sizes = [1, 32], strides = [1, 1]} : vector<3x32xf32> to vector<1x32xf32>
    %128 = vector.broadcast %127 : vector<1x32xf32> to vector<5x32xf32>
    %129 = arith.mulf %120, %128 : vector<5x32xf32>
    %130 = arith.addf %126, %129 : vector<5x32xf32>
    %cst_71 = arith.constant dense<0.000000e+00> : vector<5x32xf32>
    %131 = tpu.matmul %50, %120, %cst_71 {dimension_numbers = #tpu.dot_dimension_numbers<[1], [0], [0], [1], [0, 0, 1, 1], [], []>} : vector<5x5xf32>, vector<5x32xf32>, vector<5x32xf32> -> vector<5x32xf32>
    %132 = vector.extract_strided_slice %122 {offsets = [2, 0], sizes = [1, 32], strides = [1, 1]} : vector<3x32xf32> to vector<1x32xf32>
    %133 = vector.broadcast %132 : vector<1x32xf32> to vector<5x32xf32>
    %134 = arith.mulf %131, %133 : vector<5x32xf32>
    %135 = arith.addf %130, %134 : vector<5x32xf32>
    %c2_72 = arith.constant 2 : index
    %c0_73 = arith.constant 0 : index
    %c0_74 = arith.constant 0 : index
    %136 = vector.load %arg9[%c2_72, %c0_73, %c0_74] : memref<3x1x32xf32, #tpu.memory_space<vmem>>, vector<1x1x32xf32>
    %137 = vector.shape_cast %136 : vector<1x1x32xf32> to vector<1x32xf32>
    %138 = vector.broadcast %137 : vector<1x32xf32> to vector<5x32xf32>
    %139 = arith.addf %135, %138 : vector<5x32xf32>
    %cst_75 = arith.constant 5.000000e-01 : f32
    %140 = vector.broadcast %cst_75 : f32 to vector<5x32xf32>
    %141 = arith.mulf %140, %139 : vector<5x32xf32>
    %cst_76 = arith.constant 4.471500e-02 : f32
    %142 = vector.broadcast %cst_76 : f32 to vector<5x32xf32>
    %143 = arith.mulf %142, %139 : vector<5x32xf32>
    %144 = arith.mulf %143, %139 : vector<5x32xf32>
    %145 = arith.mulf %144, %139 : vector<5x32xf32>
    %146 = arith.addf %139, %145 : vector<5x32xf32>
    %cst_77 = arith.constant 0.797884583 : f32
    %147 = vector.broadcast %cst_77 : f32 to vector<5x32xf32>
    %148 = arith.mulf %147, %146 : vector<5x32xf32>
    %149 = math.tanh %148 : vector<5x32xf32>
    %cst_78 = arith.constant 1.000000e+00 : f32
    %150 = vector.broadcast %cst_78 : f32 to vector<5x32xf32>
    %151 = arith.addf %150, %149 : vector<5x32xf32>
    %152 = arith.mulf %141, %151 : vector<5x32xf32>
    %cst_79 = arith.constant 0.999994993 : f32
    %153 = vector.broadcast %cst_79 : f32 to vector<5x32xf32>
    %154 = arith.mulf %152, %153 : vector<5x32xf32>
    %c0_80 = arith.constant 0 : index
    %c0_81 = arith.constant 0 : index
    %155 = vector.load %arg10[%c0_80, %c0_81] : memref<32x115xf32, #tpu.memory_space<vmem>>, vector<32x115xf32>
    %cst_82 = arith.constant dense<0.000000e+00> : vector<5x115xf32>
    %156 = tpu.matmul %154, %155, %cst_82 {dimension_numbers = #tpu.dot_dimension_numbers<[1], [0], [0], [1], [0, 0, 1, 1], [], []>} : vector<5x32xf32>, vector<32x115xf32>, vector<5x115xf32> -> vector<5x115xf32>
    %c0_83 = arith.constant 0 : index
    %c0_84 = arith.constant 0 : index
    %157 = vector.load %arg11[%c0_83, %c0_84] : memref<1x115xf32, #tpu.memory_space<vmem>>, vector<1x115xf32>
    %158 = vector.broadcast %157 : vector<1x115xf32> to vector<5x115xf32>
    %159 = arith.addf %156, %158 : vector<5x115xf32>
    %cst_85 = arith.constant 5.000000e-01 : f32
    %160 = vector.broadcast %cst_85 : f32 to vector<5x115xf32>
    %161 = arith.mulf %160, %159 : vector<5x115xf32>
    %cst_86 = arith.constant 4.471500e-02 : f32
    %162 = vector.broadcast %cst_86 : f32 to vector<5x115xf32>
    %163 = arith.mulf %162, %159 : vector<5x115xf32>
    %164 = arith.mulf %163, %159 : vector<5x115xf32>
    %165 = arith.mulf %164, %159 : vector<5x115xf32>
    %166 = arith.addf %159, %165 : vector<5x115xf32>
    %cst_87 = arith.constant 0.797884583 : f32
    %167 = vector.broadcast %cst_87 : f32 to vector<5x115xf32>
    %168 = arith.mulf %167, %166 : vector<5x115xf32>
    %169 = math.tanh %168 : vector<5x115xf32>
    %cst_88 = arith.constant 1.000000e+00 : f32
    %170 = vector.broadcast %cst_88 : f32 to vector<5x115xf32>
    %171 = arith.addf %170, %169 : vector<5x115xf32>
    %172 = arith.mulf %161, %171 : vector<5x115xf32>
    %c0_89 = arith.constant 0 : index
    %c0_90 = arith.constant 0 : index
    %173 = vector.load %arg12[%c0_89, %c0_90] : memref<3x115xf32, #tpu.memory_space<vmem>>, vector<3x115xf32>
    %cst_91 = arith.constant dense<0.000000e+00> : vector<5x115xf32>
    %174 = tpu.matmul %48, %172, %cst_91 {dimension_numbers = #tpu.dot_dimension_numbers<[1], [0], [0], [1], [0, 0, 1, 1], [], []>} : vector<5x5xf32>, vector<5x115xf32>, vector<5x115xf32> -> vector<5x115xf32>
    %175 = vector.extract_strided_slice %173 {offsets = [0, 0], sizes = [1, 115], strides = [1, 1]} : vector<3x115xf32> to vector<1x115xf32>
    %176 = vector.broadcast %175 : vector<1x115xf32> to vector<5x115xf32>
    %177 = arith.mulf %174, %176 : vector<5x115xf32>
    %178 = vector.extract_strided_slice %173 {offsets = [1, 0], sizes = [1, 115], strides = [1, 1]} : vector<3x115xf32> to vector<1x115xf32>
    %179 = vector.broadcast %178 : vector<1x115xf32> to vector<5x115xf32>
    %180 = arith.mulf %172, %179 : vector<5x115xf32>
    %181 = arith.addf %177, %180 : vector<5x115xf32>
    %cst_92 = arith.constant dense<0.000000e+00> : vector<5x115xf32>
    %182 = tpu.matmul %50, %172, %cst_92 {dimension_numbers = #tpu.dot_dimension_numbers<[1], [0], [0], [1], [0, 0, 1, 1], [], []>} : vector<5x5xf32>, vector<5x115xf32>, vector<5x115xf32> -> vector<5x115xf32>
    %183 = vector.extract_strided_slice %173 {offsets = [2, 0], sizes = [1, 115], strides = [1, 1]} : vector<3x115xf32> to vector<1x115xf32>
    %184 = vector.broadcast %183 : vector<1x115xf32> to vector<5x115xf32>
    %185 = arith.mulf %182, %184 : vector<5x115xf32>
    %186 = arith.addf %181, %185 : vector<5x115xf32>
    %c0_93 = arith.constant 0 : index
    %c0_94 = arith.constant 0 : index
    %187 = vector.load %arg13[%c0_93, %c0_94] : memref<1x115xf32, #tpu.memory_space<vmem>>, vector<1x115xf32>
    %188 = vector.broadcast %187 : vector<1x115xf32> to vector<5x115xf32>
    %189 = arith.addf %186, %188 : vector<5x115xf32>
    %cst_95 = arith.constant 5.000000e-01 : f32
    %190 = vector.broadcast %cst_95 : f32 to vector<5x115xf32>
    %191 = arith.mulf %190, %189 : vector<5x115xf32>
    %cst_96 = arith.constant 4.471500e-02 : f32
    %192 = vector.broadcast %cst_96 : f32 to vector<5x115xf32>
    %193 = arith.mulf %192, %189 : vector<5x115xf32>
    %194 = arith.mulf %193, %189 : vector<5x115xf32>
    %195 = arith.mulf %194, %189 : vector<5x115xf32>
    %196 = arith.addf %189, %195 : vector<5x115xf32>
    %cst_97 = arith.constant 0.797884583 : f32
    %197 = vector.broadcast %cst_97 : f32 to vector<5x115xf32>
    %198 = arith.mulf %197, %196 : vector<5x115xf32>
    %199 = math.tanh %198 : vector<5x115xf32>
    %cst_98 = arith.constant 1.000000e+00 : f32
    %200 = vector.broadcast %cst_98 : f32 to vector<5x115xf32>
    %201 = arith.addf %200, %199 : vector<5x115xf32>
    %202 = arith.mulf %191, %201 : vector<5x115xf32>
    %c0_99 = arith.constant 0 : index
    %c0_100 = arith.constant 0 : index
    %203 = vector.load %arg14[%c0_99, %c0_100] : memref<115x32xf32, #tpu.memory_space<vmem>>, vector<115x32xf32>
    %cst_101 = arith.constant dense<0.000000e+00> : vector<5x32xf32>
    %204 = tpu.matmul %202, %203, %cst_101 {dimension_numbers = #tpu.dot_dimension_numbers<[1], [0], [0], [1], [0, 0, 1, 1], [], []>} : vector<5x115xf32>, vector<115x32xf32>, vector<5x32xf32> -> vector<5x32xf32>
    %c0_102 = arith.constant 0 : index
    %c0_103 = arith.constant 0 : index
    %205 = vector.load %arg15[%c0_102, %c0_103] : memref<1x32xf32, #tpu.memory_space<vmem>>, vector<1x32xf32>
    %206 = vector.broadcast %205 : vector<1x32xf32> to vector<5x32xf32>
    %207 = arith.addf %204, %206 : vector<5x32xf32>
    %208 = arith.addf %154, %207 : vector<5x32xf32>
    %c0_104 = arith.constant 0 : index
    %c0_105 = arith.constant 0 : index
    %c0_106 = arith.constant 0 : index
    %209 = vector.load %arg16[%c0_104, %c0_105, %c0_106] : memref<1x5x32xf32, #tpu.memory_space<vmem>>, vector<1x5x32xf32>
    %210 = vector.shape_cast %209 : vector<1x5x32xf32> to vector<5x32xf32>
    %211 = vector.shape_cast %208 : vector<5x32xf32> to vector<1x5x32xf32>
    tpu.vector_store %arg16[%c0_104, %c0_105, %c0_106], %211 {strides = array<i32>} : memref<1x5x32xf32, #tpu.memory_space<vmem>>, vector<1x5x32xf32>,
    return
  }
  func.func @transform_0(%arg0: i32) -> (i32, i32, i32) {
    %c0_i32 = arith.constant 0 : i32
    %c0_i32_0 = arith.constant 0 : i32
    %c0_i32_1 = arith.constant 0 : i32
    return %arg0, %c0_i32, %c0_i32_0 : i32, i32, i32
  }
  func.func @transform_1(%arg0: i32) -> (i32, i32, i32) {
    %c0_i32 = arith.constant 0 : i32
    %c0_i32_0 = arith.constant 0 : i32
    %c0_i32_1 = arith.constant 0 : i32
    %c0_i32_2 = arith.constant 0 : i32
    return %c0_i32, %c0_i32_0, %c0_i32_1 : i32, i32, i32
  }
  func.func @transform_2(%arg0: i32) -> (i32, i32, i32) {
    %c0_i32 = arith.constant 0 : i32
    %c0_i32_0 = arith.constant 0 : i32
    %c0_i32_1 = arith.constant 0 : i32
    %c0_i32_2 = arith.constant 0 : i32
    return %c0_i32, %c0_i32_0, %c0_i32_1 : i32, i32, i32
  }
  func.func @transform_3(%arg0: i32) -> (i32, i32) {
    %c0_i32 = arith.constant 0 : i32
    %c0_i32_0 = arith.constant 0 : i32
    %c0_i32_1 = arith.constant 0 : i32
    return %c0_i32, %c0_i32_0 : i32, i32
  }
  func.func @transform_4(%arg0: i32) -> (i32, i32, i32) {
    %c0_i32 = arith.constant 0 : i32
    %c0_i32_0 = arith.constant 0 : i32
    %c0_i32_1 = arith.constant 0 : i32
    %c0_i32_2 = arith.constant 0 : i32
    return %c0_i32, %c0_i32_0, %c0_i32_1 : i32, i32, i32
  }
  func.func @transform_5(%arg0: i32) -> (i32, i32) {
    %c0_i32 = arith.constant 0 : i32
    %c0_i32_0 = arith.constant 0 : i32
    %c0_i32_1 = arith.constant 0 : i32
    return %c0_i32, %c0_i32_0 : i32, i32
  }
  func.func @transform_6(%arg0: i32) -> (i32, i32) {
    %c0_i32 = arith.constant 0 : i32
    %c0_i32_0 = arith.constant 0 : i32
    %c0_i32_1 = arith.constant 0 : i32
    return %c0_i32, %c0_i32_0 : i32, i32
  }
  func.func @transform_7(%arg0: i32) -> (i32, i32, i32) {
    %c0_i32 = arith.constant 0 : i32
    %c0_i32_0 = arith.constant 0 : i32
    %c0_i32_1 = arith.constant 0 : i32
    %c0_i32_2 = arith.constant 0 : i32
    return %c0_i32, %c0_i32_0, %c0_i32_1 : i32, i32, i32
  }
  func.func @transform_8(%arg0: i32) -> (i32, i32, i32) {
    %c0_i32 = arith.constant 0 : i32
    %c0_i32_0 = arith.constant 0 : i32
    %c0_i32_1 = arith.constant 0 : i32
    %c0_i32_2 = arith.constant 0 : i32
    return %c0_i32, %c0_i32_0, %c0_i32_1 : i32, i32, i32
  }
  func.func @transform_9(%arg0: i32) -> (i32, i32) {
    %c0_i32 = arith.constant 0 : i32
    %c0_i32_0 = arith.constant 0 : i32
    %c0_i32_1 = arith.constant 0 : i32
    return %c0_i32, %c0_i32_0 : i32, i32
  }
  func.func @transform_10(%arg0: i32) -> (i32, i32) {
    %c0_i32 = arith.constant 0 : i32
    %c0_i32_0 = arith.constant 0 : i32
    %c0_i32_1 = arith.constant 0 : i32
    return %c0_i32, %c0_i32_0 : i32, i32
  }
  func.func @transform_11(%arg0: i32) -> (i32, i32) {
    %c0_i32 = arith.constant 0 : i32
    %c0_i32_0 = arith.constant 0 : i32
    %c0_i32_1 = arith.constant 0 : i32
    return %c0_i32, %c0_i32_0 : i32, i32
  }
  func.func @transform_12(%arg0: i32) -> (i32, i32) {
    %c0_i32 = arith.constant 0 : i32
    %c0_i32_0 = arith.constant 0 : i32
    %c0_i32_1 = arith.constant 0 : i32
    return %c0_i32, %c0_i32_0 : i32, i32
  }
  func.func @transform_13(%arg0: i32) -> (i32, i32) {
    %c0_i32 = arith.constant 0 : i32
    %c0_i32_0 = arith.constant 0 : i32
    %c0_i32_1 = arith.constant 0 : i32
    return %c0_i32, %c0_i32_0 : i32, i32
  }
  func.func @transform_14(%arg0: i32) -> (i32, i32) {
    %c0_i32 = arith.constant 0 : i32
    %c0_i32_0 = arith.constant 0 : i32
    %c0_i32_1 = arith.constant 0 : i32
    return %c0_i32, %c0_i32_0 : i32, i32
  }
  func.func @transform_15(%arg0: i32) -> (i32, i32, i32) {
    %c0_i32 = arith.constant 0 : i32
    %c0_i32_0 = arith.constant 0 : i32
    %c0_i32_1 = arith.constant 0 : i32
    return %arg0, %c0_i32, %c0_i32_0 : i32, i32, i32
  }
}

module attributes {stable_mosaic.version = 11 : i64} {
  func.func @_stage_kernel(%arg0: i32, %arg1: memref<1x5x32xf32, #tpu.memory_space<vmem>>, %arg2: memref<3x2x5xf32, #tpu.memory_space<vmem>>, %arg3: memref<3x32x32xf32, #tpu.memory_space<vmem>>, %arg4: memref<1x32xf32, #tpu.memory_space<vmem>>, %arg5: memref<2x2x2xf32, #tpu.memory_space<vmem>>, %arg6: memref<32x32xf32, #tpu.memory_space<vmem>>, %arg7: memref<1x32xf32, #tpu.memory_space<vmem>>, %arg8: memref<3x3x32xf32, #tpu.memory_space<vmem>>, %arg9: memref<3x1x32xf32, #tpu.memory_space<vmem>>, %arg10: memref<32x115xf32, #tpu.memory_space<vmem>>, %arg11: memref<1x115xf32, #tpu.memory_space<vmem>>, %arg12: memref<3x115xf32, #tpu.memory_space<vmem>>, %arg13: memref<1x115xf32, #tpu.memory_space<vmem>>, %arg14: memref<115x32xf32, #tpu.memory_space<vmem>>, %arg15: memref<1x32xf32, #tpu.memory_space<vmem>>, %arg16: memref<1x2x32xf32, #tpu.memory_space<vmem>>) attributes {dimension_semantics = [#tpu.dimension_semantics<parallel>], iteration_bounds = array<i64: 2>, scalar_prefetch = 0 : i64, scratch_operands = 0 : i64, tpu.core_type = #tpu.core_type<tc>, window_params = [{transform_indices = @transform_0, window_bounds = array<i64: 1, 5, 32>}, {pipeline_mode = #tpu.pipeline_mode<synchronous>, transform_indices = @transform_1, window_bounds = array<i64: 3, 2, 5>}, {pipeline_mode = #tpu.pipeline_mode<synchronous>, transform_indices = @transform_2, window_bounds = array<i64: 3, 32, 32>}, {pipeline_mode = #tpu.pipeline_mode<synchronous>, transform_indices = @transform_3, window_bounds = array<i64: 1, 32>}, {pipeline_mode = #tpu.pipeline_mode<synchronous>, transform_indices = @transform_4, window_bounds = array<i64: 2, 2, 2>}, {pipeline_mode = #tpu.pipeline_mode<synchronous>, transform_indices = @transform_5, window_bounds = array<i64: 32, 32>}, {pipeline_mode = #tpu.pipeline_mode<synchronous>, transform_indices = @transform_6, window_bounds = array<i64: 1, 32>}, {pipeline_mode = #tpu.pipeline_mode<synchronous>, transform_indices = @transform_7, window_bounds = array<i64: 3, 3, 32>}, {pipeline_mode = #tpu.pipeline_mode<synchronous>, transform_indices = @transform_8, window_bounds = array<i64: 3, 1, 32>}, {pipeline_mode = #tpu.pipeline_mode<synchronous>, transform_indices = @transform_9, window_bounds = array<i64: 32, 115>}, {pipeline_mode = #tpu.pipeline_mode<synchronous>, transform_indices = @transform_10, window_bounds = array<i64: 1, 115>}, {pipeline_mode = #tpu.pipeline_mode<synchronous>, transform_indices = @transform_11, window_bounds = array<i64: 3, 115>}, {pipeline_mode = #tpu.pipeline_mode<synchronous>, transform_indices = @transform_12, window_bounds = array<i64: 1, 115>}, {pipeline_mode = #tpu.pipeline_mode<synchronous>, transform_indices = @transform_13, window_bounds = array<i64: 115, 32>}, {pipeline_mode = #tpu.pipeline_mode<synchronous>, transform_indices = @transform_14, window_bounds = array<i64: 1, 32>}, {transform_indices = @transform_15, window_bounds = array<i64: 1, 2, 32>}]} {
    %c0 = arith.constant 0 : index
    %c0_0 = arith.constant 0 : index
    %c0_1 = arith.constant 0 : index
    %0 = vector.load %arg1[%c0, %c0_0, %c0_1] : memref<1x5x32xf32, #tpu.memory_space<vmem>>, vector<1x5x32xf32>
    %1 = vector.shape_cast %0 : vector<1x5x32xf32> to vector<5x32xf32>
    %c0_2 = arith.constant 0 : index
    %c0_3 = arith.constant 0 : index
    %c0_4 = arith.constant 0 : index
    %2 = vector.load %arg2[%c0_2, %c0_3, %c0_4] : memref<3x2x5xf32, #tpu.memory_space<vmem>>, vector<1x2x5xf32>
    %3 = vector.shape_cast %2 : vector<1x2x5xf32> to vector<2x5xf32>
    %cst = arith.constant dense<0.000000e+00> : vector<2x32xf32>
    %4 = tpu.matmul %3, %1, %cst {dimension_numbers = #tpu.dot_dimension_numbers<[1], [0], [0], [1], [0, 0, 1, 1], [], []>} : vector<2x5xf32>, vector<5x32xf32>, vector<2x32xf32> -> vector<2x32xf32>
    %c0_5 = arith.constant 0 : index
    %c0_6 = arith.constant 0 : index
    %c0_7 = arith.constant 0 : index
    %5 = vector.load %arg3[%c0_5, %c0_6, %c0_7] : memref<3x32x32xf32, #tpu.memory_space<vmem>>, vector<1x32x32xf32>
    %6 = vector.shape_cast %5 : vector<1x32x32xf32> to vector<32x32xf32>
    %cst_8 = arith.constant dense<0.000000e+00> : vector<2x32xf32>
    %7 = tpu.matmul %4, %6, %cst_8 {dimension_numbers = #tpu.dot_dimension_numbers<[1], [0], [0], [1], [0, 0, 1, 1], [], []>} : vector<2x32xf32>, vector<32x32xf32>, vector<2x32xf32> -> vector<2x32xf32>
    %c1 = arith.constant 1 : index
    %c0_9 = arith.constant 0 : index
    %c0_10 = arith.constant 0 : index
    %8 = vector.load %arg2[%c1, %c0_9, %c0_10] : memref<3x2x5xf32, #tpu.memory_space<vmem>>, vector<1x2x5xf32>
    %9 = vector.shape_cast %8 : vector<1x2x5xf32> to vector<2x5xf32>
    %cst_11 = arith.constant dense<0.000000e+00> : vector<2x32xf32>
    %10 = tpu.matmul %9, %1, %cst_11 {dimension_numbers = #tpu.dot_dimension_numbers<[1], [0], [0], [1], [0, 0, 1, 1], [], []>} : vector<2x5xf32>, vector<5x32xf32>, vector<2x32xf32> -> vector<2x32xf32>
    %c1_12 = arith.constant 1 : index
    %c0_13 = arith.constant 0 : index
    %c0_14 = arith.constant 0 : index
    %11 = vector.load %arg3[%c1_12, %c0_13, %c0_14] : memref<3x32x32xf32, #tpu.memory_space<vmem>>, vector<1x32x32xf32>
    %12 = vector.shape_cast %11 : vector<1x32x32xf32> to vector<32x32xf32>
    %cst_15 = arith.constant dense<0.000000e+00> : vector<2x32xf32>
    %13 = tpu.matmul %10, %12, %cst_15 {dimension_numbers = #tpu.dot_dimension_numbers<[1], [0], [0], [1], [0, 0, 1, 1], [], []>} : vector<2x32xf32>, vector<32x32xf32>, vector<2x32xf32> -> vector<2x32xf32>
    %14 = arith.addf %7, %13 : vector<2x32xf32>
    %c2 = arith.constant 2 : index
    %c0_16 = arith.constant 0 : index
    %c0_17 = arith.constant 0 : index
    %15 = vector.load %arg2[%c2, %c0_16, %c0_17] : memref<3x2x5xf32, #tpu.memory_space<vmem>>, vector<1x2x5xf32>
    %16 = vector.shape_cast %15 : vector<1x2x5xf32> to vector<2x5xf32>
    %cst_18 = arith.constant dense<0.000000e+00> : vector<2x32xf32>
    %17 = tpu.matmul %16, %1, %cst_18 {dimension_numbers = #tpu.dot_dimension_numbers<[1], [0], [0], [1], [0, 0, 1, 1], [], []>} : vector<2x5xf32>, vector<5x32xf32>, vector<2x32xf32> -> vector<2x32xf32>
    %c2_19 = arith.constant 2 : index
    %c0_20 = arith.constant 0 : index
    %c0_21 = arith.constant 0 : index
    %18 = vector.load %arg3[%c2_19, %c0_20, %c0_21] : memref<3x32x32xf32, #tpu.memory_space<vmem>>, vector<1x32x32xf32>
    %19 = vector.shape_cast %18 : vector<1x32x32xf32> to vector<32x32xf32>
    %cst_22 = arith.constant dense<0.000000e+00> : vector<2x32xf32>
    %20 = tpu.matmul %17, %19, %cst_22 {dimension_numbers = #tpu.dot_dimension_numbers<[1], [0], [0], [1], [0, 0, 1, 1], [], []>} : vector<2x32xf32>, vector<32x32xf32>, vector<2x32xf32> -> vector<2x32xf32>
    %21 = arith.addf %14, %20 : vector<2x32xf32>
    %c0_23 = arith.constant 0 : index
    %c0_24 = arith.constant 0 : index
    %22 = vector.load %arg4[%c0_23, %c0_24] : memref<1x32xf32, #tpu.memory_space<vmem>>, vector<1x32xf32>
    %23 = vector.broadcast %22 : vector<1x32xf32> to vector<2x32xf32>
    %24 = arith.addf %21, %23 : vector<2x32xf32>
    %cst_25 = arith.constant dense<0.000000e+00> : vector<2xf32>
    %25 = vector.multi_reduction <add>, %24, %cst_25 [1] : vector<2x32xf32> to vector<2xf32>
    %26 = vector.shape_cast %25 : vector<2xf32> to vector<2x1xf32>
    %cst_26 = arith.constant dense<0.000000e+00> : vector<1xf32>
    %27 = vector.multi_reduction <add>, %26, %cst_26 [0] : vector<2x1xf32> to vector<1xf32>
    %28 = vector.shape_cast %27 : vector<1xf32> to vector<1x1xf32>
    %cst_27 = arith.constant 6.400000e+01 : f32
    %29 = vector.broadcast %cst_27 : f32 to vector<1x1xf32>
    %30 = arith.divf %28, %29 : vector<1x1xf32>
    %31 = arith.mulf %24, %24 : vector<2x32xf32>
    %cst_28 = arith.constant dense<0.000000e+00> : vector<2xf32>
    %32 = vector.multi_reduction <add>, %31, %cst_28 [1] : vector<2x32xf32> to vector<2xf32>
    %33 = vector.shape_cast %32 : vector<2xf32> to vector<2x1xf32>
    %cst_29 = arith.constant dense<0.000000e+00> : vector<1xf32>
    %34 = vector.multi_reduction <add>, %33, %cst_29 [0] : vector<2x1xf32> to vector<1xf32>
    %35 = vector.shape_cast %34 : vector<1xf32> to vector<1x1xf32>
    %cst_30 = arith.constant 6.400000e+01 : f32
    %36 = vector.broadcast %cst_30 : f32 to vector<1x1xf32>
    %37 = arith.divf %35, %36 : vector<1x1xf32>
    %38 = vector.broadcast %30 : vector<1x1xf32> to vector<2x32xf32>
    %39 = arith.subf %24, %38 : vector<2x32xf32>
    %40 = arith.mulf %30, %30 : vector<1x1xf32>
    %41 = arith.subf %37, %40 : vector<1x1xf32>
    %cst_31 = arith.constant 9.99999974E-6 : f32
    %42 = vector.broadcast %cst_31 : f32 to vector<1x1xf32>
    %43 = arith.addf %41, %42 : vector<1x1xf32>
    %44 = math.rsqrt %43 : vector<1x1xf32>
    %45 = vector.broadcast %44 : vector<1x1xf32> to vector<2x32xf32>
    %46 = arith.mulf %39, %45 : vector<2x32xf32>
    %c0_32 = arith.constant 0 : index
    %c0_33 = arith.constant 0 : index
    %c0_34 = arith.constant 0 : index
    %47 = vector.load %arg5[%c0_32, %c0_33, %c0_34] : memref<2x2x2xf32, #tpu.memory_space<vmem>>, vector<1x2x2xf32>
    %48 = vector.shape_cast %47 : vector<1x2x2xf32> to vector<2x2xf32>
    %c1_35 = arith.constant 1 : index
    %c0_36 = arith.constant 0 : index
    %c0_37 = arith.constant 0 : index
    %49 = vector.load %arg5[%c1_35, %c0_36, %c0_37] : memref<2x2x2xf32, #tpu.memory_space<vmem>>, vector<1x2x2xf32>
    %50 = vector.shape_cast %49 : vector<1x2x2xf32> to vector<2x2xf32>
    %c0_38 = arith.constant 0 : index
    %c0_39 = arith.constant 0 : index
    %51 = vector.load %arg6[%c0_38, %c0_39] : memref<32x32xf32, #tpu.memory_space<vmem>>, vector<32x32xf32>
    %cst_40 = arith.constant dense<0.000000e+00> : vector<2x32xf32>
    %52 = tpu.matmul %46, %51, %cst_40 {dimension_numbers = #tpu.dot_dimension_numbers<[1], [0], [0], [1], [0, 0, 1, 1], [], []>} : vector<2x32xf32>, vector<32x32xf32>, vector<2x32xf32> -> vector<2x32xf32>
    %c0_41 = arith.constant 0 : index
    %c0_42 = arith.constant 0 : index
    %53 = vector.load %arg7[%c0_41, %c0_42] : memref<1x32xf32, #tpu.memory_space<vmem>>, vector<1x32xf32>
    %54 = vector.broadcast %53 : vector<1x32xf32> to vector<2x32xf32>
    %55 = arith.addf %52, %54 : vector<2x32xf32>
    %56 = arith.addf %55, %46 : vector<2x32xf32>
    %c0_43 = arith.constant 0 : index
    %c0_44 = arith.constant 0 : index
    %c0_45 = arith.constant 0 : index
    %57 = vector.load %arg8[%c0_43, %c0_44, %c0_45] : memref<3x3x32xf32, #tpu.memory_space<vmem>>, vector<1x3x32xf32>
    %58 = vector.shape_cast %57 : vector<1x3x32xf32> to vector<3x32xf32>
    %cst_46 = arith.constant dense<0.000000e+00> : vector<2x32xf32>
    %59 = tpu.matmul %48, %56, %cst_46 {dimension_numbers = #tpu.dot_dimension_numbers<[1], [0], [0], [1], [0, 0, 1, 1], [], []>} : vector<2x2xf32>, vector<2x32xf32>, vector<2x32xf32> -> vector<2x32xf32>
    %60 = vector.extract_strided_slice %58 {offsets = [0, 0], sizes = [1, 32], strides = [1, 1]} : vector<3x32xf32> to vector<1x32xf32>
    %61 = vector.broadcast %60 : vector<1x32xf32> to vector<2x32xf32>
    %62 = arith.mulf %59, %61 : vector<2x32xf32>
    %63 = vector.extract_strided_slice %58 {offsets = [1, 0], sizes = [1, 32], strides = [1, 1]} : vector<3x32xf32> to vector<1x32xf32>
    %64 = vector.broadcast %63 : vector<1x32xf32> to vector<2x32xf32>
    %65 = arith.mulf %56, %64 : vector<2x32xf32>
    %66 = arith.addf %62, %65 : vector<2x32xf32>
    %cst_47 = arith.constant dense<0.000000e+00> : vector<2x32xf32>
    %67 = tpu.matmul %50, %56, %cst_47 {dimension_numbers = #tpu.dot_dimension_numbers<[1], [0], [0], [1], [0, 0, 1, 1], [], []>} : vector<2x2xf32>, vector<2x32xf32>, vector<2x32xf32> -> vector<2x32xf32>
    %68 = vector.extract_strided_slice %58 {offsets = [2, 0], sizes = [1, 32], strides = [1, 1]} : vector<3x32xf32> to vector<1x32xf32>
    %69 = vector.broadcast %68 : vector<1x32xf32> to vector<2x32xf32>
    %70 = arith.mulf %67, %69 : vector<2x32xf32>
    %71 = arith.addf %66, %70 : vector<2x32xf32>
    %c0_48 = arith.constant 0 : index
    %c0_49 = arith.constant 0 : index
    %c0_50 = arith.constant 0 : index
    %72 = vector.load %arg9[%c0_48, %c0_49, %c0_50] : memref<3x1x32xf32, #tpu.memory_space<vmem>>, vector<1x1x32xf32>
    %73 = vector.shape_cast %72 : vector<1x1x32xf32> to vector<1x32xf32>
    %74 = vector.broadcast %73 : vector<1x32xf32> to vector<2x32xf32>
    %75 = arith.addf %71, %74 : vector<2x32xf32>
    %cst_51 = arith.constant 5.000000e-01 : f32
    %76 = vector.broadcast %cst_51 : f32 to vector<2x32xf32>
    %77 = arith.mulf %76, %75 : vector<2x32xf32>
    %cst_52 = arith.constant 4.471500e-02 : f32
    %78 = vector.broadcast %cst_52 : f32 to vector<2x32xf32>
    %79 = arith.mulf %78, %75 : vector<2x32xf32>
    %80 = arith.mulf %79, %75 : vector<2x32xf32>
    %81 = arith.mulf %80, %75 : vector<2x32xf32>
    %82 = arith.addf %75, %81 : vector<2x32xf32>
    %cst_53 = arith.constant 0.797884583 : f32
    %83 = vector.broadcast %cst_53 : f32 to vector<2x32xf32>
    %84 = arith.mulf %83, %82 : vector<2x32xf32>
    %85 = math.tanh %84 : vector<2x32xf32>
    %cst_54 = arith.constant 1.000000e+00 : f32
    %86 = vector.broadcast %cst_54 : f32 to vector<2x32xf32>
    %87 = arith.addf %86, %85 : vector<2x32xf32>
    %88 = arith.mulf %77, %87 : vector<2x32xf32>
    %c1_55 = arith.constant 1 : index
    %c0_56 = arith.constant 0 : index
    %c0_57 = arith.constant 0 : index
    %89 = vector.load %arg8[%c1_55, %c0_56, %c0_57] : memref<3x3x32xf32, #tpu.memory_space<vmem>>, vector<1x3x32xf32>
    %90 = vector.shape_cast %89 : vector<1x3x32xf32> to vector<3x32xf32>
    %cst_58 = arith.constant dense<0.000000e+00> : vector<2x32xf32>
    %91 = tpu.matmul %48, %88, %cst_58 {dimension_numbers = #tpu.dot_dimension_numbers<[1], [0], [0], [1], [0, 0, 1, 1], [], []>} : vector<2x2xf32>, vector<2x32xf32>, vector<2x32xf32> -> vector<2x32xf32>
    %92 = vector.extract_strided_slice %90 {offsets = [0, 0], sizes = [1, 32], strides = [1, 1]} : vector<3x32xf32> to vector<1x32xf32>
    %93 = vector.broadcast %92 : vector<1x32xf32> to vector<2x32xf32>
    %94 = arith.mulf %91, %93 : vector<2x32xf32>
    %95 = vector.extract_strided_slice %90 {offsets = [1, 0], sizes = [1, 32], strides = [1, 1]} : vector<3x32xf32> to vector<1x32xf32>
    %96 = vector.broadcast %95 : vector<1x32xf32> to vector<2x32xf32>
    %97 = arith.mulf %88, %96 : vector<2x32xf32>
    %98 = arith.addf %94, %97 : vector<2x32xf32>
    %cst_59 = arith.constant dense<0.000000e+00> : vector<2x32xf32>
    %99 = tpu.matmul %50, %88, %cst_59 {dimension_numbers = #tpu.dot_dimension_numbers<[1], [0], [0], [1], [0, 0, 1, 1], [], []>} : vector<2x2xf32>, vector<2x32xf32>, vector<2x32xf32> -> vector<2x32xf32>
    %100 = vector.extract_strided_slice %90 {offsets = [2, 0], sizes = [1, 32], strides = [1, 1]} : vector<3x32xf32> to vector<1x32xf32>
    %101 = vector.broadcast %100 : vector<1x32xf32> to vector<2x32xf32>
    %102 = arith.mulf %99, %101 : vector<2x32xf32>
    %103 = arith.addf %98, %102 : vector<2x32xf32>
    %c1_60 = arith.constant 1 : index
    %c0_61 = arith.constant 0 : index
    %c0_62 = arith.constant 0 : index
    %104 = vector.load %arg9[%c1_60, %c0_61, %c0_62] : memref<3x1x32xf32, #tpu.memory_space<vmem>>, vector<1x1x32xf32>
    %105 = vector.shape_cast %104 : vector<1x1x32xf32> to vector<1x32xf32>
    %106 = vector.broadcast %105 : vector<1x32xf32> to vector<2x32xf32>
    %107 = arith.addf %103, %106 : vector<2x32xf32>
    %cst_63 = arith.constant 5.000000e-01 : f32
    %108 = vector.broadcast %cst_63 : f32 to vector<2x32xf32>
    %109 = arith.mulf %108, %107 : vector<2x32xf32>
    %cst_64 = arith.constant 4.471500e-02 : f32
    %110 = vector.broadcast %cst_64 : f32 to vector<2x32xf32>
    %111 = arith.mulf %110, %107 : vector<2x32xf32>
    %112 = arith.mulf %111, %107 : vector<2x32xf32>
    %113 = arith.mulf %112, %107 : vector<2x32xf32>
    %114 = arith.addf %107, %113 : vector<2x32xf32>
    %cst_65 = arith.constant 0.797884583 : f32
    %115 = vector.broadcast %cst_65 : f32 to vector<2x32xf32>
    %116 = arith.mulf %115, %114 : vector<2x32xf32>
    %117 = math.tanh %116 : vector<2x32xf32>
    %cst_66 = arith.constant 1.000000e+00 : f32
    %118 = vector.broadcast %cst_66 : f32 to vector<2x32xf32>
    %119 = arith.addf %118, %117 : vector<2x32xf32>
    %120 = arith.mulf %109, %119 : vector<2x32xf32>
    %c2_67 = arith.constant 2 : index
    %c0_68 = arith.constant 0 : index
    %c0_69 = arith.constant 0 : index
    %121 = vector.load %arg8[%c2_67, %c0_68, %c0_69] : memref<3x3x32xf32, #tpu.memory_space<vmem>>, vector<1x3x32xf32>
    %122 = vector.shape_cast %121 : vector<1x3x32xf32> to vector<3x32xf32>
    %cst_70 = arith.constant dense<0.000000e+00> : vector<2x32xf32>
    %123 = tpu.matmul %48, %120, %cst_70 {dimension_numbers = #tpu.dot_dimension_numbers<[1], [0], [0], [1], [0, 0, 1, 1], [], []>} : vector<2x2xf32>, vector<2x32xf32>, vector<2x32xf32> -> vector<2x32xf32>
    %124 = vector.extract_strided_slice %122 {offsets = [0, 0], sizes = [1, 32], strides = [1, 1]} : vector<3x32xf32> to vector<1x32xf32>
    %125 = vector.broadcast %124 : vector<1x32xf32> to vector<2x32xf32>
    %126 = arith.mulf %123, %125 : vector<2x32xf32>
    %127 = vector.extract_strided_slice %122 {offsets = [1, 0], sizes = [1, 32], strides = [1, 1]} : vector<3x32xf32> to vector<1x32xf32>
    %128 = vector.broadcast %127 : vector<1x32xf32> to vector<2x32xf32>
    %129 = arith.mulf %120, %128 : vector<2x32xf32>
    %130 = arith.addf %126, %129 : vector<2x32xf32>
    %cst_71 = arith.constant dense<0.000000e+00> : vector<2x32xf32>
    %131 = tpu.matmul %50, %120, %cst_71 {dimension_numbers = #tpu.dot_dimension_numbers<[1], [0], [0], [1], [0, 0, 1, 1], [], []>} : vector<2x2xf32>, vector<2x32xf32>, vector<2x32xf32> -> vector<2x32xf32>
    %132 = vector.extract_strided_slice %122 {offsets = [2, 0], sizes = [1, 32], strides = [1, 1]} : vector<3x32xf32> to vector<1x32xf32>
    %133 = vector.broadcast %132 : vector<1x32xf32> to vector<2x32xf32>
    %134 = arith.mulf %131, %133 : vector<2x32xf32>
    %135 = arith.addf %130, %134 : vector<2x32xf32>
    %c2_72 = arith.constant 2 : index
    %c0_73 = arith.constant 0 : index
    %c0_74 = arith.constant 0 : index
    %136 = vector.load %arg9[%c2_72, %c0_73, %c0_74] : memref<3x1x32xf32, #tpu.memory_space<vmem>>, vector<1x1x32xf32>
    %137 = vector.shape_cast %136 : vector<1x1x32xf32> to vector<1x32xf32>
    %138 = vector.broadcast %137 : vector<1x32xf32> to vector<2x32xf32>
    %139 = arith.addf %135, %138 : vector<2x32xf32>
    %cst_75 = arith.constant 5.000000e-01 : f32
    %140 = vector.broadcast %cst_75 : f32 to vector<2x32xf32>
    %141 = arith.mulf %140, %139 : vector<2x32xf32>
    %cst_76 = arith.constant 4.471500e-02 : f32
    %142 = vector.broadcast %cst_76 : f32 to vector<2x32xf32>
    %143 = arith.mulf %142, %139 : vector<2x32xf32>
    %144 = arith.mulf %143, %139 : vector<2x32xf32>
    %145 = arith.mulf %144, %139 : vector<2x32xf32>
    %146 = arith.addf %139, %145 : vector<2x32xf32>
    %cst_77 = arith.constant 0.797884583 : f32
    %147 = vector.broadcast %cst_77 : f32 to vector<2x32xf32>
    %148 = arith.mulf %147, %146 : vector<2x32xf32>
    %149 = math.tanh %148 : vector<2x32xf32>
    %cst_78 = arith.constant 1.000000e+00 : f32
    %150 = vector.broadcast %cst_78 : f32 to vector<2x32xf32>
    %151 = arith.addf %150, %149 : vector<2x32xf32>
    %152 = arith.mulf %141, %151 : vector<2x32xf32>
    %cst_79 = arith.constant 0.999994993 : f32
    %153 = vector.broadcast %cst_79 : f32 to vector<2x32xf32>
    %154 = arith.mulf %152, %153 : vector<2x32xf32>
    %c0_80 = arith.constant 0 : index
    %c0_81 = arith.constant 0 : index
    %155 = vector.load %arg10[%c0_80, %c0_81] : memref<32x115xf32, #tpu.memory_space<vmem>>, vector<32x115xf32>
    %cst_82 = arith.constant dense<0.000000e+00> : vector<2x115xf32>
    %156 = tpu.matmul %154, %155, %cst_82 {dimension_numbers = #tpu.dot_dimension_numbers<[1], [0], [0], [1], [0, 0, 1, 1], [], []>} : vector<2x32xf32>, vector<32x115xf32>, vector<2x115xf32> -> vector<2x115xf32>
    %c0_83 = arith.constant 0 : index
    %c0_84 = arith.constant 0 : index
    %157 = vector.load %arg11[%c0_83, %c0_84] : memref<1x115xf32, #tpu.memory_space<vmem>>, vector<1x115xf32>
    %158 = vector.broadcast %157 : vector<1x115xf32> to vector<2x115xf32>
    %159 = arith.addf %156, %158 : vector<2x115xf32>
    %cst_85 = arith.constant 5.000000e-01 : f32
    %160 = vector.broadcast %cst_85 : f32 to vector<2x115xf32>
    %161 = arith.mulf %160, %159 : vector<2x115xf32>
    %cst_86 = arith.constant 4.471500e-02 : f32
    %162 = vector.broadcast %cst_86 : f32 to vector<2x115xf32>
    %163 = arith.mulf %162, %159 : vector<2x115xf32>
    %164 = arith.mulf %163, %159 : vector<2x115xf32>
    %165 = arith.mulf %164, %159 : vector<2x115xf32>
    %166 = arith.addf %159, %165 : vector<2x115xf32>
    %cst_87 = arith.constant 0.797884583 : f32
    %167 = vector.broadcast %cst_87 : f32 to vector<2x115xf32>
    %168 = arith.mulf %167, %166 : vector<2x115xf32>
    %169 = math.tanh %168 : vector<2x115xf32>
    %cst_88 = arith.constant 1.000000e+00 : f32
    %170 = vector.broadcast %cst_88 : f32 to vector<2x115xf32>
    %171 = arith.addf %170, %169 : vector<2x115xf32>
    %172 = arith.mulf %161, %171 : vector<2x115xf32>
    %c0_89 = arith.constant 0 : index
    %c0_90 = arith.constant 0 : index
    %173 = vector.load %arg12[%c0_89, %c0_90] : memref<3x115xf32, #tpu.memory_space<vmem>>, vector<3x115xf32>
    %cst_91 = arith.constant dense<0.000000e+00> : vector<2x115xf32>
    %174 = tpu.matmul %48, %172, %cst_91 {dimension_numbers = #tpu.dot_dimension_numbers<[1], [0], [0], [1], [0, 0, 1, 1], [], []>} : vector<2x2xf32>, vector<2x115xf32>, vector<2x115xf32> -> vector<2x115xf32>
    %175 = vector.extract_strided_slice %173 {offsets = [0, 0], sizes = [1, 115], strides = [1, 1]} : vector<3x115xf32> to vector<1x115xf32>
    %176 = vector.broadcast %175 : vector<1x115xf32> to vector<2x115xf32>
    %177 = arith.mulf %174, %176 : vector<2x115xf32>
    %178 = vector.extract_strided_slice %173 {offsets = [1, 0], sizes = [1, 115], strides = [1, 1]} : vector<3x115xf32> to vector<1x115xf32>
    %179 = vector.broadcast %178 : vector<1x115xf32> to vector<2x115xf32>
    %180 = arith.mulf %172, %179 : vector<2x115xf32>
    %181 = arith.addf %177, %180 : vector<2x115xf32>
    %cst_92 = arith.constant dense<0.000000e+00> : vector<2x115xf32>
    %182 = tpu.matmul %50, %172, %cst_92 {dimension_numbers = #tpu.dot_dimension_numbers<[1], [0], [0], [1], [0, 0, 1, 1], [], []>} : vector<2x2xf32>, vector<2x115xf32>, vector<2x115xf32> -> vector<2x115xf32>
    %183 = vector.extract_strided_slice %173 {offsets = [2, 0], sizes = [1, 115], strides = [1, 1]} : vector<3x115xf32> to vector<1x115xf32>
    %184 = vector.broadcast %183 : vector<1x115xf32> to vector<2x115xf32>
    %185 = arith.mulf %182, %184 : vector<2x115xf32>
    %186 = arith.addf %181, %185 : vector<2x115xf32>
    %c0_93 = arith.constant 0 : index
    %c0_94 = arith.constant 0 : index
    %187 = vector.load %arg13[%c0_93, %c0_94] : memref<1x115xf32, #tpu.memory_space<vmem>>, vector<1x115xf32>
    %188 = vector.broadcast %187 : vector<1x115xf32> to vector<2x115xf32>
    %189 = arith.addf %186, %188 : vector<2x115xf32>
    %cst_95 = arith.constant 5.000000e-01 : f32
    %190 = vector.broadcast %cst_95 : f32 to vector<2x115xf32>
    %191 = arith.mulf %190, %189 : vector<2x115xf32>
    %cst_96 = arith.constant 4.471500e-02 : f32
    %192 = vector.broadcast %cst_96 : f32 to vector<2x115xf32>
    %193 = arith.mulf %192, %189 : vector<2x115xf32>
    %194 = arith.mulf %193, %189 : vector<2x115xf32>
    %195 = arith.mulf %194, %189 : vector<2x115xf32>
    %196 = arith.addf %189, %195 : vector<2x115xf32>
    %cst_97 = arith.constant 0.797884583 : f32
    %197 = vector.broadcast %cst_97 : f32 to vector<2x115xf32>
    %198 = arith.mulf %197, %196 : vector<2x115xf32>
    %199 = math.tanh %198 : vector<2x115xf32>
    %cst_98 = arith.constant 1.000000e+00 : f32
    %200 = vector.broadcast %cst_98 : f32 to vector<2x115xf32>
    %201 = arith.addf %200, %199 : vector<2x115xf32>
    %202 = arith.mulf %191, %201 : vector<2x115xf32>
    %c0_99 = arith.constant 0 : index
    %c0_100 = arith.constant 0 : index
    %203 = vector.load %arg14[%c0_99, %c0_100] : memref<115x32xf32, #tpu.memory_space<vmem>>, vector<115x32xf32>
    %cst_101 = arith.constant dense<0.000000e+00> : vector<2x32xf32>
    %204 = tpu.matmul %202, %203, %cst_101 {dimension_numbers = #tpu.dot_dimension_numbers<[1], [0], [0], [1], [0, 0, 1, 1], [], []>} : vector<2x115xf32>, vector<115x32xf32>, vector<2x32xf32> -> vector<2x32xf32>
    %c0_102 = arith.constant 0 : index
    %c0_103 = arith.constant 0 : index
    %205 = vector.load %arg15[%c0_102, %c0_103] : memref<1x32xf32, #tpu.memory_space<vmem>>, vector<1x32xf32>
    %206 = vector.broadcast %205 : vector<1x32xf32> to vector<2x32xf32>
    %207 = arith.addf %204, %206 : vector<2x32xf32>
    %208 = arith.addf %154, %207 : vector<2x32xf32>
    %c0_104 = arith.constant 0 : index
    %c0_105 = arith.constant 0 : index
    %c0_106 = arith.constant 0 : index
    %209 = vector.load %arg16[%c0_104, %c0_105, %c0_106] : memref<1x2x32xf32, #tpu.memory_space<vmem>>, vector<1x2x32xf32>
    %210 = vector.shape_cast %209 : vector<1x2x32xf32> to vector<2x32xf32>
    %211 = vector.shape_cast %208 : vector<2x32xf32> to vector<1x2x32xf32>
    tpu.vector_store %arg16[%c0_104, %c0_105, %c0_106], %211 {strides = array<i32>} : memref<1x2x32xf32, #tpu.memory_space<vmem>>, vector<1x2x32xf32>,
    return
  }
  func.func @transform_0(%arg0: i32) -> (i32, i32, i32) {
    %c0_i32 = arith.constant 0 : i32
    %c0_i32_0 = arith.constant 0 : i32
    %c0_i32_1 = arith.constant 0 : i32
    return %arg0, %c0_i32, %c0_i32_0 : i32, i32, i32
  }
  func.func @transform_1(%arg0: i32) -> (i32, i32, i32) {
    %c0_i32 = arith.constant 0 : i32
    %c0_i32_0 = arith.constant 0 : i32
    %c0_i32_1 = arith.constant 0 : i32
    %c0_i32_2 = arith.constant 0 : i32
    return %c0_i32, %c0_i32_0, %c0_i32_1 : i32, i32, i32
  }
  func.func @transform_2(%arg0: i32) -> (i32, i32, i32) {
    %c0_i32 = arith.constant 0 : i32
    %c0_i32_0 = arith.constant 0 : i32
    %c0_i32_1 = arith.constant 0 : i32
    %c0_i32_2 = arith.constant 0 : i32
    return %c0_i32, %c0_i32_0, %c0_i32_1 : i32, i32, i32
  }
  func.func @transform_3(%arg0: i32) -> (i32, i32) {
    %c0_i32 = arith.constant 0 : i32
    %c0_i32_0 = arith.constant 0 : i32
    %c0_i32_1 = arith.constant 0 : i32
    return %c0_i32, %c0_i32_0 : i32, i32
  }
  func.func @transform_4(%arg0: i32) -> (i32, i32, i32) {
    %c0_i32 = arith.constant 0 : i32
    %c0_i32_0 = arith.constant 0 : i32
    %c0_i32_1 = arith.constant 0 : i32
    %c0_i32_2 = arith.constant 0 : i32
    return %c0_i32, %c0_i32_0, %c0_i32_1 : i32, i32, i32
  }
  func.func @transform_5(%arg0: i32) -> (i32, i32) {
    %c0_i32 = arith.constant 0 : i32
    %c0_i32_0 = arith.constant 0 : i32
    %c0_i32_1 = arith.constant 0 : i32
    return %c0_i32, %c0_i32_0 : i32, i32
  }
  func.func @transform_6(%arg0: i32) -> (i32, i32) {
    %c0_i32 = arith.constant 0 : i32
    %c0_i32_0 = arith.constant 0 : i32
    %c0_i32_1 = arith.constant 0 : i32
    return %c0_i32, %c0_i32_0 : i32, i32
  }
  func.func @transform_7(%arg0: i32) -> (i32, i32, i32) {
    %c0_i32 = arith.constant 0 : i32
    %c0_i32_0 = arith.constant 0 : i32
    %c0_i32_1 = arith.constant 0 : i32
    %c0_i32_2 = arith.constant 0 : i32
    return %c0_i32, %c0_i32_0, %c0_i32_1 : i32, i32, i32
  }
  func.func @transform_8(%arg0: i32) -> (i32, i32, i32) {
    %c0_i32 = arith.constant 0 : i32
    %c0_i32_0 = arith.constant 0 : i32
    %c0_i32_1 = arith.constant 0 : i32
    %c0_i32_2 = arith.constant 0 : i32
    return %c0_i32, %c0_i32_0, %c0_i32_1 : i32, i32, i32
  }
  func.func @transform_9(%arg0: i32) -> (i32, i32) {
    %c0_i32 = arith.constant 0 : i32
    %c0_i32_0 = arith.constant 0 : i32
    %c0_i32_1 = arith.constant 0 : i32
    return %c0_i32, %c0_i32_0 : i32, i32
  }
  func.func @transform_10(%arg0: i32) -> (i32, i32) {
    %c0_i32 = arith.constant 0 : i32
    %c0_i32_0 = arith.constant 0 : i32
    %c0_i32_1 = arith.constant 0 : i32
    return %c0_i32, %c0_i32_0 : i32, i32
  }
  func.func @transform_11(%arg0: i32) -> (i32, i32) {
    %c0_i32 = arith.constant 0 : i32
    %c0_i32_0 = arith.constant 0 : i32
    %c0_i32_1 = arith.constant 0 : i32
    return %c0_i32, %c0_i32_0 : i32, i32
  }
  func.func @transform_12(%arg0: i32) -> (i32, i32) {
    %c0_i32 = arith.constant 0 : i32
    %c0_i32_0 = arith.constant 0 : i32
    %c0_i32_1 = arith.constant 0 : i32
    return %c0_i32, %c0_i32_0 : i32, i32
  }
  func.func @transform_13(%arg0: i32) -> (i32, i32) {
    %c0_i32 = arith.constant 0 : i32
    %c0_i32_0 = arith.constant 0 : i32
    %c0_i32_1 = arith.constant 0 : i32
    return %c0_i32, %c0_i32_0 : i32, i32
  }
  func.func @transform_14(%arg0: i32) -> (i32, i32) {
    %c0_i32 = arith.constant 0 : i32
    %c0_i32_0 = arith.constant 0 : i32
    %c0_i32_1 = arith.constant 0 : i32
    return %c0_i32, %c0_i32_0 : i32, i32
  }
  func.func @transform_15(%arg0: i32) -> (i32, i32, i32) {
    %c0_i32 = arith.constant 0 : i32
    %c0_i32_0 = arith.constant 0 : i32
    %c0_i32_1 = arith.constant 0 : i32
    return %arg0, %c0_i32, %c0_i32_0 : i32, i32, i32
  }
}

module attributes {stable_mosaic.version = 11 : i64} {
  func.func @_head_kernel(%arg0: i32, %arg1: memref<1x25x16xf32, #tpu.memory_space<vmem>>, %arg2: memref<1x12x16xf32, #tpu.memory_space<vmem>>, %arg3: memref<1x5x32xf32, #tpu.memory_space<vmem>>, %arg4: memref<1x2x32xf32, #tpu.memory_space<vmem>>, %arg5: memref<16x16xf32, #tpu.memory_space<vmem>>, %arg6: memref<1x16xf32, #tpu.memory_space<vmem>>, %arg7: memref<16x16xf32, #tpu.memory_space<vmem>>, %arg8: memref<1x16xf32, #tpu.memory_space<vmem>>, %arg9: memref<32x16xf32, #tpu.memory_space<vmem>>, %arg10: memref<1x16xf32, #tpu.memory_space<vmem>>, %arg11: memref<32x16xf32, #tpu.memory_space<vmem>>, %arg12: memref<1x16xf32, #tpu.memory_space<vmem>>, %arg13: memref<25x12xf32, #tpu.memory_space<vmem>>, %arg14: memref<12x5xf32, #tpu.memory_space<vmem>>, %arg15: memref<5x2xf32, #tpu.memory_space<vmem>>, %arg16: memref<3x16x16xf32, #tpu.memory_space<vmem>>, %arg17: memref<1x16xf32, #tpu.memory_space<vmem>>, %arg18: memref<1x23x16xf32, #tpu.memory_space<vmem>>) attributes {dimension_semantics = [#tpu.dimension_semantics<parallel>], iteration_bounds = array<i64: 2>, scalar_prefetch = 0 : i64, scratch_operands = 0 : i64, tpu.core_type = #tpu.core_type<tc>, window_params = [{transform_indices = @transform_0, window_bounds = array<i64: 1, 25, 16>}, {transform_indices = @transform_1, window_bounds = array<i64: 1, 12, 16>}, {transform_indices = @transform_2, window_bounds = array<i64: 1, 5, 32>}, {transform_indices = @transform_3, window_bounds = array<i64: 1, 2, 32>}, {pipeline_mode = #tpu.pipeline_mode<synchronous>, transform_indices = @transform_4, window_bounds = array<i64: 16, 16>}, {pipeline_mode = #tpu.pipeline_mode<synchronous>, transform_indices = @transform_5, window_bounds = array<i64: 1, 16>}, {pipeline_mode = #tpu.pipeline_mode<synchronous>, transform_indices = @transform_6, window_bounds = array<i64: 16, 16>}, {pipeline_mode = #tpu.pipeline_mode<synchronous>, transform_indices = @transform_7, window_bounds = array<i64: 1, 16>}, {pipeline_mode = #tpu.pipeline_mode<synchronous>, transform_indices = @transform_8, window_bounds = array<i64: 32, 16>}, {pipeline_mode = #tpu.pipeline_mode<synchronous>, transform_indices = @transform_9, window_bounds = array<i64: 1, 16>}, {pipeline_mode = #tpu.pipeline_mode<synchronous>, transform_indices = @transform_10, window_bounds = array<i64: 32, 16>}, {pipeline_mode = #tpu.pipeline_mode<synchronous>, transform_indices = @transform_11, window_bounds = array<i64: 1, 16>}, {pipeline_mode = #tpu.pipeline_mode<synchronous>, transform_indices = @transform_12, window_bounds = array<i64: 25, 12>}, {pipeline_mode = #tpu.pipeline_mode<synchronous>, transform_indices = @transform_13, window_bounds = array<i64: 12, 5>}, {pipeline_mode = #tpu.pipeline_mode<synchronous>, transform_indices = @transform_14, window_bounds = array<i64: 5, 2>}, {pipeline_mode = #tpu.pipeline_mode<synchronous>, transform_indices = @transform_15, window_bounds = array<i64: 3, 16, 16>}, {pipeline_mode = #tpu.pipeline_mode<synchronous>, transform_indices = @transform_16, window_bounds = array<i64: 1, 16>}, {transform_indices = @transform_17, window_bounds = array<i64: 1, 23, 16>}]} {
    %c0 = arith.constant 0 : index
    %c0_0 = arith.constant 0 : index
    %c0_1 = arith.constant 0 : index
    %0 = vector.load %arg4[%c0, %c0_0, %c0_1] : memref<1x2x32xf32, #tpu.memory_space<vmem>>, vector<1x2x32xf32>
    %1 = vector.shape_cast %0 : vector<1x2x32xf32> to vector<2x32xf32>
    %c0_2 = arith.constant 0 : index
    %c0_3 = arith.constant 0 : index
    %2 = vector.load %arg11[%c0_2, %c0_3] : memref<32x16xf32, #tpu.memory_space<vmem>>, vector<32x16xf32>
    %cst = arith.constant dense<0.000000e+00> : vector<2x16xf32>
    %3 = tpu.matmul %1, %2, %cst {dimension_numbers = #tpu.dot_dimension_numbers<[1], [0], [0], [1], [0, 0, 1, 1], [], []>} : vector<2x32xf32>, vector<32x16xf32>, vector<2x16xf32> -> vector<2x16xf32>
    %c0_4 = arith.constant 0 : index
    %c0_5 = arith.constant 0 : index
    %4 = vector.load %arg12[%c0_4, %c0_5] : memref<1x16xf32, #tpu.memory_space<vmem>>, vector<1x16xf32>
    %5 = vector.broadcast %4 : vector<1x16xf32> to vector<2x16xf32>
    %6 = arith.addf %3, %5 : vector<2x16xf32>
    %c0_6 = arith.constant 0 : index
    %c0_7 = arith.constant 0 : index
    %c0_8 = arith.constant 0 : index
    %7 = vector.load %arg3[%c0_6, %c0_7, %c0_8] : memref<1x5x32xf32, #tpu.memory_space<vmem>>, vector<1x5x32xf32>
    %8 = vector.shape_cast %7 : vector<1x5x32xf32> to vector<5x32xf32>
    %c0_9 = arith.constant 0 : index
    %c0_10 = arith.constant 0 : index
    %9 = vector.load %arg9[%c0_9, %c0_10] : memref<32x16xf32, #tpu.memory_space<vmem>>, vector<32x16xf32>
    %cst_11 = arith.constant dense<0.000000e+00> : vector<5x16xf32>
    %10 = tpu.matmul %8, %9, %cst_11 {dimension_numbers = #tpu.dot_dimension_numbers<[1], [0], [0], [1], [0, 0, 1, 1], [], []>} : vector<5x32xf32>, vector<32x16xf32>, vector<5x16xf32> -> vector<5x16xf32>
    %c0_12 = arith.constant 0 : index
    %c0_13 = arith.constant 0 : index
    %11 = vector.load %arg10[%c0_12, %c0_13] : memref<1x16xf32, #tpu.memory_space<vmem>>, vector<1x16xf32>
    %12 = vector.broadcast %11 : vector<1x16xf32> to vector<5x16xf32>
    %13 = arith.addf %10, %12 : vector<5x16xf32>
    %c0_14 = arith.constant 0 : index
    %c0_15 = arith.constant 0 : index
    %14 = vector.load %arg15[%c0_14, %c0_15] : memref<5x2xf32, #tpu.memory_space<vmem>>, vector<5x2xf32>
    %cst_16 = arith.constant dense<0.000000e+00> : vector<5x16xf32>
    %15 = tpu.matmul %14, %6, %cst_16 {dimension_numbers = #tpu.dot_dimension_numbers<[1], [0], [0], [1], [0, 0, 1, 1], [], []>} : vector<5x2xf32>, vector<2x16xf32>, vector<5x16xf32> -> vector<5x16xf32>
    %16 = arith.addf %15, %13 : vector<5x16xf32>
    %c0_17 = arith.constant 0 : index
    %c0_18 = arith.constant 0 : index
    %c0_19 = arith.constant 0 : index
    %17 = vector.load %arg2[%c0_17, %c0_18, %c0_19] : memref<1x12x16xf32, #tpu.memory_space<vmem>>, vector<1x12x16xf32>
    %18 = vector.shape_cast %17 : vector<1x12x16xf32> to vector<12x16xf32>
    %c0_20 = arith.constant 0 : index
    %c0_21 = arith.constant 0 : index
    %19 = vector.load %arg7[%c0_20, %c0_21] : memref<16x16xf32, #tpu.memory_space<vmem>>, vector<16x16xf32>
    %cst_22 = arith.constant dense<0.000000e+00> : vector<12x16xf32>
    %20 = tpu.matmul %18, %19, %cst_22 {dimension_numbers = #tpu.dot_dimension_numbers<[1], [0], [0], [1], [0, 0, 1, 1], [], []>} : vector<12x16xf32>, vector<16x16xf32>, vector<12x16xf32> -> vector<12x16xf32>
    %c0_23 = arith.constant 0 : index
    %c0_24 = arith.constant 0 : index
    %21 = vector.load %arg8[%c0_23, %c0_24] : memref<1x16xf32, #tpu.memory_space<vmem>>, vector<1x16xf32>
    %22 = vector.broadcast %21 : vector<1x16xf32> to vector<12x16xf32>
    %23 = arith.addf %20, %22 : vector<12x16xf32>
    %c0_25 = arith.constant 0 : index
    %c0_26 = arith.constant 0 : index
    %24 = vector.load %arg14[%c0_25, %c0_26] : memref<12x5xf32, #tpu.memory_space<vmem>>, vector<12x5xf32>
    %cst_27 = arith.constant dense<0.000000e+00> : vector<12x16xf32>
    %25 = tpu.matmul %24, %16, %cst_27 {dimension_numbers = #tpu.dot_dimension_numbers<[1], [0], [0], [1], [0, 0, 1, 1], [], []>} : vector<12x5xf32>, vector<5x16xf32>, vector<12x16xf32> -> vector<12x16xf32>
    %26 = arith.addf %25, %23 : vector<12x16xf32>
    %c0_28 = arith.constant 0 : index
    %c0_29 = arith.constant 0 : index
    %c0_30 = arith.constant 0 : index
    %27 = vector.load %arg1[%c0_28, %c0_29, %c0_30] : memref<1x25x16xf32, #tpu.memory_space<vmem>>, vector<1x25x16xf32>
    %28 = vector.shape_cast %27 : vector<1x25x16xf32> to vector<25x16xf32>
    %c0_31 = arith.constant 0 : index
    %c0_32 = arith.constant 0 : index
    %29 = vector.load %arg5[%c0_31, %c0_32] : memref<16x16xf32, #tpu.memory_space<vmem>>, vector<16x16xf32>
    %cst_33 = arith.constant dense<0.000000e+00> : vector<25x16xf32>
    %30 = tpu.matmul %28, %29, %cst_33 {dimension_numbers = #tpu.dot_dimension_numbers<[1], [0], [0], [1], [0, 0, 1, 1], [], []>} : vector<25x16xf32>, vector<16x16xf32>, vector<25x16xf32> -> vector<25x16xf32>
    %c0_34 = arith.constant 0 : index
    %c0_35 = arith.constant 0 : index
    %31 = vector.load %arg6[%c0_34, %c0_35] : memref<1x16xf32, #tpu.memory_space<vmem>>, vector<1x16xf32>
    %32 = vector.broadcast %31 : vector<1x16xf32> to vector<25x16xf32>
    %33 = arith.addf %30, %32 : vector<25x16xf32>
    %c0_36 = arith.constant 0 : index
    %c0_37 = arith.constant 0 : index
    %34 = vector.load %arg13[%c0_36, %c0_37] : memref<25x12xf32, #tpu.memory_space<vmem>>, vector<25x12xf32>
    %cst_38 = arith.constant dense<0.000000e+00> : vector<25x16xf32>
    %35 = tpu.matmul %34, %26, %cst_38 {dimension_numbers = #tpu.dot_dimension_numbers<[1], [0], [0], [1], [0, 0, 1, 1], [], []>} : vector<25x12xf32>, vector<12x16xf32>, vector<25x16xf32> -> vector<25x16xf32>
    %36 = arith.addf %35, %33 : vector<25x16xf32>
    %37 = vector.extract_strided_slice %36 {offsets = [0, 0], sizes = [23, 16], strides = [1, 1]} : vector<25x16xf32> to vector<23x16xf32>
    %c0_39 = arith.constant 0 : index
    %c0_40 = arith.constant 0 : index
    %c0_41 = arith.constant 0 : index
    %38 = vector.load %arg16[%c0_39, %c0_40, %c0_41] : memref<3x16x16xf32, #tpu.memory_space<vmem>>, vector<1x16x16xf32>
    %39 = vector.shape_cast %38 : vector<1x16x16xf32> to vector<16x16xf32>
    %cst_42 = arith.constant dense<0.000000e+00> : vector<23x16xf32>
    %40 = tpu.matmul %37, %39, %cst_42 {dimension_numbers = #tpu.dot_dimension_numbers<[1], [0], [0], [1], [0, 0, 1, 1], [], []>} : vector<23x16xf32>, vector<16x16xf32>, vector<23x16xf32> -> vector<23x16xf32>
    %41 = vector.extract_strided_slice %36 {offsets = [1, 0], sizes = [23, 16], strides = [1, 1]} : vector<25x16xf32> to vector<23x16xf32>
    %c1 = arith.constant 1 : index
    %c0_43 = arith.constant 0 : index
    %c0_44 = arith.constant 0 : index
    %42 = vector.load %arg16[%c1, %c0_43, %c0_44] : memref<3x16x16xf32, #tpu.memory_space<vmem>>, vector<1x16x16xf32>
    %43 = vector.shape_cast %42 : vector<1x16x16xf32> to vector<16x16xf32>
    %cst_45 = arith.constant dense<0.000000e+00> : vector<23x16xf32>
    %44 = tpu.matmul %41, %43, %cst_45 {dimension_numbers = #tpu.dot_dimension_numbers<[1], [0], [0], [1], [0, 0, 1, 1], [], []>} : vector<23x16xf32>, vector<16x16xf32>, vector<23x16xf32> -> vector<23x16xf32>
    %45 = arith.addf %40, %44 : vector<23x16xf32>
    %46 = vector.extract_strided_slice %36 {offsets = [2, 0], sizes = [23, 16], strides = [1, 1]} : vector<25x16xf32> to vector<23x16xf32>
    %c2 = arith.constant 2 : index
    %c0_46 = arith.constant 0 : index
    %c0_47 = arith.constant 0 : index
    %47 = vector.load %arg16[%c2, %c0_46, %c0_47] : memref<3x16x16xf32, #tpu.memory_space<vmem>>, vector<1x16x16xf32>
    %48 = vector.shape_cast %47 : vector<1x16x16xf32> to vector<16x16xf32>
    %cst_48 = arith.constant dense<0.000000e+00> : vector<23x16xf32>
    %49 = tpu.matmul %46, %48, %cst_48 {dimension_numbers = #tpu.dot_dimension_numbers<[1], [0], [0], [1], [0, 0, 1, 1], [], []>} : vector<23x16xf32>, vector<16x16xf32>, vector<23x16xf32> -> vector<23x16xf32>
    %50 = arith.addf %45, %49 : vector<23x16xf32>
    %c0_49 = arith.constant 0 : index
    %c0_50 = arith.constant 0 : index
    %51 = vector.load %arg17[%c0_49, %c0_50] : memref<1x16xf32, #tpu.memory_space<vmem>>, vector<1x16xf32>
    %52 = vector.broadcast %51 : vector<1x16xf32> to vector<23x16xf32>
    %53 = arith.addf %50, %52 : vector<23x16xf32>
    %c0_51 = arith.constant 0 : index
    %c0_52 = arith.constant 0 : index
    %c0_53 = arith.constant 0 : index
    %54 = vector.load %arg18[%c0_51, %c0_52, %c0_53] : memref<1x23x16xf32, #tpu.memory_space<vmem>>, vector<1x23x16xf32>
    %55 = vector.shape_cast %54 : vector<1x23x16xf32> to vector<23x16xf32>
    %56 = vector.shape_cast %53 : vector<23x16xf32> to vector<1x23x16xf32>
    tpu.vector_store %arg18[%c0_51, %c0_52, %c0_53], %56 {strides = array<i32>} : memref<1x23x16xf32, #tpu.memory_space<vmem>>, vector<1x23x16xf32>,
    return
  }
  func.func @transform_0(%arg0: i32) -> (i32, i32, i32) {
    %c0_i32 = arith.constant 0 : i32
    %c0_i32_0 = arith.constant 0 : i32
    %c0_i32_1 = arith.constant 0 : i32
    return %arg0, %c0_i32, %c0_i32_0 : i32, i32, i32
  }
  func.func @transform_1(%arg0: i32) -> (i32, i32, i32) {
    %c0_i32 = arith.constant 0 : i32
    %c0_i32_0 = arith.constant 0 : i32
    %c0_i32_1 = arith.constant 0 : i32
    return %arg0, %c0_i32, %c0_i32_0 : i32, i32, i32
  }
  func.func @transform_2(%arg0: i32) -> (i32, i32, i32) {
    %c0_i32 = arith.constant 0 : i32
    %c0_i32_0 = arith.constant 0 : i32
    %c0_i32_1 = arith.constant 0 : i32
    return %arg0, %c0_i32, %c0_i32_0 : i32, i32, i32
  }
  func.func @transform_3(%arg0: i32) -> (i32, i32, i32) {
    %c0_i32 = arith.constant 0 : i32
    %c0_i32_0 = arith.constant 0 : i32
    %c0_i32_1 = arith.constant 0 : i32
    return %arg0, %c0_i32, %c0_i32_0 : i32, i32, i32
  }
  func.func @transform_4(%arg0: i32) -> (i32, i32) {
    %c0_i32 = arith.constant 0 : i32
    %c0_i32_0 = arith.constant 0 : i32
    %c0_i32_1 = arith.constant 0 : i32
    return %c0_i32, %c0_i32_0 : i32, i32
  }
  func.func @transform_5(%arg0: i32) -> (i32, i32) {
    %c0_i32 = arith.constant 0 : i32
    %c0_i32_0 = arith.constant 0 : i32
    %c0_i32_1 = arith.constant 0 : i32
    return %c0_i32, %c0_i32_0 : i32, i32
  }
  func.func @transform_6(%arg0: i32) -> (i32, i32) {
    %c0_i32 = arith.constant 0 : i32
    %c0_i32_0 = arith.constant 0 : i32
    %c0_i32_1 = arith.constant 0 : i32
    return %c0_i32, %c0_i32_0 : i32, i32
  }
  func.func @transform_7(%arg0: i32) -> (i32, i32) {
    %c0_i32 = arith.constant 0 : i32
    %c0_i32_0 = arith.constant 0 : i32
    %c0_i32_1 = arith.constant 0 : i32
    return %c0_i32, %c0_i32_0 : i32, i32
  }
  func.func @transform_8(%arg0: i32) -> (i32, i32) {
    %c0_i32 = arith.constant 0 : i32
    %c0_i32_0 = arith.constant 0 : i32
    %c0_i32_1 = arith.constant 0 : i32
    return %c0_i32, %c0_i32_0 : i32, i32
  }
  func.func @transform_9(%arg0: i32) -> (i32, i32) {
    %c0_i32 = arith.constant 0 : i32
    %c0_i32_0 = arith.constant 0 : i32
    %c0_i32_1 = arith.constant 0 : i32
    return %c0_i32, %c0_i32_0 : i32, i32
  }
  func.func @transform_10(%arg0: i32) -> (i32, i32) {
    %c0_i32 = arith.constant 0 : i32
    %c0_i32_0 = arith.constant 0 : i32
    %c0_i32_1 = arith.constant 0 : i32
    return %c0_i32, %c0_i32_0 : i32, i32
  }
  func.func @transform_11(%arg0: i32) -> (i32, i32) {
    %c0_i32 = arith.constant 0 : i32
    %c0_i32_0 = arith.constant 0 : i32
    %c0_i32_1 = arith.constant 0 : i32
    return %c0_i32, %c0_i32_0 : i32, i32
  }
  func.func @transform_12(%arg0: i32) -> (i32, i32) {
    %c0_i32 = arith.constant 0 : i32
    %c0_i32_0 = arith.constant 0 : i32
    %c0_i32_1 = arith.constant 0 : i32
    return %c0_i32, %c0_i32_0 : i32, i32
  }
  func.func @transform_13(%arg0: i32) -> (i32, i32) {
    %c0_i32 = arith.constant 0 : i32
    %c0_i32_0 = arith.constant 0 : i32
    %c0_i32_1 = arith.constant 0 : i32
    return %c0_i32, %c0_i32_0 : i32, i32
  }
  func.func @transform_14(%arg0: i32) -> (i32, i32) {
    %c0_i32 = arith.constant 0 : i32
    %c0_i32_0 = arith.constant 0 : i32
    %c0_i32_1 = arith.constant 0 : i32
    return %c0_i32, %c0_i32_0 : i32, i32
  }
  func.func @transform_15(%arg0: i32) -> (i32, i32, i32) {
    %c0_i32 = arith.constant 0 : i32
    %c0_i32_0 = arith.constant 0 : i32
    %c0_i32_1 = arith.constant 0 : i32
    %c0_i32_2 = arith.constant 0 : i32
    return %c0_i32, %c0_i32_0, %c0_i32_1 : i32, i32, i32
  }
  func.func @transform_16(%arg0: i32) -> (i32, i32) {
    %c0_i32 = arith.constant 0 : i32
    %c0_i32_0 = arith.constant 0 : i32
    %c0_i32_1 = arith.constant 0 : i32
    return %c0_i32, %c0_i32_0 : i32, i32
  }
  func.func @transform_17(%arg0: i32) -> (i32, i32, i32) {
    %c0_i32 = arith.constant 0 : i32
    %c0_i32_0 = arith.constant 0 : i32
    %c0_i32_1 = arith.constant 0 : i32
    return %arg0, %c0_i32, %c0_i32_0 : i32, i32, i32
  }
}

</mosaic_0001>

<bundles_post_ra>
// kernel: fea_cnn_forward.6
= control target key start
LH: loop header
LB: loop body
LE: loop exit
PB: predicated region body
PF: predicated region fallthrough
CT: control target
= control target key end

     0   :  { %s1744_s15 = smov 0   ;;  %s2280_s0 = inlined_call_operand.vmem [shape: f32[2,100,8], index: 0, kind: input, shape index: {}]   ;;  %s2281_s1 = inlined_call_operand.vmem [shape: f32[8,16], index: 1, kind: input, shape index: {}]   ;;  %s2282_s2 = inlined_call_operand.vmem [shape: f32[16,16], index: 2, kind: input, shape index: {}]   ;;  %s2283_s3 = inlined_call_operand.vmem [shape: f32[3,52,100], index: 3, kind: input, shape index: {}]   ;;  %s2284_s4 = inlined_call_operand.vmem [shape: f32[2,52,16], index: 4, kind: output, shape index: {}]  }
   0x1 LB: > { %s1256_s16 = sadd.s32 4294967295, %s1715_s15   ;;  %p1260_p0 = scmp.ge.s32.totalorder %s1715_s15, 1  ;;  %s1715_s15 = sphi %s1744_s15, %s14_s15  }
   0x2   : > { %p162_p1 = scmp.lt.s32.totalorder %s1715_s15, 3 }
   0x4   : > { %p163_p2 = pnand %p1260_p0, %p162_p1 }
   0x5   : > { %p188_p3 = scmp.lt.s32.totalorder (!%p163_p2), %s1256_s16, 1 }
   0x6   : > { %166 = sbr.rel (%p163_p2) target bundleno = 779 (0x30b), region = 36 }
   0xb   : > { %v211_v0 = vld [vmem:[%s2281_s1] sm:$0xff]  ;;  %v1717_v1 = vmov 0.0   ;;  %vm1718_vm0 = vmmov 0   ;;  %s2286_s16 = smov (!%p188_p3, %s1256_s16), 1  ;;  %vm212_vm1 = vcmask 64512   ;;  %v500_v15 = vld [vmem:[%s2282_s2 + $0x8] sm:$0xff] }
   0xc   : > { %1418 = vmatprep.subr.mxu0 %v1717_v1  ;;  %1420 = vmatprep.mubr.msk.f32.mxu0 %vm1718_vm0, %v1717_v1  ;;  %s1645_s19 = smul.u32 104, %s2286_s16  ;;  %v499_v16 = vld [vmem:[%s2282_s2] sm:$0xff]  ;;  %vm501_vm2 = vcmask 130048   ;;  %vm817_vm3 = vcmask 1043456   ;;  %vm795_vm4 = vcmask 818176   ;;  %vm1199_vm5 = vcmask 125952  }
   0xd   : > { %1419 = vmatpush3.msra.mxu0 %v211_v0  ;;  %1643 = vmatprep.subr.mxu1 %v1717_v1  ;;  %s1646_s21 = smul.u32 56, %s2286_s16 }
   0xe   : > { %1644 = vmatpush3.msra.mxu1 %v211_v0  ;;  %1450 = vmatprep.mubr.msk.f32.mxu1 %vm1718_vm0, %v1717_v1  ;;  %s1769_s22 = scalar_lea.vmem %s2280_s0, %s1645_s19 }
   0xf   : > { %1459 = vmatprep.subr.mxu1 %v1717_v1  ;;  %1502 = vmatprep.subr.mxu0 %v1717_v1  ;;  %v198_v2 = vld [vmem:[%s1769_s22] sm:$0xff]  ;;  %v208_v3 = vld [vmem:[%s1769_s22 + $0x50] sm:$0xff]  ;;  %v199_v4 = vld [vmem:[%s1769_s22 + $0x8] sm:$0xff]  ;;  %s2262_s24 = scalar_lea.vmem %s2284_s4, %s1646_s21 }
  0x10   : > { %1421 = vmatmul.mubr.msk.f32.vlgmr.msra.gmra.mxu0 %vm212_vm1, %v198_v2  ;;  %1451 = vmatmul.mubr.msk.f32.vlgmr.msra.gmra.mxu1 %vm212_vm1, %v208_v3  ;;  %v209_v5 = vld [vmem:[%s1769_s22 + $0x58] sm:$0xff]  ;;  %v200_v6 = vld [vmem:[%s1769_s22 + $0x10] sm:$0xff]  ;;  %v210_v7 = vld [vmem:[%s1769_s22 + $0x60] sm:$0xf] }
  0x11   : > { %1423 = vmatprep.mubr.msk.f32.mxu0 %vm1718_vm0, %v1717_v1  ;;  %1453 = vmatprep.mubr.msk.f32.mxu1 %vm1718_vm0, %v1717_v1  ;;  %v201_v8 = vld [vmem:[%s1769_s22 + $0x18] sm:$0xff]  ;;  %v202_v9 = vld [vmem:[%s1769_s22 + $0x20] sm:$0xff]  ;;  %v203_v10 = vld [vmem:[%s1769_s22 + $0x28] sm:$0xff] }
  0x12   : > { %v204_v11 = vld [vmem:[%s1769_s22 + $0x30] sm:$0xff]  ;;  %v205_v12 = vld [vmem:[%s1769_s22 + $0x38] sm:$0xff]  ;;  %v206_v13 = vld [vmem:[%s1769_s22 + $0x40] sm:$0xff]  ;;  %1460 = vmatpush3.msra.mxu1 %v500_v15 }
  0x13   : > { %v207_v14 = vld [vmem:[%s1769_s22 + $0x48] sm:$0xff]  ;;  %1461 = vmatprep.subr.mxu1 %v1717_v1 }
  0x14   : > { %1424 = vmatmul.mubr.msk.f32.gmra.mxu0 %vm212_vm1, %v199_v4  ;;  %1454 = vmatmul.mubr.msk.f32.gmra.mxu1 %vm212_vm1, %v209_v5 }
  0x15   : > { %1426 = vmatprep.mubr.msk.f32.mxu0 %vm1718_vm0, %v1717_v1  ;;  %1456 = vmatprep.mubr.msk.f32.mxu1 %vm1718_vm0, %v1717_v1 }
  0x16   : > { %1462 = vmatpush3.msra.mxu1 %v499_v16 }
  0x17   : > { %1549 = vmatprep.subr.mxu1 %v1717_v1 }
  0x18   : > { %1427 = vmatmul.mubr.msk.f32.gmra.mxu0 %vm212_vm1, %v200_v6  ;;  %1457 = vmatmul.mubr.msk.f32.gmra.mxu1 %vm212_vm1, %v210_v7 }
  0x19   : > { %1429 = vmatprep.mubr.msk.f32.mxu0 %vm1718_vm0, %v1717_v1  ;;  %1463 = vmatprep.mubr.msk.f32.mxu1 %vm1718_vm0, %v1717_v1 }
  0x1c   : > { %1430 = vmatmul.mubr.msk.f32.gmra.mxu0 %vm212_vm1, %v201_v8 }
  0x1d   : > { %1432 = vmatprep.mubr.msk.f32.mxu0 %vm1718_vm0, %v1717_v1 }
  0x20   : > { %1433 = vmatmul.mubr.msk.f32.gmra.mxu0 %vm212_vm1, %v202_v9 }
  0x21   : > { %1435 = vmatprep.mubr.msk.f32.mxu0 %vm1718_vm0, %v1717_v1 }
  0x24   : > { %1436 = vmatmul.mubr.msk.f32.gmra.mxu0 %vm212_vm1, %v203_v10 }
  0x25   : > { %1438 = vmatprep.mubr.msk.f32.mxu0 %vm1718_vm0, %v1717_v1 }
  0x28   : > { %1439 = vmatmul.mubr.msk.f32.gmra.mxu0 %vm212_vm1, %v204_v11 }
  0x29   : > { %1441 = vmatprep.mubr.msk.f32.mxu0 %vm1718_vm0, %v1717_v1 }
  0x2c   : > { %1442 = vmatmul.mubr.msk.f32.gmra.mxu0 %vm212_vm1, %v205_v12 }
  0x2d   : > { %1444 = vmatprep.mubr.msk.f32.mxu0 %vm1718_vm0, %v1717_v1 }
  0x30   : > { %1445 = vmatmul.mubr.msk.f32.gmra.mxu0 %vm212_vm1, %v206_v13 }
  0x31   : > { %1447 = vmatprep.mubr.msk.f32.mxu0 %vm1718_vm0, %v1717_v1 }
  0x34   : > { %1448 = vmatmul.mubr.msk.f32.gmra.mxu0 %vm212_vm1, %v207_v14 }
  0x35   : > { %1528 = vmatprep.mubr.msk.f32.mxu0 %vm1718_vm0, %v1717_v1 }
  0xd0   : > { %v318_v17 = vpop.f32.mrf.mxu0  ;;  %v1831_v19 = vpop.f32.mrf.mxu1 }
  0xd1   : > { %v395_v18 = vmul.f32 0.044715, %v318_v17  ;;  %v382_v63 = vmul.f32 0.5, %v318_v17  ;;  %v405_v9 = vmul.f32 0.044715, %v1831_v19 }
  0xd2   : > { %v1422_v20 = vpop.f32.mrf.mxu0  ;;  %v1452_v22 = vpop.f32.mrf.mxu1 }
  0xd3   : > { %v408_v21 = vmul.f32 %v395_v18, %v318_v17  ;;  %v418_v22 = vmul.f32 %v405_v9, %v1831_v19 }
  0xd4   : > { %v323_v23 = vpop.f32.mrf.mxu0  ;;  %v1833_v26 = vpop.f32.mrf.mxu1 }
  0xd5   : > { %v421_v24 = vmul.f32 %v408_v21, %v318_v17  ;;  %v396_v25 = vmul.f32 0.044715, %v323_v23  ;;  %v383_v12 = vmul.f32 0.5, %v323_v23 }
  0xd6   : > { %v1425_v27 = vpop.f32.mrf.mxu0  ;;  %v1455_v30 = vpop.f32.mrf.mxu1 }
  0xd7   : > { %v434_v28 = vadd.f32 %v421_v24, %v318_v17  ;;  %v409_v29 = vmul.f32 %v396_v25, %v323_v23 }
  0xd8   : > { %v1835_v31 = vpop.f32.mrf.mxu0  ;;  %v1838_v35 = vpop.f32.mrf.mxu1 }
  0xd9   : > { %v447_v32 = vmul.f32 0.7978846, %v434_v28  ;;  %v422_v33 = vmul.f32 %v409_v29, %v323_v23  ;;  %v397_v34 = vmul.f32 0.044715, %v1835_v31  ;;  %v384_v27 = vmul.f32 0.5, %v1835_v31 }
  0xda   : > { %v1428_v36 = vpop.f32.mrf.mxu0  ;;  %v1458_v39 = vpop.f32.mrf.mxu1 }
  0xdb   : > { %1657 = vtanh.f32 %v447_v32  ;;  %v435_v37 = vadd.f32 %v422_v33, %v323_v23  ;;  %v410_v38 = vmul.f32 %v397_v34, %v1835_v31  ;;  %v406_v23 = vmul.f32 0.044715, %v1833_v26 }
  0xdc   : > { %v1841_v40 = vpop.f32.mrf.mxu0 }
  0xdd   : > { %v448_v41 = vmul.f32 0.7978846, %v435_v37  ;;  %v423_v42 = vmul.f32 %v410_v38, %v1835_v31  ;;  %v398_v43 = vmul.f32 0.044715, %v1841_v40  ;;  %v419_v39 = vmul.f32 %v406_v23, %v1833_v26 }
  0xde   : > { %v1431_v44 = vpop.f32.mrf.mxu0 }
  0xdf   : > { %1659 = vtanh.f32 %v448_v41  ;;  %v436_v45 = vadd.f32 %v423_v42, %v1835_v31  ;;  %v411_v46 = vmul.f32 %v398_v43, %v1841_v40  ;;  %v431_v31 = vmul.f32 %v418_v22, %v1831_v19 }
  0xe0   : > { %v1847_v47 = vpop.f32.mrf.mxu0  ;;  %v407_v41 = vmul.f32 0.044715, %v1838_v35 }
  0xe1   : > { %v449_v48 = vmul.f32 0.7978846, %v436_v45  ;;  %v424_v49 = vmul.f32 %v411_v46, %v1841_v40  ;;  %v399_v50 = vmul.f32 0.044715, %v1847_v47  ;;  %v385_v46 = vmul.f32 0.5, %v1841_v40 }
  0xe2   : > { %v1434_v51 = vpop.f32.mrf.mxu0 }
  0xe3   : > { %1661 = vtanh.f32 %v449_v48  ;;  %v437_v52 = vadd.f32 %v424_v49, %v1841_v40  ;;  %v412_v53 = vmul.f32 %v399_v50, %v1847_v47 }
  0xe4   : > { %v1853_v54 = vpop.f32.mrf.mxu0 }
  0xe5   : > { %v450_v55 = vmul.f32 0.7978846, %v437_v52  ;;  %v425_v56 = vmul.f32 %v412_v53, %v1847_v47  ;;  %v400_v57 = vmul.f32 0.044715, %v1853_v54  ;;  %v444_v53 = vadd.f32 %v431_v31, %v1831_v19 }
  0xe6   : > { %v1437_v58 = vpop.f32.mrf.mxu0 }
  0xe7   : > { %1663 = vtanh.f32 %v450_v55  ;;  %v438_v59 = vadd.f32 %v425_v56, %v1847_v47  ;;  %v413_v60 = vmul.f32 %v400_v57, %v1853_v54  ;;  %v432_v55 = vmul.f32 %v419_v39, %v1833_v26 }
  0xe8   : > { %v1658_v61 = vpop.eup %1657  ;;  %v1859_v62 = vpop.f32.mrf.mxu0  ;;  %v420_v56 = vmul.f32 %v407_v41, %v1838_v35  ;;  %v386_v58 = vmul.f32 0.5, %v1847_v47 }
  0xe9   : > { %v473_v0 = vadd.f32 1.0, %v1658_v61  ;;  %v451_v2 = vmul.f32 0.7978846, %v438_v59  ;;  %v426_v3 = vmul.f32 %v413_v60, %v1853_v54  ;;  %v401_v4 = vmul.f32 0.044715, %v1859_v62 }
  0xea   : > { %v1440_v5 = vpop.f32.mrf.mxu0 }
  0xeb   : > { %v486_v6 = vmul.f32 %v473_v0, %v382_v63  ;;  %1665 = vtanh.f32 %v451_v2  ;;  %v439_v7 = vadd.f32 %v426_v3, %v1853_v54  ;;  %v414_v10 = vmul.f32 %v401_v4, %v1859_v62 }
  0xec   : > { %v1660_v8 = vpop.eup %1659  ;;  %v1866_v11 = vpop.f32.mrf.mxu0  ;;  %v457_v2 = vmul.f32 0.7978846, %v444_v53  ;;  %v445_v3 = vadd.f32 %v432_v55, %v1833_v26  ;;  %v433_v4 = vmul.f32 %v420_v56, %v1838_v35  ;;  %v387_v5 = vmul.f32 0.5, %v1853_v54 }
  0xed   : > { %v452_v13 = vmul.f32 0.7978846, %v439_v7  ;;  %v402_v14 = vmul.f32 0.044715, %v1866_v11  ;;  %1464 = vmatmul.mubr.msk.f32.vlgmr.msra.gmra.mxu1 %vm501_vm2, %v486_v6  ;;  %v474_v15 = vadd.f32 1.0, %v1660_v8  ;;  %v427_v16 = vmul.f32 %v414_v10, %v1859_v62 }
  0xee   : > { %v1443_v17 = vpop.f32.mrf.mxu0  ;;  %1466 = vmatprep.mubr.msk.f32.mxu1 %vm1718_vm0, %v1717_v1  ;;  %v458_v8 = vmul.f32 0.7978846, %v445_v3  ;;  %v446_v9 = vadd.f32 %v433_v4, %v1838_v35 }
  0xef   : > { %1667 = vtanh.f32 %v452_v13  ;;  %v415_v18 = vmul.f32 %v402_v14, %v1866_v11  ;;  %v487_v20 = vmul.f32 %v474_v15, %v383_v12  ;;  %v440_v24 = vadd.f32 %v427_v16, %v1859_v62 }
  0xf0   : > { %v1662_v21 = vpop.eup %1661  ;;  %v1877_v25 = vpop.f32.mrf.mxu0  ;;  %v388_v12 = vmul.f32 0.5, %v1859_v62  ;;  %v459_v14 = vmul.f32 0.7978846, %v446_v9  ;;  %v389_v16 = vmul.f32 0.5, %v1866_v11 }
  0xf1   : > { %v428_v28 = vmul.f32 %v415_v18, %v1866_v11  ;;  %v403_v29 = vmul.f32 0.044715, %v1877_v25  ;;  %1467 = vmatmul.mubr.msk.f32.gmra.mxu1 %vm501_vm2, %v487_v20  ;;  %v475_v30 = vadd.f32 1.0, %v1662_v21  ;;  %v453_v32 = vmul.f32 0.7978846, %v440_v24 }
  0xf2   : > { %v1446_v33 = vpop.f32.mrf.mxu0  ;;  %1469 = vmatprep.mubr.msk.f32.mxu1 %vm1718_vm0, %v1717_v1  ;;  %v390_v20 = vmul.f32 0.5, %v1877_v25 }
  0xf3   : > { %v441_v34 = vadd.f32 %v428_v28, %v1866_v11  ;;  %v416_v36 = vmul.f32 %v403_v29, %v1877_v25  ;;  %v488_v37 = vmul.f32 %v475_v30, %v384_v27  ;;  %1669 = vtanh.f32 %v453_v32 }
  0xf4   : > { %v1664_v38 = vpop.eup %1663  ;;  %v363_v42 = vpop.f32.mrf.mxu0  ;;  %v392_v29 = vmul.f32 0.5, %v1831_v19  ;;  %v393_v32 = vmul.f32 0.5, %v1833_v26 }
  0xf5   : > { %v454_v43 = vmul.f32 0.7978846, %v441_v34  ;;  %v429_v44 = vmul.f32 %v416_v36, %v1877_v25  ;;  %v404_v45 = vmul.f32 0.044715, %v363_v42  ;;  %1470 = vmatmul.mubr.msk.f32.gmra.mxu1 %vm501_vm2, %v488_v37  ;;  %v476_v49 = vadd.f32 1.0, %v1664_v38 }
  0xf6   : > { %v1449_v48 = vpop.f32.mrf.mxu0  ;;  %1472 = vmatprep.mubr.msk.f32.mxu1 %vm1718_vm0, %v1717_v1  ;;  %v391_v24 = vmul.f32 0.5, %v363_v42  ;;  %v394_v37 = vmul.f32 0.5, %v1838_v35 }
  0xf7   : > { %1671 = vtanh.f32 %v454_v43  ;;  %v442_v50 = vadd.f32 %v429_v44, %v1877_v25  ;;  %v417_v51 = vmul.f32 %v404_v45, %v363_v42  ;;  %v489_v57 = vmul.f32 %v476_v49, %v385_v46 }
  0xf8   : > { %v1666_v52 = vpop.eup %1665 }
  0xf9   : > { %v455_v40 = vmul.f32 0.7978846, %v442_v50  ;;  %v430_v59 = vmul.f32 %v417_v51, %v363_v42  ;;  %v477_v60 = vadd.f32 1.0, %v1666_v52  ;;  %1473 = vmatmul.mubr.msk.f32.gmra.mxu1 %vm501_vm2, %v489_v57 }
  0xfa   : > { %1475 = vmatprep.mubr.msk.f32.mxu1 %vm1718_vm0, %v1717_v1 }
  0xfb   : > { %1673 = vtanh.f32 %v455_v40  ;;  %v443_v61 = vadd.f32 %v430_v59, %v363_v42  ;;  %v490_v63 = vmul.f32 %v477_v60, %v386_v58 }
  0xfc   : > { %v1668_v0 = vpop.eup %1667 }
  0xfd   : > { %v456_v47 = vmul.f32 0.7978846, %v443_v61  ;;  %v478_v6 = vadd.f32 1.0, %v1668_v0  ;;  %1476 = vmatmul.mubr.msk.f32.gmra.mxu1 %vm501_vm2, %v490_v63 }
  0xfe   : > { %1478 = vmatprep.mubr.msk.f32.mxu1 %vm1718_vm0, %v1717_v1 }
  0xff   : > { %1675 = vtanh.f32 %v456_v47  ;;  %v491_v7 = vmul.f32 %v478_v6, %v387_v5 }
 0x100   : > { %1677 = vtanh.f32 %v457_v2  ;;  %v1670_v10 = vpop.eup %1669 }
 0x101   : > { %1479 = vmatmul.mubr.msk.f32.gmra.mxu1 %vm501_vm2, %v491_v7  ;;  %v479_v13 = vadd.f32 1.0, %v1670_v10  ;;  %1679 = vtanh.f32 %v458_v8 }
 0x102   : > { %1481 = vmatprep.mubr.msk.f32.mxu1 %vm1718_vm0, %v1717_v1  ;;  %1681 = vtanh.f32 %v459_v14 }
 0x103   : > { %v492_v15 = vmul.f32 %v479_v13, %v388_v12 }
 0x104   : > { %v1672_v54 = vpop.eup %1671 }
 0x105   : > { %v480_v17 = vadd.f32 1.0, %v1672_v54  ;;  %1482 = vmatmul.mubr.msk.f32.gmra.mxu1 %vm501_vm2, %v492_v15 }
 0x106   : > { %1484 = vmatprep.mubr.msk.f32.mxu1 %vm1718_vm0, %v1717_v1 }
 0x107   : > { %v493_v18 = vmul.f32 %v480_v17, %v389_v16 }
 0x108   : > { %v1674_v62 = vpop.eup %1673 }
 0x109   : > { %v481_v21 = vadd.f32 1.0, %v1674_v62  ;;  %1485 = vmatmul.mubr.msk.f32.gmra.mxu1 %vm501_vm2, %v493_v18 }
 0x10a   : > { %1487 = vmatprep.mubr.msk.f32.mxu1 %vm1718_vm0, %v1717_v1 }
 0x10b   : > { %v494_v22 = vmul.f32 %v481_v21, %v390_v20 }
 0x10c   : > { %v1676_v23 = vpop.eup %1675 }
 0x10d   : > { %v1678_v11 = vpop.eup %1677  ;;  %v482_v27 = vadd.f32 1.0, %v1676_v23  ;;  %1488 = vmatmul.mubr.msk.f32.gmra.mxu1 %vm501_vm2, %v494_v22 }
 0x10e   : > { %1490 = vmatprep.mubr.msk.f32.mxu1 %vm1718_vm0, %v1717_v1  ;;  %v483_v25 = vadd.f32 1.0, %v1678_v11  ;;  %v1680_v30 = vpop.eup %1679 }
 0x10f   : > { %v495_v28 = vmul.f32 %v482_v27, %v391_v24  ;;  %v484_v34 = vadd.f32 1.0, %v1680_v30  ;;  %v1682_v36 = vpop.eup %1681 }
 0x110   : > { %v496_v33 = vmul.f32 %v483_v25, %v392_v29  ;;  %v485_v38 = vadd.f32 1.0, %v1682_v36 }
 0x111   : > { %1491 = vmatmul.mubr.msk.f32.gmra.mxu1 %vm501_vm2, %v495_v28  ;;  %v497_v19 = vmul.f32 %v484_v34, %v393_v32 }
 0x112   : > { %1493 = vmatprep.mubr.msk.f32.mxu1 %vm1718_vm0, %v1717_v1  ;;  %v498_v31 = vmul.f32 %v485_v38, %v394_v37 }
 0x115   : > { %1494 = vmatmul.mubr.msk.f32.gmra.mxu1 %vm501_vm2, %v496_v33 }
 0x116   : > { %1496 = vmatprep.mubr.msk.f32.mxu1 %vm1718_vm0, %v1717_v1 }
 0x119   : > { %1497 = vmatmul.mubr.msk.f32.gmra.mxu1 %vm501_vm2, %v497_v19 }
 0x11a   : > { %1499 = vmatprep.mubr.msk.f32.mxu1 %vm1718_vm0, %v1717_v1 }
 0x11d   : > { %1500 = vmatmul.mubr.msk.f32.gmra.mxu1 %vm501_vm2, %v498_v31 }
 0x11e   : > { %1575 = vmatprep.mubr.msk.f32.mxu1 %vm1718_vm0, %v1717_v1 }
 0x1ad   : > { %v1940_v26 = vpop.f32.mrf.mxu1 }
 0x1af   : > { %v1465_v39 = vpop.f32.mrf.mxu1 }
 0x1b1   : > { %v1942_v41 = vpop.f32.mrf.mxu1 }
 0x1b2   : > { %v685_v19 = vmul.f32 0.044715, %v1942_v41 }
 0x1b3   : > { %v1468_v42 = vpop.f32.mrf.mxu1 }
 0x1b5   : > { %v1944_v35 = vpop.f32.mrf.mxu1 }
 0x1b6   : > { %v686_v30 = vmul.f32 0.044715, %v1944_v35 }
 0x1b7   : > { %v1471_v43 = vpop.f32.mrf.mxu1 }
 0x1b9   : > { %v1946_v44 = vpop.f32.mrf.mxu1 }
 0x1ba   : > { %v687_v11 = vmul.f32 0.044715, %v1946_v44 }
 0x1bb   : > { %v1474_v45 = vpop.f32.mrf.mxu1 }
 0x1bc   : > { %v700_v38 = vmul.f32 %v687_v11, %v1946_v44  ;;  %v684_v45 = vmul.f32 0.044715, %v1940_v26 }
 0x1bd   : > { %v1948_v46 = vpop.f32.mrf.mxu1 }
 0x1be   : > { %v688_v17 = vmul.f32 0.044715, %v1948_v46 }
 0x1bf   : > { %v1477_v48 = vpop.f32.mrf.mxu1 }
 0x1c0   : > { %v701_v33 = vmul.f32 %v688_v17, %v1948_v46  ;;  %v699_v48 = vmul.f32 %v686_v30, %v1944_v35 }
 0x1c1   : > { %v1950_v49 = vpop.f32.mrf.mxu1 }
 0x1c2   : > { %v689_v12 = vmul.f32 0.044715, %v1950_v49 }
 0x1c3   : > { %v1480_v50 = vpop.f32.mrf.mxu1 }
 0x1c4   : > { %v702_v24 = vmul.f32 %v689_v12, %v1950_v49  ;;  %v714_v50 = vmul.f32 %v701_v33, %v1948_v46 }
 0x1c5   : > { %v1952_v51 = vpop.f32.mrf.mxu1 }
 0x1c6   : > { %v690_v8 = vmul.f32 0.044715, %v1952_v51  ;;  %v715_v31 = vmul.f32 %v702_v24, %v1950_v49 }
 0x1c7   : > { %v1483_v52 = vpop.f32.mrf.mxu1 }
 0x1c8   : > { %v703_v20 = vmul.f32 %v690_v8, %v1952_v51 }
 0x1c9   : > { %v1954_v53 = vpop.f32.mrf.mxu1 }
 0x1ca   : > { %v691_v4 = vmul.f32 0.044715, %v1954_v53  ;;  %v716_v34 = vmul.f32 %v703_v20, %v1952_v51 }
 0x1cb   : > { %v1486_v55 = vpop.f32.mrf.mxu1 }
 0x1cc   : > { %v704_v54 = vmul.f32 %v691_v4, %v1954_v53  ;;  %v729_v52 = vadd.f32 %v716_v34, %v1952_v51 }
 0x1cd   : > { %v1956_v56 = vpop.f32.mrf.mxu1 }
 0x1ce   : > { %v692_v0 = vmul.f32 0.044715, %v1956_v56  ;;  %v717_v27 = vmul.f32 %v704_v54, %v1954_v53  ;;  %v742_v4 = vmul.f32 0.7978846, %v729_v52  ;;  %v679_v34 = vmul.f32 0.5, %v1956_v56 }
 0x1cf   : > { %v1489_v57 = vpop.f32.mrf.mxu1  ;;  %v675_v52 = vmul.f32 0.5, %v1948_v46 }
 0x1d0   : > { %v705_v9 = vmul.f32 %v692_v0, %v1956_v56  ;;  %v730_v39 = vadd.f32 %v717_v27, %v1954_v53  ;;  %v698_v57 = vmul.f32 %v685_v19, %v1942_v41  ;;  %v712_v0 = vmul.f32 %v699_v48, %v1944_v35 }
 0x1d1   : > { %v1958_v58 = vpop.f32.mrf.mxu1  ;;  %v678_v19 = vmul.f32 0.5, %v1954_v53 }
 0x1d2   : > { %v693_v60 = vmul.f32 0.044715, %v1958_v58  ;;  %v718_v21 = vmul.f32 %v705_v9, %v1956_v56  ;;  %v725_v8 = vadd.f32 %v712_v0, %v1944_v35 }
 0x1d3   : > { %v1492_v40 = vpop.f32.mrf.mxu1 }
 0x1d4   : > { %v706_v5 = vmul.f32 %v693_v60, %v1958_v58  ;;  %v731_v36 = vadd.f32 %v718_v21, %v1956_v56  ;;  %v713_v40 = vmul.f32 %v700_v38, %v1946_v44  ;;  %v728_v60 = vadd.f32 %v715_v31, %v1950_v49 }
 0x1d5   : > { %v1960_v59 = vpop.f32.mrf.mxu1 }
 0x1d6   : > { %v694_v61 = vmul.f32 0.044715, %v1960_v59  ;;  %v719_v14 = vmul.f32 %v706_v5, %v1958_v58  ;;  %v744_v55 = vmul.f32 0.7978846, %v731_v36  ;;  %v711_v5 = vmul.f32 %v698_v57, %v1942_v41 }
 0x1d7   : > { %v1495_v63 = vpop.f32.mrf.mxu1 }
 0x1d8   : > { %v707_v2 = vmul.f32 %v694_v61, %v1960_v59  ;;  %v732_v28 = vadd.f32 %v719_v14, %v1958_v58  ;;  %v743_v61 = vmul.f32 0.7978846, %v730_v39  ;;  %v697_v63 = vmul.f32 %v684_v45, %v1940_v26 }
 0x1d9   : > { %v1966_v3 = vpop.f32.mrf.mxu1  ;;  %v677_v39 = vmul.f32 0.5, %v1952_v51  ;;  %v676_v45 = vmul.f32 0.5, %v1950_v49 }
 0x1da   : > { %v695_v47 = vmul.f32 0.044715, %v1966_v3  ;;  %v720_v6 = vmul.f32 %v707_v2, %v1960_v59  ;;  %v745_v42 = vmul.f32 0.7978846, %v732_v28  ;;  %v727_v2 = vadd.f32 %v714_v50, %v1948_v46 }
 0x1db   : > { %v1498_v7 = vpop.f32.mrf.mxu1  ;;  %v682_v11 = vmul.f32 0.5, %v1966_v3 }
 0x1dc   : > { %v708_v10 = vmul.f32 %v695_v47, %v1966_v3  ;;  %v733_v18 = vadd.f32 %v720_v6, %v1960_v59  ;;  %v726_v47 = vadd.f32 %v713_v40, %v1946_v44  ;;  %v741_v6 = vmul.f32 0.7978846, %v728_v60 }
 0x1dd   : > { %v1976_v13 = vpop.f32.mrf.mxu1  ;;  %v710_v7 = vmul.f32 %v697_v63, %v1940_v26  ;;  %v740_v9 = vmul.f32 0.7978846, %v727_v2  ;;  %v674_v40 = vmul.f32 0.5, %v1946_v44  ;;  %v673_v63 = vmul.f32 0.5, %v1944_v35 }
 0x1de   : > { %v721_v15 = vmul.f32 %v708_v10, %v1966_v3  ;;  %v696_v16 = vmul.f32 0.044715, %v1976_v13  ;;  %v746_v32 = vmul.f32 0.7978846, %v733_v18  ;;  %v724_v10 = vadd.f32 %v711_v5, %v1942_v41 }
 0x1df   : > { %v1501_v62 = vpop.f32.mrf.mxu1  ;;  %v739_v12 = vmul.f32 0.7978846, %v726_v47  ;;  %v723_v14 = vadd.f32 %v710_v7, %v1940_v26  ;;  %v672_v2 = vmul.f32 0.5, %v1942_v41  ;;  %v671_v5 = vmul.f32 0.5, %v1940_v26  ;;  %v788_v26 = vld [vmem:[%s2283_s3] sm:$0xff]  ;;  %v789_v7 = vld [vmem:[%s2283_s3 + $0x8] sm:$0xff] }
 0x1e0   : > { %v734_v22 = vadd.f32 %v721_v15, %v1966_v3  ;;  %v709_v23 = vmul.f32 %v696_v16, %v1976_v13  ;;  %v738_v16 = vmul.f32 0.7978846, %v725_v8  ;;  %v737_v18 = vmul.f32 0.7978846, %v724_v10  ;;  %v1298_v8 = vld [vmem:[%s2283_s3 + $0x40] sm:$0xff]  ;;  %v1299_v10 = vld [vmem:[%s2283_s3 + $0x48] sm:$0xff] }
 0x1e1   : > { %v683_v62 = vmul.f32 0.5, %v1976_v13  ;;  %v680_v3 = vmul.f32 0.5, %v1958_v58 }
 0x1e2   : > { %v747_v29 = vmul.f32 0.7978846, %v734_v22  ;;  %v722_v25 = vmul.f32 %v709_v23, %v1976_v13  ;;  %v736_v23 = vmul.f32 0.7978846, %v723_v14  ;;  %v792_v14 = vld [vmem:[%s2283_s3 + $0x20] sm:$0xff] }
 0x1e4   : > { %v735_v37 = vadd.f32 %v722_v25, %v1976_v13  ;;  %1683 = vtanh.f32 %v747_v29  ;;  %v681_v29 = vmul.f32 0.5, %v1960_v59 }
 0x1e5   : > { %1685 = vtanh.f32 %v746_v32 }
 0x1e6   : > { %v748_v43 = vmul.f32 0.7978846, %v735_v37 }
 0x1e8   : > { %1687 = vtanh.f32 %v748_v43 }
 0x1e9   : > { %1689 = vtanh.f32 %v745_v42 }
 0x1ea   : > { %1691 = vtanh.f32 %v744_v55 }
 0x1eb   : > { %1693 = vtanh.f32 %v743_v61 }
 0x1ec   : > { %1695 = vtanh.f32 %v742_v4 }
 0x1ed   : > { %1697 = vtanh.f32 %v741_v6  ;;  %v1297_v6 = vld [vmem:[%s2283_s3 + $0x38] sm:$0xff] }
 0x1ee   : > { %1699 = vtanh.f32 %v740_v9  ;;  %v790_v9 = vld [vmem:[%s2283_s3 + $0x10] sm:$0xff] }
 0x1ef   : > { %1701 = vtanh.f32 %v739_v12  ;;  %v791_v12 = vld [vmem:[%s2283_s3 + $0x18] sm:$0xff] }
 0x1f0   : > { %1703 = vtanh.f32 %v738_v16  ;;  %v793_v16 = vld [vmem:[%s2283_s3 + $0x28] sm:$0xff] }
 0x1f1   : > { %v1684_v54 = vpop.eup %1683  ;;  %1705 = vtanh.f32 %v737_v18  ;;  %v794_v18 = vld [vmem:[%s2283_s3 + $0x30] sm:$0xf] }
 0x1f2   : > { %v1686_v15 = vpop.eup %1685  ;;  %v773_v21 = vadd.f32 1.0, %v1684_v54  ;;  %1707 = vtanh.f32 %v736_v23  ;;  %v1300_v54 = vld [vmem:[%s2283_s3 + $0x50] sm:$0xff]  ;;  %v1315_v23 = vld [vmem:[%s2283_s3 + $0x88] sm:$0xff] }
 0x1f3   : > { %v772_v27 = vadd.f32 1.0, %v1686_v15  ;;  %v1301_v15 = vld [vmem:[%s2283_s3 + $0x58] sm:$0xff] }
 0x1f4   : > { %v2027_v13 = vmul.f32 %v773_v21, %v682_v11  ;;  %v1313_v21 = vld [vmem:[%s2283_s3 + $0x78] sm:$0xff]  ;;  %v1316_v11 = vld [vmem:[%s2283_s3 + $0x90] sm:$0xff] }
 0x1f5   : > { %v1688_v17 = vpop.eup %1687  ;;  %v2034_v59 = vmul.f32 %v772_v27, %v681_v29  ;;  %v1318_v27 = vld [vmem:[%s2283_s3 + $0xa0] sm:$0xf] }
 0x1f6   : > { %v774_v20 = vadd.f32 1.0, %v1688_v17  ;;  %v1690_v22 = vpop.eup %1689  ;;  %v1302_v17 = vld [vmem:[%s2283_s3 + $0x60] sm:$0xff] }
 0x1f7   : > { %v1692_v28 = vpop.eup %1691  ;;  %v771_v25 = vadd.f32 1.0, %v1690_v22  ;;  %v1314_v22 = vld [vmem:[%s2283_s3 + $0x80] sm:$0xff] }
 0x1f8   : > { %v2020_v24 = vmul.f32 %v774_v20, %v683_v62  ;;  %v1694_v30 = vpop.eup %1693  ;;  %v770_v32 = vadd.f32 1.0, %v1692_v28  ;;  %v1303_v62 = vld [vmem:[%s2283_s3 + $0x68] sm:$0xf]  ;;  %v1312_v20 = vld [vmem:[%s2283_s3 + $0x70] sm:$0xff] }
 0x1f9   : > { %v1696_v33 = vpop.eup %1695  ;;  %v2041_v36 = vmul.f32 %v771_v25, %v680_v3  ;;  %v769_v58 = vadd.f32 1.0, %v1694_v30 }
 0x1fa   : > { %1503 = vmatpush3.msk.msra.mxu0 %vm817_vm3, %v2020_v24  ;;  %1550 = vmatpush3.msk.msra.mxu1 %vm817_vm3, %v2020_v24  ;;  %v1698_v37 = vpop.eup %1697  ;;  %v2048_v38 = vmul.f32 %v770_v32, %v679_v34  ;;  %v768_v56 = vadd.f32 1.0, %v1696_v33 }
 0x1fb   : > { %1504 = vmatprep.subr.mxu0 %v1717_v1  ;;  %1551 = vmatprep.subr.mxu1 %v1717_v1  ;;  %v1700_v31 = vpop.eup %1699  ;;  %v2055_v42 = vmul.f32 %v769_v58, %v678_v19  ;;  %v767_v53 = vadd.f32 1.0, %v1698_v37 }
 0x1fc   : > { %1505 = vmatpush3.msra.mxu0 %v2027_v13  ;;  %1552 = vmatpush3.msra.mxu1 %v2027_v13  ;;  %v1702_v43 = vpop.eup %1701  ;;  %v2062_v48 = vmul.f32 %v768_v56, %v677_v39  ;;  %v766_v51 = vadd.f32 1.0, %v1700_v31 }
 0x1fd   : > { %1506 = vmatprep.subr.mxu0 %v1717_v1  ;;  %1553 = vmatprep.subr.mxu1 %v1717_v1  ;;  %v1704_v50 = vpop.eup %1703  ;;  %v2069_v55 = vmul.f32 %v767_v53, %v676_v45  ;;  %v765_v49 = vadd.f32 1.0, %v1702_v43 }
 0x1fe   : > { %1507 = vmatpush3.msra.mxu0 %v2034_v59  ;;  %1554 = vmatpush3.msra.mxu1 %v2034_v59  ;;  %v1706_v57 = vpop.eup %1705  ;;  %v2076_v60 = vmul.f32 %v766_v51, %v675_v52  ;;  %v764_v46 = vadd.f32 1.0, %v1704_v50 }
 0x1ff   : > { %1508 = vmatprep.subr.mxu0 %v1717_v1  ;;  %1555 = vmatprep.subr.mxu1 %v1717_v1  ;;  %v1708_v61 = vpop.eup %1707  ;;  %v2083_v0 = vmul.f32 %v765_v49, %v674_v40  ;;  %v763_v44 = vadd.f32 1.0, %v1706_v57 }
 0x200   : > { %1509 = vmatpush3.msra.mxu0 %v2041_v36  ;;  %1556 = vmatpush3.msra.mxu1 %v2041_v36  ;;  %v2090_v4 = vmul.f32 %v764_v46, %v673_v63  ;;  %v762_v35 = vadd.f32 1.0, %v1708_v61 }
 0x201   : > { %1510 = vmatprep.subr.mxu0 %v1717_v1  ;;  %1557 = vmatprep.subr.mxu1 %v1717_v1  ;;  %v2097_v47 = vmul.f32 %v763_v44, %v672_v2 }
 0x202   : > { %1511 = vmatpush3.msra.mxu0 %v2048_v38  ;;  %1558 = vmatpush3.msra.mxu1 %v2048_v38  ;;  %v2103_v41 = vmul.f32 %v762_v35, %v671_v5 }
 0x203   : > { %1512 = vmatprep.subr.mxu0 %v1717_v1  ;;  %1559 = vmatprep.subr.mxu1 %v1717_v1 }
 0x204   : > { %1513 = vmatpush3.msra.mxu0 %v2055_v42  ;;  %1560 = vmatpush3.msra.mxu1 %v2055_v42 }
 0x205   : > { %1514 = vmatprep.subr.mxu0 %v1717_v1  ;;  %1561 = vmatprep.subr.mxu1 %v1717_v1 }
 0x206   : > { %1515 = vmatpush3.msra.mxu0 %v2062_v48  ;;  %1562 = vmatpush3.msra.mxu1 %v2062_v48 }
 0x207   : > { %1516 = vmatprep.subr.mxu0 %v1717_v1  ;;  %1563 = vmatprep.subr.mxu1 %v1717_v1 }
 0x208   : > { %1517 = vmatpush3.msra.mxu0 %v2069_v55  ;;  %1564 = vmatpush3.msra.mxu1 %v2069_v55 }
 0x209   : > { %1518 = vmatprep.subr.mxu0 %v1717_v1  ;;  %1565 = vmatprep.subr.mxu1 %v1717_v1 }
 0x20a   : > { %1519 = vmatpush3.msra.mxu0 %v2076_v60  ;;  %1566 = vmatpush3.msra.mxu1 %v2076_v60 }
 0x20b   : > { %1520 = vmatprep.subr.mxu0 %v1717_v1  ;;  %1567 = vmatprep.subr.mxu1 %v1717_v1 }
 0x20c   : > { %1521 = vmatpush3.msra.mxu0 %v2083_v0  ;;  %1568 = vmatpush3.msra.mxu1 %v2083_v0 }
 0x20d   : > { %1522 = vmatprep.subr.mxu0 %v1717_v1  ;;  %1569 = vmatprep.subr.mxu1 %v1717_v1 }
 0x20e   : > { %1523 = vmatpush3.msra.mxu0 %v2090_v4  ;;  %1570 = vmatpush3.msra.mxu1 %v2090_v4 }
 0x20f   : > { %1524 = vmatprep.subr.mxu0 %v1717_v1  ;;  %1571 = vmatprep.subr.mxu1 %v1717_v1 }
 0x210   : > { %1525 = vmatpush3.msra.mxu0 %v2097_v47  ;;  %1572 = vmatpush3.msra.mxu1 %v2097_v47 }
 0x211   : > { %1526 = vmatprep.subr.mxu0 %v1717_v1  ;;  %1573 = vmatprep.subr.mxu1 %v1717_v1 }
 0x212   : > { %1527 = vmatpush3.msra.mxu0 %v2103_v41  ;;  %1574 = vmatpush3.msra.mxu1 %v2103_v41 }
 0x213   : > { %1529 = vmatmul.mubr.msk.f32.vlgmr.msra.gmra.mxu0 %vm795_vm4, %v788_v26  ;;  %1596 = vmatprep.subr.mxu0 %v1717_v1 }
 0x214   : > { %1597 = vmatpush3.msk.msra.mxu0 %vm817_vm3, %v2020_v24  ;;  %1531 = vmatprep.mubr.msk.f32.mxu0 %vm1718_vm0, %v1717_v1  ;;  %v1317_v24 = vld [vmem:[%s2283_s3 + $0x98] sm:$0xff] }
 0x215   : > { %1598 = vmatprep.subr.mxu0 %v1717_v1  ;;  %1576 = vmatmul.mubr.msk.f32.vlgmr.msra.gmra.mxu1 %vm795_vm4, %v1297_v6 }
 0x216   : > { %1599 = vmatpush3.msra.mxu0 %v2027_v13  ;;  %1578 = vmatprep.mubr.msk.f32.mxu1 %vm1718_vm0, %v1717_v1 }
 0x217   : > { %1532 = vmatmul.mubr.msk.f32.gmra.mxu0 %vm795_vm4, %v789_v7  ;;  %1600 = vmatprep.subr.mxu0 %v1717_v1 }
 0x218   : > { %1601 = vmatpush3.msra.mxu0 %v2034_v59  ;;  %1534 = vmatprep.mubr.msk.f32.mxu0 %vm1718_vm0, %v1717_v1 }
 0x219   : > { %1602 = vmatprep.subr.mxu0 %v1717_v1  ;;  %1579 = vmatmul.mubr.msk.f32.gmra.mxu1 %vm795_vm4, %v1298_v8 }
 0x21a   : > { %1603 = vmatpush3.msra.mxu0 %v2041_v36  ;;  %1581 = vmatprep.mubr.msk.f32.mxu1 %vm1718_vm0, %v1717_v1 }
 0x21b   : > { %1535 = vmatmul.mubr.msk.f32.gmra.mxu0 %vm795_vm4, %v790_v9  ;;  %1604 = vmatprep.subr.mxu0 %v1717_v1 }
 0x21c   : > { %1605 = vmatpush3.msra.mxu0 %v2048_v38  ;;  %1537 = vmatprep.mubr.msk.f32.mxu0 %vm1718_vm0, %v1717_v1 }
 0x21d   : > { %1606 = vmatprep.subr.mxu0 %v1717_v1  ;;  %1582 = vmatmul.mubr.msk.f32.gmra.mxu1 %vm795_vm4, %v1299_v10 }
 0x21e   : > { %1607 = vmatpush3.msra.mxu0 %v2055_v42  ;;  %1584 = vmatprep.mubr.msk.f32.mxu1 %vm1718_vm0, %v1717_v1 }
 0x21f   : > { %1538 = vmatmul.mubr.msk.f32.gmra.mxu0 %vm795_vm4, %v791_v12  ;;  %1608 = vmatprep.subr.mxu0 %v1717_v1 }
 0x220   : > { %1609 = vmatpush3.msra.mxu0 %v2062_v48  ;;  %1540 = vmatprep.mubr.msk.f32.mxu0 %vm1718_vm0, %v1717_v1 }
 0x221   : > { %1610 = vmatprep.subr.mxu0 %v1717_v1  ;;  %1585 = vmatmul.mubr.msk.f32.gmra.mxu1 %vm795_vm4, %v1300_v54 }
 0x222   : > { %1611 = vmatpush3.msra.mxu0 %v2069_v55  ;;  %1587 = vmatprep.mubr.msk.f32.mxu1 %vm1718_vm0, %v1717_v1 }
 0x223   : > { %1541 = vmatmul.mubr.msk.f32.gmra.mxu0 %vm795_vm4, %v792_v14  ;;  %1612 = vmatprep.subr.mxu0 %v1717_v1 }
 0x224   : > { %1613 = vmatpush3.msra.mxu0 %v2076_v60  ;;  %1543 = vmatprep.mubr.msk.f32.mxu0 %vm1718_vm0, %v1717_v1 }
 0x225   : > { %1614 = vmatprep.subr.mxu0 %v1717_v1  ;;  %1588 = vmatmul.mubr.msk.f32.gmra.mxu1 %vm795_vm4, %v1301_v15 }
 0x226   : > { %1615 = vmatpush3.msra.mxu0 %v2083_v0  ;;  %1590 = vmatprep.mubr.msk.f32.mxu1 %vm1718_vm0, %v1717_v1 }
 0x227   : > { %1544 = vmatmul.mubr.msk.f32.gmra.mxu0 %vm795_vm4, %v793_v16  ;;  %1616 = vmatprep.subr.mxu0 %v1717_v1 }
 0x228   : > { %1617 = vmatpush3.msra.mxu0 %v2090_v4  ;;  %1546 = vmatprep.mubr.msk.f32.mxu0 %vm1718_vm0, %v1717_v1 }
 0x229   : > { %1618 = vmatprep.subr.mxu0 %v1717_v1  ;;  %1591 = vmatmul.mubr.msk.f32.gmra.mxu1 %vm795_vm4, %v1302_v17 }
 0x22a   : > { %1619 = vmatpush3.msra.mxu0 %v2097_v47  ;;  %1593 = vmatprep.mubr.msk.f32.mxu1 %vm1718_vm0, %v1717_v1 }
 0x22b   : > { %1547 = vmatmul.mubr.msk.f32.gmra.mxu0 %vm795_vm4, %v794_v18  ;;  %1620 = vmatprep.subr.mxu0 %v1717_v1 }
 0x22c   : > { %1621 = vmatpush3.msra.mxu0 %v2103_v41  ;;  %1622 = vmatprep.mubr.msk.f32.mxu0 %vm1718_vm0, %v1717_v1 }
 0x22d   : > { %1594 = vmatmul.mubr.msk.f32.gmra.mxu1 %vm795_vm4, %v1303_v62 }
 0x22f   : > { %1623 = vmatmul.mubr.msk.f32.vlgmr.msra.gmra.mxu0 %vm795_vm4, %v1312_v20 }
 0x230   : > { %1625 = vmatprep.mubr.msk.f32.mxu0 %vm1718_vm0, %v1717_v1 }
 0x233   : > { %1626 = vmatmul.mubr.msk.f32.gmra.mxu0 %vm795_vm4, %v1313_v21 }
 0x234   : > { %1628 = vmatprep.mubr.msk.f32.mxu0 %vm1718_vm0, %v1717_v1 }
 0x237   : > { %1629 = vmatmul.mubr.msk.f32.gmra.mxu0 %vm795_vm4, %v1314_v22 }
 0x238   : > { %1631 = vmatprep.mubr.msk.f32.mxu0 %vm1718_vm0, %v1717_v1 }
 0x23b   : > { %1632 = vmatmul.mubr.msk.f32.gmra.mxu0 %vm795_vm4, %v1315_v23 }
 0x23c   : > { %1634 = vmatprep.mubr.msk.f32.mxu0 %vm1718_vm0, %v1717_v1 }
 0x23f   : > { %1635 = vmatmul.mubr.msk.f32.gmra.mxu0 %vm795_vm4, %v1316_v11 }
 0x240   : > { %1637 = vmatprep.mubr.msk.f32.mxu0 %vm1718_vm0, %v1717_v1 }
 0x243   : > { %1638 = vmatmul.mubr.msk.f32.gmra.mxu0 %vm795_vm4, %v1317_v24 }
 0x244   : > { %1640 = vmatprep.mubr.msk.f32.mxu0 %vm1718_vm0, %v1717_v1 }
 0x247   : > { %1641 = vmatmul.mubr.msk.f32.gmra.mxu0 %vm795_vm4, %v1318_v27 }
 0x2d3   : > { %v887_v28 = vpop.f32.mrf.mxu0 }
 0x2d5   : > { %v1530_v29 = vpop.f32.mrf.mxu0  ;;  %v1016_v13 = vpop.f32.mrf.mxu1 }
 0x2d6   : > { %v1179_v55 = vmax.f32 %v887_v28, %v1016_v13 }
 0x2d7   : > { %v892_v25 = vpop.f32.mrf.mxu0  ;;  %v1577_v30 = vpop.f32.mrf.mxu1 }
 0x2d9   : > { %v1533_v3 = vpop.f32.mrf.mxu0  ;;  %v1021_v59 = vpop.f32.mrf.mxu1 }
 0x2da   : > { %v1180_v46 = vmax.f32 %v892_v25, %v1021_v59 }
 0x2db   : > { %v897_v32 = vpop.f32.mrf.mxu0  ;;  %v1580_v33 = vpop.f32.mrf.mxu1 }
 0x2dd   : > { %v1536_v34 = vpop.f32.mrf.mxu0  ;;  %v1026_v36 = vpop.f32.mrf.mxu1 }
 0x2de   : > { %v1181_v44 = vmax.f32 %v897_v32, %v1026_v36 }
 0x2df   : > { %v902_v58 = vpop.f32.mrf.mxu0  ;;  %v1583_v1 = vpop.f32.mrf.mxu1 }
 0x2e1   : > { %v1539_v37 = vpop.f32.mrf.mxu0  ;;  %v1031_v19 = vpop.f32.mrf.mxu1 }
 0x2e2   : > { %v1182_v5 = vmax.f32 %v902_v58, %v1031_v19 }
 0x2e3   : > { %v907_v38 = vpop.f32.mrf.mxu0  ;;  %v1586_v56 = vpop.f32.mrf.mxu1 }
 0x2e5   : > { %v1542_v31 = vpop.f32.mrf.mxu0  ;;  %v1036_v39 = vpop.f32.mrf.mxu1 }
 0x2e6   : > { %v1183_v6 = vmax.f32 %v907_v38, %v1036_v39 }
 0x2e7   : > { %v912_v42 = vpop.f32.mrf.mxu0  ;;  %v1589_v53 = vpop.f32.mrf.mxu1 }
 0x2e9   : > { %v1545_v43 = vpop.f32.mrf.mxu0  ;;  %v1041_v45 = vpop.f32.mrf.mxu1 }
 0x2ea   : > { %v1184_v10 = vmax.f32 %v912_v42, %v1041_v45 }
 0x2eb   : > { %v917_v48 = vpop.f32.mrf.mxu0  ;;  %v1592_v51 = vpop.f32.mrf.mxu1 }
 0x2ed   : > { %v1548_v50 = vpop.f32.mrf.mxu0  ;;  %v1046_v52 = vpop.f32.mrf.mxu1 }
 0x2ee   : > { %v1185_v15 = vmax.f32 %v917_v48, %v1046_v52 }
 0x2ef   : > { %v1145_v49 = vpop.f32.mrf.mxu0  ;;  %v1595_v57 = vpop.f32.mrf.mxu1 }
 0x2f0   : > { %v1186_v40 = vmax.f32 %v1179_v55, %v1145_v49 }
 0x2f1   : > { %v1624_v60 = vpop.f32.mrf.mxu0 }
 0x2f2   : > { %1193 = vst.msk [vmem:[%s2262_s24] sm:$0xff] %vm501_vm2, %v1186_v40 }
 0x2f3   : > { %v1150_v61 = vpop.f32.mrf.mxu0 }
 0x2f4   : > { %v1187_v63 = vmax.f32 %v1180_v46, %v1150_v61 }
 0x2f5   : > { %v1627_v0 = vpop.f32.mrf.mxu0 }
 0x2f6   : > { %1194 = vst.msk [vmem:[%s2262_s24 + $0x8] sm:$0xff] %vm501_vm2, %v1187_v63 }
 0x2f7   : > { %v1155_v2 = vpop.f32.mrf.mxu0 }
 0x2f8   : > { %v1188_v4 = vmax.f32 %v1181_v44, %v1155_v2 }
 0x2f9   : > { %v1630_v35 = vpop.f32.mrf.mxu0 }
 0x2fa   : > { %1195 = vst.msk [vmem:[%s2262_s24 + $0x10] sm:$0xff] %vm501_vm2, %v1188_v4 }
 0x2fb   : > { %v1160_v47 = vpop.f32.mrf.mxu0 }
 0x2fc   : > { %v1189_v41 = vmax.f32 %v1182_v5, %v1160_v47 }
 0x2fd   : > { %v1633_v26 = vpop.f32.mrf.mxu0 }
 0x2fe   : > { %1196 = vst.msk [vmem:[%s2262_s24 + $0x18] sm:$0xff] %vm501_vm2, %v1189_v41 }
 0x2ff   : > { %v1165_v7 = vpop.f32.mrf.mxu0 }
 0x300   : > { %v1190_v8 = vmax.f32 %v1183_v6, %v1165_v7 }
 0x301   : > { %v1636_v9 = vpop.f32.mrf.mxu0 }
 0x302   : > { %1197 = vst.msk [vmem:[%s2262_s24 + $0x20] sm:$0xff] %vm501_vm2, %v1190_v8 }
 0x303   : > { %v1170_v12 = vpop.f32.mrf.mxu0 }
 0x304   : > { %v1191_v54 = vmax.f32 %v1184_v10, %v1170_v12 }
 0x305   : > { %v1639_v14 = vpop.f32.mrf.mxu0 }
 0x306   : > { %1198 = vst.msk [vmem:[%s2262_s24 + $0x28] sm:$0xff] %vm501_vm2, %v1191_v54 }
 0x307   : > { %v1175_v16 = vpop.f32.mrf.mxu0 }
 0x308   : > { %v1192_v17 = vmax.f32 %v1185_v15, %v1175_v16 }
 0x309   : > { %v1642_v18 = vpop.f32.mrf.mxu0 }
 0x30a   : > { %1200 = vst.msk [vmem:[%s2262_s24 + $0x30] sm:$0xf] %vm1199_vm5, %v1192_v17 }
 0x30b PF: > { %s14_s15 = sadd.s32 1, %s1715_s15  }
 0x30c   : > { %p11_p4 = scmp.ge.s32.totalorder %s14_s15, 4  }
 0x30e   :  { %13 = sbr.rel (!%p11_p4) target bundleno = 1 (0x1), region = 68 }

// kernel: fea_cnn_forward.8
= control target key start
LH: loop header
LB: loop body
LE: loop exit
PB: predicated region body
PF: predicated region fallthrough
CT: control target
= control target key end

     0   :  { %s2678_s18 = smov 0   ;;  %s2933_s0 = inlined_call_operand.vmem [shape: f32[2,25,16], index: 0, kind: input, shape index: {}]   ;;  %s2934_s1 = inlined_call_operand.vmem [shape: f32[3,12,25], index: 1, kind: input, shape index: {}]   ;;  %s2935_s2 = inlined_call_operand.vmem [shape: f32[3,16,16], index: 2, kind: input, shape index: {}]   ;;  %s2936_s3 = inlined_call_operand.vmem [shape: f32[1,16], index: 3, kind: input, shape index: {}]   ;;  %s2937_s4 = inlined_call_operand.vmem [shape: f32[2,12,12], index: 4, kind: input, shape index: {}]   ;;  %s2938_s5 = inlined_call_operand.vmem [shape: f32[16,16], index: 5, kind: input, shape index: {}]   ;;  %s2939_s6 = inlined_call_operand.vmem [shape: f32[1,16], index: 6, kind: input, shape index: {}]   ;;  %s2940_s7 = inlined_call_operand.vmem [shape: f32[3,3,16], index: 7, kind: input, shape index: {}]   ;;  %s2941_s8 = inlined_call_operand.vmem [shape: f32[3,1,16], index: 8, kind: input, shape index: {}]   ;;  %s2942_s9 = inlined_call_operand.vmem [shape: f32[16,57], index: 9, kind: input, shape index: {}]   ;;  %s2943_s10 = inlined_call_operand.vmem [shape: f32[1,57], index: 10, kind: input, shape index: {}]   ;;  %s2944_s11 = inlined_call_operand.vmem [shape: f32[3,57], index: 11, kind: input, shape index: {}]   ;;  %s2945_s12 = inlined_call_operand.vmem [shape: f32[1,57], index: 12, kind: input, shape index: {}]   ;;  %s2946_s13 = inlined_call_operand.vmem [shape: f32[57,16], index: 13, kind: input, shape index: {}]   ;;  %s2947_s14 = inlined_call_operand.vmem [shape: f32[1,16], index: 14, kind: input, shape index: {}]   ;;  %s2948_s15 = inlined_call_operand.vmem [shape: f32[2,12,16], index: 15, kind: output, shape index: {}]  }
   0x1 LB: > { %s2256_s19 = sadd.s32 4294967295, %s2596_s18   ;;  %p2260_p0 = scmp.ge.s32.totalorder %s2596_s18, 1  ;;  %s2596_s18 = sphi %s2678_s18, %s25_s18  }
   0x2   : > { %p437_p1 = scmp.lt.s32.totalorder %s2596_s18, 3 }
   0x4   : > { %p438_p2 = pnand %p2260_p0, %p437_p1 }
   0x5   : > { %p485_p3 = scmp.lt.s32.totalorder (!%p438_p2), %s2256_s19, 1 }
   0x6   : > { %441 = sbr.rel (%p438_p2) target bundleno = 2370 (0x942), region = 80 }
   0xb   : > { %v499_v0 = vld [vmem:[%s2934_s1] sm:$0xff]  ;;  %vm501_vm0 = vcmask 203776   ;;  %s2950_s19 = smov (!%p485_p3, %s2256_s19), 1  ;;  %vm508_vm1 = vcmask 1040384   ;;  %v500_v5 = vld [vmem:[%s2934_s1 + $0x8] sm:$0xf] }
   0xc   : > { %2425 = vmatprep.mubr.msk.f32.mxu0 %vm501_vm0, %v499_v0  ;;  %s2335_s22 = sshll.u32 %s2950_s19, 5  ;;  %v2268_v6 = vld [vmem:[%s2934_s1 + $0x10] sm:$0xff]  ;;  %v2269_v7 = vld [vmem:[%s2934_s1 + $0x18] sm:$0xf]  ;;  %v588_v8 = vld [vmem:[%s2935_s2 + $0x8] sm:$0xff]  ;;  %vm676_vm2 = vcmask 130048  }
   0xd   : > { %s489_s25 = scalar_lea.vmem %s2933_s0, %s2335_s22  ;;  %2446 = vmatprep.subr.mxu1 %v588_v8  ;;  %v587_v9 = vld [vmem:[%s2935_s2] sm:$0xff]  ;;  %v2274_v10 = vld [vmem:[%s2935_s2 + $0x18] sm:$0xff]  ;;  %v2273_v11 = vld [vmem:[%s2935_s2 + $0x10] sm:$0xff]  ;;  %vm1021_vm3 = vcmask 125952   ;;  %vm1025_vm4 = vcmask 1043456   ;;  %vm1159_vm5 = vcmask 97280  }
   0xe   : > { %v498_v1 = vld [vmem:[%s489_s25 + $0x18] sm:$0x1]  ;;  %v497_v2 = vld [vmem:[%s489_s25 + $0x10] sm:$0xff]  ;;  %v496_v3 = vld [vmem:[%s489_s25 + $0x8] sm:$0xff]  ;;  %2447 = vmatpush3.msra.mxu1 %v588_v8  ;;  %vm2112_vm6 = vcmask 465920   ;;  %s2336_s26 = sshll.u32 %s2950_s19, 4 }
   0xf   : > { %2417 = vmatprep.subr.msk.mxu0 %vm508_vm1, %v498_v1  ;;  %v495_v4 = vld [vmem:[%s489_s25] sm:$0xff]  ;;  %2448 = vmatprep.subr.mxu1 %v587_v9  ;;  %v2280_v17 = vld [vmem:[%s2934_s1 + $0x28] sm:$0xf]  ;;  %s494_s29 = scalar_lea.vmem %s2948_s15, %s2336_s26 }
  0x10   : > { %2418 = vmatpush3.msk.msra.mxu0 %vm508_vm1, %v498_v1  ;;  %2449 = vmatpush3.msra.mxu1 %v587_v9  ;;  %v2279_v16 = vld [vmem:[%s2934_s1 + $0x20] sm:$0xff]  ;;  %v2285_v18 = vld [vmem:[%s2935_s2 + $0x28] sm:$0xff] }
  0x11   : > { %2419 = vmatprep.subr.mxu0 %v497_v2  ;;  %2464 = vmatprep.subr.mxu1 %v2285_v18  ;;  %v2284_v19 = vld [vmem:[%s2935_s2 + $0x20] sm:$0xff]  ;;  %v1067_v41 = vld [vmem:[%s2938_s5 + $0x8] sm:$0xff] }
  0x12   : > { %2420 = vmatpush3.msra.mxu0 %v497_v2  ;;  %v2288_v28 = vld [vmem:[%s2936_s3] ss:$0 sm:$0xff] }
  0x13   : > { %2421 = vmatprep.subr.mxu0 %v496_v3  ;;  %v1066_v42 = vld [vmem:[%s2938_s5] sm:$0xff] }
  0x14   : > { %2422 = vmatpush3.msra.mxu0 %v496_v3  ;;  %v2766_v9 = vld [vmem:[%s2937_s4] sm:$0xff] }
  0x15   : > { %2423 = vmatprep.subr.mxu0 %v495_v4 }
  0x16   : > { %2424 = vmatpush3.msra.mxu0 %v495_v4 }
  0x17   : > { %2426 = vmatmul.mubr.msk.f32.vlgmr.msra.gmra.mxu0 %vm501_vm0, %v500_v5  ;;  %2428 = vmatprep.subr.msk.mxu0 %vm508_vm1, %v498_v1 }
  0x18   : > { %2429 = vmatpush3.msk.msra.mxu0 %vm508_vm1, %v498_v1  ;;  %2436 = vmatprep.mubr.msk.f32.mxu0 %vm501_vm0, %v2268_v6 }
  0x19   : > { %2430 = vmatprep.subr.mxu0 %v497_v2 }
  0x1a   : > { %2431 = vmatpush3.msra.mxu0 %v497_v2 }
  0x1b   : > { %2432 = vmatprep.subr.mxu0 %v496_v3 }
  0x1c   : > { %2433 = vmatpush3.msra.mxu0 %v496_v3 }
  0x1d   : > { %2434 = vmatprep.subr.mxu0 %v495_v4 }
  0x1e   : > { %2435 = vmatpush3.msra.mxu0 %v495_v4 }
  0x1f   : > { %2437 = vmatmul.mubr.msk.f32.vlgmr.msra.gmra.mxu0 %vm501_vm0, %v2269_v7  ;;  %2439 = vmatprep.subr.mxu0 %v2274_v10 }
  0x20   : > { %2440 = vmatpush3.msra.mxu0 %v2274_v10  ;;  %v2771_v10 = vld [vmem:[%s2937_s4 + $0x10] sm:$0xff] }
  0x21   : > { %2441 = vmatprep.subr.mxu0 %v2273_v11 }
  0x22   : > { %2442 = vmatpush3.msra.mxu0 %v2273_v11  ;;  %v2291_v11 = vld [vmem:[%s2939_s6] ss:$0 sm:$0xff] }
  0x23   : > { %2453 = vmatprep.subr.msk.mxu0 %vm508_vm1, %v498_v1 }
  0xd7   : > { %v2427_v12 = vpop.f32.mrf.mxu0 }
  0xd9   : > { %v578_v13 = vpop.f32.mrf.mxu0 }
  0xda   : > { %2450 = vmatprep.mubr.msk.f32.mxu1 %vm676_vm2, %v578_v13 }
  0xdb   : > { %2451 = vmatmul.mubr.msk.f32.vlgmr.msra.gmra.mxu1 %vm676_vm2, %v2427_v12 }
  0xdc   : > { %2465 = vmatpush3.msra.mxu1 %v2285_v18  ;;  %v2787_v18 = vld [vmem:[%s2937_s4 + $0x8] sm:$0xf] }
  0xdd   : > { %2466 = vmatprep.subr.mxu1 %v2284_v19 }
  0xde   : > { %2467 = vmatpush3.msra.mxu1 %v2284_v19  ;;  %v2792_v19 = vld [vmem:[%s2937_s4 + $0x18] sm:$0xf] }
  0xdf   : > { %v2438_v14 = vpop.f32.mrf.mxu0  ;;  %2471 = vmatprep.subr.mxu1 %v1067_v41 }
  0xe1   : > { %v664_v15 = vpop.f32.mrf.mxu0 }
  0xe2   : > { %2443 = vmatprep.mubr.msk.f32.mxu0 %vm676_vm2, %v664_v15 }
  0xe3   : > { %2444 = vmatmul.mubr.msk.f32.vlgmr.msra.gmra.mxu0 %vm676_vm2, %v2438_v14 }
  0xe4   : > { %2454 = vmatpush3.msk.msra.mxu0 %vm508_vm1, %v498_v1  ;;  %2461 = vmatprep.mubr.msk.f32.mxu0 %vm501_vm0, %v2279_v16 }
  0xe5   : > { %2455 = vmatprep.subr.mxu0 %v497_v2 }
  0xe6   : > { %2456 = vmatpush3.msra.mxu0 %v497_v2 }
  0xe7   : > { %2457 = vmatprep.subr.mxu0 %v496_v3 }
  0xe8   : > { %2458 = vmatpush3.msra.mxu0 %v496_v3 }
  0xe9   : > { %2459 = vmatprep.subr.mxu0 %v495_v4 }
  0xea   : > { %2460 = vmatpush3.msra.mxu0 %v495_v4 }
  0xeb   : > { %2462 = vmatmul.mubr.msk.f32.vlgmr.msra.gmra.mxu0 %vm501_vm0, %v2280_v17 }
  0xec   : > { %2482 = vmatprep.mubr.msk.f32.mxu0 %vm1159_vm5, %v2766_v9 }
 0x19b   : > { %v2452_v24 = vpop.f32.mrf.mxu1 }
 0x19d   : > { %v830_v25 = vpop.f32.mrf.mxu1 }
 0x1a3   : > { %v2445_v20 = vpop.f32.mrf.mxu0 }
 0x1a4   : > { %v836_v26 = vadd.f32 %v2452_v24, %v2445_v20  ;;  %v1244_v20 = vlaneseq }
 0x1a5   : > { %v749_v21 = vpop.f32.mrf.mxu0 }
 0x1a6   : > { %v831_v29 = vadd.f32 %v830_v25, %v749_v21  ;;  %v1245_v21 = vshrl.u32 %v1244_v20, 7  ;;  %v1158_v25 = vld [vmem:[%s2940_s7] sm:$0x7] }
 0x1a8   : > { %v2806_v24 = vsub.s32 2, %v1245_v21 }
 0x1ab   : > { %v2463_v22 = vpop.f32.mrf.mxu0 }
 0x1ad   : > { %v914_v23 = vpop.f32.mrf.mxu0 }
 0x1ae   : > { %2468 = vmatprep.mubr.msk.f32.mxu1 %vm676_vm2, %v914_v23  ;;  %v2804_v23 = vsub.s32 1, %v1245_v21 }
 0x1af   : > { %2469 = vmatmul.mubr.msk.f32.vlgmr.msra.gmra.mxu1 %vm676_vm2, %v2463_v22  ;;  %v2802_v22 = vsub.s32 0, %v1245_v21 }
 0x1b0   : > { %2472 = vmatpush3.msra.mxu1 %v1067_v41 }
 0x1b1   : > { %2473 = vmatprep.subr.mxu1 %v1066_v42 }
 0x1b2   : > { %2474 = vmatpush3.msra.mxu1 %v1066_v42 }
 0x26f   : > { %v2470_v27 = vpop.f32.mrf.mxu1 }
 0x270   : > { %v1008_v30 = vadd.f32 %v2470_v27, %v836_v26  ;;  %v1247_v26 = vrot.slane %v1158_v25, %v2802_v22  ;;  %v1253_v27 = vrot.slane %v1158_v25, %v2804_v23 }
 0x271   : > { %v998_v31 = vpop.f32.mrf.mxu1 }
 0x272   : > { %v1017_v32 = vadd.f32 %v2288_v28, %v1008_v30  ;;  %v1007_v33 = vadd.f32 %v998_v31, %v831_v29 }
 0x274   : > { %v1016_v34 = vadd.f32 %v2288_v28, %v1007_v33  ;;  %v1022_v35 = vsel %vm1021_vm3, %v1017_v32, 0.0  ;;  %v1037_v36 = vmul.f32 %v1017_v32, %v1017_v32  ;;  %v1342_v28 = vrot.slane %v1158_v25, %v2806_v24 }
 0x275   : > { %1023 = vadd.xlane.f32.xlu0 %v1022_v35 }
 0x276   : > { %v1041_v37 = vsel %vm1021_vm3, %v1037_v36, 0.0  ;;  %v1036_v38 = vmul.f32 %v1016_v34, %v1016_v34  ;;  %v1018_v39 = vsel %vm676_vm2, %v1016_v34, 0.0 }
 0x277   : > { %1042 = vadd.xlane.f32.xlu1 %v1041_v37 }
 0x278   : > { %v1038_v40 = vsel %vm676_vm2, %v1036_v38, 0.0 }
 0x279   : > { %1019 = vadd.xlane.f32.xlu0 %v1018_v39  ;;  %v2300_v39 = vld [vmem:[%s2941_s8] ss:$0 sm:$0xff] }
 0x27b   : > { %1039 = vadd.xlane.f32.xlu1 %v1038_v40 }
 0x2fe   : > { %v1024_v43 = vpop.xlane.xlu0 %1023 }
 0x2ff   : > { %v1026_v45 = vsel %vm1025_vm4, %v1024_v43, 0.0 }
 0x300   : > { %v1043_v44 = vpop.xlane.xlu1 %1042 }
 0x301   : > { %v1044_v48 = vsel %vm1025_vm4, %v1043_v44, 0.0 }
 0x302   : > { %v1020_v46 = vpop.xlane.xlu0 %1019 }
 0x303   : > { %v1027_v47 = vadd.f32 %v1026_v45, %v1020_v46 }
 0x304   : > { %v1040_v49 = vpop.xlane.xlu1 %1039 }
 0x305   : > { %v1028_v50 = vrot.slane %v1027_v47, 4  ;;  %v1045_v51 = vadd.f32 %v1044_v48, %v1040_v49 }
 0x307   : > { %v1029_v52 = vadd.f32 %v1028_v50, %v1027_v47  ;;  %v1046_v53 = vrot.slane %v1045_v51, 4 }
 0x309   : > { %v1030_v54 = vrot.slane %v1029_v52, 2  ;;  %v1047_v55 = vadd.f32 %v1046_v53, %v1045_v51 }
 0x30b   : > { %v1031_v56 = vadd.f32 %v1030_v54, %v1029_v52  ;;  %v1048_v57 = vrot.slane %v1047_v55, 2 }
 0x30d   : > { %v1032_v58 = vrot.slane %v1031_v56, 1  ;;  %v1049_v59 = vadd.f32 %v1048_v57, %v1047_v55 }
 0x30f   : > { %v1033_v60 = vadd.f32 %v1032_v58, %v1031_v56  ;;  %v1050_v61 = vrot.slane %v1049_v59, 1 }
 0x311   : > { %v1035_v62 = vmul.f32 0.0052083335, %v1033_v60  ;;  %v1051_v63 = vadd.f32 %v1050_v61, %v1049_v59 }
 0x313   : > { %v1052_v0 = vmul.f32 0.0052083335, %v1051_v63  ;;  %v1055_v1 = vmul.f32 %v1035_v62, %v1035_v62  ;;  %v1054_v4 = vsub.f32 %v1017_v32, %v1035_v62  ;;  %v1053_v5 = vsub.f32 %v1016_v34, %v1035_v62 }
 0x315   : > { %v1056_v2 = vsub.f32 %v1052_v0, %v1055_v1  ;;  %v2301_v0 = vld [vmem:[%s2940_s7 + $0x4] sm:$0x7] }
 0x316   : > { %v1457_v1 = vrot.slane %v2301_v0, %v2802_v22 }
 0x317   : > { %v1057_v3 = vadd.f32 1e-05, %v1056_v2  ;;  %v1463_v2 = vrot.slane %v2301_v0, %v2804_v23 }
 0x319   : > { %2568 = vrsqrt.f32 %v1057_v3  ;;  %v1546_v3 = vrot.slane %v2301_v0, %v2806_v24 }
 0x326   : > { %v2569_v6 = vpop.eup %2568 }
 0x327   : > { %v1059_v7 = vmul.f32 %v2569_v6, %v1053_v5  ;;  %v1060_v8 = vmul.f32 %v2569_v6, %v1054_v4 }
 0x329   : > { %2475 = vmatprep.mubr.msk.f32.mxu1 %vm676_vm2, %v1059_v7 }
 0x32a   : > { %2476 = vmatmul.mubr.msk.f32.vlgmr.msra.gmra.mxu1 %vm676_vm2, %v1060_v8 }
 0x32b   : > { %2489 = vmatprep.mubr.msk.f32.mxu1 %vm1159_vm5, %v2771_v10 }
 0x3ea   : > { %v2477_v12 = vpop.f32.mrf.mxu1 }
 0x3eb   : > { %v1153_v13 = vadd.f32 %v2477_v12, %v2291_v11 }
 0x3ec   : > { %v1147_v14 = vpop.f32.mrf.mxu1 }
 0x3ed   : > { %v1157_v15 = vadd.f32 %v1153_v13, %v1060_v8  ;;  %v1148_v16 = vadd.f32 %v2291_v11, %v1147_v14 }
 0x3ef   : > { %v1156_v17 = vadd.f32 %v1148_v16, %v1059_v7  ;;  %2478 = vmatprep.subr.msk.mxu0 %vm1025_vm4, %v1157_v15  ;;  %2485 = vmatprep.subr.msk.mxu1 %vm1025_vm4, %v1157_v15  ;;  %v1255_v32 = vmul.f32 %v1253_v27, %v1157_v15  ;;  %v2309_v16 = vld [vmem:[%s2941_s8 + $0x1] ss:$0 sm:$0xff] }
 0x3f0   : > { %2479 = vmatpush3.msk.msra.mxu0 %vm1025_vm4, %v1157_v15  ;;  %2486 = vmatpush3.msk.msra.mxu1 %vm1025_vm4, %v1157_v15 }
 0x3f1   : > { %2480 = vmatprep.subr.mxu0 %v1156_v17  ;;  %2487 = vmatprep.subr.mxu1 %v1156_v17  ;;  %v1254_v38 = vmul.f32 %v1253_v27, %v1156_v17 }
 0x3f2   : > { %2481 = vmatpush3.msra.mxu0 %v1156_v17  ;;  %2488 = vmatpush3.msra.mxu1 %v1156_v17 }
 0x3f3   : > { %2483 = vmatmul.mubr.msk.f32.vlgmr.msra.gmra.mxu0 %vm1159_vm5, %v2787_v18  ;;  %2490 = vmatmul.mubr.msk.f32.vlgmr.msra.gmra.mxu1 %vm1159_vm5, %v2792_v19 }
 0x3f4   : > { %2496 = vmatprep.mubr.msk.f32.mxu0 %vm1159_vm5, %v2766_v9  ;;  %2503 = vmatprep.mubr.msk.f32.mxu1 %vm1159_vm5, %v2771_v10 }
 0x4b3   : > { %v2484_v29 = vpop.f32.mrf.mxu0  ;;  %v2491_v30 = vpop.f32.mrf.mxu1 }
 0x4b4   : > { %v1249_v31 = vmul.f32 %v2484_v29, %v1247_v26  ;;  %v1344_v33 = vmul.f32 %v2491_v30, %v1342_v28 }
 0x4b5   : > { %v1235_v34 = vpop.f32.mrf.mxu0  ;;  %v1330_v35 = vpop.f32.mrf.mxu1 }
 0x4b6   : > { %v1257_v36 = vadd.f32 %v1255_v32, %v1249_v31  ;;  %v1248_v37 = vmul.f32 %v1247_v26, %v1235_v34  ;;  %v1343_v42 = vmul.f32 %v1342_v28, %v1330_v35 }
 0x4b8   : > { %v1346_v40 = vadd.f32 %v1344_v33, %v1257_v36  ;;  %v1256_v41 = vadd.f32 %v1254_v38, %v1248_v37 }
 0x4ba   : > { %v1355_v43 = vadd.f32 %v2300_v39, %v1346_v40  ;;  %v1345_v44 = vadd.f32 %v1343_v42, %v1256_v41 }
 0x4bc   : > { %v1359_v45 = vmul.f32 0.044715, %v1355_v43  ;;  %v1354_v46 = vadd.f32 %v2300_v39, %v1345_v44  ;;  %v1357_v57 = vmul.f32 0.5, %v1355_v43 }
 0x4be   : > { %v1361_v47 = vmul.f32 %v1359_v45, %v1355_v43  ;;  %v1358_v48 = vmul.f32 0.044715, %v1354_v46  ;;  %v1356_v61 = vmul.f32 0.5, %v1354_v46 }
 0x4c0   : > { %v1363_v49 = vmul.f32 %v1361_v47, %v1355_v43  ;;  %v1360_v50 = vmul.f32 %v1358_v48, %v1354_v46  ;;  %v1786_v47 = vld [vmem:[%s2942_s9] sm:$0xff]  ;;  %v2310_v48 = vld [vmem:[%s2940_s7 + $0x8] sm:$0x7] }
 0x4c2   : > { %v1365_v51 = vadd.f32 %v1363_v49, %v1355_v43  ;;  %v1362_v52 = vmul.f32 %v1360_v50, %v1354_v46  ;;  %v1662_v49 = vrot.slane %v2310_v48, %v2802_v22  ;;  %v1751_v50 = vrot.slane %v2310_v48, %v2806_v24 }
 0x4c4   : > { %v1367_v53 = vmul.f32 0.7978846, %v1365_v51  ;;  %v1364_v54 = vadd.f32 %v1362_v52, %v1354_v46  ;;  %v1787_v46 = vld [vmem:[%s2942_s9 + $0x8] sm:$0xff] }
 0x4c6   : > { %v1366_v55 = vmul.f32 0.7978846, %v1364_v54  ;;  %2570 = vtanh.f32 %v1367_v53 }
 0x4c8   : > { %2572 = vtanh.f32 %v1366_v55 }
 0x4d3   : > { %v2571_v56 = vpop.eup %2570 }
 0x4d4   : > { %v1371_v58 = vadd.f32 1.0, %v2571_v56 }
 0x4d5   : > { %v2573_v59 = vpop.eup %2572 }
 0x4d6   : > { %v1373_v60 = vmul.f32 %v1371_v58, %v1357_v57  ;;  %v1370_v62 = vadd.f32 1.0, %v2573_v59 }
 0x4d8   : > { %2492 = vmatprep.subr.msk.mxu0 %vm1025_vm4, %v1373_v60  ;;  %2499 = vmatprep.subr.msk.mxu1 %vm1025_vm4, %v1373_v60  ;;  %v1372_v63 = vmul.f32 %v1370_v62, %v1356_v61  ;;  %v1465_v7 = vmul.f32 %v1463_v2, %v1373_v60  ;;  %v2318_v61 = vld [vmem:[%s2941_s8 + $0x2] ss:$0 sm:$0xff] }
 0x4d9   : > { %2493 = vmatpush3.msk.msra.mxu0 %vm1025_vm4, %v1373_v60  ;;  %2500 = vmatpush3.msk.msra.mxu1 %vm1025_vm4, %v1373_v60 }
 0x4da   : > { %2494 = vmatprep.subr.mxu0 %v1372_v63  ;;  %2501 = vmatprep.subr.mxu1 %v1372_v63  ;;  %v1464_v15 = vmul.f32 %v1463_v2, %v1372_v63 }
 0x4db   : > { %2495 = vmatpush3.msra.mxu0 %v1372_v63  ;;  %2502 = vmatpush3.msra.mxu1 %v1372_v63 }
 0x4dc   : > { %2497 = vmatmul.mubr.msk.f32.vlgmr.msra.gmra.mxu0 %vm1159_vm5, %v2787_v18  ;;  %2504 = vmatmul.mubr.msk.f32.vlgmr.msra.gmra.mxu1 %vm1159_vm5, %v2792_v19 }
 0x4dd   : > { %2510 = vmatprep.mubr.msk.f32.mxu0 %vm1159_vm5, %v2766_v9  ;;  %2517 = vmatprep.mubr.msk.f32.mxu1 %vm1159_vm5, %v2771_v10 }
 0x59c   : > { %v2498_v4 = vpop.f32.mrf.mxu0  ;;  %v2505_v5 = vpop.f32.mrf.mxu1 }
 0x59d   : > { %v1459_v6 = vmul.f32 %v2498_v4, %v1457_v1  ;;  %v1548_v8 = vmul.f32 %v2505_v5, %v1546_v3 }
 0x59e   : > { %v1445_v11 = vpop.f32.mrf.mxu0  ;;  %v1534_v12 = vpop.f32.mrf.mxu1 }
 0x59f   : > { %v1467_v13 = vadd.f32 %v1465_v7, %v1459_v6  ;;  %v1458_v14 = vmul.f32 %v1457_v1, %v1445_v11  ;;  %v1547_v21 = vmul.f32 %v1546_v3, %v1534_v12 }
 0x5a1   : > { %v1550_v17 = vadd.f32 %v1548_v8, %v1467_v13  ;;  %v1466_v20 = vadd.f32 %v1464_v15, %v1458_v14 }
 0x5a3   : > { %v1560_v25 = vadd.f32 %v2309_v16, %v1550_v17  ;;  %v1549_v26 = vadd.f32 %v1547_v21, %v1466_v20 }
 0x5a5   : > { %v1564_v27 = vmul.f32 0.044715, %v1560_v25  ;;  %v1559_v28 = vadd.f32 %v2309_v16, %v1549_v26  ;;  %v1562_v39 = vmul.f32 0.5, %v1560_v25 }
 0x5a7   : > { %v1566_v29 = vmul.f32 %v1564_v27, %v1560_v25  ;;  %v1563_v30 = vmul.f32 0.044715, %v1559_v28  ;;  %v1561_v43 = vmul.f32 0.5, %v1559_v28 }
 0x5a9   : > { %v1568_v31 = vmul.f32 %v1566_v29, %v1560_v25  ;;  %v1565_v32 = vmul.f32 %v1563_v30, %v1559_v28 }
 0x5ab   : > { %v1570_v33 = vadd.f32 %v1568_v31, %v1560_v25  ;;  %v1567_v34 = vmul.f32 %v1565_v32, %v1559_v28  ;;  %v2319_v31 = vld [vmem:[%s2943_s10] ss:$0 sm:$0xff] }
 0x5ad   : > { %v1572_v35 = vmul.f32 0.7978846, %v1570_v33  ;;  %v1569_v36 = vadd.f32 %v1567_v34, %v1559_v28 }
 0x5af   : > { %v1571_v37 = vmul.f32 0.7978846, %v1569_v36  ;;  %2574 = vtanh.f32 %v1572_v35 }
 0x5b1   : > { %2576 = vtanh.f32 %v1571_v37 }
 0x5bc   : > { %v2575_v38 = vpop.eup %2574 }
 0x5bd   : > { %v1576_v40 = vadd.f32 1.0, %v2575_v38 }
 0x5be   : > { %v2577_v41 = vpop.eup %2576 }
 0x5bf   : > { %v1578_v42 = vmul.f32 %v1576_v40, %v1562_v39  ;;  %v1575_v44 = vadd.f32 1.0, %v2577_v41 }
 0x5c1   : > { %2506 = vmatprep.subr.msk.mxu0 %vm1025_vm4, %v1578_v42  ;;  %2513 = vmatprep.subr.msk.mxu1 %vm1025_vm4, %v1578_v42  ;;  %v1577_v45 = vmul.f32 %v1575_v44, %v1561_v43 }
 0x5c2   : > { %2507 = vmatpush3.msk.msra.mxu0 %vm1025_vm4, %v1578_v42  ;;  %2514 = vmatpush3.msk.msra.mxu1 %vm1025_vm4, %v1578_v42 }
 0x5c3   : > { %2508 = vmatprep.subr.mxu0 %v1577_v45  ;;  %2515 = vmatprep.subr.mxu1 %v1577_v45 }
 0x5c4   : > { %2509 = vmatpush3.msra.mxu0 %v1577_v45  ;;  %2516 = vmatpush3.msra.mxu1 %v1577_v45 }
 0x5c5   : > { %2511 = vmatmul.mubr.msk.f32.vlgmr.msra.gmra.mxu0 %vm1159_vm5, %v2787_v18  ;;  %2518 = vmatmul.mubr.msk.f32.vlgmr.msra.gmra.mxu1 %vm1159_vm5, %v2792_v19 }
 0x5c6   : > { %2531 = vmatprep.mubr.msk.f32.mxu1 %vm1159_vm5, %v2766_v9  ;;  %2520 = vmatprep.subr.mxu0 %v1787_v46  ;;  %v1668_v9 = vrot.slane %v2310_v48, %v2804_v23 }
 0x5c7   : > { %2521 = vmatpush3.msra.mxu0 %v1787_v46 }
 0x5c8   : > { %2522 = vmatprep.subr.mxu0 %v1786_v47  ;;  %v1670_v54 = vmul.f32 %v1668_v9, %v1578_v42  ;;  %v1669_v60 = vmul.f32 %v1668_v9, %v1577_v45 }
 0x5c9   : > { %2523 = vmatpush3.msra.mxu0 %v1786_v47 }
 0x685   : > { %v2512_v51 = vpop.f32.mrf.mxu0  ;;  %v2519_v52 = vpop.f32.mrf.mxu1 }
 0x686   : > { %v1664_v53 = vmul.f32 %v2512_v51, %v1662_v49  ;;  %v1753_v55 = vmul.f32 %v2519_v52, %v1751_v50  ;;  %v2104_v52 = vld [vmem:[%s2946_s13 + $0x38] sm:$0x1] }
 0x687   : > { %v1650_v56 = vpop.f32.mrf.mxu0  ;;  %v1739_v57 = vpop.f32.mrf.mxu1 }
 0x688   : > { %v1672_v58 = vadd.f32 %v1670_v54, %v1664_v53  ;;  %v1663_v59 = vmul.f32 %v1662_v49, %v1650_v56  ;;  %v1752_v0 = vmul.f32 %v1751_v50, %v1739_v57  ;;  %v2103_v53 = vld [vmem:[%s2946_s13 + $0x30] sm:$0xff]  ;;  %v2102_v54 = vld [vmem:[%s2946_s13 + $0x28] sm:$0xff]  ;;  %v2097_v57 = vld [vmem:[%s2946_s13] sm:$0xff] }
 0x689   : > { %v2098_v56 = vld [vmem:[%s2946_s13 + $0x8] sm:$0xff] }
 0x68a   : > { %v1755_v62 = vadd.f32 %v1753_v55, %v1672_v58  ;;  %v1671_v63 = vadd.f32 %v1669_v60, %v1663_v59  ;;  %v2099_v55 = vld [vmem:[%s2946_s13 + $0x10] sm:$0xff]  ;;  %v1894_v58 = vld [vmem:[%s2944_s11] sm:$0x7] }
 0x68b   : > { %v1976_v59 = vrot.slane %v1894_v58, %v2802_v22  ;;  %v1982_v60 = vrot.slane %v1894_v58, %v2804_v23 }
 0x68c   : > { %v1765_v1 = vadd.f32 %v2318_v61, %v1755_v62  ;;  %v1754_v2 = vadd.f32 %v1752_v0, %v1671_v63 }
 0x68e   : > { %v1769_v3 = vmul.f32 0.044715, %v1765_v1  ;;  %v1764_v4 = vadd.f32 %v2318_v61, %v1754_v2  ;;  %v1767_v21 = vmul.f32 0.5, %v1765_v1  ;;  %v2065_v61 = vrot.slane %v1894_v58, %v2806_v24 }
 0x690   : > { %v1771_v5 = vmul.f32 %v1769_v3, %v1765_v1  ;;  %v1768_v6 = vmul.f32 0.044715, %v1764_v4  ;;  %v1766_v25 = vmul.f32 0.5, %v1764_v4 }
 0x692   : > { %v1773_v7 = vmul.f32 %v1771_v5, %v1765_v1  ;;  %v1770_v8 = vmul.f32 %v1768_v6, %v1764_v4 }
 0x694   : > { %v1775_v11 = vadd.f32 %v1773_v7, %v1765_v1  ;;  %v1772_v12 = vmul.f32 %v1770_v8, %v1764_v4  ;;  %v2328_v8 = vld [vmem:[%s2945_s12] ss:$0 sm:$0xff] }
 0x696   : > { %v1777_v13 = vmul.f32 0.7978846, %v1775_v11  ;;  %v1774_v14 = vadd.f32 %v1772_v12, %v1764_v4 }
 0x698   : > { %v1776_v15 = vmul.f32 0.7978846, %v1774_v14  ;;  %2578 = vtanh.f32 %v1777_v13 }
 0x69a   : > { %2580 = vtanh.f32 %v1776_v15 }
 0x6a5   : > { %v2579_v16 = vpop.eup %2578 }
 0x6a6   : > { %v1781_v17 = vadd.f32 1.0, %v2579_v16 }
 0x6a7   : > { %v2581_v20 = vpop.eup %2580 }
 0x6a8   : > { %v1780_v26 = vadd.f32 1.0, %v2581_v20  ;;  %v1783_v27 = vmul.f32 %v1781_v17, %v1767_v21 }
 0x6aa   : > { %v1782_v28 = vmul.f32 %v1780_v26, %v1766_v25  ;;  %v2865_v30 = vmul.f32 0.999995, %v1783_v27 }
 0x6ac   : > { %v2863_v29 = vmul.f32 0.999995, %v1782_v28 }
 0x6ae   : > { %2524 = vmatprep.mubr.msk.f32.mxu0 %vm676_vm2, %v2863_v29 }
 0x6af   : > { %2525 = vmatmul.mubr.msk.f32.vlgmr.msra.gmra.mxu0 %vm676_vm2, %v2865_v30 }
 0x6b0   : > { %2538 = vmatprep.mubr.msk.f32.mxu0 %vm1159_vm5, %v2771_v10 }
 0x76f   : > { %v2526_v32 = vpop.f32.mrf.mxu0 }
 0x770   : > { %v1873_v33 = vadd.f32 %v2526_v32, %v2319_v31 }
 0x771   : > { %v1867_v34 = vpop.f32.mrf.mxu0 }
 0x772   : > { %v1879_v35 = vmul.f32 0.044715, %v1873_v33  ;;  %v1868_v36 = vadd.f32 %v2319_v31, %v1867_v34  ;;  %v1877_v46 = vmul.f32 0.5, %v1873_v33 }
 0x774   : > { %v1881_v37 = vmul.f32 %v1879_v35, %v1873_v33  ;;  %v1878_v38 = vmul.f32 0.044715, %v1868_v36  ;;  %v1876_v49 = vmul.f32 0.5, %v1868_v36 }
 0x776   : > { %v1883_v39 = vmul.f32 %v1881_v37, %v1873_v33  ;;  %v1880_v40 = vmul.f32 %v1878_v38, %v1868_v36 }
 0x778   : > { %v1885_v41 = vadd.f32 %v1883_v39, %v1873_v33  ;;  %v1882_v42 = vmul.f32 %v1880_v40, %v1868_v36  ;;  %v2329_v39 = vld [vmem:[%s2947_s14] ss:$0 sm:$0xff] }
 0x77a   : > { %v1887_v43 = vmul.f32 0.7978846, %v1885_v41  ;;  %v1884_v44 = vadd.f32 %v1882_v42, %v1868_v36 }
 0x77c   : > { %2582 = vtanh.f32 %v1887_v43  ;;  %v1886_v45 = vmul.f32 0.7978846, %v1884_v44 }
 0x77e   : > { %2584 = vtanh.f32 %v1886_v45 }
 0x789   : > { %v2583_v10 = vpop.eup %2582 }
 0x78a   : > { %v1891_v47 = vadd.f32 1.0, %v2583_v10 }
 0x78b   : > { %v2585_v48 = vpop.eup %2584 }
 0x78c   : > { %v1893_v9 = vmul.f32 %v1891_v47, %v1877_v46  ;;  %v1890_v50 = vadd.f32 1.0, %v2585_v48 }
 0x78e   : > { %2527 = vmatprep.subr.msk.mxu1 %vm1025_vm4, %v1893_v9  ;;  %2534 = vmatprep.subr.msk.mxu0 %vm1025_vm4, %v1893_v9  ;;  %v1892_v51 = vmul.f32 %v1890_v50, %v1876_v49  ;;  %v1984_v1 = vmul.f32 %v1982_v60, %v1893_v9 }
 0x78f   : > { %2528 = vmatpush3.msk.msra.mxu1 %vm1025_vm4, %v1893_v9  ;;  %2535 = vmatpush3.msk.msra.mxu0 %vm1025_vm4, %v1893_v9 }
 0x790   : > { %2529 = vmatprep.subr.mxu1 %v1892_v51  ;;  %2536 = vmatprep.subr.mxu0 %v1892_v51  ;;  %v1983_v7 = vmul.f32 %v1982_v60, %v1892_v51 }
 0x791   : > { %2530 = vmatpush3.msra.mxu1 %v1892_v51  ;;  %2537 = vmatpush3.msra.mxu0 %v1892_v51 }
 0x792   : > { %2532 = vmatmul.mubr.msk.f32.vlgmr.msra.gmra.mxu1 %vm1159_vm5, %v2787_v18  ;;  %2539 = vmatmul.mubr.msk.f32.vlgmr.msra.gmra.mxu0 %vm1159_vm5, %v2792_v19  ;;  %v2101_v18 = vld [vmem:[%s2946_s13 + $0x20] sm:$0xff]  ;;  %v2100_v19 = vld [vmem:[%s2946_s13 + $0x18] sm:$0xff] }
 0x793   : > { %2541 = vmatprep.subr.msk.mxu1 %vm508_vm1, %v2104_v52 }
 0x794   : > { %2542 = vmatpush3.msk.msra.mxu1 %vm508_vm1, %v2104_v52 }
 0x795   : > { %2543 = vmatprep.subr.mxu1 %v2103_v53 }
 0x796   : > { %2544 = vmatpush3.msra.mxu1 %v2103_v53 }
 0x797   : > { %2545 = vmatprep.subr.mxu1 %v2102_v54 }
 0x798   : > { %2546 = vmatpush3.msra.mxu1 %v2102_v54 }
 0x799   : > { %2547 = vmatprep.subr.mxu1 %v2101_v18 }
 0x79a   : > { %2548 = vmatpush3.msra.mxu1 %v2101_v18 }
 0x79b   : > { %2549 = vmatprep.subr.mxu1 %v2100_v19 }
 0x79c   : > { %2550 = vmatpush3.msra.mxu1 %v2100_v19 }
 0x79d   : > { %2551 = vmatprep.subr.mxu1 %v2099_v55 }
 0x79e   : > { %2552 = vmatpush3.msra.mxu1 %v2099_v55 }
 0x79f   : > { %2553 = vmatprep.subr.mxu1 %v2098_v56 }
 0x7a0   : > { %2554 = vmatpush3.msra.mxu1 %v2098_v56 }
 0x7a1   : > { %2555 = vmatprep.subr.mxu1 %v2097_v57 }
 0x7a2   : > { %2556 = vmatpush3.msra.mxu1 %v2097_v57 }
 0x852   : > { %v2533_v62 = vpop.f32.mrf.mxu1  ;;  %v2540_v63 = vpop.f32.mrf.mxu0 }
 0x853   : > { %v1978_v0 = vmul.f32 %v2533_v62, %v1976_v59  ;;  %v2067_v2 = vmul.f32 %v2540_v63, %v2065_v61 }
 0x854   : > { %v1964_v3 = vpop.f32.mrf.mxu1  ;;  %v2053_v4 = vpop.f32.mrf.mxu0 }
 0x855   : > { %v1986_v5 = vadd.f32 %v1984_v1, %v1978_v0  ;;  %v1977_v6 = vmul.f32 %v1976_v59, %v1964_v3  ;;  %v2066_v12 = vmul.f32 %v2065_v61, %v2053_v4 }
 0x857   : > { %v2069_v11 = vadd.f32 %v2067_v2, %v1986_v5  ;;  %v1985_v22 = vadd.f32 %v1983_v7, %v1977_v6 }
 0x859   : > { %v2078_v23 = vadd.f32 %v2328_v8, %v2069_v11  ;;  %v2068_v13 = vadd.f32 %v2066_v12, %v1985_v22 }
 0x85b   : > { %v2082_v24 = vmul.f32 0.044715, %v2078_v23  ;;  %v2077_v14 = vadd.f32 %v2328_v8, %v2068_v13  ;;  %v2080_v36 = vmul.f32 0.5, %v2078_v23 }
 0x85d   : > { %v2084_v15 = vmul.f32 %v2082_v24, %v2078_v23  ;;  %v2081_v16 = vmul.f32 0.044715, %v2077_v14  ;;  %v2079_v34 = vmul.f32 0.5, %v2077_v14 }
 0x85f   : > { %v2086_v17 = vmul.f32 %v2084_v15, %v2078_v23  ;;  %v2083_v20 = vmul.f32 %v2081_v16, %v2077_v14 }
 0x861   : > { %v2088_v21 = vadd.f32 %v2086_v17, %v2078_v23  ;;  %v2085_v25 = vmul.f32 %v2083_v20, %v2077_v14 }
 0x863   : > { %v2090_v26 = vmul.f32 0.7978846, %v2088_v21  ;;  %v2087_v27 = vadd.f32 %v2085_v25, %v2077_v14 }
 0x865   : > { %v2089_v28 = vmul.f32 0.7978846, %v2087_v27  ;;  %2586 = vtanh.f32 %v2090_v26 }
 0x867   : > { %2588 = vtanh.f32 %v2089_v28 }
 0x872   : > { %v2587_v31 = vpop.eup %2586 }
 0x873   : > { %v2094_v33 = vadd.f32 1.0, %v2587_v31 }
 0x874   : > { %v2589_v32 = vpop.eup %2588 }
 0x875   : > { %v2093_v35 = vadd.f32 1.0, %v2589_v32  ;;  %v2096_v38 = vmul.f32 %v2094_v33, %v2080_v36 }
 0x877   : > { %v2095_v37 = vmul.f32 %v2093_v35, %v2079_v34 }
 0x879   : > { %2557 = vmatprep.mubr.msk.f32.mxu1 %vm2112_vm6, %v2095_v37 }
 0x87a   : > { %2558 = vmatmul.mubr.msk.f32.vlgmr.msra.gmra.mxu1 %vm2112_vm6, %v2096_v38 }
 0x93a   : > { %v2559_v40 = vpop.f32.mrf.mxu1 }
 0x93b   : > { %v2194_v41 = vadd.f32 %v2559_v40, %v2329_v39 }
 0x93c   : > { %v2188_v42 = vpop.f32.mrf.mxu1 }
 0x93d   : > { %v2198_v43 = vadd.f32 %v2194_v41, %v2865_v30  ;;  %v2189_v44 = vadd.f32 %v2329_v39, %v2188_v42 }
 0x93f   : > { %2200 = vst.msk [vmem:[%s494_s29 + $0x8] sm:$0xf] %vm1021_vm3, %v2198_v43  ;;  %v2197_v45 = vadd.f32 %v2189_v44, %v2863_v29 }
 0x941   : > { %2199 = vst.msk [vmem:[%s494_s29] sm:$0xff] %vm676_vm2, %v2197_v45 }
 0x942 PF: > { %s25_s18 = sadd.s32 1, %s2596_s18  }
 0x943   : > { %p22_p4 = scmp.ge.s32.totalorder %s25_s18, 4  }
 0x945   :  { %24 = sbr.rel (!%p22_p4) target bundleno = 1 (0x1), region = 119 }

// kernel: fea_cnn_forward.7
= control target key start
LH: loop header
LB: loop body
LE: loop exit
PB: predicated region body
PF: predicated region fallthrough
CT: control target
= control target key end

     0   :  { %s3322_s18 = smov 0   ;;  %s3771_s0 = inlined_call_operand.vmem [shape: f32[2,52,16], index: 0, kind: input, shape index: {}]   ;;  %s3772_s1 = inlined_call_operand.vmem [shape: f32[3,25,52], index: 1, kind: input, shape index: {}]   ;;  %s3773_s2 = inlined_call_operand.vmem [shape: f32[3,16,16], index: 2, kind: input, shape index: {}]   ;;  %s3774_s3 = inlined_call_operand.vmem [shape: f32[1,16], index: 3, kind: input, shape index: {}]   ;;  %s3775_s4 = inlined_call_operand.vmem [shape: f32[2,25,25], index: 4, kind: input, shape index: {}]   ;;  %s3776_s5 = inlined_call_operand.vmem [shape: f32[16,16], index: 5, kind: input, shape index: {}]   ;;  %s3777_s6 = inlined_call_operand.vmem [shape: f32[1,16], index: 6, kind: input, shape index: {}]   ;;  %s3778_s7 = inlined_call_operand.vmem [shape: f32[3,3,16], index: 7, kind: input, shape index: {}]   ;;  %s3779_s8 = inlined_call_operand.vmem [shape: f32[3,1,16], index: 8, kind: input, shape index: {}]   ;;  %s3780_s9 = inlined_call_operand.vmem [shape: f32[16,57], index: 9, kind: input, shape index: {}]   ;;  %s3781_s10 = inlined_call_operand.vmem [shape: f32[1,57], index: 10, kind: input, shape index: {}]   ;;  %s3782_s11 = inlined_call_operand.vmem [shape: f32[3,57], index: 11, kind: input, shape index: {}]   ;;  %s3783_s12 = inlined_call_operand.vmem [shape: f32[1,57], index: 12, kind: input, shape index: {}]   ;;  %s3784_s13 = inlined_call_operand.vmem [shape: f32[57,16], index: 13, kind: input, shape index: {}]   ;;  %s3785_s14 = inlined_call_operand.vmem [shape: f32[1,16], index: 14, kind: input, shape index: {}]   ;;  %s3786_s15 = inlined_call_operand.vmem [shape: f32[2,25,16], index: 15, kind: output, shape index: {}]  }
   0x1 LB: > { %s2677_s19 = sadd.s32 4294967295, %s3240_s18   ;;  %p2681_p0 = scmp.ge.s32.totalorder %s3240_s18, 1  ;;  %s3240_s18 = sphi %s3322_s18, %s25_s18  }
   0x2   : > { %p437_p1 = scmp.lt.s32.totalorder %s3240_s18, 3 }
   0x4   : > { %p438_p2 = pnand %p2681_p0, %p437_p1 }
   0x5   : > { %p485_p3 = scmp.lt.s32.totalorder (!%p438_p2), %s2677_s19, 1 }
   0x6   : > { %441 = sbr.rel (%p438_p2) target bundleno = 2426 (0x97a), region = 80 }
   0xb   : > { %vm506_vm0 = vcmask 424960   ;;  %v2690_v0 = vld [vmem:[%s3772_s1 + $0x20] sm:$0xff]  ;;  %s3788_s19 = smov (!%p485_p3, %s2677_s19), 1  ;;  %vm519_vm1 = vcmask 1043456   ;;  %v2691_v9 = vld [vmem:[%s3772_s1 + $0x28] sm:$0xff]  ;;  %v504_v11 = vld [vmem:[%s3772_s1 + $0x10] sm:$0xff] }
   0xc   : > { %v502_v1 = vld [vmem:[%s3772_s1] sm:$0xff]  ;;  %2969 = vmatprep.mubr.msk.f32.mxu1 %vm506_vm0, %v2690_v0  ;;  %s3183_s24 = smul.u32 56, %s3788_s19  ;;  %v503_v10 = vld [vmem:[%s3772_s1 + $0x8] sm:$0xff]  ;;  %v2692_v12 = vld [vmem:[%s3772_s1 + $0x30] sm:$0xff]  ;;  %vm715_vm2 = vcmask 130048   ;;  %vm1136_vm3 = vcmask 122880  }
   0xd   : > { %2949 = vmatprep.mubr.msk.f32.mxu0 %vm506_vm0, %v502_v1  ;;  %v2700_v13 = vld [vmem:[%s3773_s2 + $0x18] sm:$0xff]  ;;  %v2699_v16 = vld [vmem:[%s3773_s2 + $0x10] sm:$0xff]  ;;  %v609_v17 = vld [vmem:[%s3773_s2 + $0x8] sm:$0xff]  ;;  %vm1142_vm4 = vcmask 1040384   ;;  %vm1312_vm5 = vcmask 203776   ;;  %vm2513_vm6 = vcmask 465920  }
   0xe   : > { %s489_s27 = scalar_lea.vmem %s3771_s0, %s3183_s24  ;;  %v505_v14 = vld [vmem:[%s3772_s1 + $0x18] sm:$0x1]  ;;  %v608_v22 = vld [vmem:[%s3773_s2] sm:$0xff]  ;;  %v2710_v28 = vld [vmem:[%s3772_s1 + $0x48] sm:$0xff]  ;;  %s2795_s20 = sshll.u32 %s3788_s19, 5 }
   0xf   : > { %v3344_v2 = vld [vmem:[%s489_s27 + $0x30] sm:$0xf]  ;;  %v3346_v3 = vld [vmem:[%s489_s27 + $0x28] sm:$0xff]  ;;  %v3356_v4 = vld [vmem:[%s489_s27 + $0x20] sm:$0xff]  ;;  %s494_s23 = scalar_lea.vmem %s3786_s15, %s2795_s20 }
  0x10   : > { %2955 = vmatprep.subr.msk.mxu1 %vm519_vm1, %v3344_v2  ;;  %2935 = vmatprep.subr.msk.mxu0 %vm519_vm1, %v3344_v2  ;;  %v3362_v5 = vld [vmem:[%s489_s27 + $0x18] sm:$0xff]  ;;  %v3368_v6 = vld [vmem:[%s489_s27 + $0x10] sm:$0xff]  ;;  %v3374_v7 = vld [vmem:[%s489_s27 + $0x8] sm:$0xff] }
  0x11   : > { %2956 = vmatpush3.msk.msra.mxu1 %vm519_vm1, %v3344_v2  ;;  %2936 = vmatpush3.msk.msra.mxu0 %vm519_vm1, %v3344_v2  ;;  %v3380_v8 = vld [vmem:[%s489_s27] sm:$0xff]  ;;  %v2693_v15 = vld [vmem:[%s3772_s1 + $0x38] sm:$0x1]  ;;  %v2711_v29 = vld [vmem:[%s3772_s1 + $0x50] sm:$0xff] }
  0x12   : > { %2957 = vmatprep.subr.mxu1 %v3346_v3  ;;  %2937 = vmatprep.subr.mxu0 %v3346_v3  ;;  %v2709_v27 = vld [vmem:[%s3772_s1 + $0x40] sm:$0xff]  ;;  %v2712_v30 = vld [vmem:[%s3772_s1 + $0x58] sm:$0x1]  ;;  %v2719_v31 = vld [vmem:[%s3773_s2 + $0x28] sm:$0xff] }
  0x13   : > { %2958 = vmatpush3.msra.mxu1 %v3346_v3  ;;  %2938 = vmatpush3.msra.mxu0 %v3346_v3  ;;  %v2718_v32 = vld [vmem:[%s3773_s2 + $0x20] sm:$0xff] }
  0x14   : > { %2959 = vmatprep.subr.mxu1 %v3356_v4  ;;  %2939 = vmatprep.subr.mxu0 %v3356_v4  ;;  %v2724_v48 = vld [vmem:[%s3774_s3] ss:$0 sm:$0xff] }
  0x15   : > { %2960 = vmatpush3.msra.mxu1 %v3356_v4  ;;  %2940 = vmatpush3.msra.mxu0 %v3356_v4 }
  0x16   : > { %2961 = vmatprep.subr.mxu1 %v3362_v5  ;;  %2941 = vmatprep.subr.mxu0 %v3362_v5 }
  0x17   : > { %2962 = vmatpush3.msra.mxu1 %v3362_v5  ;;  %2942 = vmatpush3.msra.mxu0 %v3362_v5 }
  0x18   : > { %2963 = vmatprep.subr.mxu1 %v3368_v6  ;;  %2943 = vmatprep.subr.mxu0 %v3368_v6 }
  0x19   : > { %2964 = vmatpush3.msra.mxu1 %v3368_v6  ;;  %2944 = vmatpush3.msra.mxu0 %v3368_v6 }
  0x1a   : > { %2965 = vmatprep.subr.mxu1 %v3374_v7  ;;  %2945 = vmatprep.subr.mxu0 %v3374_v7 }
  0x1b   : > { %2966 = vmatpush3.msra.mxu1 %v3374_v7  ;;  %2946 = vmatpush3.msra.mxu0 %v3374_v7 }
  0x1c   : > { %2967 = vmatprep.subr.mxu1 %v3380_v8  ;;  %2947 = vmatprep.subr.mxu0 %v3380_v8 }
  0x1d   : > { %2968 = vmatpush3.msra.mxu1 %v3380_v8  ;;  %2948 = vmatpush3.msra.mxu0 %v3380_v8 }
  0x1e   : > { %2970 = vmatmul.mubr.msk.f32.vlgmr.msra.gmra.mxu1 %vm506_vm0, %v2691_v9  ;;  %2950 = vmatmul.mubr.msk.f32.vlgmr.msra.gmra.mxu0 %vm506_vm0, %v503_v10  ;;  %v1202_v10 = vld [vmem:[%s3776_s5 + $0x8] sm:$0xff] }
  0x1f   : > { %2952 = vmatprep.mubr.msk.f32.mxu0 %vm506_vm0, %v504_v11  ;;  %2972 = vmatprep.mubr.msk.f32.mxu1 %vm506_vm0, %v2692_v12  ;;  %v1201_v11 = vld [vmem:[%s3776_s5] sm:$0xff] }
  0x20   : > { %2975 = vmatprep.subr.mxu0 %v2700_v13  ;;  %3179 = vmatprep.subr.mxu1 %v2700_v13 }
  0x21   : > { %2976 = vmatpush3.msra.mxu0 %v2700_v13  ;;  %3181 = vmatpush3.msra.mxu1 %v2700_v13 }
  0x22   : > { %2953 = vmatmul.mubr.msk.f32.gmra.mxu0 %vm506_vm0, %v505_v14  ;;  %2973 = vmatmul.mubr.msk.f32.gmra.mxu1 %vm506_vm0, %v2693_v15 }
  0x23   : > { %2977 = vmatprep.subr.mxu0 %v2699_v16  ;;  %3180 = vmatprep.subr.mxu1 %v2699_v16 }
  0x24   : > { %2978 = vmatpush3.msra.mxu0 %v2699_v16  ;;  %3182 = vmatpush3.msra.mxu1 %v2699_v16 }
  0x25   : > { %2985 = vmatprep.subr.mxu0 %v609_v17  ;;  %3015 = vmatprep.subr.mxu1 %v2719_v31 }
  0xde   : > { %v2971_v18 = vpop.f32.mrf.mxu1  ;;  %v2951_v19 = vpop.f32.mrf.mxu0 }
  0xe0   : > { %v693_v20 = vpop.f32.mrf.mxu1  ;;  %v589_v21 = vpop.f32.mrf.mxu0 }
  0xe1   : > { %2979 = vmatprep.mubr.msk.f32.mxu0 %vm715_vm2, %v693_v20 }
  0xe2   : > { %2980 = vmatmul.mubr.msk.f32.vlgmr.msra.gmra.mxu0 %vm715_vm2, %v2971_v18  ;;  %v2954_v23 = vpop.f32.mrf.mxu0  ;;  %v2974_v24 = vpop.f32.mrf.mxu1 }
  0xe3   : > { %2986 = vmatpush3.msra.mxu0 %v609_v17  ;;  %2989 = vmatprep.mubr.msk.f32.mxu0 %vm715_vm2, %v589_v21 }
  0xe4   : > { %2987 = vmatprep.subr.mxu0 %v608_v22  ;;  %v599_v25 = vpop.f32.mrf.mxu0  ;;  %v703_v26 = vpop.f32.mrf.mxu1 }
  0xe5   : > { %2988 = vmatpush3.msra.mxu0 %v608_v22  ;;  %2982 = vmatprep.mubr.msk.f32.mxu1 %vm715_vm2, %v703_v26 }
  0xe6   : > { %2995 = vmatprep.subr.msk.mxu0 %vm519_vm1, %v3344_v2  ;;  %2990 = vmatmul.mubr.msk.f32.vlgmr.msra.gmra.mxu0 %vm715_vm2, %v2951_v19 }
  0xe7   : > { %2996 = vmatpush3.msk.msra.mxu0 %vm519_vm1, %v3344_v2  ;;  %2992 = vmatprep.mubr.msk.f32.mxu0 %vm715_vm2, %v599_v25 }
  0xe8   : > { %2997 = vmatprep.subr.mxu0 %v3346_v3  ;;  %2983 = vmatmul.mubr.msk.f32.vlgmr.msra.gmra.mxu1 %vm715_vm2, %v2974_v24 }
  0xe9   : > { %2998 = vmatpush3.msra.mxu0 %v3346_v3  ;;  %3016 = vmatpush3.msra.mxu1 %v2719_v31 }
  0xea   : > { %2999 = vmatprep.subr.mxu0 %v3356_v4  ;;  %2993 = vmatmul.mubr.msk.f32.gmra.mxu0 %vm715_vm2, %v2954_v23 }
  0xeb   : > { %3000 = vmatpush3.msra.mxu0 %v3356_v4  ;;  %3009 = vmatprep.mubr.msk.f32.mxu0 %vm506_vm0, %v2709_v27 }
  0xec   : > { %3001 = vmatprep.subr.mxu0 %v3362_v5  ;;  %3017 = vmatprep.subr.mxu1 %v2718_v32 }
  0xed   : > { %3002 = vmatpush3.msra.mxu0 %v3362_v5  ;;  %3018 = vmatpush3.msra.mxu1 %v2718_v32 }
  0xee   : > { %3003 = vmatprep.subr.mxu0 %v3368_v6  ;;  %3025 = vmatprep.subr.mxu1 %v1202_v10 }
  0xef   : > { %3004 = vmatpush3.msra.mxu0 %v3368_v6 }
  0xf0   : > { %3005 = vmatprep.subr.mxu0 %v3374_v7 }
  0xf1   : > { %3006 = vmatpush3.msra.mxu0 %v3374_v7 }
  0xf2   : > { %3007 = vmatprep.subr.mxu0 %v3380_v8 }
  0xf3   : > { %3008 = vmatpush3.msra.mxu0 %v3380_v8 }
  0xf4   : > { %3010 = vmatmul.mubr.msk.f32.vlgmr.msra.gmra.mxu0 %vm506_vm0, %v2710_v28 }
  0xf5   : > { %3012 = vmatprep.mubr.msk.f32.mxu0 %vm506_vm0, %v2711_v29 }
  0xf8   : > { %3013 = vmatmul.mubr.msk.f32.gmra.mxu0 %vm506_vm0, %v2712_v30 }
 0x1a2   : > { %v2981_v33 = vpop.f32.mrf.mxu0 }
 0x1a4   : > { %v794_v34 = vpop.f32.mrf.mxu0 }
 0x1a6   : > { %v2991_v35 = vpop.f32.mrf.mxu0 }
 0x1a7   : > { %v897_v36 = vadd.f32 %v2991_v35, %v2981_v33 }
 0x1a8   : > { %v891_v37 = vpop.f32.mrf.mxu0  ;;  %v2984_v45 = vpop.f32.mrf.mxu1 }
 0x1a9   : > { %v892_v38 = vadd.f32 %v891_v37, %v794_v34 }
 0x1aa   : > { %v2994_v39 = vpop.f32.mrf.mxu0  ;;  %v804_v46 = vpop.f32.mrf.mxu1 }
 0x1ab   : > { %v907_v51 = vadd.f32 %v2994_v39, %v2984_v45 }
 0x1ac   : > { %v901_v40 = vpop.f32.mrf.mxu0 }
 0x1ad   : > { %v902_v55 = vadd.f32 %v901_v40, %v804_v46 }
 0x1b4   : > { %v3011_v41 = vpop.f32.mrf.mxu0 }
 0x1b6   : > { %v993_v42 = vpop.f32.mrf.mxu0 }
 0x1b7   : > { %3019 = vmatprep.mubr.msk.f32.mxu1 %vm715_vm2, %v993_v42 }
 0x1b8   : > { %v3014_v43 = vpop.f32.mrf.mxu0  ;;  %3020 = vmatmul.mubr.msk.f32.vlgmr.msra.gmra.mxu1 %vm715_vm2, %v3011_v41 }
 0x1b9   : > { %3026 = vmatpush3.msra.mxu1 %v1202_v10  ;;  %v3580_v10 = vld [vmem:[%s3775_s4 + $0x38] sm:$0x1] }
 0x1ba   : > { %v1003_v44 = vpop.f32.mrf.mxu0  ;;  %3027 = vmatprep.subr.mxu1 %v1201_v11 }
 0x1bb   : > { %3022 = vmatprep.mubr.msk.f32.mxu1 %vm715_vm2, %v1003_v44  ;;  %3028 = vmatpush3.msra.mxu1 %v1201_v11  ;;  %v1413_v11 = vlaneseq }
 0x1bc   : > { %3023 = vmatmul.mubr.msk.f32.gmra.mxu1 %vm715_vm2, %v3014_v43 }
 0x278   : > { %v3021_v47 = vpop.f32.mrf.mxu1 }
 0x279   : > { %v1113_v49 = vadd.f32 %v3021_v47, %v897_v36 }
 0x27a   : > { %v1093_v50 = vpop.f32.mrf.mxu1 }
 0x27b   : > { %v3479_v52 = vadd.f32 %v2724_v48, %v1113_v49  ;;  %v1112_v53 = vadd.f32 %v1093_v50, %v892_v38 }
 0x27c   : > { %v3024_v54 = vpop.f32.mrf.mxu1 }
 0x27d   : > { %v3481_v56 = vadd.f32 %v2724_v48, %v1112_v53  ;;  %v1115_v57 = vadd.f32 %v3024_v54, %v907_v51  ;;  %v1130_v58 = vsel %vm715_vm2, %v3479_v52, 0.0  ;;  %v1154_v62 = vmul.f32 %v3479_v52, %v3479_v52 }
 0x27e   : > { %1131 = vadd.xlane.f32.xlu0 %v1130_v58  ;;  %v1103_v59 = vpop.f32.mrf.mxu1  ;;  %v2729_v58 = vld [vmem:[%s3777_s6] ss:$0 sm:$0xff] }
 0x27f   : > { %v1114_v60 = vadd.f32 %v1103_v59, %v902_v55  ;;  %v1153_v61 = vmul.f32 %v3481_v56, %v3481_v56  ;;  %v3489_v63 = vadd.f32 %v2724_v48, %v1115_v57  ;;  %v1127_v2 = vsel %vm715_vm2, %v3481_v56, 0.0  ;;  %v3531_v55 = vld [vmem:[%s3775_s4 + $0x20] sm:$0xff] }
 0x280   : > { %v1160_v4 = vsel %vm715_vm2, %v1154_v62, 0.0 }
 0x281   : > { %v3491_v0 = vadd.f32 %v2724_v48, %v1114_v60  ;;  %v1157_v1 = vsel %vm715_vm2, %v1153_v61, 0.0  ;;  %v1137_v3 = vsel %vm1136_vm3, %v3489_v63, 0.0  ;;  %v1156_v8 = vmul.f32 %v3489_v63, %v3489_v63 }
 0x282   : > { %1158 = vadd.xlane.f32.xlu1 %v1157_v1  ;;  %1128 = vadd.xlane.f32.xlu0 %v1127_v2 }
 0x283   : > { %v1155_v5 = vmul.f32 %v3491_v0, %v3491_v0  ;;  %v1133_v6 = vsel %vm715_vm2, %v3491_v0, 0.0  ;;  %v1166_v9 = vsel %vm1136_vm3, %v1156_v8, 0.0  ;;  %v3562_v8 = vld [vmem:[%s3775_s4 + $0x30] sm:$0xff] }
 0x285   : > { %v1163_v7 = vsel %vm715_vm2, %v1155_v5, 0.0  ;;  %v3547_v5 = vld [vmem:[%s3775_s4 + $0x8] sm:$0xff] }
 0x286   : > { %1138 = vadd.xlane.f32.xlu1 %v1137_v3  ;;  %1161 = vadd.xlane.f32.xlu0 %v1160_v4 }
 0x28a   : > { %1134 = vadd.xlane.f32.xlu1 %v1133_v6  ;;  %1164 = vadd.xlane.f32.xlu0 %v1163_v7  ;;  %v3552_v6 = vld [vmem:[%s3775_s4 + $0x28] sm:$0xff]  ;;  %v3557_v7 = vld [vmem:[%s3775_s4 + $0x10] sm:$0xff] }
 0x28e   : > { %1167 = vadd.xlane.f32.xlu1 %v1166_v9  ;;  %v3575_v9 = vld [vmem:[%s3775_s4 + $0x18] sm:$0x1] }
 0x307   : > { %v1132_v12 = vpop.xlane.xlu0 %1131 }
 0x30b   : > { %v1159_v13 = vpop.xlane.xlu1 %1158  ;;  %v1129_v14 = vpop.xlane.xlu0 %1128 }
 0x30c   : > { %v1140_v17 = vadd.f32 %v1132_v12, %v1129_v14  ;;  %v1414_v12 = vshrl.u32 %v1413_v11, 7 }
 0x30e   : > { %v3592_v14 = vsub.s32 1, %v1414_v12 }
 0x30f   : > { %v1139_v15 = vpop.xlane.xlu1 %1138  ;;  %v1162_v16 = vpop.xlane.xlu0 %1161 }
 0x310   : > { %v1143_v21 = vsel %vm1142_vm4, %v1139_v15, 0.0  ;;  %v1169_v22 = vadd.f32 %v1162_v16, %v1159_v13  ;;  %v3590_v13 = vsub.s32 0, %v1414_v12  ;;  %v3594_v15 = vsub.s32 2, %v1414_v12  ;;  %v1311_v16 = vld [vmem:[%s3778_s7] sm:$0x7] }
 0x313   : > { %v1135_v18 = vpop.xlane.xlu1 %1134  ;;  %v1165_v20 = vpop.xlane.xlu0 %1164 }
 0x314   : > { %v1141_v19 = vadd.f32 %v1140_v17, %v1135_v18  ;;  %v1170_v24 = vadd.f32 %v1169_v22, %v1165_v20  ;;  %v1416_v17 = vrot.slane %v1311_v16, %v3590_v13  ;;  %v1424_v18 = vrot.slane %v1311_v16, %v3592_v14 }
 0x316   : > { %v1144_v23 = vadd.f32 %v1143_v21, %v1141_v19  ;;  %v1533_v19 = vrot.slane %v1311_v16, %v3594_v15 }
 0x317   : > { %v1168_v25 = vpop.xlane.xlu1 %1167 }
 0x318   : > { %v1145_v26 = vrot.slane %v1144_v23, 4  ;;  %v1171_v27 = vsel %vm1142_vm4, %v1168_v25, 0.0 }
 0x319   : > { %v1172_v28 = vadd.f32 %v1171_v27, %v1170_v24 }
 0x31a   : > { %v1146_v29 = vadd.f32 %v1145_v26, %v1144_v23 }
 0x31b   : > { %v1173_v30 = vrot.slane %v1172_v28, 4 }
 0x31c   : > { %v1147_v31 = vrot.slane %v1146_v29, 2 }
 0x31d   : > { %v1174_v32 = vadd.f32 %v1173_v30, %v1172_v28  ;;  %v2744_v30 = vld [vmem:[%s3779_s8] ss:$0 sm:$0xff] }
 0x31e   : > { %v1148_v33 = vadd.f32 %v1147_v31, %v1146_v29 }
 0x31f   : > { %v1175_v34 = vrot.slane %v1174_v32, 2 }
 0x320   : > { %v1149_v35 = vrot.slane %v1148_v33, 1 }
 0x321   : > { %v1176_v36 = vadd.f32 %v1175_v34, %v1174_v32 }
 0x322   : > { %v1150_v37 = vadd.f32 %v1149_v35, %v1148_v33 }
 0x323   : > { %v1177_v38 = vrot.slane %v1176_v36, 1 }
 0x324   : > { %v1152_v39 = vmul.f32 0.0025, %v1150_v37 }
 0x325   : > { %v1178_v40 = vadd.f32 %v1177_v38, %v1176_v36 }
 0x326   : > { %v1184_v41 = vmul.f32 %v1152_v39, %v1152_v39  ;;  %v1180_v45 = vsub.f32 %v3481_v56, %v1152_v39  ;;  %v1181_v46 = vsub.f32 %v3479_v52, %v1152_v39  ;;  %v1182_v50 = vsub.f32 %v3491_v0, %v1152_v39  ;;  %v3526_v52 = vld [vmem:[%s3775_s4] sm:$0xff] }
 0x327   : > { %v1179_v42 = vmul.f32 0.0025, %v1178_v40  ;;  %v1183_v53 = vsub.f32 %v3489_v63, %v1152_v39  ;;  %3043 = vmatprep.mubr.msk.f32.mxu0 %vm1312_vm5, %v3526_v52 }
 0x329   : > { %v1185_v43 = vsub.f32 %v1179_v42, %v1184_v41 }
 0x32b   : > { %v1186_v44 = vadd.f32 1e-05, %v1185_v43 }
 0x32d   : > { %3192 = vrsqrt.f32 %v1186_v44 }
 0x33a   : > { %v3193_v47 = vpop.eup %3192 }
 0x33b   : > { %v1188_v48 = vmul.f32 %v3193_v47, %v1180_v45  ;;  %v1189_v49 = vmul.f32 %v3193_v47, %v1181_v46  ;;  %v1190_v51 = vmul.f32 %v3193_v47, %v1182_v50  ;;  %v1191_v54 = vmul.f32 %v3193_v47, %v1183_v53 }
 0x33d   : > { %3029 = vmatprep.mubr.msk.f32.mxu1 %vm715_vm2, %v1188_v48 }
 0x33e   : > { %3030 = vmatmul.mubr.msk.f32.vlgmr.msra.gmra.mxu1 %vm715_vm2, %v1189_v49 }
 0x33f   : > { %3032 = vmatprep.mubr.msk.f32.mxu1 %vm715_vm2, %v1190_v51 }
 0x342   : > { %3033 = vmatmul.mubr.msk.f32.gmra.mxu1 %vm715_vm2, %v1191_v54 }
 0x343   : > { %3057 = vmatprep.mubr.msk.f32.mxu1 %vm1312_vm5, %v3531_v55 }
 0x3fe   : > { %v3031_v56 = vpop.f32.mrf.mxu1 }
 0x3ff   : > { %v1294_v62 = vadd.f32 %v3031_v56, %v2729_v58 }
 0x400   : > { %v1288_v57 = vpop.f32.mrf.mxu1 }
 0x401   : > { %v1289_v1 = vadd.f32 %v2729_v58, %v1288_v57  ;;  %v1308_v3 = vadd.f32 %v1294_v62, %v1189_v49 }
 0x402   : > { %v3034_v59 = vpop.f32.mrf.mxu1 }
 0x403   : > { %v1304_v60 = vadd.f32 %v3034_v59, %v2729_v58  ;;  %v1307_v4 = vadd.f32 %v1289_v1, %v1188_v48  ;;  %v1426_v23 = vmul.f32 %v1424_v18, %v1308_v3 }
 0x404   : > { %v1298_v61 = vpop.f32.mrf.mxu1 }
 0x405   : > { %v1310_v63 = vadd.f32 %v1304_v60, %v1191_v54  ;;  %v1299_v0 = vadd.f32 %v2729_v58, %v1298_v61  ;;  %v1425_v29 = vmul.f32 %v1424_v18, %v1307_v4 }
 0x407   : > { %v1309_v2 = vadd.f32 %v1299_v0, %v1190_v51  ;;  %3035 = vmatprep.subr.msk.mxu0 %vm1142_vm4, %v1310_v63  ;;  %3049 = vmatprep.subr.msk.mxu1 %vm1142_vm4, %v1310_v63  ;;  %v1428_v33 = vmul.f32 %v1424_v18, %v1310_v63 }
 0x408   : > { %3036 = vmatpush3.msk.msra.mxu0 %vm1142_vm4, %v1310_v63  ;;  %3050 = vmatpush3.msk.msra.mxu1 %vm1142_vm4, %v1310_v63 }
 0x409   : > { %3037 = vmatprep.subr.mxu0 %v1309_v2  ;;  %3051 = vmatprep.subr.mxu1 %v1309_v2  ;;  %v1427_v40 = vmul.f32 %v1424_v18, %v1309_v2 }
 0x40a   : > { %3038 = vmatpush3.msra.mxu0 %v1309_v2  ;;  %3052 = vmatpush3.msra.mxu1 %v1309_v2 }
 0x40b   : > { %3039 = vmatprep.subr.mxu0 %v1308_v3  ;;  %3053 = vmatprep.subr.mxu1 %v1308_v3 }
 0x40c   : > { %3040 = vmatpush3.msra.mxu0 %v1308_v3  ;;  %3054 = vmatpush3.msra.mxu1 %v1308_v3 }
 0x40d   : > { %3041 = vmatprep.subr.mxu0 %v1307_v4  ;;  %3055 = vmatprep.subr.mxu1 %v1307_v4 }
 0x40e   : > { %3042 = vmatpush3.msra.mxu0 %v1307_v4  ;;  %3056 = vmatpush3.msra.mxu1 %v1307_v4 }
 0x40f   : > { %3044 = vmatmul.mubr.msk.f32.vlgmr.msra.gmra.mxu0 %vm1312_vm5, %v3547_v5  ;;  %3058 = vmatmul.mubr.msk.f32.vlgmr.msra.gmra.mxu1 %vm1312_vm5, %v3552_v6 }
 0x410   : > { %3046 = vmatprep.mubr.msk.f32.mxu0 %vm1312_vm5, %v3557_v7  ;;  %3060 = vmatprep.mubr.msk.f32.mxu1 %vm1312_vm5, %v3562_v8 }
 0x413   : > { %3047 = vmatmul.mubr.msk.f32.gmra.mxu0 %vm1312_vm5, %v3575_v9  ;;  %3061 = vmatmul.mubr.msk.f32.gmra.mxu1 %vm1312_vm5, %v3580_v10 }
 0x414   : > { %3071 = vmatprep.mubr.msk.f32.mxu0 %vm1312_vm5, %v3526_v52  ;;  %3085 = vmatprep.mubr.msk.f32.mxu1 %vm1312_vm5, %v3531_v55 }
 0x4cf   : > { %v3045_v20 = vpop.f32.mrf.mxu0  ;;  %v3059_v21 = vpop.f32.mrf.mxu1 }
 0x4d0   : > { %v1418_v22 = vmul.f32 %v3045_v20, %v1416_v17  ;;  %v1535_v24 = vmul.f32 %v3059_v21, %v1533_v19 }
 0x4d1   : > { %v1394_v25 = vpop.f32.mrf.mxu0  ;;  %v1511_v26 = vpop.f32.mrf.mxu1 }
 0x4d2   : > { %v1430_v27 = vadd.f32 %v1426_v23, %v1418_v22  ;;  %v1417_v28 = vmul.f32 %v1416_v17, %v1394_v25  ;;  %v1534_v31 = vmul.f32 %v1533_v19, %v1511_v26 }
 0x4d3   : > { %v3048_v32 = vpop.f32.mrf.mxu0  ;;  %v3062_v34 = vpop.f32.mrf.mxu1 }
 0x4d4   : > { %v1539_v35 = vadd.f32 %v1535_v24, %v1430_v27  ;;  %v1429_v36 = vadd.f32 %v1425_v29, %v1417_v28  ;;  %v1420_v37 = vmul.f32 %v3048_v32, %v1416_v17  ;;  %v1537_v38 = vmul.f32 %v3062_v34, %v1533_v19 }
 0x4d5   : > { %v1404_v39 = vpop.f32.mrf.mxu0  ;;  %v1521_v41 = vpop.f32.mrf.mxu1 }
 0x4d6   : > { %v1550_v42 = vadd.f32 %v2744_v30, %v1539_v35  ;;  %v1538_v43 = vadd.f32 %v1534_v31, %v1429_v36  ;;  %v1432_v44 = vadd.f32 %v1428_v33, %v1420_v37  ;;  %v1419_v45 = vmul.f32 %v1416_v17, %v1404_v39  ;;  %v2745_v36 = vld [vmem:[%s3778_s7 + $0x4] sm:$0x7] }
 0x4d7   : > { %v1536_v46 = vmul.f32 %v1533_v19, %v1521_v41  ;;  %v1682_v37 = vrot.slane %v2745_v36, %v3590_v13  ;;  %v1787_v39 = vrot.slane %v2745_v36, %v3594_v15 }
 0x4d8   : > { %v1558_v47 = vmul.f32 0.044715, %v1550_v42  ;;  %v1549_v48 = vadd.f32 %v2744_v30, %v1538_v43  ;;  %v1541_v49 = vadd.f32 %v1537_v38, %v1432_v44  ;;  %v1431_v50 = vadd.f32 %v1427_v40, %v1419_v45 }
 0x4d9   : > { %v1554_v31 = vmul.f32 0.5, %v1550_v42  ;;  %v1690_v38 = vrot.slane %v2745_v36, %v3592_v14 }
 0x4da   : > { %v1562_v51 = vmul.f32 %v1558_v47, %v1550_v42  ;;  %v1557_v53 = vmul.f32 0.044715, %v1549_v48  ;;  %v1552_v54 = vadd.f32 %v2744_v30, %v1541_v49  ;;  %v1540_v56 = vadd.f32 %v1536_v46, %v1431_v50  ;;  %v2757_v50 = vld [vmem:[%s3779_s8 + $0x1] ss:$0 sm:$0xff] }
 0x4db   : > { %v1553_v34 = vmul.f32 0.5, %v1549_v48 }
 0x4dc   : > { %v1566_v57 = vmul.f32 %v1562_v51, %v1550_v42  ;;  %v1561_v58 = vmul.f32 %v1557_v53, %v1549_v48  ;;  %v1560_v59 = vmul.f32 0.044715, %v1552_v54  ;;  %v1551_v60 = vadd.f32 %v2744_v30, %v1540_v56 }
 0x4dd   : > { %v1556_v23 = vmul.f32 0.5, %v1552_v54 }
 0x4de   : > { %v1570_v61 = vadd.f32 %v1566_v57, %v1550_v42  ;;  %v1565_v62 = vmul.f32 %v1561_v58, %v1549_v48  ;;  %v1564_v63 = vmul.f32 %v1560_v59, %v1552_v54  ;;  %v1559_v0 = vmul.f32 0.044715, %v1551_v60 }
 0x4df   : > { %v1555_v27 = vmul.f32 0.5, %v1551_v60 }
 0x4e0   : > { %v1569_v1 = vadd.f32 %v1565_v62, %v1549_v48  ;;  %v1568_v2 = vmul.f32 %v1564_v63, %v1552_v54  ;;  %v1563_v3 = vmul.f32 %v1559_v0, %v1551_v60  ;;  %v1574_v4 = vmul.f32 0.7978846, %v1570_v61 }
 0x4e2   : > { %v1572_v11 = vadd.f32 %v1568_v2, %v1552_v54  ;;  %v1567_v12 = vmul.f32 %v1563_v3, %v1551_v60  ;;  %v1573_v16 = vmul.f32 0.7978846, %v1569_v1  ;;  %3194 = vtanh.f32 %v1574_v4 }
 0x4e4   : > { %v1576_v17 = vmul.f32 0.7978846, %v1572_v11  ;;  %v1571_v18 = vadd.f32 %v1567_v12, %v1551_v60 }
 0x4e6   : > { %v1575_v19 = vmul.f32 0.7978846, %v1571_v18  ;;  %3196 = vtanh.f32 %v1576_v17 }
 0x4e7   : > { %3198 = vtanh.f32 %v1573_v16 }
 0x4e8   : > { %3200 = vtanh.f32 %v1575_v19 }
 0x4ef   : > { %v3195_v20 = vpop.eup %3194 }
 0x4f0   : > { %v1582_v29 = vadd.f32 1.0, %v3195_v20 }
 0x4f2   : > { %v1586_v33 = vmul.f32 %v1582_v29, %v1554_v31 }
 0x4f3   : > { %v3197_v21 = vpop.eup %3196 }
 0x4f4   : > { %v3199_v22 = vpop.eup %3198  ;;  %v1584_v24 = vadd.f32 1.0, %v3197_v21  ;;  %v1692_v43 = vmul.f32 %v1690_v38, %v1586_v33 }
 0x4f5   : > { %v3201_v25 = vpop.eup %3200  ;;  %v1581_v32 = vadd.f32 1.0, %v3199_v22 }
 0x4f6   : > { %v1588_v26 = vmul.f32 %v1584_v24, %v1556_v23  ;;  %v1583_v28 = vadd.f32 1.0, %v3201_v25 }
 0x4f7   : > { %v1585_v35 = vmul.f32 %v1581_v32, %v1553_v34 }
 0x4f8   : > { %3063 = vmatprep.subr.msk.mxu0 %vm1142_vm4, %v1588_v26  ;;  %3077 = vmatprep.subr.msk.mxu1 %vm1142_vm4, %v1588_v26  ;;  %v1587_v30 = vmul.f32 %v1583_v28, %v1555_v27  ;;  %v1694_v54 = vmul.f32 %v1690_v38, %v1588_v26 }
 0x4f9   : > { %3064 = vmatpush3.msk.msra.mxu0 %vm1142_vm4, %v1588_v26  ;;  %3078 = vmatpush3.msk.msra.mxu1 %vm1142_vm4, %v1588_v26  ;;  %v1691_v49 = vmul.f32 %v1690_v38, %v1585_v35 }
 0x4fa   : > { %3065 = vmatprep.subr.mxu0 %v1587_v30  ;;  %3079 = vmatprep.subr.mxu1 %v1587_v30  ;;  %v1693_v62 = vmul.f32 %v1690_v38, %v1587_v30 }
 0x4fb   : > { %3066 = vmatpush3.msra.mxu0 %v1587_v30  ;;  %3080 = vmatpush3.msra.mxu1 %v1587_v30 }
 0x4fc   : > { %3067 = vmatprep.subr.mxu0 %v1586_v33  ;;  %3081 = vmatprep.subr.mxu1 %v1586_v33 }
 0x4fd   : > { %3068 = vmatpush3.msra.mxu0 %v1586_v33  ;;  %3082 = vmatpush3.msra.mxu1 %v1586_v33 }
 0x4fe   : > { %3069 = vmatprep.subr.mxu0 %v1585_v35  ;;  %3083 = vmatprep.subr.mxu1 %v1585_v35 }
 0x4ff   : > { %3070 = vmatpush3.msra.mxu0 %v1585_v35  ;;  %3084 = vmatpush3.msra.mxu1 %v1585_v35 }
 0x500   : > { %3072 = vmatmul.mubr.msk.f32.vlgmr.msra.gmra.mxu0 %vm1312_vm5, %v3547_v5  ;;  %3086 = vmatmul.mubr.msk.f32.vlgmr.msra.gmra.mxu1 %vm1312_vm5, %v3552_v6 }
 0x501   : > { %3074 = vmatprep.mubr.msk.f32.mxu0 %vm1312_vm5, %v3557_v7  ;;  %3088 = vmatprep.mubr.msk.f32.mxu1 %vm1312_vm5, %v3562_v8 }
 0x504   : > { %3075 = vmatmul.mubr.msk.f32.gmra.mxu0 %vm1312_vm5, %v3575_v9  ;;  %3089 = vmatmul.mubr.msk.f32.gmra.mxu1 %vm1312_vm5, %v3580_v10 }
 0x505   : > { %3099 = vmatprep.mubr.msk.f32.mxu0 %vm1312_vm5, %v3526_v52  ;;  %3113 = vmatprep.mubr.msk.f32.mxu1 %vm1312_vm5, %v3531_v55 }
 0x5c0   : > { %v3073_v40 = vpop.f32.mrf.mxu0  ;;  %v3087_v41 = vpop.f32.mrf.mxu1 }
 0x5c1   : > { %v1684_v42 = vmul.f32 %v3073_v40, %v1682_v37  ;;  %v1789_v44 = vmul.f32 %v3087_v41, %v1787_v39 }
 0x5c2   : > { %v1660_v45 = vpop.f32.mrf.mxu0  ;;  %v1765_v46 = vpop.f32.mrf.mxu1 }
 0x5c3   : > { %v1696_v47 = vadd.f32 %v1692_v43, %v1684_v42  ;;  %v1683_v48 = vmul.f32 %v1682_v37, %v1660_v45  ;;  %v1788_v51 = vmul.f32 %v1787_v39, %v1765_v46 }
 0x5c4   : > { %v3076_v53 = vpop.f32.mrf.mxu0  ;;  %v3090_v56 = vpop.f32.mrf.mxu1 }
 0x5c5   : > { %v1793_v57 = vadd.f32 %v1789_v44, %v1696_v47  ;;  %v1695_v58 = vadd.f32 %v1691_v49, %v1683_v48  ;;  %v1686_v59 = vmul.f32 %v3076_v53, %v1682_v37  ;;  %v1791_v60 = vmul.f32 %v3090_v56, %v1787_v39 }
 0x5c6   : > { %v1670_v61 = vpop.f32.mrf.mxu0  ;;  %v1775_v63 = vpop.f32.mrf.mxu1 }
 0x5c7   : > { %v1805_v0 = vadd.f32 %v2757_v50, %v1793_v57  ;;  %v1792_v1 = vadd.f32 %v1788_v51, %v1695_v58  ;;  %v1698_v2 = vadd.f32 %v1694_v54, %v1686_v59  ;;  %v1685_v3 = vmul.f32 %v1682_v37, %v1670_v61  ;;  %v2104_v58 = vld [vmem:[%s3780_s9 + $0x8] sm:$0xff]  ;;  %v2103_v59 = vld [vmem:[%s3780_s9] sm:$0xff] }
 0x5c8   : > { %v1790_v4 = vmul.f32 %v1787_v39, %v1775_v63 }
 0x5c9   : > { %v1813_v11 = vmul.f32 0.044715, %v1805_v0  ;;  %v1804_v12 = vadd.f32 %v2757_v50, %v1792_v1  ;;  %v1795_v16 = vadd.f32 %v1791_v60, %v1698_v2  ;;  %v1697_v17 = vadd.f32 %v1693_v62, %v1685_v3  ;;  %v2758_v60 = vld [vmem:[%s3778_s7 + $0x8] sm:$0x7] }
 0x5ca   : > { %v1809_v51 = vmul.f32 0.5, %v1805_v0  ;;  %v1937_v61 = vrot.slane %v2758_v60, %v3590_v13  ;;  %v2042_v62 = vrot.slane %v2758_v60, %v3594_v15 }
 0x5cb   : > { %v1817_v18 = vmul.f32 %v1813_v11, %v1805_v0  ;;  %v1812_v19 = vmul.f32 0.044715, %v1804_v12  ;;  %v1807_v20 = vadd.f32 %v2757_v50, %v1795_v16  ;;  %v1794_v21 = vadd.f32 %v1790_v4, %v1697_v17 }
 0x5cc   : > { %v1808_v56 = vmul.f32 0.5, %v1804_v12 }
 0x5cd   : > { %v1821_v22 = vmul.f32 %v1817_v18, %v1805_v0  ;;  %v1816_v23 = vmul.f32 %v1812_v19, %v1804_v12  ;;  %v1815_v24 = vmul.f32 0.044715, %v1807_v20  ;;  %v1806_v25 = vadd.f32 %v2757_v50, %v1794_v21  ;;  %v2770_v18 = vld [vmem:[%s3779_s8 + $0x2] ss:$0 sm:$0xff] }
 0x5ce   : > { %v1811_v43 = vmul.f32 0.5, %v1807_v20 }
 0x5cf   : > { %v1825_v26 = vadd.f32 %v1821_v22, %v1805_v0  ;;  %v1820_v27 = vmul.f32 %v1816_v23, %v1804_v12  ;;  %v1819_v28 = vmul.f32 %v1815_v24, %v1807_v20  ;;  %v1814_v29 = vmul.f32 0.044715, %v1806_v25 }
 0x5d0   : > { %v1810_v47 = vmul.f32 0.5, %v1806_v25 }
 0x5d1   : > { %v1824_v30 = vadd.f32 %v1820_v27, %v1804_v12  ;;  %v1823_v31 = vmul.f32 %v1819_v28, %v1807_v20  ;;  %v1818_v32 = vmul.f32 %v1814_v29, %v1806_v25  ;;  %v1829_v33 = vmul.f32 0.7978846, %v1825_v26 }
 0x5d3   : > { %v1827_v34 = vadd.f32 %v1823_v31, %v1807_v20  ;;  %v1822_v35 = vmul.f32 %v1818_v32, %v1806_v25  ;;  %v1828_v36 = vmul.f32 0.7978846, %v1824_v30  ;;  %3202 = vtanh.f32 %v1829_v33 }
 0x5d5   : > { %v1831_v37 = vmul.f32 0.7978846, %v1827_v34  ;;  %v1826_v38 = vadd.f32 %v1822_v35, %v1806_v25 }
 0x5d7   : > { %v1830_v39 = vmul.f32 0.7978846, %v1826_v38  ;;  %3204 = vtanh.f32 %v1831_v37 }
 0x5d8   : > { %3206 = vtanh.f32 %v1828_v36 }
 0x5d9   : > { %3208 = vtanh.f32 %v1830_v39 }
 0x5e0   : > { %v3203_v40 = vpop.eup %3202 }
 0x5e1   : > { %v1837_v49 = vadd.f32 1.0, %v3203_v40 }
 0x5e3   : > { %v1841_v54 = vmul.f32 %v1837_v49, %v1809_v51 }
 0x5e4   : > { %v3205_v41 = vpop.eup %3204 }
 0x5e5   : > { %v3207_v42 = vpop.eup %3206  ;;  %v1839_v44 = vadd.f32 1.0, %v3205_v41 }
 0x5e6   : > { %v3209_v45 = vpop.eup %3208  ;;  %v1836_v53 = vadd.f32 1.0, %v3207_v42 }
 0x5e7   : > { %v1843_v46 = vmul.f32 %v1839_v44, %v1811_v43  ;;  %v1838_v48 = vadd.f32 1.0, %v3209_v45 }
 0x5e8   : > { %v1840_v57 = vmul.f32 %v1836_v53, %v1808_v56 }
 0x5e9   : > { %3091 = vmatprep.subr.msk.mxu0 %vm1142_vm4, %v1843_v46  ;;  %3105 = vmatprep.subr.msk.mxu1 %vm1142_vm4, %v1843_v46  ;;  %v1842_v50 = vmul.f32 %v1838_v48, %v1810_v47 }
 0x5ea   : > { %3092 = vmatpush3.msk.msra.mxu0 %vm1142_vm4, %v1843_v46  ;;  %3106 = vmatpush3.msk.msra.mxu1 %vm1142_vm4, %v1843_v46 }
 0x5eb   : > { %3093 = vmatprep.subr.mxu0 %v1842_v50  ;;  %3107 = vmatprep.subr.mxu1 %v1842_v50 }
 0x5ec   : > { %3094 = vmatpush3.msra.mxu0 %v1842_v50  ;;  %3108 = vmatpush3.msra.mxu1 %v1842_v50 }
 0x5ed   : > { %3095 = vmatprep.subr.mxu0 %v1841_v54  ;;  %3109 = vmatprep.subr.mxu1 %v1841_v54 }
 0x5ee   : > { %3096 = vmatpush3.msra.mxu0 %v1841_v54  ;;  %3110 = vmatpush3.msra.mxu1 %v1841_v54 }
 0x5ef   : > { %3097 = vmatprep.subr.mxu0 %v1840_v57  ;;  %3111 = vmatprep.subr.mxu1 %v1840_v57 }
 0x5f0   : > { %3098 = vmatpush3.msra.mxu0 %v1840_v57  ;;  %3112 = vmatpush3.msra.mxu1 %v1840_v57 }
 0x5f1   : > { %3100 = vmatmul.mubr.msk.f32.vlgmr.msra.gmra.mxu0 %vm1312_vm5, %v3547_v5  ;;  %3114 = vmatmul.mubr.msk.f32.vlgmr.msra.gmra.mxu1 %vm1312_vm5, %v3552_v6 }
 0x5f2   : > { %3102 = vmatprep.mubr.msk.f32.mxu0 %vm1312_vm5, %v3557_v7  ;;  %3116 = vmatprep.mubr.msk.f32.mxu1 %vm1312_vm5, %v3562_v8 }
 0x5f3   : > { %3119 = vmatprep.subr.mxu0 %v2104_v58 }
 0x5f4   : > { %3120 = vmatpush3.msra.mxu0 %v2104_v58 }
 0x5f5   : > { %3103 = vmatmul.mubr.msk.f32.gmra.mxu0 %vm1312_vm5, %v3575_v9  ;;  %3117 = vmatmul.mubr.msk.f32.gmra.mxu1 %vm1312_vm5, %v3580_v10 }
 0x5f6   : > { %3137 = vmatprep.mubr.msk.f32.mxu1 %vm1312_vm5, %v3526_v52  ;;  %3121 = vmatprep.subr.mxu0 %v2103_v59  ;;  %v1945_v52 = vrot.slane %v2758_v60, %v3592_v14 }
 0x5f7   : > { %3122 = vmatpush3.msra.mxu0 %v2103_v59 }
 0x5f8   : > { %v1947_v2 = vmul.f32 %v1945_v52, %v1841_v54  ;;  %v1946_v17 = vmul.f32 %v1945_v52, %v1840_v57  ;;  %v1949_v21 = vmul.f32 %v1945_v52, %v1843_v46  ;;  %v1948_v33 = vmul.f32 %v1945_v52, %v1842_v50 }
 0x6b1   : > { %v3101_v63 = vpop.f32.mrf.mxu0  ;;  %v3115_v0 = vpop.f32.mrf.mxu1 }
 0x6b2   : > { %v1939_v1 = vmul.f32 %v3101_v63, %v1937_v61  ;;  %v2044_v3 = vmul.f32 %v3115_v0, %v2042_v62 }
 0x6b3   : > { %v1915_v4 = vpop.f32.mrf.mxu0  ;;  %v2020_v11 = vpop.f32.mrf.mxu1 }
 0x6b4   : > { %v1951_v12 = vadd.f32 %v1947_v2, %v1939_v1  ;;  %v1938_v16 = vmul.f32 %v1937_v61, %v1915_v4  ;;  %v2043_v19 = vmul.f32 %v2042_v62, %v2020_v11 }
 0x6b5   : > { %v3104_v20 = vpop.f32.mrf.mxu0  ;;  %v3118_v22 = vpop.f32.mrf.mxu1 }
 0x6b6   : > { %v2048_v23 = vadd.f32 %v2044_v3, %v1951_v12  ;;  %v1950_v24 = vadd.f32 %v1946_v17, %v1938_v16  ;;  %v1941_v25 = vmul.f32 %v3104_v20, %v1937_v61  ;;  %v2046_v26 = vmul.f32 %v3118_v22, %v2042_v62 }
 0x6b7   : > { %v1925_v27 = vpop.f32.mrf.mxu0  ;;  %v2030_v32 = vpop.f32.mrf.mxu1 }
 0x6b8   : > { %v2060_v28 = vadd.f32 %v2770_v18, %v2048_v23  ;;  %v2047_v29 = vadd.f32 %v2043_v19, %v1950_v24  ;;  %v1953_v30 = vadd.f32 %v1949_v21, %v1941_v25  ;;  %v1940_v31 = vmul.f32 %v1937_v61, %v1925_v27  ;;  %v2771_v27 = vld [vmem:[%s3781_s10] ss:$0 sm:$0xff] }
 0x6b9   : > { %v2045_v38 = vmul.f32 %v2042_v62, %v2030_v32 }
 0x6ba   : > { %v2068_v34 = vmul.f32 0.044715, %v2060_v28  ;;  %v2059_v35 = vadd.f32 %v2770_v18, %v2047_v29  ;;  %v2050_v36 = vadd.f32 %v2046_v26, %v1953_v30  ;;  %v1952_v37 = vadd.f32 %v1948_v33, %v1940_v31 }
 0x6bb   : > { %v2064_v1 = vmul.f32 0.5, %v2060_v28 }
 0x6bc   : > { %v2072_v39 = vmul.f32 %v2068_v34, %v2060_v28  ;;  %v2067_v40 = vmul.f32 0.044715, %v2059_v35  ;;  %v2062_v41 = vadd.f32 %v2770_v18, %v2050_v36  ;;  %v2049_v42 = vadd.f32 %v2045_v38, %v1952_v37 }
 0x6bd   : > { %v2063_v2 = vmul.f32 0.5, %v2059_v35 }
 0x6be   : > { %v2076_v43 = vmul.f32 %v2072_v39, %v2060_v28  ;;  %v2071_v44 = vmul.f32 %v2067_v40, %v2059_v35  ;;  %v2070_v45 = vmul.f32 0.044715, %v2062_v41  ;;  %v2061_v46 = vadd.f32 %v2770_v18, %v2049_v42 }
 0x6bf   : > { %v2066_v19 = vmul.f32 0.5, %v2062_v41 }
 0x6c0   : > { %v2080_v47 = vadd.f32 %v2076_v43, %v2060_v28  ;;  %v2074_v48 = vmul.f32 %v2070_v45, %v2062_v41  ;;  %v2075_v49 = vmul.f32 %v2071_v44, %v2059_v35  ;;  %v2069_v51 = vmul.f32 0.044715, %v2061_v46 }
 0x6c1   : > { %v2065_v21 = vmul.f32 0.5, %v2061_v46 }
 0x6c2   : > { %v2084_v53 = vmul.f32 0.7978846, %v2080_v47  ;;  %v2079_v54 = vadd.f32 %v2075_v49, %v2059_v35  ;;  %v2078_v50 = vmul.f32 %v2074_v48, %v2062_v41  ;;  %v2073_v56 = vmul.f32 %v2069_v51, %v2061_v46 }
 0x6c4   : > { %3210 = vtanh.f32 %v2084_v53  ;;  %v2083_v57 = vmul.f32 0.7978846, %v2079_v54  ;;  %v2082_v58 = vadd.f32 %v2078_v50, %v2062_v41  ;;  %v2077_v59 = vmul.f32 %v2073_v56, %v2061_v46 }
 0x6c6   : > { %3212 = vtanh.f32 %v2083_v57  ;;  %v2086_v60 = vmul.f32 0.7978846, %v2082_v58  ;;  %v2081_v61 = vadd.f32 %v2077_v59, %v2061_v46 }
 0x6c8   : > { %3214 = vtanh.f32 %v2086_v60  ;;  %v2085_v52 = vmul.f32 0.7978846, %v2081_v61 }
 0x6ca   : > { %3216 = vtanh.f32 %v2085_v52 }
 0x6d1   : > { %v3211_v62 = vpop.eup %3210 }
 0x6d2   : > { %v2092_v63 = vadd.f32 1.0, %v3211_v62 }
 0x6d3   : > { %v3213_v0 = vpop.eup %3212 }
 0x6d4   : > { %v2091_v3 = vadd.f32 1.0, %v3213_v0  ;;  %v2096_v11 = vmul.f32 %v2092_v63, %v2064_v1 }
 0x6d5   : > { %v3215_v4 = vpop.eup %3214 }
 0x6d6   : > { %v2095_v12 = vmul.f32 %v2091_v3, %v2063_v2  ;;  %v2094_v16 = vadd.f32 1.0, %v3215_v4  ;;  %v3669_v20 = vmul.f32 0.999995, %v2096_v11 }
 0x6d7   : > { %v3217_v17 = vpop.eup %3216 }
 0x6d8   : > { %v3667_v18 = vmul.f32 0.999995, %v2095_v12  ;;  %v2093_v22 = vadd.f32 1.0, %v3217_v17  ;;  %v2098_v23 = vmul.f32 %v2094_v16, %v2066_v19  ;;  %v2505_v17 = vld [vmem:[%s3784_s13 + $0x38] sm:$0x1]  ;;  %v2498_v19 = vld [vmem:[%s3784_s13] sm:$0xff] }
 0x6da   : > { %3123 = vmatprep.mubr.msk.f32.mxu0 %vm715_vm2, %v3667_v18  ;;  %v2097_v24 = vmul.f32 %v2093_v22, %v2065_v21  ;;  %v3677_v26 = vmul.f32 0.999995, %v2098_v23  ;;  %v2245_v21 = vld [vmem:[%s3782_s11] sm:$0x7] }
 0x6db   : > { %3124 = vmatmul.mubr.msk.f32.vlgmr.msra.gmra.mxu0 %vm715_vm2, %v3669_v20  ;;  %v2337_v22 = vrot.slane %v2245_v21, %v3590_v13  ;;  %v2345_v23 = vrot.slane %v2245_v21, %v3592_v14 }
 0x6dc   : > { %v3675_v25 = vmul.f32 0.999995, %v2097_v24  ;;  %v2442_v24 = vrot.slane %v2245_v21, %v3594_v15 }
 0x6de   : > { %3126 = vmatprep.mubr.msk.f32.mxu0 %vm715_vm2, %v3675_v25 }
 0x6df   : > { %3127 = vmatmul.mubr.msk.f32.gmra.mxu0 %vm715_vm2, %v3677_v26 }
 0x6e0   : > { %3151 = vmatprep.mubr.msk.f32.mxu0 %vm1312_vm5, %v3531_v55 }
 0x79b   : > { %v3125_v28 = vpop.f32.mrf.mxu0 }
 0x79c   : > { %v2196_v29 = vadd.f32 %v3125_v28, %v2771_v27 }
 0x79d   : > { %v2190_v30 = vpop.f32.mrf.mxu0 }
 0x79e   : > { %v2214_v31 = vmul.f32 0.044715, %v2196_v29  ;;  %v2191_v32 = vadd.f32 %v2771_v27, %v2190_v30  ;;  %v2210_v2 = vmul.f32 0.5, %v2196_v29 }
 0x79f   : > { %v3128_v35 = vpop.f32.mrf.mxu0 }
 0x7a0   : > { %v2218_v33 = vmul.f32 %v2214_v31, %v2196_v29  ;;  %v2213_v34 = vmul.f32 0.044715, %v2191_v32  ;;  %v2206_v36 = vadd.f32 %v3128_v35, %v2771_v27  ;;  %v2209_v11 = vmul.f32 0.5, %v2191_v32 }
 0x7a1   : > { %v2200_v39 = vpop.f32.mrf.mxu0 }
 0x7a2   : > { %v2222_v37 = vmul.f32 %v2218_v33, %v2196_v29  ;;  %v2217_v38 = vmul.f32 %v2213_v34, %v2191_v32  ;;  %v2216_v40 = vmul.f32 0.044715, %v2206_v36  ;;  %v2201_v41 = vadd.f32 %v2771_v27, %v2200_v39 }
 0x7a3   : > { %v2212_v60 = vmul.f32 0.5, %v2206_v36 }
 0x7a4   : > { %v2226_v42 = vadd.f32 %v2222_v37, %v2196_v29  ;;  %v2221_v55 = vmul.f32 %v2217_v38, %v2191_v32  ;;  %v2220_v43 = vmul.f32 %v2216_v40, %v2206_v36  ;;  %v2215_v44 = vmul.f32 0.044715, %v2201_v41  ;;  %v2786_v37 = vld [vmem:[%s3783_s12] ss:$0 sm:$0xff] }
 0x7a5   : > { %v2211_v62 = vmul.f32 0.5, %v2201_v41 }
 0x7a6   : > { %v2225_v45 = vadd.f32 %v2221_v55, %v2191_v32  ;;  %v2224_v46 = vmul.f32 %v2220_v43, %v2206_v36  ;;  %v2219_v47 = vmul.f32 %v2215_v44, %v2201_v41  ;;  %v2230_v48 = vmul.f32 0.7978846, %v2226_v42 }
 0x7a8   : > { %v2228_v49 = vadd.f32 %v2224_v46, %v2206_v36  ;;  %v2223_v51 = vmul.f32 %v2219_v47, %v2201_v41  ;;  %v2229_v53 = vmul.f32 0.7978846, %v2225_v45  ;;  %3218 = vtanh.f32 %v2230_v48 }
 0x7aa   : > { %v2232_v54 = vmul.f32 0.7978846, %v2228_v49  ;;  %v2227_v50 = vadd.f32 %v2223_v51, %v2201_v41 }
 0x7ac   : > { %3220 = vtanh.f32 %v2232_v54  ;;  %v2231_v56 = vmul.f32 0.7978846, %v2227_v50 }
 0x7ad   : > { %3222 = vtanh.f32 %v2229_v53 }
 0x7ae   : > { %3224 = vtanh.f32 %v2231_v56 }
 0x7b5   : > { %v3219_v57 = vpop.eup %3218 }
 0x7b6   : > { %v2238_v1 = vadd.f32 1.0, %v3219_v57 }
 0x7b8   : > { %v2242_v12 = vmul.f32 %v2238_v1, %v2210_v2 }
 0x7b9   : > { %v3221_v58 = vpop.eup %3220 }
 0x7ba   : > { %v3223_v59 = vpop.eup %3222  ;;  %v2240_v61 = vadd.f32 1.0, %v3221_v58  ;;  %v2347_v30 = vmul.f32 %v2345_v23, %v2242_v12 }
 0x7bb   : > { %v3225_v52 = vpop.eup %3224  ;;  %v2237_v4 = vadd.f32 1.0, %v3223_v59 }
 0x7bc   : > { %v3688_v63 = vmul.f32 %v2240_v61, %v2212_v60  ;;  %v2239_v0 = vadd.f32 1.0, %v3225_v52 }
 0x7bd   : > { %v2241_v16 = vmul.f32 %v2237_v4, %v2209_v11 }
 0x7be   : > { %3129 = vmatprep.subr.msk.mxu1 %vm1142_vm4, %v3688_v63  ;;  %3143 = vmatprep.subr.msk.mxu0 %vm1142_vm4, %v3688_v63  ;;  %v3694_v3 = vmul.f32 %v2239_v0, %v2211_v62  ;;  %v2349_v14 = vmul.f32 %v2345_v23, %v3688_v63 }
 0x7bf   : > { %3130 = vmatpush3.msk.msra.mxu1 %vm1142_vm4, %v3688_v63  ;;  %3144 = vmatpush3.msk.msra.mxu0 %vm1142_vm4, %v3688_v63  ;;  %v2346_v36 = vmul.f32 %v2345_v23, %v2241_v16 }
 0x7c0   : > { %3131 = vmatprep.subr.mxu1 %v3694_v3  ;;  %3145 = vmatprep.subr.mxu0 %v3694_v3  ;;  %v2348_v48 = vmul.f32 %v2345_v23, %v3694_v3 }
 0x7c1   : > { %3132 = vmatpush3.msra.mxu1 %v3694_v3  ;;  %3146 = vmatpush3.msra.mxu0 %v3694_v3 }
 0x7c2   : > { %3133 = vmatprep.subr.mxu1 %v2242_v12  ;;  %3147 = vmatprep.subr.mxu0 %v2242_v12 }
 0x7c3   : > { %3134 = vmatpush3.msra.mxu1 %v2242_v12  ;;  %3148 = vmatpush3.msra.mxu0 %v2242_v12 }
 0x7c4   : > { %3135 = vmatprep.subr.mxu1 %v2241_v16  ;;  %3149 = vmatprep.subr.mxu0 %v2241_v16 }
 0x7c5   : > { %3136 = vmatpush3.msra.mxu1 %v2241_v16  ;;  %3150 = vmatpush3.msra.mxu0 %v2241_v16 }
 0x7c6   : > { %3138 = vmatmul.mubr.msk.f32.vlgmr.msra.gmra.mxu1 %vm1312_vm5, %v3547_v5  ;;  %3152 = vmatmul.mubr.msk.f32.vlgmr.msra.gmra.mxu0 %vm1312_vm5, %v3552_v6  ;;  %v2504_v5 = vld [vmem:[%s3784_s13 + $0x30] sm:$0xff]  ;;  %v2503_v6 = vld [vmem:[%s3784_s13 + $0x28] sm:$0xff] }
 0x7c7   : > { %3140 = vmatprep.mubr.msk.f32.mxu1 %vm1312_vm5, %v3557_v7  ;;  %3154 = vmatprep.mubr.msk.f32.mxu0 %vm1312_vm5, %v3562_v8  ;;  %v2502_v7 = vld [vmem:[%s3784_s13 + $0x20] sm:$0xff]  ;;  %v2501_v8 = vld [vmem:[%s3784_s13 + $0x18] sm:$0xff] }
 0x7c8   : > { %3157 = vmatprep.subr.msk.mxu1 %vm1142_vm4, %v2505_v17 }
 0x7c9   : > { %3158 = vmatpush3.msk.msra.mxu1 %vm1142_vm4, %v2505_v17 }
 0x7ca   : > { %3141 = vmatmul.mubr.msk.f32.gmra.mxu1 %vm1312_vm5, %v3575_v9  ;;  %3155 = vmatmul.mubr.msk.f32.gmra.mxu0 %vm1312_vm5, %v3580_v10  ;;  %v2500_v9 = vld [vmem:[%s3784_s13 + $0x10] sm:$0xff]  ;;  %v2499_v10 = vld [vmem:[%s3784_s13 + $0x8] sm:$0xff] }
 0x7cb   : > { %3159 = vmatprep.subr.mxu1 %v2504_v5 }
 0x7cc   : > { %3160 = vmatpush3.msra.mxu1 %v2504_v5 }
 0x7cd   : > { %3161 = vmatprep.subr.mxu1 %v2503_v6 }
 0x7ce   : > { %3162 = vmatpush3.msra.mxu1 %v2503_v6 }
 0x7cf   : > { %3163 = vmatprep.subr.mxu1 %v2502_v7 }
 0x7d0   : > { %3164 = vmatpush3.msra.mxu1 %v2502_v7 }
 0x7d1   : > { %3165 = vmatprep.subr.mxu1 %v2501_v8 }
 0x7d2   : > { %3166 = vmatpush3.msra.mxu1 %v2501_v8 }
 0x7d3   : > { %3167 = vmatprep.subr.mxu1 %v2500_v9 }
 0x7d4   : > { %3168 = vmatpush3.msra.mxu1 %v2500_v9 }
 0x7d5   : > { %3169 = vmatprep.subr.mxu1 %v2499_v10 }
 0x7d6   : > { %3170 = vmatpush3.msra.mxu1 %v2499_v10 }
 0x7d7   : > { %3171 = vmatprep.subr.mxu1 %v2498_v19 }
 0x7d8   : > { %3172 = vmatpush3.msra.mxu1 %v2498_v19 }
 0x886   : > { %v3139_v27 = vpop.f32.mrf.mxu1  ;;  %v3153_v28 = vpop.f32.mrf.mxu0 }
 0x887   : > { %v2339_v29 = vmul.f32 %v3139_v27, %v2337_v22  ;;  %v2444_v31 = vmul.f32 %v3153_v28, %v2442_v24 }
 0x888   : > { %v2315_v32 = vpop.f32.mrf.mxu1  ;;  %v2420_v33 = vpop.f32.mrf.mxu0 }
 0x889   : > { %v2351_v34 = vadd.f32 %v2347_v30, %v2339_v29  ;;  %v2338_v35 = vmul.f32 %v2337_v22, %v2315_v32  ;;  %v2443_v38 = vmul.f32 %v2442_v24, %v2420_v33 }
 0x88a   : > { %v3142_v13 = vpop.f32.mrf.mxu1  ;;  %v3156_v39 = vpop.f32.mrf.mxu0 }
 0x88b   : > { %v2448_v15 = vadd.f32 %v2444_v31, %v2351_v34  ;;  %v2350_v40 = vadd.f32 %v2346_v36, %v2338_v35  ;;  %v2341_v41 = vmul.f32 %v3142_v13, %v2337_v22  ;;  %v2446_v42 = vmul.f32 %v3156_v39, %v2442_v24  ;;  %v2787_v36 = vld [vmem:[%s3785_s14] ss:$0 sm:$0xff] }
 0x88c   : > { %v2325_v55 = vpop.f32.mrf.mxu1  ;;  %v2430_v47 = vpop.f32.mrf.mxu0 }
 0x88d   : > { %v2459_v43 = vadd.f32 %v2786_v37, %v2448_v15  ;;  %v2447_v44 = vadd.f32 %v2443_v38, %v2350_v40  ;;  %v2353_v45 = vadd.f32 %v2349_v14, %v2341_v41  ;;  %v2340_v46 = vmul.f32 %v2337_v22, %v2325_v55 }
 0x88e   : > { %v2445_v50 = vmul.f32 %v2442_v24, %v2430_v47 }
 0x88f   : > { %v2467_v49 = vmul.f32 0.044715, %v2459_v43  ;;  %v2458_v51 = vadd.f32 %v2786_v37, %v2447_v44  ;;  %v2450_v53 = vadd.f32 %v2446_v42, %v2353_v45  ;;  %v2352_v54 = vadd.f32 %v2348_v48, %v2340_v46 }
 0x890   : > { %v2463_v24 = vmul.f32 0.5, %v2459_v43 }
 0x891   : > { %v2471_v56 = vmul.f32 %v2467_v49, %v2459_v43  ;;  %v2466_v57 = vmul.f32 0.044715, %v2458_v51  ;;  %v2461_v58 = vadd.f32 %v2786_v37, %v2450_v53  ;;  %v2449_v59 = vadd.f32 %v2445_v50, %v2352_v54 }
 0x892   : > { %v2462_v21 = vmul.f32 0.5, %v2458_v51 }
 0x893   : > { %v2475_v60 = vmul.f32 %v2471_v56, %v2459_v43  ;;  %v2470_v61 = vmul.f32 %v2466_v57, %v2458_v51  ;;  %v2469_v52 = vmul.f32 0.044715, %v2461_v58  ;;  %v2460_v62 = vadd.f32 %v2786_v37, %v2449_v59 }
 0x894   : > { %v2465_v33 = vmul.f32 0.5, %v2461_v58 }
 0x895   : > { %v2479_v63 = vadd.f32 %v2475_v60, %v2459_v43  ;;  %v2473_v0 = vmul.f32 %v2469_v52, %v2461_v58  ;;  %v2474_v1 = vmul.f32 %v2470_v61, %v2458_v51  ;;  %v2468_v2 = vmul.f32 0.044715, %v2460_v62 }
 0x896   : > { %v2464_v31 = vmul.f32 0.5, %v2460_v62 }
 0x897   : > { %v2483_v4 = vmul.f32 0.7978846, %v2479_v63  ;;  %v2478_v11 = vadd.f32 %v2474_v1, %v2458_v51  ;;  %v2477_v3 = vmul.f32 %v2473_v0, %v2461_v58  ;;  %v2472_v12 = vmul.f32 %v2468_v2, %v2460_v62 }
 0x899   : > { %3226 = vtanh.f32 %v2483_v4  ;;  %v2482_v16 = vmul.f32 0.7978846, %v2478_v11  ;;  %v2481_v17 = vadd.f32 %v2477_v3, %v2461_v58  ;;  %v2476_v5 = vmul.f32 %v2472_v12, %v2460_v62 }
 0x89b   : > { %3228 = vtanh.f32 %v2482_v16  ;;  %v2485_v6 = vmul.f32 0.7978846, %v2481_v17  ;;  %v2480_v7 = vadd.f32 %v2476_v5, %v2460_v62 }
 0x89d   : > { %3230 = vtanh.f32 %v2485_v6  ;;  %v2484_v8 = vmul.f32 0.7978846, %v2480_v7 }
 0x89f   : > { %3232 = vtanh.f32 %v2484_v8 }
 0x8a6   : > { %v3227_v9 = vpop.eup %3226 }
 0x8a7   : > { %v2491_v19 = vadd.f32 1.0, %v3227_v9 }
 0x8a8   : > { %v3229_v10 = vpop.eup %3228 }
 0x8a9   : > { %v2490_v22 = vadd.f32 1.0, %v3229_v10  ;;  %v2495_v28 = vmul.f32 %v2491_v19, %v2463_v24 }
 0x8aa   : > { %v3231_v23 = vpop.eup %3230 }
 0x8ab   : > { %v2494_v27 = vmul.f32 %v2490_v22, %v2462_v21  ;;  %v2493_v30 = vadd.f32 1.0, %v3231_v23 }
 0x8ac   : > { %v3233_v29 = vpop.eup %3232 }
 0x8ad   : > { %3173 = vmatprep.mubr.msk.f32.mxu1 %vm2513_vm6, %v2494_v27  ;;  %v2492_v32 = vadd.f32 1.0, %v3233_v29  ;;  %v2497_v35 = vmul.f32 %v2493_v30, %v2465_v33 }
 0x8ae   : > { %3174 = vmatmul.mubr.msk.f32.vlgmr.msra.gmra.mxu1 %vm2513_vm6, %v2495_v28 }
 0x8af   : > { %v2496_v34 = vmul.f32 %v2492_v32, %v2464_v31 }
 0x8b1   : > { %3176 = vmatprep.mubr.msk.f32.mxu1 %vm2513_vm6, %v2496_v34 }
 0x8b2   : > { %3177 = vmatmul.mubr.msk.f32.gmra.mxu1 %vm2513_vm6, %v2497_v35 }
 0x96e   : > { %v3175_v37 = vpop.f32.mrf.mxu1 }
 0x96f   : > { %v2601_v38 = vadd.f32 %v3175_v37, %v2787_v36 }
 0x970   : > { %v2595_v13 = vpop.f32.mrf.mxu1 }
 0x971   : > { %v2615_v14 = vadd.f32 %v2601_v38, %v3669_v20  ;;  %v2596_v39 = vadd.f32 %v2787_v36, %v2595_v13 }
 0x972   : > { %v3178_v40 = vpop.f32.mrf.mxu1 }
 0x973   : > { %2619 = vst.msk [vmem:[%s494_s23 + $0x8] sm:$0xff] %vm715_vm2, %v2615_v14  ;;  %v2614_v15 = vadd.f32 %v2596_v39, %v3667_v18  ;;  %v2611_v41 = vadd.f32 %v3178_v40, %v2787_v36 }
 0x974   : > { %v2605_v42 = vpop.f32.mrf.mxu1 }
 0x975   : > { %2618 = vst.msk [vmem:[%s494_s23] sm:$0xff] %vm715_vm2, %v2614_v15  ;;  %v2617_v55 = vadd.f32 %v2611_v41, %v3677_v26  ;;  %v2606_v43 = vadd.f32 %v2787_v36, %v2605_v42 }
 0x977   : > { %2621 = vst.msk [vmem:[%s494_s23 + $0x18] sm:$0x1] %vm1136_vm3, %v2617_v55  ;;  %v2616_v44 = vadd.f32 %v2606_v43, %v3675_v25 }
 0x979   : > { %2620 = vst.msk [vmem:[%s494_s23 + $0x10] sm:$0xff] %vm715_vm2, %v2616_v44 }
 0x97a PF: > { %s25_s18 = sadd.s32 1, %s3240_s18  }
 0x97b   : > { %p22_p4 = scmp.ge.s32.totalorder %s25_s18, 4  }
 0x97d   :  { %24 = sbr.rel (!%p22_p4) target bundleno = 1 (0x1), region = 119 }

// kernel: fea_cnn_forward.9
= control target key start
LH: loop header
LB: loop body
LE: loop exit
PB: predicated region body
PF: predicated region fallthrough
CT: control target
= control target key end

     0   :  { %s2422_s18 = smov 0   ;;  %s2724_s0 = inlined_call_operand.vmem [shape: f32[2,12,16], index: 0, kind: input, shape index: {}]   ;;  %s2725_s1 = inlined_call_operand.vmem [shape: f32[3,5,12], index: 1, kind: input, shape index: {}]   ;;  %s2726_s2 = inlined_call_operand.vmem [shape: f32[3,16,32], index: 2, kind: input, shape index: {}]   ;;  %s2727_s3 = inlined_call_operand.vmem [shape: f32[1,32], index: 3, kind: input, shape index: {}]   ;;  %s2728_s4 = inlined_call_operand.vmem [shape: f32[2,5,5], index: 4, kind: input, shape index: {}]   ;;  %s2729_s5 = inlined_call_operand.vmem [shape: f32[32,32], index: 5, kind: input, shape index: {}]   ;;  %s2730_s6 = inlined_call_operand.vmem [shape: f32[1,32], index: 6, kind: input, shape index: {}]   ;;  %s2731_s7 = inlined_call_operand.vmem [shape: f32[3,3,32], index: 7, kind: input, shape index: {}]   ;;  %s2732_s8 = inlined_call_operand.vmem [shape: f32[3,1,32], index: 8, kind: input, shape index: {}]   ;;  %s2733_s9 = inlined_call_operand.vmem [shape: f32[32,115], index: 9, kind: input, shape index: {}]   ;;  %s2734_s10 = inlined_call_operand.vmem [shape: f32[1,115], index: 10, kind: input, shape index: {}]   ;;  %s2735_s11 = inlined_call_operand.vmem [shape: f32[3,115], index: 11, kind: input, shape index: {}]   ;;  %s2736_s12 = inlined_call_operand.vmem [shape: f32[1,115], index: 12, kind: input, shape index: {}]   ;;  %s2737_s13 = inlined_call_operand.vmem [shape: f32[115,32], index: 13, kind: input, shape index: {}]   ;;  %s2738_s14 = inlined_call_operand.vmem [shape: f32[1,32], index: 14, kind: input, shape index: {}]   ;;  %s2739_s15 = inlined_call_operand.vmem [shape: f32[2,5,32], index: 15, kind: output, shape index: {}]  }
   0x1 LB: > { %s2054_s19 = sadd.s32 4294967295, %s2338_s18   ;;  %p2058_p0 = scmp.ge.s32.totalorder %s2338_s18, 1  ;;  %s2338_s18 = sphi %s2422_s18, %s25_s18  }
   0x2   : > { %p437_p1 = scmp.lt.s32.totalorder %s2338_s18, 3 }
   0x4   : > { %p438_p2 = pnand %p2058_p0, %p437_p1 }
   0x5   : > { %p484_p3 = scmp.lt.s32.totalorder (!%p438_p2), %s2054_s19, 1 }
   0x6   : > { %441 = sbr.rel (%p438_p2) target bundleno = 2327 (0x917), region = 80 }
   0xb   : > { %v2340_v0 = vmov 0.0   ;;  %s2741_s19 = smov (!%p484_p3, %s2054_s19), 1  ;;  %vm2341_vm0 = vmmov 0   ;;  %vm500_vm1 = vcmask 1043456   ;;  %v495_v3 = vld [vmem:[%s2725_s1] sm:$0x1f] }
   0xc   : > { %2173 = vmatprep.subr.mxu0 %v2340_v0  ;;  %2180 = vmatprep.subr.mxu1 %v2340_v0  ;;  %s2112_s20 = sshll.u32 %s2741_s19, 4  ;;  %vm496_vm2 = vcmask 97280   ;;  %v2064_v4 = vld [vmem:[%s2725_s1 + $0x8] sm:$0x1f]  ;;  %v2068_v5 = vld [vmem:[%s2726_s2 + $0x18] sm:$0xff]  ;;  %v2067_v7 = vld [vmem:[%s2726_s2 + $0x10] sm:$0xff] }
   0xd   : > { %2177 = vmatprep.mubr.msk.f32.mxu0 %vm2341_vm0, %v2340_v0  ;;  %2184 = vmatprep.mubr.msk.f32.mxu1 %vm2341_vm0, %v2340_v0  ;;  %s488_s23 = scalar_lea.vmem %s2724_s0, %s2112_s20  ;;  %v575_v6 = vld [vmem:[%s2726_s2 + $0x8] sm:$0xff]  ;;  %v574_v8 = vld [vmem:[%s2726_s2] sm:$0xff]  ;;  %vm654_vm3 = vcmask 130048   ;;  %v2071_v12 = vld [vmem:[%s2725_s1 + $0x10] sm:$0x1f]  ;;  %vm961_vm4 = vcmask 258048  }
   0xe   : > { %v494_v1 = vld [vmem:[%s488_s23 + $0x8] sm:$0xf]  ;;  %v493_v2 = vld [vmem:[%s488_s23] sm:$0xff]  ;;  %v999_v31 = vld [vmem:[%s2729_s5 + $0x18] sm:$0xff]  ;;  %vm965_vm5 = vcmask 1044480   ;;  %vm1007_vm6 = vcmask 261120  }
   0xf   : > { %2174 = vmatpush3.msk.msra.mxu0 %vm500_vm1, %v494_v1  ;;  %2181 = vmatpush3.msk.msra.mxu1 %vm500_vm1, %v494_v1  ;;  %v2075_v14 = vld [vmem:[%s2726_s2 + $0x28] sm:$0xff]  ;;  %v2074_v15 = vld [vmem:[%s2726_s2 + $0x20] sm:$0xff]  ;;  %v998_v32 = vld [vmem:[%s2729_s5 + $0x10] sm:$0xff]  ;;  %vm1083_vm7 = vcmask 39936   ;;  %vm1925_vm8 = vcmask 1042432   ;;  %vm1921_vm9 = vcmask 941056  }
  0x10   : > { %2175 = vmatprep.subr.mxu0 %v2340_v0  ;;  %2182 = vmatprep.subr.mxu1 %v2340_v0  ;;  %v2077_v24 = vld [vmem:[%s2727_s3] ss:$0 sm:$0xff]  ;;  %v997_v33 = vld [vmem:[%s2729_s5 + $0x8] sm:$0xff]  ;;  %s2061_s25 = sshll.u32 %s2741_s19, 3 }
  0x11   : > { %2176 = vmatpush3.msra.mxu0 %v493_v2  ;;  %2183 = vmatpush3.msra.mxu1 %v493_v2  ;;  %v996_v34 = vld [vmem:[%s2729_s5] sm:$0xff]  ;;  %s492_s28 = scalar_lea.vmem %s2739_s15, %s2061_s25 }
  0x12   : > { %2178 = vmatmul.mubr.msk.f32.vlgmr.msra.gmra.mxu0 %vm496_vm2, %v495_v3  ;;  %2185 = vmatmul.mubr.msk.f32.vlgmr.msra.gmra.mxu1 %vm496_vm2, %v2064_v4  ;;  %v2079_v59 = vld [vmem:[%s2730_s6] ss:$0 sm:$0xff]  ;;  %v1160_v3 = vlaneseq }
  0x13   : > { %2187 = vmatprep.subr.mxu0 %v2340_v0  ;;  %2194 = vmatprep.subr.mxu1 %v2340_v0 }
  0x14   : > { %2188 = vmatpush3.msra.mxu0 %v2068_v5  ;;  %2195 = vmatpush3.msra.mxu1 %v575_v6  ;;  %v1161_v4 = vshrl.u32 %v1160_v3, 7 }
  0x15   : > { %2189 = vmatprep.subr.mxu0 %v2340_v0  ;;  %2196 = vmatprep.subr.mxu1 %v2340_v0 }
  0x16   : > { %2191 = vmatprep.mubr.msk.f32.mxu0 %vm2341_vm0, %v2340_v0  ;;  %2198 = vmatprep.mubr.msk.f32.mxu1 %vm2341_vm0, %v2340_v0  ;;  %v2553_v5 = vsub.s32 0, %v1161_v4  ;;  %v2555_v6 = vsub.s32 1, %v1161_v4 }
  0x17   : > { %2190 = vmatpush3.msra.mxu0 %v2067_v7  ;;  %2197 = vmatpush3.msra.mxu1 %v574_v8  ;;  %v1082_v7 = vld [vmem:[%s2731_s7] sm:$0x7] }
  0x18   : > { %2201 = vmatprep.subr.mxu0 %v2340_v0  ;;  %2208 = vmatprep.subr.mxu1 %v2340_v0  ;;  %v1163_v8 = vrot.slane %v1082_v7, %v2553_v5 }
  0xd2   : > { %v570_v9 = vpop.f32.mrf.mxu0  ;;  %v647_v10 = vpop.f32.mrf.mxu1 }
  0xd3   : > { %2192 = vmatmul.mubr.msk.f32.vlgmr.msra.gmra.mxu0 %vm654_vm3, %v647_v10  ;;  %2199 = vmatmul.mubr.msk.f32.vlgmr.msra.gmra.mxu1 %vm654_vm3, %v570_v9  ;;  %v2561_v9 = vsub.s32 2, %v1161_v4  ;;  %v1168_v10 = vrot.slane %v1082_v7, %v2555_v6 }
  0xd4   : > { %v2186_v11 = vpop.f32.mrf.mxu1  ;;  %2202 = vmatpush3.msk.msra.mxu0 %vm500_vm1, %v494_v1  ;;  %2205 = vmatprep.mubr.msk.f32.mxu0 %vm2341_vm0, %v2340_v0  ;;  %v2179_v13 = vpop.f32.mrf.mxu0  ;;  %v2534_v1 = vld [vmem:[%s2728_s4] sm:$0x1f] }
  0xd5   : > { %2203 = vmatprep.subr.mxu0 %v2340_v0  ;;  %2212 = vmatprep.mubr.msk.f32.mxu1 %vm2341_vm0, %v2340_v0  ;;  %v1247_v13 = vrot.slane %v1082_v7, %v2561_v9 }
  0xd6   : > { %2204 = vmatpush3.msra.mxu0 %v493_v2  ;;  %2209 = vmatpush3.msra.mxu1 %v2075_v14  ;;  %v2546_v2 = vld [vmem:[%s2728_s4 + $0x8] sm:$0x1f] }
  0xd7   : > { %2206 = vmatmul.mubr.msk.f32.vlgmr.msra.gmra.mxu0 %vm496_vm2, %v2071_v12  ;;  %2236 = vmatprep.subr.mxu0 %v2340_v0 }
  0xd8   : > { %2238 = vmatprep.mubr.msk.f32.mxu0 %vm2341_vm0, %v2340_v0  ;;  %2210 = vmatprep.subr.mxu1 %v2340_v0 }
  0xd9   : > { %2211 = vmatpush3.msra.mxu1 %v2074_v15 }
  0xda   : > { %2215 = vmatprep.subr.mxu1 %v2340_v0 }
 0x193   : > { %v724_v16 = vpop.f32.mrf.mxu0  ;;  %v797_v17 = vpop.f32.mrf.mxu1 }
 0x194   : > { %v798_v18 = vadd.f32 %v797_v17, %v724_v16 }
 0x195   : > { %v2193_v19 = vpop.f32.mrf.mxu0  ;;  %v2200_v20 = vpop.f32.mrf.mxu1 }
 0x196   : > { %v2085_v19 = vld [vmem:[%s2732_s8] ss:$0 sm:$0xff] }
 0x197   : > { %v872_v21 = vpop.f32.mrf.mxu0 }
 0x198   : > { %2213 = vmatmul.mubr.msk.f32.vlgmr.msra.gmra.mxu1 %vm654_vm3, %v872_v21 }
 0x199   : > { %v2207_v22 = vpop.f32.mrf.mxu0  ;;  %2223 = vmatprep.mubr.msk.f32.mxu1 %vm2341_vm0, %v2340_v0  ;;  %2216 = vmatpush3.msra.mxu1 %v999_v31 }
 0x19a   : > { %2217 = vmatprep.subr.mxu1 %v2340_v0 }
 0x19b   : > { %2218 = vmatpush3.msra.mxu1 %v998_v32  ;;  %v2086_v32 = vld [vmem:[%s2731_s7 + $0x4] sm:$0x7] }
 0x19c   : > { %2219 = vmatprep.subr.mxu1 %v2340_v0 }
 0x19d   : > { %2220 = vmatpush3.msra.mxu1 %v997_v33  ;;  %v1345_v33 = vrot.slane %v2086_v32, %v2553_v5 }
 0x19e   : > { %2221 = vmatprep.subr.mxu1 %v2340_v0 }
 0x19f   : > { %2222 = vmatpush3.msra.mxu1 %v996_v34  ;;  %v1350_v34 = vrot.slane %v2086_v32, %v2555_v6 }
 0x1a0   : > { %2226 = vmatprep.subr.mxu1 %v2340_v0 }
 0x258   : > { %v948_v23 = vpop.f32.mrf.mxu1 }
 0x259   : > { %v952_v25 = vadd.f32 %v948_v23, %v798_v18 }
 0x25a   : > { %v2214_v26 = vpop.f32.mrf.mxu1 }
 0x25b   : > { %v960_v27 = vadd.f32 %v2077_v24, %v952_v25 }
 0x25d   : > { %v962_v28 = vsel %vm961_vm4, %v960_v27, 0.0  ;;  %v975_v29 = vmul.f32 %v960_v27, %v960_v27 }
 0x25e   : > { %963 = vadd.xlane.f32.xlu0 %v962_v28 }
 0x25f   : > { %v976_v30 = vsel %vm961_vm4, %v975_v29, 0.0 }
 0x262   : > { %977 = vadd.xlane.f32.xlu0 %v976_v30 }
 0x2e7   : > { %v964_v35 = vpop.xlane.xlu0 %963 }
 0x2e8   : > { %v966_v36 = vsel %vm965_vm5, %v964_v35, 0.0  ;;  %v1426_v35 = vrot.slane %v2086_v32, %v2561_v9 }
 0x2e9   : > { %v967_v37 = vrot.slane %v966_v36, 4 }
 0x2eb   : > { %v968_v38 = vadd.f32 %v967_v37, %v966_v36  ;;  %v978_v39 = vpop.xlane.xlu0 %977 }
 0x2ec   : > { %v979_v40 = vsel %vm965_vm5, %v978_v39, 0.0 }
 0x2ed   : > { %v969_v41 = vrot.slane %v968_v38, 2  ;;  %v980_v42 = vrot.slane %v979_v40, 4 }
 0x2ef   : > { %v970_v43 = vadd.f32 %v969_v41, %v968_v38  ;;  %v981_v44 = vadd.f32 %v980_v42, %v979_v40 }
 0x2f1   : > { %v971_v45 = vrot.slane %v970_v43, 1  ;;  %v982_v46 = vrot.slane %v981_v44, 2 }
 0x2f3   : > { %v972_v47 = vadd.f32 %v971_v45, %v970_v43  ;;  %v983_v48 = vadd.f32 %v982_v46, %v981_v44  ;;  %v2092_v44 = vld [vmem:[%s2732_s8 + $0x1] ss:$0 sm:$0xff] }
 0x2f5   : > { %v974_v49 = vmul.f32 0.00625, %v972_v47  ;;  %v984_v50 = vrot.slane %v983_v48, 1 }
 0x2f7   : > { %v985_v51 = vadd.f32 %v984_v50, %v983_v48  ;;  %v988_v52 = vmul.f32 %v974_v49, %v974_v49  ;;  %v987_v56 = vsub.f32 %v960_v27, %v974_v49 }
 0x2f9   : > { %v986_v53 = vmul.f32 0.00625, %v985_v51 }
 0x2fb   : > { %v989_v54 = vsub.f32 %v986_v53, %v988_v52 }
 0x2fd   : > { %v990_v55 = vadd.f32 1e-05, %v989_v54 }
 0x2ff   : > { %2320 = vrsqrt.f32 %v990_v55 }
 0x30c   : > { %v2321_v57 = vpop.eup %2320 }
 0x30d   : > { %v992_v58 = vmul.f32 %v2321_v57, %v987_v56  ;;  %v1631_v56 = vld [vmem:[%s2733_s9 + $0x18] sm:$0xff]  ;;  %v1630_v57 = vld [vmem:[%s2733_s9 + $0x10] sm:$0xff] }
 0x30f   : > { %2224 = vmatmul.mubr.msk.f32.vlgmr.msra.gmra.mxu1 %vm1007_vm6, %v992_v58 }
 0x310   : > { %2228 = vmatprep.mubr.msk.f32.mxu1 %vm2341_vm0, %v2340_v0 }
 0x3cf   : > { %v1077_v60 = vpop.f32.mrf.mxu1 }
 0x3d0   : > { %v1078_v61 = vadd.f32 %v2079_v59, %v1077_v60  ;;  %v1628_v59 = vld [vmem:[%s2733_s9] sm:$0xff]  ;;  %v2093_v60 = vld [vmem:[%s2731_s7 + $0x8] sm:$0x7] }
 0x3d1   : > { %v2225_v62 = vpop.f32.mrf.mxu1 }
 0x3d2   : > { %v1081_v63 = vadd.f32 %v1078_v61, %v992_v58  ;;  %v1629_v58 = vld [vmem:[%s2733_s9 + $0x8] sm:$0xff]  ;;  %v1525_v61 = vrot.slane %v2093_v60, %v2553_v5  ;;  %v1530_v62 = vrot.slane %v2093_v60, %v2555_v6 }
 0x3d4   : > { %2227 = vmatpush3.msk.msra.mxu1 %vm965_vm5, %v1081_v63  ;;  %v1169_v15 = vmul.f32 %v1168_v10, %v1081_v63 }
 0x3d5   : > { %2229 = vmatmul.mubr.msk.f32.vlgmr.msra.gmra.mxu1 %vm1083_vm7, %v2534_v1  ;;  %2231 = vmatprep.subr.mxu1 %v2340_v0 }
 0x3d6   : > { %2232 = vmatpush3.msk.msra.mxu1 %vm965_vm5, %v1081_v63  ;;  %2233 = vmatprep.mubr.msk.f32.mxu1 %vm2341_vm0, %v2340_v0  ;;  %v1606_v63 = vrot.slane %v2093_v60, %v2561_v9 }
 0x3d7   : > { %2241 = vmatprep.subr.mxu1 %v2340_v0 }
 0x3d9   : > { %2234 = vmatmul.mubr.msk.f32.vlgmr.msra.gmra.mxu1 %vm1083_vm7, %v2546_v2 }
 0x3da   : > { %2243 = vmatprep.mubr.msk.f32.mxu1 %vm2341_vm0, %v2340_v0 }
 0x495   : > { %v1156_v11 = vpop.f32.mrf.mxu1 }
 0x496   : > { %v1164_v12 = vmul.f32 %v1163_v8, %v1156_v11 }
 0x497   : > { %v2230_v14 = vpop.f32.mrf.mxu1 }
 0x498   : > { %v1170_v17 = vadd.f32 %v1169_v15, %v1164_v12  ;;  %v2099_v14 = vld [vmem:[%s2732_s8 + $0x2] ss:$0 sm:$0xff] }
 0x499   : > { %v1240_v16 = vpop.f32.mrf.mxu1 }
 0x49a   : > { %v1248_v18 = vmul.f32 %v1247_v13, %v1240_v16 }
 0x49b   : > { %v2235_v20 = vpop.f32.mrf.mxu1 }
 0x49c   : > { %v1249_v21 = vadd.f32 %v1248_v18, %v1170_v17 }
 0x49e   : > { %v1257_v22 = vadd.f32 %v2085_v19, %v1249_v21 }
 0x4a0   : > { %v1259_v23 = vmul.f32 0.044715, %v1257_v22  ;;  %v1258_v29 = vmul.f32 0.5, %v1257_v22 }
 0x4a2   : > { %v1260_v24 = vmul.f32 %v1259_v23, %v1257_v22 }
 0x4a4   : > { %v1261_v25 = vmul.f32 %v1260_v24, %v1257_v22 }
 0x4a6   : > { %v1262_v26 = vadd.f32 %v1261_v25, %v1257_v22 }
 0x4a8   : > { %v1263_v27 = vmul.f32 0.7978846, %v1262_v26 }
 0x4aa   : > { %2322 = vtanh.f32 %v1263_v27  ;;  %v2100_v27 = vld [vmem:[%s2734_s10] ss:$0 sm:$0xff] }
 0x4b7   : > { %v2323_v28 = vpop.eup %2322 }
 0x4b8   : > { %v1265_v30 = vadd.f32 1.0, %v2323_v28 }
 0x4ba   : > { %v1266_v31 = vmul.f32 %v1265_v30, %v1258_v29 }
 0x4bc   : > { %2237 = vmatpush3.msk.msra.mxu0 %vm965_vm5, %v1266_v31  ;;  %2242 = vmatpush3.msk.msra.mxu1 %vm965_vm5, %v1266_v31  ;;  %v1351_v39 = vmul.f32 %v1350_v34, %v1266_v31 }
 0x4bd   : > { %2239 = vmatmul.mubr.msk.f32.vlgmr.msra.gmra.mxu0 %vm1083_vm7, %v2534_v1  ;;  %2244 = vmatmul.mubr.msk.f32.vlgmr.msra.gmra.mxu1 %vm1083_vm7, %v2546_v2 }
 0x4be   : > { %2246 = vmatprep.subr.mxu0 %v2340_v0  ;;  %2251 = vmatprep.subr.mxu1 %v2340_v0 }
 0x4bf   : > { %2248 = vmatprep.mubr.msk.f32.mxu0 %vm2341_vm0, %v2340_v0  ;;  %2253 = vmatprep.mubr.msk.f32.mxu1 %vm2341_vm0, %v2340_v0 }
 0x57d   : > { %v1338_v36 = vpop.f32.mrf.mxu0  ;;  %v1419_v37 = vpop.f32.mrf.mxu1 }
 0x57e   : > { %v1346_v38 = vmul.f32 %v1345_v33, %v1338_v36  ;;  %v1427_v40 = vmul.f32 %v1426_v35, %v1419_v37 }
 0x57f   : > { %v2240_v41 = vpop.f32.mrf.mxu0  ;;  %v2245_v42 = vpop.f32.mrf.mxu1 }
 0x580   : > { %v1352_v43 = vadd.f32 %v1351_v39, %v1346_v38  ;;  %v1911_v41 = vld [vmem:[%s2737_s13 + $0x60] sm:$0xff]  ;;  %v1909_v42 = vld [vmem:[%s2737_s13 + $0x50] sm:$0xff] }
 0x582   : > { %v1428_v45 = vadd.f32 %v1427_v40, %v1352_v43  ;;  %v1913_v40 = vld [vmem:[%s2737_s13 + $0x70] sm:$0x7]  ;;  %v1908_v43 = vld [vmem:[%s2737_s13 + $0x48] sm:$0xff] }
 0x584   : > { %v1437_v46 = vadd.f32 %v2092_v44, %v1428_v45  ;;  %v1907_v44 = vld [vmem:[%s2737_s13 + $0x40] sm:$0xff]  ;;  %v1906_v45 = vld [vmem:[%s2737_s13 + $0x38] sm:$0xff] }
 0x586   : > { %v1439_v47 = vmul.f32 0.044715, %v1437_v46  ;;  %v1438_v53 = vmul.f32 0.5, %v1437_v46 }
 0x588   : > { %v1440_v48 = vmul.f32 %v1439_v47, %v1437_v46  ;;  %v1904_v47 = vld [vmem:[%s2737_s13 + $0x28] sm:$0xff] }
 0x58a   : > { %v1441_v49 = vmul.f32 %v1440_v48, %v1437_v46  ;;  %v1903_v48 = vld [vmem:[%s2737_s13 + $0x20] sm:$0xff] }
 0x58c   : > { %v1442_v50 = vadd.f32 %v1441_v49, %v1437_v46  ;;  %v1905_v46 = vld [vmem:[%s2737_s13 + $0x30] sm:$0xff]  ;;  %v1902_v49 = vld [vmem:[%s2737_s13 + $0x18] sm:$0xff] }
 0x58e   : > { %v1443_v51 = vmul.f32 0.7978846, %v1442_v50  ;;  %v1901_v50 = vld [vmem:[%s2737_s13 + $0x10] sm:$0xff] }
 0x590   : > { %2324 = vtanh.f32 %v1443_v51  ;;  %v1900_v51 = vld [vmem:[%s2737_s13 + $0x8] sm:$0xff] }
 0x59d   : > { %v2325_v52 = vpop.eup %2324 }
 0x59e   : > { %v1445_v54 = vadd.f32 1.0, %v2325_v52  ;;  %v1899_v52 = vld [vmem:[%s2737_s13] sm:$0xff] }
 0x5a0   : > { %v1446_v55 = vmul.f32 %v1445_v54, %v1438_v53  ;;  %v1721_v53 = vld [vmem:[%s2735_s11] sm:$0x7] }
 0x5a1   : > { %v1798_v54 = vrot.slane %v1721_v53, %v2553_v5 }
 0x5a2   : > { %2247 = vmatpush3.msk.msra.mxu0 %vm965_vm5, %v1446_v55  ;;  %2252 = vmatpush3.msk.msra.mxu1 %vm965_vm5, %v1446_v55  ;;  %v1531_v8 = vmul.f32 %v1530_v62, %v1446_v55  ;;  %v1803_v55 = vrot.slane %v1721_v53, %v2555_v6 }
 0x5a3   : > { %2249 = vmatmul.mubr.msk.f32.vlgmr.msra.gmra.mxu0 %vm1083_vm7, %v2534_v1  ;;  %2254 = vmatmul.mubr.msk.f32.vlgmr.msra.gmra.mxu1 %vm1083_vm7, %v2546_v2 }
 0x5a4   : > { %2256 = vmatprep.subr.mxu1 %v2340_v0  ;;  %2264 = vmatprep.mubr.msk.f32.mxu1 %vm2341_vm0, %v2340_v0 }
 0x5a5   : > { %2277 = vmatprep.subr.mxu0 %v2340_v0  ;;  %2307 = vmatprep.mubr.msk.f32.mxu0 %vm2341_vm0, %v2340_v0 }
 0x5a6   : > { %2257 = vmatpush3.msra.mxu1 %v1631_v56  ;;  %2278 = vmatpush3.msk.msra.mxu0 %vm1925_vm8, %v1913_v40 }
 0x5a7   : > { %2258 = vmatprep.subr.mxu1 %v2340_v0  ;;  %2279 = vmatprep.subr.mxu0 %v2340_v0 }
 0x5a8   : > { %2259 = vmatpush3.msra.mxu1 %v1630_v57 }
 0x5a9   : > { %2260 = vmatprep.subr.mxu1 %v2340_v0 }
 0x5aa   : > { %2261 = vmatpush3.msra.mxu1 %v1629_v58  ;;  %v1879_v58 = vrot.slane %v1721_v53, %v2561_v9 }
 0x5ab   : > { %2262 = vmatprep.subr.mxu1 %v2340_v0 }
 0x5ac   : > { %2263 = vmatpush3.msra.mxu1 %v1628_v59 }
 0x5ad   : > { %2267 = vmatprep.subr.mxu1 %v2340_v0 }
 0x663   : > { %v1518_v3 = vpop.f32.mrf.mxu0  ;;  %v1599_v4 = vpop.f32.mrf.mxu1 }
 0x664   : > { %v1526_v7 = vmul.f32 %v1525_v61, %v1518_v3  ;;  %v1607_v10 = vmul.f32 %v1606_v63, %v1599_v4 }
 0x665   : > { %v2250_v11 = vpop.f32.mrf.mxu0  ;;  %v2255_v12 = vpop.f32.mrf.mxu1 }
 0x666   : > { %v1532_v13 = vadd.f32 %v1531_v8, %v1526_v7 }
 0x668   : > { %v1608_v15 = vadd.f32 %v1607_v10, %v1532_v13 }
 0x66a   : > { %v1617_v16 = vadd.f32 %v2099_v14, %v1608_v15  ;;  %v2107_v15 = vld [vmem:[%s2738_s14] ss:$0 sm:$0xff] }
 0x66c   : > { %v1619_v17 = vmul.f32 0.044715, %v1617_v16  ;;  %v1618_v23 = vmul.f32 0.5, %v1617_v16 }
 0x66e   : > { %v1620_v18 = vmul.f32 %v1619_v17, %v1617_v16 }
 0x670   : > { %v1621_v19 = vmul.f32 %v1620_v18, %v1617_v16 }
 0x672   : > { %v1622_v20 = vadd.f32 %v1621_v19, %v1617_v16 }
 0x674   : > { %v1623_v21 = vmul.f32 0.7978846, %v1622_v20 }
 0x676   : > { %2326 = vtanh.f32 %v1623_v21 }
 0x683   : > { %v2327_v22 = vpop.eup %2326 }
 0x684   : > { %v1625_v24 = vadd.f32 1.0, %v2327_v22 }
 0x686   : > { %v1626_v25 = vmul.f32 %v1625_v24, %v1618_v23 }
 0x688   : > { %v2626_v26 = vmul.f32 0.999995, %v1626_v25 }
 0x68a   : > { %2265 = vmatmul.mubr.msk.f32.vlgmr.msra.gmra.mxu1 %vm1007_vm6, %v2626_v26 }
 0x68b   : > { %2269 = vmatprep.mubr.msk.f32.mxu1 %vm2341_vm0, %v2340_v0 }
 0x74a   : > { %v1708_v28 = vpop.f32.mrf.mxu1 }
 0x74b   : > { %v1709_v29 = vadd.f32 %v2100_v27, %v1708_v28 }
 0x74c   : > { %v2266_v30 = vpop.f32.mrf.mxu1 }
 0x74d   : > { %v1713_v31 = vmul.f32 0.044715, %v1709_v29  ;;  %v1712_v37 = vmul.f32 0.5, %v1709_v29 }
 0x74f   : > { %v1714_v32 = vmul.f32 %v1713_v31, %v1709_v29 }
 0x751   : > { %v1715_v33 = vmul.f32 %v1714_v32, %v1709_v29 }
 0x753   : > { %v1716_v34 = vadd.f32 %v1715_v33, %v1709_v29 }
 0x755   : > { %v1717_v35 = vmul.f32 0.7978846, %v1716_v34 }
 0x757   : > { %2328 = vtanh.f32 %v1717_v35 }
 0x764   : > { %v2329_v36 = vpop.eup %2328 }
 0x765   : > { %v1719_v38 = vadd.f32 1.0, %v2329_v36 }
 0x767   : > { %v1720_v39 = vmul.f32 %v1719_v38, %v1712_v37 }
 0x769   : > { %2268 = vmatpush3.msk.msra.mxu1 %vm965_vm5, %v1720_v39  ;;  %v1804_v60 = vmul.f32 %v1803_v55, %v1720_v39 }
 0x76a   : > { %2270 = vmatmul.mubr.msk.f32.vlgmr.msra.gmra.mxu1 %vm1083_vm7, %v2534_v1  ;;  %2272 = vmatprep.subr.mxu1 %v2340_v0  ;;  %v1912_v1 = vld [vmem:[%s2737_s13 + $0x68] sm:$0xff] }
 0x76b   : > { %2273 = vmatpush3.msk.msra.mxu1 %vm965_vm5, %v1720_v39  ;;  %2274 = vmatprep.mubr.msk.f32.mxu1 %vm2341_vm0, %v2340_v0 }
 0x76c   : > { %2280 = vmatpush3.msra.mxu0 %v1912_v1 }
 0x76d   : > { %2281 = vmatprep.subr.mxu0 %v2340_v0 }
 0x76e   : > { %2275 = vmatmul.mubr.msk.f32.vlgmr.msra.gmra.mxu1 %vm1083_vm7, %v2546_v2  ;;  %2282 = vmatpush3.msra.mxu0 %v1911_v41  ;;  %v1910_v2 = vld [vmem:[%s2737_s13 + $0x58] sm:$0xff] }
 0x76f   : > { %2283 = vmatprep.subr.mxu0 %v2340_v0 }
 0x770   : > { %2284 = vmatpush3.msra.mxu0 %v1910_v2 }
 0x771   : > { %2285 = vmatprep.subr.mxu0 %v2340_v0 }
 0x772   : > { %2286 = vmatpush3.msra.mxu0 %v1909_v42 }
 0x773   : > { %2287 = vmatprep.subr.mxu0 %v2340_v0 }
 0x774   : > { %2288 = vmatpush3.msra.mxu0 %v1908_v43 }
 0x775   : > { %2289 = vmatprep.subr.mxu0 %v2340_v0 }
 0x776   : > { %2290 = vmatpush3.msra.mxu0 %v1907_v44 }
 0x777   : > { %2291 = vmatprep.subr.mxu0 %v2340_v0 }
 0x778   : > { %2292 = vmatpush3.msra.mxu0 %v1906_v45 }
 0x779   : > { %2293 = vmatprep.subr.mxu0 %v2340_v0 }
 0x77a   : > { %2294 = vmatpush3.msra.mxu0 %v1905_v46 }
 0x77b   : > { %2295 = vmatprep.subr.mxu0 %v2340_v0 }
 0x77c   : > { %2296 = vmatpush3.msra.mxu0 %v1904_v47 }
 0x77d   : > { %2297 = vmatprep.subr.mxu0 %v2340_v0 }
 0x77e   : > { %2298 = vmatpush3.msra.mxu0 %v1903_v48 }
 0x77f   : > { %2299 = vmatprep.subr.mxu0 %v2340_v0 }
 0x780   : > { %2300 = vmatpush3.msra.mxu0 %v1902_v49 }
 0x781   : > { %2301 = vmatprep.subr.mxu0 %v2340_v0 }
 0x782   : > { %2302 = vmatpush3.msra.mxu0 %v1901_v50 }
 0x783   : > { %2303 = vmatprep.subr.mxu0 %v2340_v0 }
 0x784   : > { %2304 = vmatpush3.msra.mxu0 %v1900_v51 }
 0x785   : > { %2305 = vmatprep.subr.mxu0 %v2340_v0  ;;  %v2106_v0 = vld [vmem:[%s2736_s12] ss:$0 sm:$0xff] }
 0x786   : > { %2306 = vmatpush3.msra.mxu0 %v1899_v52 }
 0x82a   : > { %v1791_v56 = vpop.f32.mrf.mxu1 }
 0x82b   : > { %v1799_v57 = vmul.f32 %v1798_v54, %v1791_v56 }
 0x82c   : > { %v2271_v59 = vpop.f32.mrf.mxu1 }
 0x82d   : > { %v1805_v62 = vadd.f32 %v1804_v60, %v1799_v57 }
 0x82e   : > { %v1872_v61 = vpop.f32.mrf.mxu1 }
 0x82f   : > { %v1880_v63 = vmul.f32 %v1879_v58, %v1872_v61 }
 0x830   : > { %v2276_v3 = vpop.f32.mrf.mxu1 }
 0x831   : > { %v1881_v4 = vadd.f32 %v1880_v63, %v1805_v62 }
 0x833   : > { %v1889_v7 = vadd.f32 %v2106_v0, %v1881_v4 }
 0x835   : > { %v1891_v5 = vmul.f32 0.044715, %v1889_v7  ;;  %v1890_v12 = vmul.f32 0.5, %v1889_v7 }
 0x837   : > { %v1892_v8 = vmul.f32 %v1891_v5, %v1889_v7 }
 0x839   : > { %v1893_v6 = vmul.f32 %v1892_v8, %v1889_v7 }
 0x83b   : > { %v1894_v10 = vadd.f32 %v1893_v6, %v1889_v7 }
 0x83d   : > { %v1895_v11 = vmul.f32 0.7978846, %v1894_v10 }
 0x83f   : > { %2330 = vtanh.f32 %v1895_v11 }
 0x84c   : > { %v2331_v9 = vpop.eup %2330 }
 0x84d   : > { %v1897_v13 = vadd.f32 1.0, %v2331_v9 }
 0x84f   : > { %v1898_v14 = vmul.f32 %v1897_v13, %v1890_v12 }
 0x851   : > { %2308 = vmatmul.mubr.msk.f32.vlgmr.msra.gmra.mxu0 %vm1921_vm9, %v1898_v14 }
 0x911   : > { %v1995_v16 = vpop.f32.mrf.mxu0 }
 0x912   : > { %v1996_v17 = vadd.f32 %v2107_v15, %v1995_v16 }
 0x913   : > { %v2309_v18 = vpop.f32.mrf.mxu0 }
 0x914   : > { %v1999_v19 = vadd.f32 %v1996_v17, %v2626_v26 }
 0x916   : > { %2000 = vst.msk [vmem:[%s492_s28] sm:$0x1f] %vm961_vm4, %v1999_v19 }
 0x917 PF: > { %s25_s18 = sadd.s32 1, %s2338_s18  }
 0x918   : > { %p22_p4 = scmp.ge.s32.totalorder %s25_s18, 4  }
 0x91a   :  { %24 = sbr.rel (!%p22_p4) target bundleno = 1 (0x1), region = 119 }

// kernel: fea_cnn_forward.10
= control target key start
LH: loop header
LB: loop body
LE: loop exit
PB: predicated region body
PF: predicated region fallthrough
CT: control target
= control target key end

     0   :  { %s2434_s18 = smov 0   ;;  %s2757_s0 = inlined_call_operand.vmem [shape: f32[2,5,32], index: 0, kind: input, shape index: {}]   ;;  %s2758_s1 = inlined_call_operand.vmem [shape: f32[3,2,5], index: 1, kind: input, shape index: {}]   ;;  %s2759_s2 = inlined_call_operand.vmem [shape: f32[3,32,32], index: 2, kind: input, shape index: {}]   ;;  %s2760_s3 = inlined_call_operand.vmem [shape: f32[1,32], index: 3, kind: input, shape index: {}]   ;;  %s2761_s4 = inlined_call_operand.vmem [shape: f32[2,2,2], index: 4, kind: input, shape index: {}]   ;;  %s2762_s5 = inlined_call_operand.vmem [shape: f32[32,32], index: 5, kind: input, shape index: {}]   ;;  %s2763_s6 = inlined_call_operand.vmem [shape: f32[1,32], index: 6, kind: input, shape index: {}]   ;;  %s2764_s7 = inlined_call_operand.vmem [shape: f32[3,3,32], index: 7, kind: input, shape index: {}]   ;;  %s2765_s8 = inlined_call_operand.vmem [shape: f32[3,1,32], index: 8, kind: input, shape index: {}]   ;;  %s2766_s9 = inlined_call_operand.vmem [shape: f32[32,115], index: 9, kind: input, shape index: {}]   ;;  %s2767_s10 = inlined_call_operand.vmem [shape: f32[1,115], index: 10, kind: input, shape index: {}]   ;;  %s2768_s11 = inlined_call_operand.vmem [shape: f32[3,115], index: 11, kind: input, shape index: {}]   ;;  %s2769_s12 = inlined_call_operand.vmem [shape: f32[1,115], index: 12, kind: input, shape index: {}]   ;;  %s2770_s13 = inlined_call_operand.vmem [shape: f32[115,32], index: 13, kind: input, shape index: {}]   ;;  %s2771_s14 = inlined_call_operand.vmem [shape: f32[1,32], index: 14, kind: input, shape index: {}]   ;;  %s2772_s15 = inlined_call_operand.vmem [shape: f32[2,2,32], index: 15, kind: output, shape index: {}]  }
   0x1 LB: > { %s2055_s19 = sadd.s32 4294967295, %s2350_s18   ;;  %p2059_p0 = scmp.ge.s32.totalorder %s2350_s18, 1  ;;  %s2350_s18 = sphi %s2434_s18, %s25_s18  }
   0x2   : > { %p436_p1 = scmp.lt.s32.totalorder %s2350_s18, 3 }
   0x4   : > { %p437_p2 = pnand %p2059_p0, %p436_p1 }
   0x5   : > { %p482_p3 = scmp.lt.s32.totalorder (!%p437_p2), %s2055_s19, 1 }
   0x6   : > { %440 = sbr.rel (%p437_p2) target bundleno = 2333 (0x91d), region = 80 }
   0xb   : > { %v2352_v0 = vmov 0.0   ;;  %vm2353_vm0 = vmmov 0   ;;  %s2774_s19 = smov (!%p482_p3, %s2055_s19), 1  ;;  %vm496_vm1 = vcmask 1044480   ;;  %vm492_vm2 = vcmask 39936   ;;  %v2070_v4 = vld [vmem:[%s2759_s2 + $0x38] sm:$0xff] }
   0xc   : > { %2184 = vmatprep.subr.mxu1 %v2352_v0  ;;  %2186 = vmatprep.mubr.msk.f32.mxu1 %vm2353_vm0, %v2352_v0  ;;  %s2060_s20 = sshll.u32 %s2774_s19, 3  ;;  %v2064_v1 = vld [vmem:[%s2758_s1 + $0x2] sm:$0x3]  ;;  %v491_v2 = vld [vmem:[%s2758_s1] sm:$0x3]  ;;  %v2069_v5 = vld [vmem:[%s2759_s2 + $0x30] sm:$0xff] }
   0xd   : > { %2179 = vmatprep.subr.mxu0 %v2352_v0  ;;  %2181 = vmatprep.mubr.msk.f32.mxu0 %vm2353_vm0, %v2352_v0  ;;  %s485_s23 = scalar_lea.vmem %s2757_s0, %s2060_s20  ;;  %v2068_v6 = vld [vmem:[%s2759_s2 + $0x28] sm:$0xff]  ;;  %v2067_v7 = vld [vmem:[%s2759_s2 + $0x20] sm:$0xff]  ;;  %vm654_vm3 = vcmask 261120   ;;  %v573_v8 = vld [vmem:[%s2759_s2 + $0x18] sm:$0xff]  ;;  %vm963_vm4 = vcmask 254976   ;;  %vm967_vm5 = vcmask 1041408  }
   0xe   : > { %v490_v3 = vld [vmem:[%s485_s23] sm:$0x1f]  ;;  %v572_v11 = vld [vmem:[%s2759_s2 + $0x10] sm:$0xff]  ;;  %v571_v14 = vld [vmem:[%s2759_s2 + $0x8] sm:$0xff]  ;;  %vm1084_vm6 = vcmask 15360   ;;  %vm1926_vm7 = vcmask 1042432  }
   0xf   : > { %2185 = vmatpush3.msk.msra.mxu1 %vm496_vm1, %v490_v3  ;;  %2180 = vmatpush3.msk.msra.mxu0 %vm496_vm1, %v490_v3  ;;  %v570_v15 = vld [vmem:[%s2759_s2] sm:$0xff]  ;;  %v2079_v17 = vld [vmem:[%s2759_s2 + $0x58] sm:$0xff]  ;;  %v2078_v18 = vld [vmem:[%s2759_s2 + $0x50] sm:$0xff]  ;;  %vm1922_vm8 = vcmask 941056   ;;  %s2061_s24 = sshll.u32 %s2774_s19, 1 }
  0x10   : > { %2187 = vmatmul.mubr.msk.f32.vlgmr.msra.gmra.mxu1 %vm492_vm2, %v2064_v1  ;;  %2182 = vmatmul.mubr.msk.f32.vlgmr.msra.gmra.mxu0 %vm492_vm2, %v491_v2  ;;  %v2073_v16 = vld [vmem:[%s2758_s1 + $0x4] sm:$0x3]  ;;  %v2077_v19 = vld [vmem:[%s2759_s2 + $0x48] sm:$0xff]  ;;  %v2081_v29 = vld [vmem:[%s2760_s3] ss:$0 sm:$0xff]  ;;  %s489_s27 = scalar_lea.vmem %s2772_s15, %s2061_s24 }
  0x11   : > { %2189 = vmatprep.subr.mxu0 %v2352_v0  ;;  %2197 = vmatprep.mubr.msk.f32.mxu0 %vm2353_vm0, %v2352_v0  ;;  %v2076_v20 = vld [vmem:[%s2759_s2 + $0x40] sm:$0xff]  ;;  %v1001_v36 = vld [vmem:[%s2762_s5 + $0x18] sm:$0xff]  ;;  %v1000_v37 = vld [vmem:[%s2762_s5 + $0x10] sm:$0xff] }
  0x12   : > { %2190 = vmatpush3.msra.mxu0 %v2070_v4  ;;  %2216 = vmatprep.subr.mxu1 %v2352_v0  ;;  %v999_v38 = vld [vmem:[%s2762_s5 + $0x8] sm:$0xff]  ;;  %v998_v39 = vld [vmem:[%s2762_s5] sm:$0xff] }
  0x13   : > { %2191 = vmatprep.subr.mxu0 %v2352_v0  ;;  %2224 = vmatprep.mubr.msk.f32.mxu1 %vm2353_vm0, %v2352_v0  ;;  %v2083_v1 = vld [vmem:[%s2763_s6] ss:$0 sm:$0xff] }
  0x14   : > { %2192 = vmatpush3.msra.mxu0 %v2069_v5  ;;  %2217 = vmatpush3.msra.mxu1 %v2079_v17 }
  0x15   : > { %2193 = vmatprep.subr.mxu0 %v2352_v0  ;;  %2218 = vmatprep.subr.mxu1 %v2352_v0 }
  0x16   : > { %2194 = vmatpush3.msra.mxu0 %v2068_v6  ;;  %2219 = vmatpush3.msra.mxu1 %v2078_v18  ;;  %v2567_v6 = vld [vmem:[%s2761_s4] sm:$0x3] }
  0x17   : > { %2195 = vmatprep.subr.mxu0 %v2352_v0  ;;  %2220 = vmatprep.subr.mxu1 %v2352_v0 }
  0x18   : > { %2196 = vmatpush3.msra.mxu0 %v2067_v7  ;;  %2221 = vmatpush3.msra.mxu1 %v2077_v19  ;;  %v2579_v7 = vld [vmem:[%s2761_s4 + $0x2] sm:$0x3] }
  0x19   : > { %2200 = vmatprep.subr.mxu0 %v2352_v0  ;;  %2222 = vmatprep.subr.mxu1 %v2352_v0 }
  0x1a   : > { %2223 = vmatpush3.msra.mxu1 %v2076_v20 }
  0x1b   : > { %2248 = vmatprep.subr.mxu1 %v2352_v0 }
  0xd0   : > { %v645_v9 = vpop.f32.mrf.mxu1  ;;  %v566_v10 = vpop.f32.mrf.mxu0 }
  0xd1   : > { %2198 = vmatmul.mubr.msk.f32.vlgmr.msra.gmra.mxu0 %vm654_vm3, %v645_v9 }
  0xd2   : > { %2201 = vmatpush3.msra.mxu0 %v573_v8  ;;  %v2188_v12 = vpop.f32.mrf.mxu1  ;;  %v2183_v13 = vpop.f32.mrf.mxu0  ;;  %2208 = vmatprep.mubr.msk.f32.mxu0 %vm2353_vm0, %v2352_v0  ;;  %v1161_v8 = vlaneseq }
  0xd3   : > { %2202 = vmatprep.subr.mxu0 %v2352_v0  ;;  %v1083_v12 = vld [vmem:[%s2764_s7] sm:$0x7] }
  0xd4   : > { %2203 = vmatpush3.msra.mxu0 %v572_v11  ;;  %v1162_v9 = vshrl.u32 %v1161_v8, 7 }
  0xd5   : > { %2204 = vmatprep.subr.mxu0 %v2352_v0 }
  0xd6   : > { %2205 = vmatpush3.msra.mxu0 %v571_v14  ;;  %v2588_v11 = vsub.s32 1, %v1162_v9  ;;  %v2594_v14 = vsub.s32 2, %v1162_v9 }
  0xd7   : > { %2206 = vmatprep.subr.mxu0 %v2352_v0 }
  0xd8   : > { %2207 = vmatpush3.msra.mxu0 %v570_v15  ;;  %v1169_v15 = vrot.slane %v1083_v12, %v2588_v11  ;;  %v1248_v18 = vrot.slane %v1083_v12, %v2594_v14 }
  0xd9   : > { %2209 = vmatmul.mubr.msk.f32.vlgmr.msra.gmra.mxu0 %vm654_vm3, %v566_v10  ;;  %2211 = vmatprep.subr.mxu0 %v2352_v0  ;;  %v2586_v10 = vsub.s32 0, %v1162_v9 }
  0xda   : > { %2212 = vmatpush3.msk.msra.mxu0 %vm496_vm1, %v490_v3  ;;  %2213 = vmatprep.mubr.msk.f32.mxu0 %vm2353_vm0, %v2352_v0 }
  0xdb   : > { %2227 = vmatprep.subr.mxu0 %v2352_v0  ;;  %v1164_v13 = vrot.slane %v1083_v12, %v2586_v10 }
  0xdd   : > { %2214 = vmatmul.mubr.msk.f32.vlgmr.msra.gmra.mxu0 %vm492_vm2, %v2073_v16 }
  0xde   : > { %2235 = vmatprep.mubr.msk.f32.mxu0 %vm2353_vm0, %v2352_v0  ;;  %2228 = vmatpush3.msra.mxu0 %v1001_v36 }
  0xdf   : > { %2229 = vmatprep.subr.mxu0 %v2352_v0 }
  0xe0   : > { %2230 = vmatpush3.msra.mxu0 %v1000_v37  ;;  %v2090_v37 = vld [vmem:[%s2764_s7 + $0x4] sm:$0x7] }
  0xe1   : > { %2231 = vmatprep.subr.mxu0 %v2352_v0 }
  0xe2   : > { %2232 = vmatpush3.msra.mxu0 %v999_v38  ;;  %v1346_v38 = vrot.slane %v2090_v37, %v2586_v10 }
  0xe3   : > { %2233 = vmatprep.subr.mxu0 %v2352_v0 }
  0xe4   : > { %2234 = vmatpush3.msra.mxu0 %v998_v39  ;;  %v1351_v39 = vrot.slane %v2090_v37, %v2588_v11 }
  0xe5   : > { %2238 = vmatprep.subr.mxu0 %v2352_v0 }
 0x191   : > { %v724_v21 = vpop.f32.mrf.mxu0 }
 0x193   : > { %v2199_v22 = vpop.f32.mrf.mxu0 }
 0x199   : > { %v797_v23 = vpop.f32.mrf.mxu0 }
 0x19a   : > { %v798_v24 = vadd.f32 %v797_v23, %v724_v21 }
 0x19b   : > { %v2210_v25 = vpop.f32.mrf.mxu0 }
 0x19d   : > { %v872_v26 = vpop.f32.mrf.mxu0 }
 0x19e   : > { %2225 = vmatmul.mubr.msk.f32.vlgmr.msra.gmra.mxu1 %vm654_vm3, %v872_v26 }
 0x19f   : > { %v2215_v27 = vpop.f32.mrf.mxu0  ;;  %2250 = vmatprep.mubr.msk.f32.mxu1 %vm2353_vm0, %v2352_v0 }
 0x25e   : > { %v950_v28 = vpop.f32.mrf.mxu1 }
 0x25f   : > { %v954_v30 = vadd.f32 %v950_v28, %v798_v24  ;;  %v2089_v24 = vld [vmem:[%s2765_s8] ss:$0 sm:$0xff] }
 0x260   : > { %v2226_v31 = vpop.f32.mrf.mxu1 }
 0x261   : > { %v962_v32 = vadd.f32 %v2081_v29, %v954_v30 }
 0x263   : > { %v964_v33 = vsel %vm963_vm4, %v962_v32, 0.0  ;;  %v977_v34 = vmul.f32 %v962_v32, %v962_v32 }
 0x264   : > { %965 = vadd.xlane.f32.xlu0 %v964_v33 }
 0x265   : > { %v978_v35 = vsel %vm963_vm4, %v977_v34, 0.0 }
 0x268   : > { %979 = vadd.xlane.f32.xlu0 %v978_v35 }
 0x2ed   : > { %v966_v40 = vpop.xlane.xlu0 %965 }
 0x2ee   : > { %v968_v41 = vsel %vm967_vm5, %v966_v40, 0.0  ;;  %v1427_v40 = vrot.slane %v2090_v37, %v2594_v14 }
 0x2ef   : > { %v969_v42 = vrot.slane %v968_v41, 4 }
 0x2f1   : > { %v970_v43 = vadd.f32 %v969_v42, %v968_v41  ;;  %v980_v44 = vpop.xlane.xlu0 %979 }
 0x2f2   : > { %v981_v45 = vsel %vm967_vm5, %v980_v44, 0.0 }
 0x2f3   : > { %v971_v46 = vrot.slane %v970_v43, 2  ;;  %v982_v47 = vrot.slane %v981_v45, 4 }
 0x2f5   : > { %v972_v48 = vadd.f32 %v971_v46, %v970_v43  ;;  %v983_v49 = vadd.f32 %v982_v47, %v981_v45 }
 0x2f7   : > { %v973_v50 = vrot.slane %v972_v48, 1  ;;  %v984_v51 = vrot.slane %v983_v49, 2 }
 0x2f9   : > { %v974_v52 = vadd.f32 %v973_v50, %v972_v48  ;;  %v985_v53 = vadd.f32 %v984_v51, %v983_v49  ;;  %v2096_v49 = vld [vmem:[%s2765_s8 + $0x1] ss:$0 sm:$0xff] }
 0x2fb   : > { %v976_v54 = vmul.f32 0.015625, %v974_v52  ;;  %v986_v55 = vrot.slane %v985_v53, 1 }
 0x2fd   : > { %v987_v56 = vadd.f32 %v986_v55, %v985_v53  ;;  %v990_v57 = vmul.f32 %v976_v54, %v976_v54  ;;  %v989_v61 = vsub.f32 %v962_v32, %v976_v54 }
 0x2ff   : > { %v988_v58 = vmul.f32 0.015625, %v987_v56 }
 0x301   : > { %v991_v59 = vsub.f32 %v988_v58, %v990_v57 }
 0x303   : > { %v992_v60 = vadd.f32 1e-05, %v991_v59 }
 0x305   : > { %2332 = vrsqrt.f32 %v992_v60 }
 0x312   : > { %v2333_v62 = vpop.eup %2332 }
 0x313   : > { %v994_v63 = vmul.f32 %v2333_v62, %v989_v61  ;;  %v1632_v61 = vld [vmem:[%s2766_s9 + $0x18] sm:$0xff]  ;;  %v1631_v62 = vld [vmem:[%s2766_s9 + $0x10] sm:$0xff] }
 0x315   : > { %2236 = vmatmul.mubr.msk.f32.vlgmr.msra.gmra.mxu0 %vm654_vm3, %v994_v63 }
 0x316   : > { %2240 = vmatprep.mubr.msk.f32.mxu0 %vm2353_vm0, %v2352_v0 }
 0x3d5   : > { %v1078_v2 = vpop.f32.mrf.mxu0 }
 0x3d6   : > { %v1079_v3 = vadd.f32 %v2083_v1, %v1078_v2  ;;  %v1629_v1 = vld [vmem:[%s2766_s9] sm:$0xff]  ;;  %v2097_v2 = vld [vmem:[%s2764_s7 + $0x8] sm:$0x7] }
 0x3d7   : > { %v2237_v4 = vpop.f32.mrf.mxu0 }
 0x3d8   : > { %v1082_v5 = vadd.f32 %v1079_v3, %v994_v63  ;;  %v1630_v63 = vld [vmem:[%s2766_s9 + $0x8] sm:$0xff]  ;;  %v1526_v3 = vrot.slane %v2097_v2, %v2586_v10  ;;  %v1531_v4 = vrot.slane %v2097_v2, %v2588_v11 }
 0x3da   : > { %2239 = vmatpush3.msk.msra.mxu0 %vm967_vm5, %v1082_v5  ;;  %v1170_v20 = vmul.f32 %v1169_v15, %v1082_v5 }
 0x3db   : > { %2241 = vmatmul.mubr.msk.f32.vlgmr.msra.gmra.mxu0 %vm1084_vm6, %v2567_v6  ;;  %2243 = vmatprep.subr.mxu0 %v2352_v0 }
 0x3dc   : > { %2244 = vmatpush3.msk.msra.mxu0 %vm967_vm5, %v1082_v5  ;;  %2245 = vmatprep.mubr.msk.f32.mxu0 %vm2353_vm0, %v2352_v0  ;;  %v1607_v5 = vrot.slane %v2097_v2, %v2594_v14 }
 0x3dd   : > { %2253 = vmatprep.subr.mxu0 %v2352_v0 }
 0x3df   : > { %2246 = vmatmul.mubr.msk.f32.vlgmr.msra.gmra.mxu0 %vm1084_vm6, %v2579_v7 }
 0x3e0   : > { %2255 = vmatprep.mubr.msk.f32.mxu0 %vm2353_vm0, %v2352_v0 }
 0x49b   : > { %v1157_v16 = vpop.f32.mrf.mxu0 }
 0x49c   : > { %v1165_v17 = vmul.f32 %v1164_v13, %v1157_v16 }
 0x49d   : > { %v2242_v19 = vpop.f32.mrf.mxu0 }
 0x49e   : > { %v1171_v22 = vadd.f32 %v1170_v20, %v1165_v17  ;;  %v2103_v19 = vld [vmem:[%s2765_s8 + $0x2] ss:$0 sm:$0xff] }
 0x49f   : > { %v1241_v21 = vpop.f32.mrf.mxu0 }
 0x4a0   : > { %v1249_v23 = vmul.f32 %v1248_v18, %v1241_v21 }
 0x4a1   : > { %v2247_v25 = vpop.f32.mrf.mxu0 }
 0x4a2   : > { %v1250_v26 = vadd.f32 %v1249_v23, %v1171_v22 }
 0x4a4   : > { %v1258_v27 = vadd.f32 %v2089_v24, %v1250_v26 }
 0x4a6   : > { %v1260_v28 = vmul.f32 0.044715, %v1258_v27  ;;  %v1259_v34 = vmul.f32 0.5, %v1258_v27 }
 0x4a8   : > { %v1261_v29 = vmul.f32 %v1260_v28, %v1258_v27 }
 0x4aa   : > { %v1262_v30 = vmul.f32 %v1261_v29, %v1258_v27 }
 0x4ac   : > { %v1263_v31 = vadd.f32 %v1262_v30, %v1258_v27 }
 0x4ae   : > { %v1264_v32 = vmul.f32 0.7978846, %v1263_v31 }
 0x4b0   : > { %2334 = vtanh.f32 %v1264_v32  ;;  %v2104_v32 = vld [vmem:[%s2767_s10] ss:$0 sm:$0xff] }
 0x4bd   : > { %v2335_v33 = vpop.eup %2334 }
 0x4be   : > { %v1266_v35 = vadd.f32 1.0, %v2335_v33 }
 0x4c0   : > { %v1267_v36 = vmul.f32 %v1266_v35, %v1259_v34 }
 0x4c2   : > { %2249 = vmatpush3.msk.msra.mxu1 %vm967_vm5, %v1267_v36  ;;  %2254 = vmatpush3.msk.msra.mxu0 %vm967_vm5, %v1267_v36  ;;  %v1352_v44 = vmul.f32 %v1351_v39, %v1267_v36 }
 0x4c3   : > { %2251 = vmatmul.mubr.msk.f32.vlgmr.msra.gmra.mxu1 %vm1084_vm6, %v2567_v6  ;;  %2256 = vmatmul.mubr.msk.f32.vlgmr.msra.gmra.mxu0 %vm1084_vm6, %v2579_v7 }
 0x4c4   : > { %2258 = vmatprep.subr.mxu1 %v2352_v0  ;;  %2263 = vmatprep.subr.mxu0 %v2352_v0 }
 0x4c5   : > { %2260 = vmatprep.mubr.msk.f32.mxu1 %vm2353_vm0, %v2352_v0  ;;  %2265 = vmatprep.mubr.msk.f32.mxu0 %vm2353_vm0, %v2352_v0 }
 0x583   : > { %v1339_v41 = vpop.f32.mrf.mxu1  ;;  %v1420_v42 = vpop.f32.mrf.mxu0 }
 0x584   : > { %v1347_v43 = vmul.f32 %v1346_v38, %v1339_v41  ;;  %v1428_v45 = vmul.f32 %v1427_v40, %v1420_v42 }
 0x585   : > { %v2252_v46 = vpop.f32.mrf.mxu1  ;;  %v2257_v47 = vpop.f32.mrf.mxu0 }
 0x586   : > { %v1353_v48 = vadd.f32 %v1352_v44, %v1347_v43  ;;  %v1912_v46 = vld [vmem:[%s2770_s13 + $0x60] sm:$0xff]  ;;  %v1910_v47 = vld [vmem:[%s2770_s13 + $0x50] sm:$0xff] }
 0x588   : > { %v1429_v50 = vadd.f32 %v1428_v45, %v1353_v48  ;;  %v1914_v45 = vld [vmem:[%s2770_s13 + $0x70] sm:$0x7]  ;;  %v1909_v48 = vld [vmem:[%s2770_s13 + $0x48] sm:$0xff] }
 0x58a   : > { %v1438_v51 = vadd.f32 %v2096_v49, %v1429_v50  ;;  %v1908_v49 = vld [vmem:[%s2770_s13 + $0x40] sm:$0xff]  ;;  %v1907_v50 = vld [vmem:[%s2770_s13 + $0x38] sm:$0xff] }
 0x58c   : > { %v1440_v52 = vmul.f32 0.044715, %v1438_v51  ;;  %v1439_v58 = vmul.f32 0.5, %v1438_v51 }
 0x58e   : > { %v1441_v53 = vmul.f32 %v1440_v52, %v1438_v51  ;;  %v1905_v52 = vld [vmem:[%s2770_s13 + $0x28] sm:$0xff] }
 0x590   : > { %v1442_v54 = vmul.f32 %v1441_v53, %v1438_v51  ;;  %v1904_v53 = vld [vmem:[%s2770_s13 + $0x20] sm:$0xff] }
 0x592   : > { %v1443_v55 = vadd.f32 %v1442_v54, %v1438_v51  ;;  %v1906_v51 = vld [vmem:[%s2770_s13 + $0x30] sm:$0xff]  ;;  %v1903_v54 = vld [vmem:[%s2770_s13 + $0x18] sm:$0xff] }
 0x594   : > { %v1444_v56 = vmul.f32 0.7978846, %v1443_v55  ;;  %v1902_v55 = vld [vmem:[%s2770_s13 + $0x10] sm:$0xff] }
 0x596   : > { %2336 = vtanh.f32 %v1444_v56  ;;  %v1901_v56 = vld [vmem:[%s2770_s13 + $0x8] sm:$0xff] }
 0x5a3   : > { %v2337_v57 = vpop.eup %2336 }
 0x5a4   : > { %v1446_v59 = vadd.f32 1.0, %v2337_v57  ;;  %v1900_v57 = vld [vmem:[%s2770_s13] sm:$0xff] }
 0x5a6   : > { %v1447_v60 = vmul.f32 %v1446_v59, %v1439_v58  ;;  %v1722_v58 = vld [vmem:[%s2768_s11] sm:$0x7] }
 0x5a7   : > { %v1799_v59 = vrot.slane %v1722_v58, %v2586_v10 }
 0x5a8   : > { %2259 = vmatpush3.msk.msra.mxu1 %vm967_vm5, %v1447_v60  ;;  %2264 = vmatpush3.msk.msra.mxu0 %vm967_vm5, %v1447_v60  ;;  %v1532_v13 = vmul.f32 %v1531_v4, %v1447_v60  ;;  %v1804_v60 = vrot.slane %v1722_v58, %v2588_v11 }
 0x5a9   : > { %2261 = vmatmul.mubr.msk.f32.vlgmr.msra.gmra.mxu1 %vm1084_vm6, %v2567_v6  ;;  %2266 = vmatmul.mubr.msk.f32.vlgmr.msra.gmra.mxu0 %vm1084_vm6, %v2579_v7 }
 0x5aa   : > { %2268 = vmatprep.subr.mxu1 %v2352_v0  ;;  %2276 = vmatprep.mubr.msk.f32.mxu1 %vm2353_vm0, %v2352_v0 }
 0x5ab   : > { %2279 = vmatprep.subr.mxu0 %v2352_v0  ;;  %2281 = vmatprep.mubr.msk.f32.mxu0 %vm2353_vm0, %v2352_v0 }
 0x5ac   : > { %2269 = vmatpush3.msra.mxu1 %v1632_v61 }
 0x5ad   : > { %2270 = vmatprep.subr.mxu1 %v2352_v0 }
 0x5ae   : > { %2271 = vmatpush3.msra.mxu1 %v1631_v62 }
 0x5af   : > { %2272 = vmatprep.subr.mxu1 %v2352_v0 }
 0x5b0   : > { %2273 = vmatpush3.msra.mxu1 %v1630_v63  ;;  %v1880_v63 = vrot.slane %v1722_v58, %v2594_v14 }
 0x5b1   : > { %2274 = vmatprep.subr.mxu1 %v2352_v0 }
 0x5b2   : > { %2275 = vmatpush3.msra.mxu1 %v1629_v1 }
 0x5b3   : > { %2289 = vmatprep.subr.mxu1 %v2352_v0 }
 0x669   : > { %v1519_v8 = vpop.f32.mrf.mxu1  ;;  %v1600_v9 = vpop.f32.mrf.mxu0 }
 0x66a   : > { %v1527_v12 = vmul.f32 %v1526_v3, %v1519_v8  ;;  %v1608_v15 = vmul.f32 %v1607_v5, %v1600_v9 }
 0x66b   : > { %v2262_v16 = vpop.f32.mrf.mxu1  ;;  %v2267_v17 = vpop.f32.mrf.mxu0 }
 0x66c   : > { %v1533_v18 = vadd.f32 %v1532_v13, %v1527_v12 }
 0x66e   : > { %v1609_v20 = vadd.f32 %v1608_v15, %v1533_v18 }
 0x670   : > { %v1618_v21 = vadd.f32 %v2103_v19, %v1609_v20  ;;  %v2111_v20 = vld [vmem:[%s2771_s14] ss:$0 sm:$0xff] }
 0x672   : > { %v1620_v22 = vmul.f32 0.044715, %v1618_v21  ;;  %v1619_v28 = vmul.f32 0.5, %v1618_v21 }
 0x674   : > { %v1621_v23 = vmul.f32 %v1620_v22, %v1618_v21 }
 0x676   : > { %v1622_v24 = vmul.f32 %v1621_v23, %v1618_v21 }
 0x678   : > { %v1623_v25 = vadd.f32 %v1622_v24, %v1618_v21 }
 0x67a   : > { %v1624_v26 = vmul.f32 0.7978846, %v1623_v25 }
 0x67c   : > { %2338 = vtanh.f32 %v1624_v26 }
 0x689   : > { %v2339_v27 = vpop.eup %2338 }
 0x68a   : > { %v1626_v29 = vadd.f32 1.0, %v2339_v27 }
 0x68c   : > { %v1627_v30 = vmul.f32 %v1626_v29, %v1619_v28 }
 0x68e   : > { %v2659_v31 = vmul.f32 0.999995, %v1627_v30 }
 0x690   : > { %2277 = vmatmul.mubr.msk.f32.vlgmr.msra.gmra.mxu1 %vm654_vm3, %v2659_v31 }
 0x691   : > { %2319 = vmatprep.mubr.msk.f32.mxu1 %vm2353_vm0, %v2352_v0  ;;  %2290 = vmatpush3.msk.msra.mxu1 %vm1926_vm7, %v1914_v45 }
 0x692   : > { %2291 = vmatprep.subr.mxu1 %v2352_v0 }
 0x750   : > { %v1709_v33 = vpop.f32.mrf.mxu1 }
 0x751   : > { %v1710_v34 = vadd.f32 %v2104_v32, %v1709_v33 }
 0x752   : > { %v2278_v35 = vpop.f32.mrf.mxu1 }
 0x753   : > { %v1714_v36 = vmul.f32 0.044715, %v1710_v34  ;;  %v1713_v42 = vmul.f32 0.5, %v1710_v34 }
 0x755   : > { %v1715_v37 = vmul.f32 %v1714_v36, %v1710_v34 }
 0x757   : > { %v1716_v38 = vmul.f32 %v1715_v37, %v1710_v34 }
 0x759   : > { %v1717_v39 = vadd.f32 %v1716_v38, %v1710_v34 }
 0x75b   : > { %v1718_v40 = vmul.f32 0.7978846, %v1717_v39 }
 0x75d   : > { %2340 = vtanh.f32 %v1718_v40 }
 0x76a   : > { %v2341_v41 = vpop.eup %2340 }
 0x76b   : > { %v1720_v43 = vadd.f32 1.0, %v2341_v41 }
 0x76d   : > { %v1721_v44 = vmul.f32 %v1720_v43, %v1713_v42 }
 0x76f   : > { %2280 = vmatpush3.msk.msra.mxu0 %vm967_vm5, %v1721_v44  ;;  %v1805_v2 = vmul.f32 %v1804_v60, %v1721_v44 }
 0x770   : > { %2282 = vmatmul.mubr.msk.f32.vlgmr.msra.gmra.mxu0 %vm1084_vm6, %v2567_v6  ;;  %2284 = vmatprep.subr.mxu0 %v2352_v0  ;;  %v1913_v6 = vld [vmem:[%s2770_s13 + $0x68] sm:$0xff] }
 0x771   : > { %2285 = vmatpush3.msk.msra.mxu0 %vm967_vm5, %v1721_v44  ;;  %2286 = vmatprep.mubr.msk.f32.mxu0 %vm2353_vm0, %v2352_v0 }
 0x772   : > { %2292 = vmatpush3.msra.mxu1 %v1913_v6 }
 0x773   : > { %2293 = vmatprep.subr.mxu1 %v2352_v0 }
 0x774   : > { %2287 = vmatmul.mubr.msk.f32.vlgmr.msra.gmra.mxu0 %vm1084_vm6, %v2579_v7  ;;  %2294 = vmatpush3.msra.mxu1 %v1912_v46  ;;  %v1911_v7 = vld [vmem:[%s2770_s13 + $0x58] sm:$0xff] }
 0x775   : > { %2295 = vmatprep.subr.mxu1 %v2352_v0 }
 0x776   : > { %2296 = vmatpush3.msra.mxu1 %v1911_v7 }
 0x777   : > { %2297 = vmatprep.subr.mxu1 %v2352_v0 }
 0x778   : > { %2298 = vmatpush3.msra.mxu1 %v1910_v47 }
 0x779   : > { %2299 = vmatprep.subr.mxu1 %v2352_v0 }
 0x77a   : > { %2300 = vmatpush3.msra.mxu1 %v1909_v48 }
 0x77b   : > { %2301 = vmatprep.subr.mxu1 %v2352_v0 }
 0x77c   : > { %2302 = vmatpush3.msra.mxu1 %v1908_v49 }
 0x77d   : > { %2303 = vmatprep.subr.mxu1 %v2352_v0 }
 0x77e   : > { %2304 = vmatpush3.msra.mxu1 %v1907_v50 }
 0x77f   : > { %2305 = vmatprep.subr.mxu1 %v2352_v0 }
 0x780   : > { %2306 = vmatpush3.msra.mxu1 %v1906_v51 }
 0x781   : > { %2307 = vmatprep.subr.mxu1 %v2352_v0 }
 0x782   : > { %2308 = vmatpush3.msra.mxu1 %v1905_v52 }
 0x783   : > { %2309 = vmatprep.subr.mxu1 %v2352_v0 }
 0x784   : > { %2310 = vmatpush3.msra.mxu1 %v1904_v53 }
 0x785   : > { %2311 = vmatprep.subr.mxu1 %v2352_v0 }
 0x786   : > { %2312 = vmatpush3.msra.mxu1 %v1903_v54 }
 0x787   : > { %2313 = vmatprep.subr.mxu1 %v2352_v0 }
 0x788   : > { %2314 = vmatpush3.msra.mxu1 %v1902_v55 }
 0x789   : > { %2315 = vmatprep.subr.mxu1 %v2352_v0 }
 0x78a   : > { %2316 = vmatpush3.msra.mxu1 %v1901_v56 }
 0x78b   : > { %2317 = vmatprep.subr.mxu1 %v2352_v0  ;;  %v2110_v0 = vld [vmem:[%s2769_s12] ss:$0 sm:$0xff] }
 0x78c   : > { %2318 = vmatpush3.msra.mxu1 %v1900_v57 }
 0x830   : > { %v1792_v61 = vpop.f32.mrf.mxu0 }
 0x831   : > { %v1800_v62 = vmul.f32 %v1799_v59, %v1792_v61 }
 0x832   : > { %v2283_v1 = vpop.f32.mrf.mxu0 }
 0x833   : > { %v1806_v4 = vadd.f32 %v1805_v2, %v1800_v62 }
 0x834   : > { %v1873_v3 = vpop.f32.mrf.mxu0 }
 0x835   : > { %v1881_v5 = vmul.f32 %v1880_v63, %v1873_v3 }
 0x836   : > { %v2288_v8 = vpop.f32.mrf.mxu0 }
 0x837   : > { %v1882_v9 = vadd.f32 %v1881_v5, %v1806_v4 }
 0x839   : > { %v1890_v12 = vadd.f32 %v2110_v0, %v1882_v9 }
 0x83b   : > { %v1892_v10 = vmul.f32 0.044715, %v1890_v12  ;;  %v1891_v17 = vmul.f32 0.5, %v1890_v12 }
 0x83d   : > { %v1893_v13 = vmul.f32 %v1892_v10, %v1890_v12 }
 0x83f   : > { %v1894_v11 = vmul.f32 %v1893_v13, %v1890_v12 }
 0x841   : > { %v1895_v15 = vadd.f32 %v1894_v11, %v1890_v12 }
 0x843   : > { %v1896_v16 = vmul.f32 0.7978846, %v1895_v15 }
 0x845   : > { %2342 = vtanh.f32 %v1896_v16 }
 0x852   : > { %v2343_v14 = vpop.eup %2342 }
 0x853   : > { %v1898_v18 = vadd.f32 1.0, %v2343_v14 }
 0x855   : > { %v1899_v19 = vmul.f32 %v1898_v18, %v1891_v17 }
 0x857   : > { %2320 = vmatmul.mubr.msk.f32.vlgmr.msra.gmra.mxu1 %vm1922_vm8, %v1899_v19 }
 0x917   : > { %v1996_v21 = vpop.f32.mrf.mxu1 }
 0x918   : > { %v1997_v22 = vadd.f32 %v2111_v20, %v1996_v21 }
 0x919   : > { %v2321_v23 = vpop.f32.mrf.mxu1 }
 0x91a   : > { %v2000_v24 = vadd.f32 %v1997_v22, %v2659_v31 }
 0x91c   : > { %2001 = vst.msk [vmem:[%s489_s27] sm:$0x3] %vm963_vm4, %v2000_v24 }
 0x91d PF: > { %s25_s18 = sadd.s32 1, %s2350_s18  }
 0x91e   : > { %p22_p4 = scmp.ge.s32.totalorder %s25_s18, 4  }
 0x920   :  { %24 = sbr.rel (!%p22_p4) target bundleno = 1 (0x1), region = 119 }

// kernel: fea_cnn_forward.11
= control target key start
LH: loop header
LB: loop body
LE: loop exit
PB: predicated region body
PF: predicated region fallthrough
CT: control target
= control target key end

     0   :  { %s1949_s24 = smov 0   ;;  %s2134_s0 = inlined_call_operand.vmem [shape: f32[2,25,16], index: 0, kind: input, shape index: {}]   ;;  %s2135_s1 = inlined_call_operand.vmem [shape: f32[2,12,16], index: 1, kind: input, shape index: {}]   ;;  %s2136_s2 = inlined_call_operand.vmem [shape: f32[2,5,32], index: 2, kind: input, shape index: {}]   ;;  %s2137_s3 = inlined_call_operand.vmem [shape: f32[2,2,32], index: 3, kind: input, shape index: {}]   ;;  %s2138_s4 = inlined_call_operand.vmem [shape: f32[16,16], index: 4, kind: input, shape index: {}]   ;;  %s2139_s5 = inlined_call_operand.vmem [shape: f32[1,16], index: 5, kind: input, shape index: {}]   ;;  %s2140_s6 = inlined_call_operand.vmem [shape: f32[16,16], index: 6, kind: input, shape index: {}]   ;;  %s2141_s7 = inlined_call_operand.vmem [shape: f32[1,16], index: 7, kind: input, shape index: {}]   ;;  %s2142_s8 = inlined_call_operand.vmem [shape: f32[32,16], index: 8, kind: input, shape index: {}]   ;;  %s2143_s9 = inlined_call_operand.vmem [shape: f32[1,16], index: 9, kind: input, shape index: {}]   ;;  %s2144_s10 = inlined_call_operand.vmem [shape: f32[32,16], index: 10, kind: input, shape index: {}]   ;;  %s2145_s11 = inlined_call_operand.vmem [shape: f32[1,16], index: 11, kind: input, shape index: {}]   ;;  %s2146_s12 = inlined_call_operand.vmem [shape: f32[25,12], index: 12, kind: input, shape index: {}]   ;;  %s2147_s13 = inlined_call_operand.vmem [shape: f32[12,5], index: 13, kind: input, shape index: {}]   ;;  %s2148_s14 = inlined_call_operand.vmem [shape: f32[5,2], index: 14, kind: input, shape index: {}]   ;;  %s2149_s15 = inlined_call_operand.vmem [shape: f32[3,16,16], index: 15, kind: input, shape index: {}]   ;;  %s2150_s16 = inlined_call_operand.vmem [shape: f32[1,16], index: 16, kind: input, shape index: {}]   ;;  %s2151_s17 = inlined_call_operand.vmem [shape: f32[2,23,16], index: 17, kind: output, shape index: {}]  }
   0x1   :  { %2152 = sst [smem:[#allocation2_spill]] %s2134_s0 }
   0x2   :  { %2153 = sst [smem:[#allocation3_spill]] %s2135_s1 }
   0x3 LB: > { %s1642_s25 = sadd.s32 4294967295, %s1855_s24   ;;  %p1646_p0 = scmp.ge.s32.totalorder %s1855_s24, 1  ;;  %s1855_s24 = sphi %s1949_s24, %s27_s24  }
   0x4   : > { %p515_p1 = scmp.lt.s32.totalorder %s1855_s24, 3 }
   0x6   : > { %p516_p2 = pnand %p1646_p0, %p515_p1 }
   0x7   : > { %p580_p3 = scmp.lt.s32.totalorder (!%p516_p2), %s1642_s25, 1  ;;  %s2154_s20 = sld [smem:[#allocation3_spill]] (!%p516_p2) }
   0x8   : > { %519 = sbr.rel (%p516_p2) target bundleno = 1032 (0x408), region = 88  ;;  %s2155_s22 = sld [smem:[#allocation2_spill]] (!%p516_p2) }
   0xd   : > { %v607_v0 = vld [vmem:[%s2144_s10 + $0x18] sm:$0xff]  ;;  %v1857_v1 = vmov 0.0   ;;  %v606_v2 = vld [vmem:[%s2144_s10 + $0x10] sm:$0xff]  ;;  %vm1858_vm0 = vmmov 0   ;;  %s2157_s25 = smov (!%p580_p3, %s1642_s25), 1  ;;  %v605_v5 = vld [vmem:[%s2144_s10 + $0x8] sm:$0xff] }
   0xe   : > { %1740 = vmatprep.subr.mxu0 %v1857_v1  ;;  %1748 = vmatprep.mubr.msk.f32.mxu0 %vm1858_vm0, %v1857_v1  ;;  %v693_v3 = vld [vmem:[%s2142_s8 + $0x18] sm:$0xff]  ;;  %v692_v4 = vld [vmem:[%s2142_s8 + $0x10] sm:$0xff]  ;;  %s1652_s21 = sshll.u32 %s2157_s25, 1  ;;  %v691_v6 = vld [vmem:[%s2142_s8 + $0x8] sm:$0xff]  ;;  %vm615_vm1 = vcmask 261120   ;;  %s1651_s19 = sshll.u32 %s2157_s25, 3 }
   0xf   : > { %1741 = vmatpush3.msra.mxu0 %v607_v0  ;;  %1751 = vmatprep.subr.mxu1 %v1857_v1  ;;  %v604_v7 = vld [vmem:[%s2144_s10] sm:$0xff]  ;;  %s597_s0 = scalar_lea.vmem %s2137_s3, %s1652_s21  ;;  %s593_s21 = scalar_lea.vmem %s2136_s2, %s1651_s19  ;;  %vm779_vm2 = vcmask 1041408   ;;  %vm775_vm3 = vcmask 15360   ;;  %v856_v15 = vld [vmem:[%s2140_s6 + $0x8] sm:$0xff]  ;;  %vm864_vm4 = vcmask 130048   ;;  %vm948_vm5 = vcmask 39936  }
  0x10   : > { %1742 = vmatprep.subr.mxu0 %v1857_v1  ;;  %1752 = vmatpush3.msra.mxu1 %v693_v3  ;;  %v603_v8 = vld [vmem:[%s597_s0] sm:$0x3]  ;;  %s1693_s18 = sshll.u32 %s2157_s25, 4  ;;  %vm955_vm6 = vcmask 1044480   ;;  %v947_v28 = vld [vmem:[%s2147_s13 + $0x8] sm:$0xf] }
  0x11   : > { %1743 = vmatpush3.msra.mxu0 %v606_v2  ;;  %1753 = vmatprep.subr.mxu1 %v1857_v1  ;;  %v690_v9 = vld [vmem:[%s2142_s8] sm:$0xff]  ;;  %v1039_v29 = vld [vmem:[%s2138_s4 + $0x8] sm:$0xff]  ;;  %vm1148_vm7 = vcmask 97280   ;;  %vm1161_vm8 = vcmask 1043456   ;;  %v1146_v46 = vld [vmem:[%s2146_s12 + $0x10] sm:$0xff]  ;;  %vm1258_vm9 = vcmask 1046528  }
  0x12   : > { %1744 = vmatprep.subr.mxu0 %v1857_v1  ;;  %1754 = vmatpush3.msra.mxu1 %v692_v4  ;;  %v689_v10 = vld [vmem:[%s593_s21] sm:$0x1f]  ;;  %s589_s21 = scalar_lea.vmem %s2154_s20, %s1693_s18  ;;  %s1692_s18 = sshll.u32 %s2157_s25, 5  ;;  %v1145_v45 = vld [vmem:[%s2146_s12 + $0x8] sm:$0xff]  ;;  %v1147_v47 = vld [vmem:[%s2146_s12 + $0x18] sm:$0x1] }
  0x13   : > { %1745 = vmatpush3.msra.mxu0 %v605_v5  ;;  %1755 = vmatprep.subr.mxu1 %v1857_v1  ;;  %v1654_v11 = vld [vmem:[%s2145_s11] ss:$0 sm:$0xff]  ;;  %v854_v21 = vld [vmem:[%s589_s21 + $0x8] sm:$0xf]  ;;  %s584_s23 = scalar_lea.vmem %s2155_s22, %s1692_s18  ;;  %v1677_v50 = vld [vmem:[%s2149_s15 + $0x18] sm:$0xff]  ;;  %vm1440_vm10 = vcmask 1045504  }
  0x14   : > { %1746 = vmatprep.subr.mxu0 %v1857_v1  ;;  %1756 = vmatpush3.msra.mxu1 %v691_v6  ;;  %v774_v14 = vld [vmem:[%s2148_s14] sm:$0x1f]  ;;  %v1035_v32 = vld [vmem:[%s584_s23 + $0x8] sm:$0xff]  ;;  %v1036_v34 = vld [vmem:[%s584_s23 + $0x10] sm:$0xff]  ;;  %s1838_s22 = smul.u32 24, %s2157_s25  ;;  %vm1549_vm11 = vcmask 129024  }
  0x15   : > { %1747 = vmatpush3.msra.mxu0 %v604_v7  ;;  %1757 = vmatprep.subr.mxu1 %v1857_v1  ;;  %v855_v17 = vld [vmem:[%s2140_s6] sm:$0xff]  ;;  %v1037_v35 = vld [vmem:[%s584_s23 + $0x18] sm:$0x1]  ;;  %v1251_v48 = vld [vmem:[%s2149_s15 + $0x8] sm:$0xff] }
  0x16   : > { %1749 = vmatmul.mubr.msk.f32.vlgmr.msra.gmra.mxu0 %vm615_vm1, %v603_v8  ;;  %1758 = vmatpush3.msra.mxu1 %v690_v9  ;;  %v853_v19 = vld [vmem:[%s589_s21] sm:$0xff]  ;;  %v1676_v51 = vld [vmem:[%s2149_s15 + $0x10] sm:$0xff]  ;;  %v1685_v7 = vld [vmem:[%s2149_s15 + $0x28] sm:$0xff]  ;;  %s602_s29 = scalar_lea.vmem %s2151_s17, %s1838_s22 }
  0x17   : > { %1759 = vmatprep.mubr.msk.f32.mxu1 %vm1858_vm0, %v1857_v1  ;;  %1762 = vmatprep.subr.mxu0 %v1857_v1  ;;  %v946_v22 = vld [vmem:[%s2147_s13] sm:$0xff] }
  0x18   : > { %1764 = vmatprep.mubr.msk.f32.mxu0 %vm1858_vm0, %v1857_v1  ;;  %1760 = vmatmul.mubr.msk.f32.vlgmr.msra.gmra.mxu1 %vm615_vm1, %v689_v10  ;;  %v1656_v23 = vld [vmem:[%s2143_s9] ss:$0 sm:$0xff] }
  0x19   : > { %1779 = vmatprep.subr.mxu1 %v1039_v29  ;;  %v1038_v30 = vld [vmem:[%s2138_s4] sm:$0xff] }
  0x1a   : > { %1780 = vmatpush3.msra.mxu1 %v1039_v29  ;;  %v1034_v31 = vld [vmem:[%s584_s23] sm:$0xff] }
  0x1b   : > { %1781 = vmatprep.subr.mxu1 %v1038_v30  ;;  %1783 = vmatprep.mubr.msk.f32.mxu1 %vm864_vm4, %v1034_v31  ;;  %v1144_v33 = vld [vmem:[%s2146_s12] sm:$0xff] }
  0x1c   : > { %1782 = vmatpush3.msra.mxu1 %v1038_v30  ;;  %v1660_v37 = vld [vmem:[%s2141_s7] ss:$0 sm:$0xff] }
  0x1d   : > { %1784 = vmatmul.mubr.msk.f32.vlgmr.msra.gmra.mxu1 %vm864_vm4, %v1035_v32  ;;  %1799 = vmatprep.subr.mxu1 %v1857_v1  ;;  %v1250_v49 = vld [vmem:[%s2149_s15] sm:$0xff] }
  0x1e   : > { %1786 = vmatprep.mubr.msk.f32.mxu1 %vm864_vm4, %v1036_v34  ;;  %1800 = vmatpush3.msra.mxu1 %v1677_v50  ;;  %v1666_v53 = vld [vmem:[%s2139_s5] ss:$0 sm:$0xff] }
  0x1f   : > { %1801 = vmatprep.subr.mxu1 %v1857_v1  ;;  %v1684_v10 = vld [vmem:[%s2149_s15 + $0x20] sm:$0xff] }
  0x20   : > { %1802 = vmatpush3.msra.mxu1 %v1676_v51 }
  0x21   : > { %1787 = vmatmul.mubr.msk.f32.gmra.mxu1 %vm864_vm4, %v1037_v35  ;;  %1825 = vmatprep.subr.mxu1 %v1857_v1 }
  0x22   : > { %1803 = vmatprep.mubr.msk.f32.mxu1 %vm1858_vm0, %v1857_v1 }
  0xd6   : > { %v685_v12 = vpop.f32.mrf.mxu0 }
  0xd7   : > { %v686_v13 = vadd.f32 %v1654_v11, %v685_v12 }
  0xd8   : > { %v1750_v16 = vpop.f32.mrf.mxu0  ;;  %v770_v18 = vpop.f32.mrf.mxu1 }
  0xd9   : > { %1763 = vmatpush3.msk.msra.mxu0 %vm779_vm2, %v686_v13  ;;  %v771_v24 = vadd.f32 %v1656_v23, %v770_v18 }
  0xda   : > { %1765 = vmatmul.mubr.msk.f32.vlgmr.msra.gmra.mxu0 %vm775_vm3, %v774_v14  ;;  %1767 = vmatprep.subr.mxu0 %v856_v15  ;;  %v1761_v20 = vpop.f32.mrf.mxu1 }
  0xdb   : > { %1768 = vmatpush3.msra.mxu0 %v856_v15  ;;  %1771 = vmatprep.mubr.msk.f32.mxu0 %vm864_vm4, %v853_v19 }
  0xdc   : > { %1769 = vmatprep.subr.mxu0 %v855_v17 }
  0xdd   : > { %1770 = vmatpush3.msra.mxu0 %v855_v17  ;;  %v1785_v52 = vpop.f32.mrf.mxu1 }
  0xde   : > { %1772 = vmatmul.mubr.msk.f32.vlgmr.msra.gmra.mxu0 %vm864_vm4, %v854_v21  ;;  %v1131_v55 = vadd.f32 %v1785_v52, %v1666_v53 }
  0xdf   : > { %1776 = vmatprep.mubr.msk.f32.mxu0 %vm948_vm5, %v946_v22  ;;  %v1125_v54 = vpop.f32.mrf.mxu1 }
  0xe0   : > { %v1126_v58 = vadd.f32 %v1666_v53, %v1125_v54 }
  0xe1   : > { %v1788_v56 = vpop.f32.mrf.mxu1 }
  0xe2   : > { %v1141_v13 = vadd.f32 %v1788_v56, %v1666_v53 }
  0xe3   : > { %v1135_v61 = vpop.f32.mrf.mxu1 }
  0xe4   : > { %v1136_v3 = vadd.f32 %v1666_v53, %v1135_v61 }
 0x19a   : > { %v849_v25 = vpop.f32.mrf.mxu0 }
 0x19b   : > { %v850_v26 = vadd.f32 %v849_v25, %v771_v24 }
 0x19c   : > { %v1766_v27 = vpop.f32.mrf.mxu0 }
 0x19d   : > { %1774 = vmatprep.subr.msk.mxu0 %vm955_vm6, %v850_v26 }
 0x19e   : > { %1775 = vmatpush3.msk.msra.mxu0 %vm955_vm6, %v850_v26  ;;  %v1773_v36 = vpop.f32.mrf.mxu0 }
 0x19f   : > { %1777 = vmatmul.mubr.msk.f32.vlgmr.msra.gmra.mxu0 %vm948_vm5, %v947_v28  ;;  %v943_v39 = vadd.f32 %v1773_v36, %v1660_v37 }
 0x1a0   : > { %1793 = vmatprep.mubr.msk.f32.mxu0 %vm1148_vm7, %v1144_v33  ;;  %v937_v38 = vpop.f32.mrf.mxu0 }
 0x1a1   : > { %v938_v41 = vadd.f32 %v1660_v37, %v937_v38 }
 0x25f   : > { %v1778_v40 = vpop.f32.mrf.mxu0 }
 0x260   : > { %v1031_v42 = vadd.f32 %v1778_v40, %v943_v39 }
 0x261   : > { %v1025_v43 = vpop.f32.mrf.mxu0 }
 0x262   : > { %v1026_v44 = vadd.f32 %v1025_v43, %v938_v41  ;;  %1789 = vmatprep.subr.msk.mxu0 %vm1161_vm8, %v1031_v42 }
 0x263   : > { %1790 = vmatpush3.msk.msra.mxu0 %vm1161_vm8, %v1031_v42 }
 0x264   : > { %1791 = vmatprep.subr.mxu0 %v1026_v44 }
 0x265   : > { %1792 = vmatpush3.msra.mxu0 %v1026_v44 }
 0x266   : > { %1794 = vmatmul.mubr.msk.f32.vlgmr.msra.gmra.mxu0 %vm1148_vm7, %v1145_v45  ;;  %1812 = vmatprep.subr.mxu0 %v1857_v1 }
 0x267   : > { %1796 = vmatprep.mubr.msk.f32.mxu0 %vm1148_vm7, %v1146_v46  ;;  %1813 = vmatpush3.msra.mxu0 %v1251_v48 }
 0x268   : > { %1814 = vmatprep.subr.mxu0 %v1857_v1 }
 0x269   : > { %1815 = vmatpush3.msra.mxu0 %v1250_v49 }
 0x26a   : > { %1797 = vmatmul.mubr.msk.f32.gmra.mxu0 %vm1148_vm7, %v1147_v47 }
 0x26b   : > { %1816 = vmatprep.mubr.msk.f32.mxu0 %vm1858_vm0, %v1857_v1 }
 0x326   : > { %v1795_v57 = vpop.f32.mrf.mxu0 }
 0x327   : > { %v1237_v59 = vadd.f32 %v1795_v57, %v1131_v55 }
 0x328   : > { %v1231_v60 = vpop.f32.mrf.mxu0 }
 0x329   : > { %v1232_v62 = vadd.f32 %v1231_v60, %v1126_v58  ;;  %v1260_v0 = vrot.slane %v1237_v59, 1  ;;  %v1442_v12 = vrot.slane %v1237_v59, 2 }
 0x32a   : > { %v1798_v63 = vpop.f32.mrf.mxu0 }
 0x32b   : > { %v1259_v2 = vrot.slane %v1232_v62, 1  ;;  %1817 = vmatmul.mubr.msk.f32.vlgmr.msra.gmra.mxu0 %vm864_vm4, %v1232_v62  ;;  %v1441_v11 = vrot.slane %v1232_v62, 2  ;;  %v1247_v16 = vadd.f32 %v1798_v63, %v1141_v13 }
 0x32c   : > { %v1241_v4 = vpop.f32.mrf.mxu0  ;;  %1819 = vmatprep.mubr.msk.f32.mxu0 %vm1858_vm0, %v1857_v1 }
 0x32d   : > { %v1242_v5 = vadd.f32 %v1241_v4, %v1136_v3  ;;  %v1261_v6 = vsel %vm1258_vm9, %v1259_v2, %v1260_v0  ;;  %v1443_v15 = vsel %vm1440_vm10, %v1441_v11, %v1442_v12  ;;  %v1446_v18 = vrot.slane %v1247_v16, 2 }
 0x32e   : > { %1804 = vmatmul.mubr.msk.f32.vlgmr.msra.gmra.mxu1 %vm864_vm4, %v1261_v6 }
 0x32f   : > { %v1262_v8 = vrot.slane %v1242_v5, 1  ;;  %1820 = vmatmul.mubr.msk.f32.gmra.mxu0 %vm864_vm4, %v1237_v59  ;;  %1806 = vmatprep.mubr.msk.f32.mxu1 %vm1858_vm0, %v1857_v1  ;;  %v1444_v14 = vrot.slane %v1242_v5, 2 }
 0x330   : > { %1826 = vmatpush3.msra.mxu1 %v1685_v7  ;;  %1822 = vmatprep.mubr.msk.f32.mxu0 %vm1858_vm0, %v1857_v1 }
 0x331   : > { %v1263_v9 = vsel %vm1258_vm9, %v1260_v0, %v1262_v8  ;;  %1827 = vmatprep.subr.mxu1 %v1857_v1  ;;  %v1445_v17 = vsel %vm1440_vm10, %v1442_v12, %v1444_v14  ;;  %v1447_v19 = vsel %vm1440_vm10, %v1444_v14, %v1446_v18 }
 0x332   : > { %1807 = vmatmul.mubr.msk.f32.gmra.mxu1 %vm864_vm4, %v1263_v9 }
 0x333   : > { %1823 = vmatmul.mubr.msk.f32.gmra.mxu0 %vm864_vm4, %v1242_v5  ;;  %1809 = vmatprep.mubr.msk.f32.mxu1 %vm1858_vm0, %v1857_v1 }
 0x334   : > { %1828 = vmatpush3.msra.mxu1 %v1684_v10 }
 0x336   : > { %1810 = vmatmul.mubr.msk.f32.gmra.mxu1 %vm864_vm4, %v1262_v8 }
 0x337   : > { %1829 = vmatprep.mubr.msk.f32.mxu1 %vm1858_vm0, %v1857_v1 }
 0x33a   : > { %1830 = vmatmul.mubr.msk.f32.vlgmr.msra.gmra.mxu1 %vm864_vm4, %v1443_v15 }
 0x33b   : > { %1832 = vmatprep.mubr.msk.f32.mxu1 %vm1858_vm0, %v1857_v1 }
 0x33e   : > { %1833 = vmatmul.mubr.msk.f32.gmra.mxu1 %vm864_vm4, %v1445_v17 }
 0x33f   : > { %1835 = vmatprep.mubr.msk.f32.mxu1 %vm1858_vm0, %v1857_v1  ;;  %v1689_v1 = vld [vmem:[%s2150_s16] ss:$0 sm:$0xff] }
 0x342   : > { %1836 = vmatmul.mubr.msk.f32.gmra.mxu1 %vm864_vm4, %v1447_v19 }
 0x3eb   : > { %v1422_v20 = vpop.f32.mrf.mxu0 }
 0x3ed   : > { %v1818_v21 = vpop.f32.mrf.mxu0 }
 0x3ee   : > { %v1336_v22 = vpop.f32.mrf.mxu1 }
 0x3ef   : > { %v1427_v23 = vpop.f32.mrf.mxu0  ;;  %v1423_v32 = vadd.f32 %v1422_v20, %v1336_v22 }
 0x3f0   : > { %v1805_v24 = vpop.f32.mrf.mxu1 }
 0x3f1   : > { %v1821_v25 = vpop.f32.mrf.mxu0 }
 0x3f2   : > { %v1341_v26 = vpop.f32.mrf.mxu1 }
 0x3f3   : > { %v1432_v27 = vpop.f32.mrf.mxu0  ;;  %v1428_v36 = vadd.f32 %v1427_v23, %v1341_v26 }
 0x3f4   : > { %v1808_v28 = vpop.f32.mrf.mxu1 }
 0x3f5   : > { %v1824_v29 = vpop.f32.mrf.mxu0 }
 0x3f6   : > { %v1346_v30 = vpop.f32.mrf.mxu1 }
 0x3f7   : > { %v1433_v41 = vadd.f32 %v1432_v27, %v1346_v30 }
 0x3f8   : > { %v1811_v31 = vpop.f32.mrf.mxu1 }
 0x3fa   : > { %v1520_v33 = vpop.f32.mrf.mxu1 }
 0x3fb   : > { %v1534_v34 = vadd.f32 %v1520_v33, %v1423_v32 }
 0x3fc   : > { %v1831_v35 = vpop.f32.mrf.mxu1 }
 0x3fd   : > { %v1544_v37 = vadd.f32 %v1689_v1, %v1534_v34 }
 0x3fe   : > { %v1525_v38 = vpop.f32.mrf.mxu1 }
 0x3ff   : > { %1547 = vst.msk [vmem:[%s602_s29] sm:$0xff] %vm864_vm4, %v1544_v37  ;;  %v1535_v39 = vadd.f32 %v1525_v38, %v1428_v36 }
 0x400   : > { %v1834_v40 = vpop.f32.mrf.mxu1 }
 0x401   : > { %v1545_v42 = vadd.f32 %v1689_v1, %v1535_v39 }
 0x402   : > { %v1530_v43 = vpop.f32.mrf.mxu1 }
 0x403   : > { %1548 = vst.msk [vmem:[%s602_s29 + $0x8] sm:$0xff] %vm864_vm4, %v1545_v42  ;;  %v1536_v44 = vadd.f32 %v1530_v43, %v1433_v41 }
 0x404   : > { %v1837_v45 = vpop.f32.mrf.mxu1 }
 0x405   : > { %v1546_v46 = vadd.f32 %v1689_v1, %v1536_v44 }
 0x407   : > { %1550 = vst.msk [vmem:[%s602_s29 + $0x10] sm:$0x7f] %vm1549_vm11, %v1546_v46 }
 0x408 PF: > { %s27_s24 = sadd.s32 1, %s1855_s24  }
 0x409   : > { %p24_p4 = scmp.ge.s32.totalorder %s27_s24, 4  }
 0x40b   :  { %26 = sbr.rel (!%p24_p4) target bundleno = 3 (0x3), region = 129 }

</bundles_post_ra>
